<compile_context>
chip_gen: v6e
topology: v6e:2x2x1
jax: 0.10.0
libtpu: 0.0.40
codegen_flags: <defaults>
</compile_context>

<pallas_src>
import functools

import jax
import jax.numpy as jnp
from jax.experimental import pallas as pl
from jax.experimental.pallas import tpu as pltpu


def _pick_row_tile(rows):
    for rt in (512, 256, 128, 64, 32, 16, 8):
        if rows % rt == 0:
            return rt
    return rows


def _pick_time_chunk(seq, batch):
    # Largest chunk (bounded unroll) such that the (tc*B, D) block satisfies the sublane rule.
    for tc in (16, 8, 4, 2, 1):
        if seq % tc == 0 and (tc * batch) % 8 == 0:
            return tc
    return seq  # fall back: single chunk spanning the full sequence (block == full array dims)


# ----------------------------------------------------------------------------
# Fused bidirectional LSTM layer:
#   - grid iterates sequentially over time chunks (Tc timesteps per step),
#   - per chunk: input projection for BOTH directions on the MXU (gates gx = x W_ih^T + b),
#   - then an unrolled per-timestep loop runs the fwd cell (chunk c) and the bwd cell
#     (chunk nc-1-c, walked in reverse) with (h, c) carried in VMEM scratch.
# All tensors are 2-D time-major: row = t*B + b.  PyTorch gate order: i, f, g, o.
# ----------------------------------------------------------------------------
def _bilstm_fused_kernel(*refs, n_in, hidden, chunk, batch, mm_dtype):
    i = 0
    xf = refs[i:i + n_in]; i += n_in          # fwd-chunk view of each input slab
    xb = refs[i:i + n_in]; i += n_in          # bwd-chunk (time-reversed) view of each input
    wf = refs[i:i + n_in]; i += n_in          # W_ih^T pieces, forward direction (resident)
    wb = refs[i:i + n_in]; i += n_in          # W_ih^T pieces, backward direction (resident)
    bf_ref, bb_ref, whtf_ref, whtb_ref = refs[i:i + 4]; i += 4
    of_ref, ob_ref = refs[i:i + 2]; i += 2
    hf_scr, cf_scr, hb_scr, cb_scr, gf_scr, gb_scr = refs[i:i + 6]

    H = hidden
    B = batch
    c = pl.program_id(0)

    @pl.when(c == 0)
    def _():
        hf_scr[...] = jnp.zeros_like(hf_scr)
        cf_scr[...] = jnp.zeros_like(cf_scr)
        hb_scr[...] = jnp.zeros_like(hb_scr)
        cb_scr[...] = jnp.zeros_like(cb_scr)

    # --- chunk input projection, both directions (hoisted out of the per-timestep loop;
    #     one (Tc*B, D) x (D, 4H) matmul per input slab per direction) ---
    gf = bf_ref[...].astype(jnp.float32)       # (1, 4H): b_ih + b_hh, broadcasts over rows
    gb = bb_ref[...].astype(jnp.float32)
    for x_f, x_b, w_f, w_b in zip(xf, xb, wf, wb):
        gf = gf + jnp.dot(x_f[...].astype(mm_dtype), w_f[...].astype(mm_dtype),
                          preferred_element_type=jnp.float32)
        gb = gb + jnp.dot(x_b[...].astype(mm_dtype), w_b[...].astype(mm_dtype),
                          preferred_element_type=jnp.float32)
    gf_scr[...] = gf
    gb_scr[...] = gb

    # Pre-transposed recurrent weights (H, 4H), loaded once per grid step (not per timestep).
    whtf = whtf_ref[...].astype(mm_dtype)
    whtb = whtb_ref[...].astype(mm_dtype)

    def cell(gx, h_prev, c_prev, wht):
        gates = gx + jnp.dot(h_prev.astype(mm_dtype), wht,
                             preferred_element_type=jnp.float32)
        i_g = jax.nn.sigmoid(gates[:, 0 * H:1 * H])
        f_g = jax.nn.sigmoid(gates[:, 1 * H:2 * H])
        g_g = jnp.tanh(gates[:, 2 * H:3 * H])
        o_g = jax.nn.sigmoid(gates[:, 3 * H:4 * H])
        c_new = f_g * c_prev + i_g * g_g
        h_new = o_g * jnp.tanh(c_new)
        return h_new, c_new

    # Unrolled inner time loop over the chunk: static row ranges, dense chunk writeback.
    for k in range(chunk):
        # forward: local step k == global time c*chunk + k
        r0 = k * B
        h_new, c_new = cell(gf_scr[r0:r0 + B, :], hf_scr[...], cf_scr[...], whtf)
        hf_scr[...] = h_new
        cf_scr[...] = c_new
        of_ref[r0:r0 + B, :] = h_new.astype(of_ref.dtype)

        # backward walks its (time-reversed) chunk from the end
        rb = (chunk - 1 - k) * B
        h_new, c_new = cell(gb_scr[rb:rb + B, :], hb_scr[...], cb_scr[...], whtb)
        hb_scr[...] = h_new
        cb_scr[...] = c_new
        ob_ref[rb:rb + B, :] = h_new.astype(ob_ref.dtype)


def bilstm_layer(inputs, wT_ih_f, wT_ih_b, b_f, b_b, wT_hh_f, wT_hh_b, *,
                 seq_len, batch, mm_dtype):
    """One bidirectional LSTM layer.

    inputs      : list of time-major 2-D slabs (S*B, D_i); their feature concat is the layer
                  input (layer 0: [x]; layer l>0: [h_fwd_prev, h_bwd_prev] -> no concat needed).
    wT_ih_f/b   : matching list of pre-transposed input weights (D_i, 4H) per direction.
    Returns (h_fwd, h_bwd), each (S*B, H) time-major.
    """
    S, B = seq_len, batch
    G = wT_hh_f.shape[1]
    H = G // 4
    tc = _pick_time_chunk(S, B)
    nc = S // tc
    rows = tc * B
    n_in = len(inputs)

    in_specs = []
    for x in inputs:                                   # forward-chunk views
        in_specs.append(pl.BlockSpec((rows, x.shape[-1]), lambda c: (c, 0)))
    for x in inputs:                                   # backward-chunk (reversed) views
        in_specs.append(pl.BlockSpec((rows, x.shape[-1]), lambda c: (nc - 1 - c, 0)))
    for w in list(wT_ih_f) + list(wT_ih_b):            # resident weights
        in_specs.append(pl.BlockSpec(w.shape, lambda c: (0, 0)))
    in_specs += [
        pl.BlockSpec((1, G), lambda c: (0, 0)),        # bias fwd (b_ih + b_hh)
        pl.BlockSpec((1, G), lambda c: (0, 0)),        # bias bwd
        pl.BlockSpec((H, G), lambda c: (0, 0)),        # W_hh^T fwd (resident)
        pl.BlockSpec((H, G), lambda c: (0, 0)),        # W_hh^T bwd (resident)
    ]

    kernel = functools.partial(_bilstm_fused_kernel, n_in=n_in, hidden=H,
                               chunk=tc, batch=B, mm_dtype=mm_dtype)
    return pl.pallas_call(
        kernel,
        out_shape=(jax.ShapeDtypeStruct((S * B, H), jnp.float32),
                   jax.ShapeDtypeStruct((S * B, H), jnp.float32)),
        grid_spec=pltpu.PrefetchScalarGridSpec(
            num_scalar_prefetch=0,
            grid=(nc,),
            in_specs=in_specs,
            out_specs=[
                pl.BlockSpec((rows, H), lambda c: (c, 0)),            # h fwd chunk
                pl.BlockSpec((rows, H), lambda c: (nc - 1 - c, 0)),   # h bwd chunk (reversed)
            ],
            scratch_shapes=[
                pltpu.VMEM((B, H), jnp.float32),       # h fwd
                pltpu.VMEM((B, H), jnp.float32),       # c fwd
                pltpu.VMEM((B, H), jnp.float32),       # h bwd
                pltpu.VMEM((B, H), jnp.float32),       # c bwd
                pltpu.VMEM((rows, G), jnp.float32),    # gates, fwd chunk
                pltpu.VMEM((rows, G), jnp.float32),    # gates, bwd chunk
            ],
        ),
        compiler_params=pltpu.CompilerParams(
            dimension_semantics=("arbitrary",),        # recurrence over time chunks: sequential
        ),
    )(*inputs, *inputs,
      *wT_ih_f, *wT_ih_b,
      b_f.reshape(1, -1), b_b.reshape(1, -1),
      wT_hh_f, wT_hh_b)


# ----------------------------------------------------------------------------
# Tiled LayerNorm over the concatenation [h_fwd, h_bwd]; fuses the final concat.
# eps = 1e-5 (torch default).
# ----------------------------------------------------------------------------
def _ln_concat_kernel(hf_ref, hb_ref, g_ref, b_ref, o_ref, *, hidden, eps):
    hf = hf_ref[...].astype(jnp.float32)
    hb = hb_ref[...].astype(jnp.float32)
    d = 2.0 * hidden
    mean = (jnp.sum(hf, axis=-1, keepdims=True) + jnp.sum(hb, axis=-1, keepdims=True)) / d
    df = hf - mean
    db = hb - mean
    var = (jnp.sum(df * df, axis=-1, keepdims=True)
           + jnp.sum(db * db, axis=-1, keepdims=True)) / d
    inv = jax.lax.rsqrt(var + eps)
    g = g_ref[...]
    b = b_ref[...]
    o_ref[:, 0:hidden] = (df * inv * g[:, 0:hidden] + b[:, 0:hidden]).astype(o_ref.dtype)
    o_ref[:, hidden:2 * hidden] = (db * inv * g[:, hidden:2 * hidden]
                                   + b[:, hidden:2 * hidden]).astype(o_ref.dtype)


def layer_norm_concat(hf2d, hb2d, gamma, beta, *, eps=1e-5):
    R, H = hf2d.shape
    D = 2 * H
    rt = _pick_row_tile(R)
    kernel = functools.partial(_ln_concat_kernel, hidden=H, eps=eps)
    return pl.pallas_call(
        kernel,
        out_shape=jax.ShapeDtypeStruct((R, D), jnp.float32),
        grid_spec=pltpu.PrefetchScalarGridSpec(
            num_scalar_prefetch=0,
            grid=(R // rt,),
            in_specs=[
                pl.BlockSpec((rt, H), lambda i: (i, 0)),
                pl.BlockSpec((rt, H), lambda i: (i, 0)),
                pl.BlockSpec((1, D), lambda i: (0, 0)),
                pl.BlockSpec((1, D), lambda i: (0, 0)),
            ],
            out_specs=pl.BlockSpec((rt, D), lambda i: (i, 0)),
        ),
        compiler_params=pltpu.CompilerParams(dimension_semantics=("parallel",)),
    )(hf2d, hb2d, gamma.reshape(1, -1), beta.reshape(1, -1))


# ----------------------------------------------------------------------------
# Parameters and forward pass.
# ----------------------------------------------------------------------------
def init_params(key, layer_num, emb_dim, hid_dim, use_layer_norm):
    H = hid_dim // 2
    scale = 1.0 / float(H) ** 0.5
    params = {"layers": []}
    for l in range(layer_num):
        # Layer 0 consumes x; layer l>0 consumes [h_fwd_prev, h_bwd_prev] (W_ih^T split rows).
        part_dims = [emb_dim] if l == 0 else [H, H]
        layer = {}
        for d in ("fwd", "bwd"):
            key, kh, kb1, kb2 = jax.random.split(key, 4)
            parts = []
            for pd in part_dims:
                key, kw = jax.random.split(key)
                # Pre-transposed, lane-last layout: W_ih^T piece (pd, 4H).
                parts.append(jax.random.uniform(kw, (pd, 4 * H), jnp.float32, -scale, scale))
            layer[d] = {
                "wT_ih_parts": parts,
                "wT_hh": jax.random.uniform(kh, (H, 4 * H), jnp.float32, -scale, scale),
                # b = b_ih + b_hh, folded into the gate precomputation.
                "b": (jax.random.uniform(kb1, (4 * H,), jnp.float32, -scale, scale)
                      + jax.random.uniform(kb2, (4 * H,), jnp.float32, -scale, scale)),
            }
        params["layers"].append(layer)
    if use_layer_norm:
        params["ln_gamma"] = jnp.ones((hid_dim,), jnp.float32)
        params["ln_beta"] = jnp.zeros((hid_dim,), jnp.float32)
    return params


def basic_rnn_forward(params, x, *, use_layer_norm, droprate, mm_dtype=jnp.float32):
    B, S, E = x.shape
    # Time-major 2-D layout (row = t*B + b): keeps every kernel operand a lane-dense 2-D slab
    # and makes per-timestep accesses contiguous row ranges.  Only transposes: here and at end.
    inputs = [jnp.transpose(x, (1, 0, 2)).reshape(S * B, E)]
    hf = hb = None
    for layer in params["layers"]:
        f, bwd = layer["fwd"], layer["bwd"]
        hf, hb = bilstm_layer(inputs, f["wT_ih_parts"], bwd["wT_ih_parts"],
                              f["b"], bwd["b"], f["wT_hh"], bwd["wT_hh"],
                              seq_len=S, batch=B, mm_dtype=mm_dtype)
        inputs = [hf, hb]        # next layer consumes both halves directly (no concat)

    if use_layer_norm:
        out2d = layer_norm_concat(hf, hb, params["ln_gamma"], params["ln_beta"])
    else:
        out2d = jnp.concatenate([hf, hb], axis=-1)
    out = jnp.transpose(out2d.reshape(S, B, -1), (1, 0, 2))
    # droprate > 0: F.dropout in eval mode is identity.
    # TODO(synk): training-mode dropout not implemented.
    return out


if __name__ == "__main__":
    # Module config
    layer_num = 2
    emb_dim = 16
    hid_dim = 32          # bidirectional: hidden per direction = 16
    droprate = 0.5
    use_layer_norm = True

    # Small deterministic inputs: (batch, seq, emb_dim)
    B, S = 2, 16
    key = jax.random.PRNGKey(0)
    kx, kp = jax.random.split(key)
    x = jax.random.normal(kx, (B, S, emb_dim), jnp.float32)

    params = init_params(kp, layer_num, emb_dim, hid_dim, use_layer_norm)

    fwd = jax.jit(functools.partial(basic_rnn_forward,
                                    use_layer_norm=use_layer_norm,
                                    droprate=droprate,
                                    mm_dtype=jnp.float32))
    out = fwd(params, x)
    out = jax.block_until_ready(out)

    assert out.shape == (B, S, hid_dim), out.shape
    assert bool(jnp.all(jnp.isfinite(out)))
    print("KERNEL_OK")
</pallas_src>

<mosaic_0001>
module attributes {stable_mosaic.version = 11 : i64} {
  func.func @_ln_concat_kernel(%arg0: i32, %arg1: memref<32x16xf32, #tpu.memory_space<vmem>>, %arg2: memref<32x16xf32, #tpu.memory_space<vmem>>, %arg3: memref<1x32xf32, #tpu.memory_space<vmem>>, %arg4: memref<1x32xf32, #tpu.memory_space<vmem>>, %arg5: memref<32x32xf32, #tpu.memory_space<vmem>>) attributes {dimension_semantics = [#tpu.dimension_semantics<parallel>], iteration_bounds = array<i64: 1>, scalar_prefetch = 0 : i64, scratch_operands = 0 : i64, tpu.core_type = #tpu.core_type<tc>, window_params = [{transform_indices = @transform_0, window_bounds = array<i64: 32, 16>}, {transform_indices = @transform_1, window_bounds = array<i64: 32, 16>}, {pipeline_mode = #tpu.pipeline_mode<synchronous>, transform_indices = @transform_2, window_bounds = array<i64: 1, 32>}, {pipeline_mode = #tpu.pipeline_mode<synchronous>, transform_indices = @transform_3, window_bounds = array<i64: 1, 32>}, {transform_indices = @transform_4, window_bounds = array<i64: 32, 32>}]} {
    %c0 = arith.constant 0 : index
    %c0_0 = arith.constant 0 : index
    %0 = vector.load %arg1[%c0, %c0_0] : memref<32x16xf32, #tpu.memory_space<vmem>>, vector<32x16xf32>
    %c0_1 = arith.constant 0 : index
    %c0_2 = arith.constant 0 : index
    %1 = vector.load %arg2[%c0_1, %c0_2] : memref<32x16xf32, #tpu.memory_space<vmem>>, vector<32x16xf32>
    %cst = arith.constant dense<0.000000e+00> : vector<32xf32>
    %2 = vector.multi_reduction <add>, %0, %cst [1] : vector<32x16xf32> to vector<32xf32>
    %3 = vector.shape_cast %2 : vector<32xf32> to vector<32x1xf32>
    %cst_3 = arith.constant dense<0.000000e+00> : vector<32xf32>
    %4 = vector.multi_reduction <add>, %1, %cst_3 [1] : vector<32x16xf32> to vector<32xf32>
    %5 = vector.shape_cast %4 : vector<32xf32> to vector<32x1xf32>
    %6 = arith.addf %3, %5 : vector<32x1xf32>
    %cst_4 = arith.constant 3.200000e+01 : f32
    %7 = vector.broadcast %cst_4 : f32 to vector<32x1xf32>
    %8 = arith.divf %6, %7 : vector<32x1xf32>
    %9 = vector.broadcast %8 : vector<32x1xf32> to vector<32x16xf32>
    %10 = arith.subf %0, %9 : vector<32x16xf32>
    %11 = vector.broadcast %8 : vector<32x1xf32> to vector<32x16xf32>
    %12 = arith.subf %1, %11 : vector<32x16xf32>
    %13 = arith.mulf %10, %10 : vector<32x16xf32>
    %cst_5 = arith.constant dense<0.000000e+00> : vector<32xf32>
    %14 = vector.multi_reduction <add>, %13, %cst_5 [1] : vector<32x16xf32> to vector<32xf32>
    %15 = vector.shape_cast %14 : vector<32xf32> to vector<32x1xf32>
    %16 = arith.mulf %12, %12 : vector<32x16xf32>
    %cst_6 = arith.constant dense<0.000000e+00> : vector<32xf32>
    %17 = vector.multi_reduction <add>, %16, %cst_6 [1] : vector<32x16xf32> to vector<32xf32>
    %18 = vector.shape_cast %17 : vector<32xf32> to vector<32x1xf32>
    %19 = arith.addf %15, %18 : vector<32x1xf32>
    %cst_7 = arith.constant 3.200000e+01 : f32
    %20 = vector.broadcast %cst_7 : f32 to vector<32x1xf32>
    %21 = arith.divf %19, %20 : vector<32x1xf32>
    %cst_8 = arith.constant 9.99999974E-6 : f32
    %22 = vector.broadcast %cst_8 : f32 to vector<32x1xf32>
    %23 = arith.addf %21, %22 : vector<32x1xf32>
    %24 = math.rsqrt %23 : vector<32x1xf32>
    %c0_9 = arith.constant 0 : index
    %c0_10 = arith.constant 0 : index
    %25 = vector.load %arg3[%c0_9, %c0_10] : memref<1x32xf32, #tpu.memory_space<vmem>>, vector<1x32xf32>
    %c0_11 = arith.constant 0 : index
    %c0_12 = arith.constant 0 : index
    %26 = vector.load %arg4[%c0_11, %c0_12] : memref<1x32xf32, #tpu.memory_space<vmem>>, vector<1x32xf32>
    %27 = vector.broadcast %24 : vector<32x1xf32> to vector<32x16xf32>
    %28 = arith.mulf %10, %27 : vector<32x16xf32>
    %29 = vector.extract_strided_slice %25 {offsets = [0, 0], sizes = [1, 16], strides = [1, 1]} : vector<1x32xf32> to vector<1x16xf32>
    %30 = vector.broadcast %29 : vector<1x16xf32> to vector<32x16xf32>
    %31 = arith.mulf %28, %30 : vector<32x16xf32>
    %32 = vector.extract_strided_slice %26 {offsets = [0, 0], sizes = [1, 16], strides = [1, 1]} : vector<1x32xf32> to vector<1x16xf32>
    %33 = vector.broadcast %32 : vector<1x16xf32> to vector<32x16xf32>
    %34 = arith.addf %31, %33 : vector<32x16xf32>
    %c0_13 = arith.constant 0 : index
    %c0_14 = arith.constant 0 : index
    %35 = vector.load %arg5[%c0_13, %c0_14] : memref<32x32xf32, #tpu.memory_space<vmem>>, vector<32x16xf32>
    tpu.vector_store %arg5[%c0_13, %c0_14], %34 {strides = array<i32>} : memref<32x32xf32, #tpu.memory_space<vmem>>, vector<32x16xf32>,
    %36 = vector.broadcast %24 : vector<32x1xf32> to vector<32x16xf32>
    %37 = arith.mulf %12, %36 : vector<32x16xf32>
    %38 = vector.extract_strided_slice %25 {offsets = [0, 16], sizes = [1, 16], strides = [1, 1]} : vector<1x32xf32> to vector<1x16xf32>
    %39 = vector.broadcast %38 : vector<1x16xf32> to vector<32x16xf32>
    %40 = arith.mulf %37, %39 : vector<32x16xf32>
    %41 = vector.extract_strided_slice %26 {offsets = [0, 16], sizes = [1, 16], strides = [1, 1]} : vector<1x32xf32> to vector<1x16xf32>
    %42 = vector.broadcast %41 : vector<1x16xf32> to vector<32x16xf32>
    %43 = arith.addf %40, %42 : vector<32x16xf32>
    %c0_15 = arith.constant 0 : index
    %c16 = arith.constant 16 : index
    %44 = vector.load %arg5[%c0_15, %c16] : memref<32x32xf32, #tpu.memory_space<vmem>>, vector<32x16xf32>
    tpu.vector_store %arg5[%c0_15, %c16], %43 {strides = array<i32>} : memref<32x32xf32, #tpu.memory_space<vmem>>, vector<32x16xf32>,
    return
  }
  func.func @transform_0(%arg0: i32) -> (i32, i32) {
    %c0_i32 = arith.constant 0 : i32
    %c0_i32_0 = arith.constant 0 : i32
    return %arg0, %c0_i32 : i32, i32
  }
  func.func @transform_1(%arg0: i32) -> (i32, i32) {
    %c0_i32 = arith.constant 0 : i32
    %c0_i32_0 = arith.constant 0 : i32
    return %arg0, %c0_i32 : i32, i32
  }
  func.func @transform_2(%arg0: i32) -> (i32, i32) {
    %c0_i32 = arith.constant 0 : i32
    %c0_i32_0 = arith.constant 0 : i32
    %c0_i32_1 = arith.constant 0 : i32
    return %c0_i32, %c0_i32_0 : i32, i32
  }
  func.func @transform_3(%arg0: i32) -> (i32, i32) {
    %c0_i32 = arith.constant 0 : i32
    %c0_i32_0 = arith.constant 0 : i32
    %c0_i32_1 = arith.constant 0 : i32
    return %c0_i32, %c0_i32_0 : i32, i32
  }
  func.func @transform_4(%arg0: i32) -> (i32, i32) {
    %c0_i32 = arith.constant 0 : i32
    %c0_i32_0 = arith.constant 0 : i32
    return %arg0, %c0_i32 : i32, i32
  }
}

module attributes {stable_mosaic.version = 11 : i64} {
  func.func @_bilstm_fused_kernel(%arg0: i32, %arg1: memref<32x16xf32, #tpu.memory_space<vmem>>, %arg2: memref<32x16xf32, #tpu.memory_space<vmem>>, %arg3: memref<32x16xf32, #tpu.memory_space<vmem>>, %arg4: memref<32x16xf32, #tpu.memory_space<vmem>>, %arg5: memref<16x64xf32, #tpu.memory_space<vmem>>, %arg6: memref<16x64xf32, #tpu.memory_space<vmem>>, %arg7: memref<16x64xf32, #tpu.memory_space<vmem>>, %arg8: memref<16x64xf32, #tpu.memory_space<vmem>>, %arg9: memref<1x64xf32, #tpu.memory_space<vmem>>, %arg10: memref<1x64xf32, #tpu.memory_space<vmem>>, %arg11: memref<16x64xf32, #tpu.memory_space<vmem>>, %arg12: memref<16x64xf32, #tpu.memory_space<vmem>>, %arg13: memref<32x16xf32, #tpu.memory_space<vmem>>, %arg14: memref<32x16xf32, #tpu.memory_space<vmem>>, %arg15: memref<2x16xf32, #tpu.memory_space<vmem>>, %arg16: memref<2x16xf32, #tpu.memory_space<vmem>>, %arg17: memref<2x16xf32, #tpu.memory_space<vmem>>, %arg18: memref<2x16xf32, #tpu.memory_space<vmem>>, %arg19: memref<32x64xf32, #tpu.memory_space<vmem>>, %arg20: memref<32x64xf32, #tpu.memory_space<vmem>>) attributes {dimension_semantics = [#tpu.dimension_semantics<arbitrary>], iteration_bounds = array<i64: 1>, scalar_prefetch = 0 : i64, scratch_operands = 6 : i64, tpu.core_type = #tpu.core_type<tc>, window_params = [{transform_indices = @transform_0, window_bounds = array<i64: 32, 16>}, {transform_indices = @transform_1, window_bounds = array<i64: 32, 16>}, {transform_indices = @transform_2, window_bounds = array<i64: 32, 16>}, {transform_indices = @transform_3, window_bounds = array<i64: 32, 16>}, {pipeline_mode = #tpu.pipeline_mode<synchronous>, transform_indices = @transform_4, window_bounds = array<i64: 16, 64>}, {pipeline_mode = #tpu.pipeline_mode<synchronous>, transform_indices = @transform_5, window_bounds = array<i64: 16, 64>}, {pipeline_mode = #tpu.pipeline_mode<synchronous>, transform_indices = @transform_6, window_bounds = array<i64: 16, 64>}, {pipeline_mode = #tpu.pipeline_mode<synchronous>, transform_indices = @transform_7, window_bounds = array<i64: 16, 64>}, {pipeline_mode = #tpu.pipeline_mode<synchronous>, transform_indices = @transform_8, window_bounds = array<i64: 1, 64>}, {pipeline_mode = #tpu.pipeline_mode<synchronous>, transform_indices = @transform_9, window_bounds = array<i64: 1, 64>}, {pipeline_mode = #tpu.pipeline_mode<synchronous>, transform_indices = @transform_10, window_bounds = array<i64: 16, 64>}, {pipeline_mode = #tpu.pipeline_mode<synchronous>, transform_indices = @transform_11, window_bounds = array<i64: 16, 64>}, {transform_indices = @transform_12, window_bounds = array<i64: 32, 16>}, {transform_indices = @transform_13, window_bounds = array<i64: 32, 16>}]} {
    %c0_i32 = arith.constant 0 : i32
    %0 = arith.cmpi eq, %arg0, %c0_i32 : i32
    %1 = arith.extui %0 : i1 to i32
    %c0_i32_0 = arith.constant 0 : i32
    %2 = arith.cmpi ne, %1, %c0_i32_0 : i32
    scf.if %2 {
      %cst_528 = arith.constant 0.000000e+00 : f32
      %1083 = vector.broadcast %cst_528 : f32 to vector<2x16xf32>
      %c0_529 = arith.constant 0 : index
      %c0_530 = arith.constant 0 : index
      %1084 = vector.load %arg15[%c0_529, %c0_530] : memref<2x16xf32, #tpu.memory_space<vmem>>, vector<2x16xf32>
      tpu.vector_store %arg15[%c0_529, %c0_530], %1083 {strides = array<i32>} : memref<2x16xf32, #tpu.memory_space<vmem>>, vector<2x16xf32>,
      %cst_531 = arith.constant 0.000000e+00 : f32
      %1085 = vector.broadcast %cst_531 : f32 to vector<2x16xf32>
      %c0_532 = arith.constant 0 : index
      %c0_533 = arith.constant 0 : index
      %1086 = vector.load %arg16[%c0_532, %c0_533] : memref<2x16xf32, #tpu.memory_space<vmem>>, vector<2x16xf32>
      tpu.vector_store %arg16[%c0_532, %c0_533], %1085 {strides = array<i32>} : memref<2x16xf32, #tpu.memory_space<vmem>>, vector<2x16xf32>,
      %cst_534 = arith.constant 0.000000e+00 : f32
      %1087 = vector.broadcast %cst_534 : f32 to vector<2x16xf32>
      %c0_535 = arith.constant 0 : index
      %c0_536 = arith.constant 0 : index
      %1088 = vector.load %arg17[%c0_535, %c0_536] : memref<2x16xf32, #tpu.memory_space<vmem>>, vector<2x16xf32>
      tpu.vector_store %arg17[%c0_535, %c0_536], %1087 {strides = array<i32>} : memref<2x16xf32, #tpu.memory_space<vmem>>, vector<2x16xf32>,
      %cst_537 = arith.constant 0.000000e+00 : f32
      %1089 = vector.broadcast %cst_537 : f32 to vector<2x16xf32>
      %c0_538 = arith.constant 0 : index
      %c0_539 = arith.constant 0 : index
      %1090 = vector.load %arg18[%c0_538, %c0_539] : memref<2x16xf32, #tpu.memory_space<vmem>>, vector<2x16xf32>
      tpu.vector_store %arg18[%c0_538, %c0_539], %1089 {strides = array<i32>} : memref<2x16xf32, #tpu.memory_space<vmem>>, vector<2x16xf32>,
    } else {
    }
    %c0 = arith.constant 0 : index
    %c0_1 = arith.constant 0 : index
    %3 = vector.load %arg9[%c0, %c0_1] : memref<1x64xf32, #tpu.memory_space<vmem>>, vector<1x64xf32>
    %c0_2 = arith.constant 0 : index
    %c0_3 = arith.constant 0 : index
    %4 = vector.load %arg10[%c0_2, %c0_3] : memref<1x64xf32, #tpu.memory_space<vmem>>, vector<1x64xf32>
    %c0_4 = arith.constant 0 : index
    %c0_5 = arith.constant 0 : index
    %5 = vector.load %arg1[%c0_4, %c0_5] : memref<32x16xf32, #tpu.memory_space<vmem>>, vector<32x16xf32>
    %c0_6 = arith.constant 0 : index
    %c0_7 = arith.constant 0 : index
    %6 = vector.load %arg5[%c0_6, %c0_7] : memref<16x64xf32, #tpu.memory_space<vmem>>, vector<16x64xf32>
    %cst = arith.constant dense<0.000000e+00> : vector<32x64xf32>
    %7 = tpu.matmul %5, %6, %cst {dimension_numbers = #tpu.dot_dimension_numbers<[1], [0], [0], [1], [0, 0, 1, 1], [], []>} : vector<32x16xf32>, vector<16x64xf32>, vector<32x64xf32> -> vector<32x64xf32>
    %8 = vector.broadcast %3 : vector<1x64xf32> to vector<32x64xf32>
    %9 = arith.addf %8, %7 : vector<32x64xf32>
    %c0_8 = arith.constant 0 : index
    %c0_9 = arith.constant 0 : index
    %10 = vector.load %arg3[%c0_8, %c0_9] : memref<32x16xf32, #tpu.memory_space<vmem>>, vector<32x16xf32>
    %c0_10 = arith.constant 0 : index
    %c0_11 = arith.constant 0 : index
    %11 = vector.load %arg7[%c0_10, %c0_11] : memref<16x64xf32, #tpu.memory_space<vmem>>, vector<16x64xf32>
    %cst_12 = arith.constant dense<0.000000e+00> : vector<32x64xf32>
    %12 = tpu.matmul %10, %11, %cst_12 {dimension_numbers = #tpu.dot_dimension_numbers<[1], [0], [0], [1], [0, 0, 1, 1], [], []>} : vector<32x16xf32>, vector<16x64xf32>, vector<32x64xf32> -> vector<32x64xf32>
    %13 = vector.broadcast %4 : vector<1x64xf32> to vector<32x64xf32>
    %14 = arith.addf %13, %12 : vector<32x64xf32>
    %c0_13 = arith.constant 0 : index
    %c0_14 = arith.constant 0 : index
    %15 = vector.load %arg2[%c0_13, %c0_14] : memref<32x16xf32, #tpu.memory_space<vmem>>, vector<32x16xf32>
    %c0_15 = arith.constant 0 : index
    %c0_16 = arith.constant 0 : index
    %16 = vector.load %arg6[%c0_15, %c0_16] : memref<16x64xf32, #tpu.memory_space<vmem>>, vector<16x64xf32>
    %cst_17 = arith.constant dense<0.000000e+00> : vector<32x64xf32>
    %17 = tpu.matmul %15, %16, %cst_17 {dimension_numbers = #tpu.dot_dimension_numbers<[1], [0], [0], [1], [0, 0, 1, 1], [], []>} : vector<32x16xf32>, vector<16x64xf32>, vector<32x64xf32> -> vector<32x64xf32>
    %18 = arith.addf %9, %17 : vector<32x64xf32>
    %c0_18 = arith.constant 0 : index
    %c0_19 = arith.constant 0 : index
    %19 = vector.load %arg4[%c0_18, %c0_19] : memref<32x16xf32, #tpu.memory_space<vmem>>, vector<32x16xf32>
    %c0_20 = arith.constant 0 : index
    %c0_21 = arith.constant 0 : index
    %20 = vector.load %arg8[%c0_20, %c0_21] : memref<16x64xf32, #tpu.memory_space<vmem>>, vector<16x64xf32>
    %cst_22 = arith.constant dense<0.000000e+00> : vector<32x64xf32>
    %21 = tpu.matmul %19, %20, %cst_22 {dimension_numbers = #tpu.dot_dimension_numbers<[1], [0], [0], [1], [0, 0, 1, 1], [], []>} : vector<32x16xf32>, vector<16x64xf32>, vector<32x64xf32> -> vector<32x64xf32>
    %22 = arith.addf %14, %21 : vector<32x64xf32>
    %c0_23 = arith.constant 0 : index
    %c0_24 = arith.constant 0 : index
    %23 = vector.load %arg19[%c0_23, %c0_24] : memref<32x64xf32, #tpu.memory_space<vmem>>, vector<32x64xf32>
    tpu.vector_store %arg19[%c0_23, %c0_24], %18 {strides = array<i32>} : memref<32x64xf32, #tpu.memory_space<vmem>>, vector<32x64xf32>,
    %c0_25 = arith.constant 0 : index
    %c0_26 = arith.constant 0 : index
    %24 = vector.load %arg20[%c0_25, %c0_26] : memref<32x64xf32, #tpu.memory_space<vmem>>, vector<32x64xf32>
    tpu.vector_store %arg20[%c0_25, %c0_26], %22 {strides = array<i32>} : memref<32x64xf32, #tpu.memory_space<vmem>>, vector<32x64xf32>,
    %c0_27 = arith.constant 0 : index
    %c0_28 = arith.constant 0 : index
    %25 = vector.load %arg11[%c0_27, %c0_28] : memref<16x64xf32, #tpu.memory_space<vmem>>, vector<16x64xf32>
    %c0_29 = arith.constant 0 : index
    %c0_30 = arith.constant 0 : index
    %26 = vector.load %arg12[%c0_29, %c0_30] : memref<16x64xf32, #tpu.memory_space<vmem>>, vector<16x64xf32>
    %c0_31 = arith.constant 0 : index
    %c0_32 = arith.constant 0 : index
    %27 = vector.load %arg19[%c0_31, %c0_32] : memref<32x64xf32, #tpu.memory_space<vmem>>, vector<2x64xf32>
    %c0_33 = arith.constant 0 : index
    %c0_34 = arith.constant 0 : index
    %28 = vector.load %arg15[%c0_33, %c0_34] : memref<2x16xf32, #tpu.memory_space<vmem>>, vector<2x16xf32>
    %c0_35 = arith.constant 0 : index
    %c0_36 = arith.constant 0 : index
    %29 = vector.load %arg16[%c0_35, %c0_36] : memref<2x16xf32, #tpu.memory_space<vmem>>, vector<2x16xf32>
    %cst_37 = arith.constant dense<0.000000e+00> : vector<2x64xf32>
    %30 = tpu.matmul %28, %25, %cst_37 {dimension_numbers = #tpu.dot_dimension_numbers<[1], [0], [0], [1], [0, 0, 1, 1], [], []>} : vector<2x16xf32>, vector<16x64xf32>, vector<2x64xf32> -> vector<2x64xf32>
    %31 = arith.addf %27, %30 : vector<2x64xf32>
    %32 = vector.extract_strided_slice %31 {offsets = [0, 0], sizes = [2, 16], strides = [1, 1]} : vector<2x64xf32> to vector<2x16xf32>
    %33 = arith.negf %32 : vector<2x16xf32>
    %34 = math.exp %33 : vector<2x16xf32>
    %cst_38 = arith.constant 1.000000e+00 : f32
    %35 = vector.broadcast %cst_38 : f32 to vector<2x16xf32>
    %36 = arith.addf %35, %34 : vector<2x16xf32>
    %37 = arith.divf %35, %36 : vector<2x16xf32>
    %38 = vector.extract_strided_slice %31 {offsets = [0, 16], sizes = [2, 16], strides = [1, 1]} : vector<2x64xf32> to vector<2x16xf32>
    %39 = arith.negf %38 : vector<2x16xf32>
    %40 = math.exp %39 : vector<2x16xf32>
    %cst_39 = arith.constant 1.000000e+00 : f32
    %41 = vector.broadcast %cst_39 : f32 to vector<2x16xf32>
    %42 = arith.addf %41, %40 : vector<2x16xf32>
    %43 = arith.divf %41, %42 : vector<2x16xf32>
    %44 = vector.extract_strided_slice %31 {offsets = [0, 32], sizes = [2, 16], strides = [1, 1]} : vector<2x64xf32> to vector<2x16xf32>
    %45 = math.tanh %44 : vector<2x16xf32>
    %46 = vector.extract_strided_slice %31 {offsets = [0, 48], sizes = [2, 16], strides = [1, 1]} : vector<2x64xf32> to vector<2x16xf32>
    %47 = arith.negf %46 : vector<2x16xf32>
    %48 = math.exp %47 : vector<2x16xf32>
    %cst_40 = arith.constant 1.000000e+00 : f32
    %49 = vector.broadcast %cst_40 : f32 to vector<2x16xf32>
    %50 = arith.addf %49, %48 : vector<2x16xf32>
    %51 = arith.divf %49, %50 : vector<2x16xf32>
    %52 = arith.mulf %43, %29 : vector<2x16xf32>
    %53 = arith.mulf %37, %45 : vector<2x16xf32>
    %54 = arith.addf %52, %53 : vector<2x16xf32>
    %55 = math.tanh %54 : vector<2x16xf32>
    %56 = arith.mulf %51, %55 : vector<2x16xf32>
    %c0_41 = arith.constant 0 : index
    %c0_42 = arith.constant 0 : index
    %57 = vector.load %arg15[%c0_41, %c0_42] : memref<2x16xf32, #tpu.memory_space<vmem>>, vector<2x16xf32>
    tpu.vector_store %arg15[%c0_41, %c0_42], %56 {strides = array<i32>} : memref<2x16xf32, #tpu.memory_space<vmem>>, vector<2x16xf32>,
    %c0_43 = arith.constant 0 : index
    %c0_44 = arith.constant 0 : index
    %58 = vector.load %arg16[%c0_43, %c0_44] : memref<2x16xf32, #tpu.memory_space<vmem>>, vector<2x16xf32>
    tpu.vector_store %arg16[%c0_43, %c0_44], %54 {strides = array<i32>} : memref<2x16xf32, #tpu.memory_space<vmem>>, vector<2x16xf32>,
    %c0_45 = arith.constant 0 : index
    %c0_46 = arith.constant 0 : index
    %59 = vector.load %arg13[%c0_45, %c0_46] : memref<32x16xf32, #tpu.memory_space<vmem>>, vector<2x16xf32>
    tpu.vector_store %arg13[%c0_45, %c0_46], %56 {strides = array<i32>} : memref<32x16xf32, #tpu.memory_space<vmem>>, vector<2x16xf32>,
    %c30 = arith.constant 30 : index
    %c0_47 = arith.constant 0 : index
    %60 = vector.load %arg20[%c30, %c0_47] : memref<32x64xf32, #tpu.memory_space<vmem>>, vector<2x64xf32>
    %c0_48 = arith.constant 0 : index
    %c0_49 = arith.constant 0 : index
    %61 = vector.load %arg17[%c0_48, %c0_49] : memref<2x16xf32, #tpu.memory_space<vmem>>, vector<2x16xf32>
    %c0_50 = arith.constant 0 : index
    %c0_51 = arith.constant 0 : index
    %62 = vector.load %arg18[%c0_50, %c0_51] : memref<2x16xf32, #tpu.memory_space<vmem>>, vector<2x16xf32>
    %cst_52 = arith.constant dense<0.000000e+00> : vector<2x64xf32>
    %63 = tpu.matmul %61, %26, %cst_52 {dimension_numbers = #tpu.dot_dimension_numbers<[1], [0], [0], [1], [0, 0, 1, 1], [], []>} : vector<2x16xf32>, vector<16x64xf32>, vector<2x64xf32> -> vector<2x64xf32>
    %64 = arith.addf %60, %63 : vector<2x64xf32>
    %65 = vector.extract_strided_slice %64 {offsets = [0, 0], sizes = [2, 16], strides = [1, 1]} : vector<2x64xf32> to vector<2x16xf32>
    %66 = arith.negf %65 : vector<2x16xf32>
    %67 = math.exp %66 : vector<2x16xf32>
    %cst_53 = arith.constant 1.000000e+00 : f32
    %68 = vector.broadcast %cst_53 : f32 to vector<2x16xf32>
    %69 = arith.addf %68, %67 : vector<2x16xf32>
    %70 = arith.divf %68, %69 : vector<2x16xf32>
    %71 = vector.extract_strided_slice %64 {offsets = [0, 16], sizes = [2, 16], strides = [1, 1]} : vector<2x64xf32> to vector<2x16xf32>
    %72 = arith.negf %71 : vector<2x16xf32>
    %73 = math.exp %72 : vector<2x16xf32>
    %cst_54 = arith.constant 1.000000e+00 : f32
    %74 = vector.broadcast %cst_54 : f32 to vector<2x16xf32>
    %75 = arith.addf %74, %73 : vector<2x16xf32>
    %76 = arith.divf %74, %75 : vector<2x16xf32>
    %77 = vector.extract_strided_slice %64 {offsets = [0, 32], sizes = [2, 16], strides = [1, 1]} : vector<2x64xf32> to vector<2x16xf32>
    %78 = math.tanh %77 : vector<2x16xf32>
    %79 = vector.extract_strided_slice %64 {offsets = [0, 48], sizes = [2, 16], strides = [1, 1]} : vector<2x64xf32> to vector<2x16xf32>
    %80 = arith.negf %79 : vector<2x16xf32>
    %81 = math.exp %80 : vector<2x16xf32>
    %cst_55 = arith.constant 1.000000e+00 : f32
    %82 = vector.broadcast %cst_55 : f32 to vector<2x16xf32>
    %83 = arith.addf %82, %81 : vector<2x16xf32>
    %84 = arith.divf %82, %83 : vector<2x16xf32>
    %85 = arith.mulf %76, %62 : vector<2x16xf32>
    %86 = arith.mulf %70, %78 : vector<2x16xf32>
    %87 = arith.addf %85, %86 : vector<2x16xf32>
    %88 = math.tanh %87 : vector<2x16xf32>
    %89 = arith.mulf %84, %88 : vector<2x16xf32>
    %c0_56 = arith.constant 0 : index
    %c0_57 = arith.constant 0 : index
    %90 = vector.load %arg17[%c0_56, %c0_57] : memref<2x16xf32, #tpu.memory_space<vmem>>, vector<2x16xf32>
    tpu.vector_store %arg17[%c0_56, %c0_57], %89 {strides = array<i32>} : memref<2x16xf32, #tpu.memory_space<vmem>>, vector<2x16xf32>,
    %c0_58 = arith.constant 0 : index
    %c0_59 = arith.constant 0 : index
    %91 = vector.load %arg18[%c0_58, %c0_59] : memref<2x16xf32, #tpu.memory_space<vmem>>, vector<2x16xf32>
    tpu.vector_store %arg18[%c0_58, %c0_59], %87 {strides = array<i32>} : memref<2x16xf32, #tpu.memory_space<vmem>>, vector<2x16xf32>,
    %c30_60 = arith.constant 30 : index
    %c0_61 = arith.constant 0 : index
    %92 = vector.load %arg14[%c30_60, %c0_61] : memref<32x16xf32, #tpu.memory_space<vmem>>, vector<2x16xf32>
    tpu.vector_store %arg14[%c30_60, %c0_61], %89 {strides = array<i32>} : memref<32x16xf32, #tpu.memory_space<vmem>>, vector<2x16xf32>,
    %c2 = arith.constant 2 : index
    %c0_62 = arith.constant 0 : index
    %93 = vector.load %arg19[%c2, %c0_62] : memref<32x64xf32, #tpu.memory_space<vmem>>, vector<2x64xf32>
    %c0_63 = arith.constant 0 : index
    %c0_64 = arith.constant 0 : index
    %94 = vector.load %arg15[%c0_63, %c0_64] : memref<2x16xf32, #tpu.memory_space<vmem>>, vector<2x16xf32>
    %c0_65 = arith.constant 0 : index
    %c0_66 = arith.constant 0 : index
    %95 = vector.load %arg16[%c0_65, %c0_66] : memref<2x16xf32, #tpu.memory_space<vmem>>, vector<2x16xf32>
    %cst_67 = arith.constant dense<0.000000e+00> : vector<2x64xf32>
    %96 = tpu.matmul %94, %25, %cst_67 {dimension_numbers = #tpu.dot_dimension_numbers<[1], [0], [0], [1], [0, 0, 1, 1], [], []>} : vector<2x16xf32>, vector<16x64xf32>, vector<2x64xf32> -> vector<2x64xf32>
    %97 = arith.addf %93, %96 : vector<2x64xf32>
    %98 = vector.extract_strided_slice %97 {offsets = [0, 0], sizes = [2, 16], strides = [1, 1]} : vector<2x64xf32> to vector<2x16xf32>
    %99 = arith.negf %98 : vector<2x16xf32>
    %100 = math.exp %99 : vector<2x16xf32>
    %cst_68 = arith.constant 1.000000e+00 : f32
    %101 = vector.broadcast %cst_68 : f32 to vector<2x16xf32>
    %102 = arith.addf %101, %100 : vector<2x16xf32>
    %103 = arith.divf %101, %102 : vector<2x16xf32>
    %104 = vector.extract_strided_slice %97 {offsets = [0, 16], sizes = [2, 16], strides = [1, 1]} : vector<2x64xf32> to vector<2x16xf32>
    %105 = arith.negf %104 : vector<2x16xf32>
    %106 = math.exp %105 : vector<2x16xf32>
    %cst_69 = arith.constant 1.000000e+00 : f32
    %107 = vector.broadcast %cst_69 : f32 to vector<2x16xf32>
    %108 = arith.addf %107, %106 : vector<2x16xf32>
    %109 = arith.divf %107, %108 : vector<2x16xf32>
    %110 = vector.extract_strided_slice %97 {offsets = [0, 32], sizes = [2, 16], strides = [1, 1]} : vector<2x64xf32> to vector<2x16xf32>
    %111 = math.tanh %110 : vector<2x16xf32>
    %112 = vector.extract_strided_slice %97 {offsets = [0, 48], sizes = [2, 16], strides = [1, 1]} : vector<2x64xf32> to vector<2x16xf32>
    %113 = arith.negf %112 : vector<2x16xf32>
    %114 = math.exp %113 : vector<2x16xf32>
    %cst_70 = arith.constant 1.000000e+00 : f32
    %115 = vector.broadcast %cst_70 : f32 to vector<2x16xf32>
    %116 = arith.addf %115, %114 : vector<2x16xf32>
    %117 = arith.divf %115, %116 : vector<2x16xf32>
    %118 = arith.mulf %109, %95 : vector<2x16xf32>
    %119 = arith.mulf %103, %111 : vector<2x16xf32>
    %120 = arith.addf %118, %119 : vector<2x16xf32>
    %121 = math.tanh %120 : vector<2x16xf32>
    %122 = arith.mulf %117, %121 : vector<2x16xf32>
    %c0_71 = arith.constant 0 : index
    %c0_72 = arith.constant 0 : index
    %123 = vector.load %arg15[%c0_71, %c0_72] : memref<2x16xf32, #tpu.memory_space<vmem>>, vector<2x16xf32>
    tpu.vector_store %arg15[%c0_71, %c0_72], %122 {strides = array<i32>} : memref<2x16xf32, #tpu.memory_space<vmem>>, vector<2x16xf32>,
    %c0_73 = arith.constant 0 : index
    %c0_74 = arith.constant 0 : index
    %124 = vector.load %arg16[%c0_73, %c0_74] : memref<2x16xf32, #tpu.memory_space<vmem>>, vector<2x16xf32>
    tpu.vector_store %arg16[%c0_73, %c0_74], %120 {strides = array<i32>} : memref<2x16xf32, #tpu.memory_space<vmem>>, vector<2x16xf32>,
    %c2_75 = arith.constant 2 : index
    %c0_76 = arith.constant 0 : index
    %125 = vector.load %arg13[%c2_75, %c0_76] : memref<32x16xf32, #tpu.memory_space<vmem>>, vector<2x16xf32>
    tpu.vector_store %arg13[%c2_75, %c0_76], %122 {strides = array<i32>} : memref<32x16xf32, #tpu.memory_space<vmem>>, vector<2x16xf32>,
    %c28 = arith.constant 28 : index
    %c0_77 = arith.constant 0 : index
    %126 = vector.load %arg20[%c28, %c0_77] : memref<32x64xf32, #tpu.memory_space<vmem>>, vector<2x64xf32>
    %c0_78 = arith.constant 0 : index
    %c0_79 = arith.constant 0 : index
    %127 = vector.load %arg17[%c0_78, %c0_79] : memref<2x16xf32, #tpu.memory_space<vmem>>, vector<2x16xf32>
    %c0_80 = arith.constant 0 : index
    %c0_81 = arith.constant 0 : index
    %128 = vector.load %arg18[%c0_80, %c0_81] : memref<2x16xf32, #tpu.memory_space<vmem>>, vector<2x16xf32>
    %cst_82 = arith.constant dense<0.000000e+00> : vector<2x64xf32>
    %129 = tpu.matmul %127, %26, %cst_82 {dimension_numbers = #tpu.dot_dimension_numbers<[1], [0], [0], [1], [0, 0, 1, 1], [], []>} : vector<2x16xf32>, vector<16x64xf32>, vector<2x64xf32> -> vector<2x64xf32>
    %130 = arith.addf %126, %129 : vector<2x64xf32>
    %131 = vector.extract_strided_slice %130 {offsets = [0, 0], sizes = [2, 16], strides = [1, 1]} : vector<2x64xf32> to vector<2x16xf32>
    %132 = arith.negf %131 : vector<2x16xf32>
    %133 = math.exp %132 : vector<2x16xf32>
    %cst_83 = arith.constant 1.000000e+00 : f32
    %134 = vector.broadcast %cst_83 : f32 to vector<2x16xf32>
    %135 = arith.addf %134, %133 : vector<2x16xf32>
    %136 = arith.divf %134, %135 : vector<2x16xf32>
    %137 = vector.extract_strided_slice %130 {offsets = [0, 16], sizes = [2, 16], strides = [1, 1]} : vector<2x64xf32> to vector<2x16xf32>
    %138 = arith.negf %137 : vector<2x16xf32>
    %139 = math.exp %138 : vector<2x16xf32>
    %cst_84 = arith.constant 1.000000e+00 : f32
    %140 = vector.broadcast %cst_84 : f32 to vector<2x16xf32>
    %141 = arith.addf %140, %139 : vector<2x16xf32>
    %142 = arith.divf %140, %141 : vector<2x16xf32>
    %143 = vector.extract_strided_slice %130 {offsets = [0, 32], sizes = [2, 16], strides = [1, 1]} : vector<2x64xf32> to vector<2x16xf32>
    %144 = math.tanh %143 : vector<2x16xf32>
    %145 = vector.extract_strided_slice %130 {offsets = [0, 48], sizes = [2, 16], strides = [1, 1]} : vector<2x64xf32> to vector<2x16xf32>
    %146 = arith.negf %145 : vector<2x16xf32>
    %147 = math.exp %146 : vector<2x16xf32>
    %cst_85 = arith.constant 1.000000e+00 : f32
    %148 = vector.broadcast %cst_85 : f32 to vector<2x16xf32>
    %149 = arith.addf %148, %147 : vector<2x16xf32>
    %150 = arith.divf %148, %149 : vector<2x16xf32>
    %151 = arith.mulf %142, %128 : vector<2x16xf32>
    %152 = arith.mulf %136, %144 : vector<2x16xf32>
    %153 = arith.addf %151, %152 : vector<2x16xf32>
    %154 = math.tanh %153 : vector<2x16xf32>
    %155 = arith.mulf %150, %154 : vector<2x16xf32>
    %c0_86 = arith.constant 0 : index
    %c0_87 = arith.constant 0 : index
    %156 = vector.load %arg17[%c0_86, %c0_87] : memref<2x16xf32, #tpu.memory_space<vmem>>, vector<2x16xf32>
    tpu.vector_store %arg17[%c0_86, %c0_87], %155 {strides = array<i32>} : memref<2x16xf32, #tpu.memory_space<vmem>>, vector<2x16xf32>,
    %c0_88 = arith.constant 0 : index
    %c0_89 = arith.constant 0 : index
    %157 = vector.load %arg18[%c0_88, %c0_89] : memref<2x16xf32, #tpu.memory_space<vmem>>, vector<2x16xf32>
    tpu.vector_store %arg18[%c0_88, %c0_89], %153 {strides = array<i32>} : memref<2x16xf32, #tpu.memory_space<vmem>>, vector<2x16xf32>,
    %c28_90 = arith.constant 28 : index
    %c0_91 = arith.constant 0 : index
    %158 = vector.load %arg14[%c28_90, %c0_91] : memref<32x16xf32, #tpu.memory_space<vmem>>, vector<2x16xf32>
    tpu.vector_store %arg14[%c28_90, %c0_91], %155 {strides = array<i32>} : memref<32x16xf32, #tpu.memory_space<vmem>>, vector<2x16xf32>,
    %c4 = arith.constant 4 : index
    %c0_92 = arith.constant 0 : index
    %159 = vector.load %arg19[%c4, %c0_92] : memref<32x64xf32, #tpu.memory_space<vmem>>, vector<2x64xf32>
    %c0_93 = arith.constant 0 : index
    %c0_94 = arith.constant 0 : index
    %160 = vector.load %arg15[%c0_93, %c0_94] : memref<2x16xf32, #tpu.memory_space<vmem>>, vector<2x16xf32>
    %c0_95 = arith.constant 0 : index
    %c0_96 = arith.constant 0 : index
    %161 = vector.load %arg16[%c0_95, %c0_96] : memref<2x16xf32, #tpu.memory_space<vmem>>, vector<2x16xf32>
    %cst_97 = arith.constant dense<0.000000e+00> : vector<2x64xf32>
    %162 = tpu.matmul %160, %25, %cst_97 {dimension_numbers = #tpu.dot_dimension_numbers<[1], [0], [0], [1], [0, 0, 1, 1], [], []>} : vector<2x16xf32>, vector<16x64xf32>, vector<2x64xf32> -> vector<2x64xf32>
    %163 = arith.addf %159, %162 : vector<2x64xf32>
    %164 = vector.extract_strided_slice %163 {offsets = [0, 0], sizes = [2, 16], strides = [1, 1]} : vector<2x64xf32> to vector<2x16xf32>
    %165 = arith.negf %164 : vector<2x16xf32>
    %166 = math.exp %165 : vector<2x16xf32>
    %cst_98 = arith.constant 1.000000e+00 : f32
    %167 = vector.broadcast %cst_98 : f32 to vector<2x16xf32>
    %168 = arith.addf %167, %166 : vector<2x16xf32>
    %169 = arith.divf %167, %168 : vector<2x16xf32>
    %170 = vector.extract_strided_slice %163 {offsets = [0, 16], sizes = [2, 16], strides = [1, 1]} : vector<2x64xf32> to vector<2x16xf32>
    %171 = arith.negf %170 : vector<2x16xf32>
    %172 = math.exp %171 : vector<2x16xf32>
    %cst_99 = arith.constant 1.000000e+00 : f32
    %173 = vector.broadcast %cst_99 : f32 to vector<2x16xf32>
    %174 = arith.addf %173, %172 : vector<2x16xf32>
    %175 = arith.divf %173, %174 : vector<2x16xf32>
    %176 = vector.extract_strided_slice %163 {offsets = [0, 32], sizes = [2, 16], strides = [1, 1]} : vector<2x64xf32> to vector<2x16xf32>
    %177 = math.tanh %176 : vector<2x16xf32>
    %178 = vector.extract_strided_slice %163 {offsets = [0, 48], sizes = [2, 16], strides = [1, 1]} : vector<2x64xf32> to vector<2x16xf32>
    %179 = arith.negf %178 : vector<2x16xf32>
    %180 = math.exp %179 : vector<2x16xf32>
    %cst_100 = arith.constant 1.000000e+00 : f32
    %181 = vector.broadcast %cst_100 : f32 to vector<2x16xf32>
    %182 = arith.addf %181, %180 : vector<2x16xf32>
    %183 = arith.divf %181, %182 : vector<2x16xf32>
    %184 = arith.mulf %175, %161 : vector<2x16xf32>
    %185 = arith.mulf %169, %177 : vector<2x16xf32>
    %186 = arith.addf %184, %185 : vector<2x16xf32>
    %187 = math.tanh %186 : vector<2x16xf32>
    %188 = arith.mulf %183, %187 : vector<2x16xf32>
    %c0_101 = arith.constant 0 : index
    %c0_102 = arith.constant 0 : index
    %189 = vector.load %arg15[%c0_101, %c0_102] : memref<2x16xf32, #tpu.memory_space<vmem>>, vector<2x16xf32>
    tpu.vector_store %arg15[%c0_101, %c0_102], %188 {strides = array<i32>} : memref<2x16xf32, #tpu.memory_space<vmem>>, vector<2x16xf32>,
    %c0_103 = arith.constant 0 : index
    %c0_104 = arith.constant 0 : index
    %190 = vector.load %arg16[%c0_103, %c0_104] : memref<2x16xf32, #tpu.memory_space<vmem>>, vector<2x16xf32>
    tpu.vector_store %arg16[%c0_103, %c0_104], %186 {strides = array<i32>} : memref<2x16xf32, #tpu.memory_space<vmem>>, vector<2x16xf32>,
    %c4_105 = arith.constant 4 : index
    %c0_106 = arith.constant 0 : index
    %191 = vector.load %arg13[%c4_105, %c0_106] : memref<32x16xf32, #tpu.memory_space<vmem>>, vector<2x16xf32>
    tpu.vector_store %arg13[%c4_105, %c0_106], %188 {strides = array<i32>} : memref<32x16xf32, #tpu.memory_space<vmem>>, vector<2x16xf32>,
    %c26 = arith.constant 26 : index
    %c0_107 = arith.constant 0 : index
    %192 = vector.load %arg20[%c26, %c0_107] : memref<32x64xf32, #tpu.memory_space<vmem>>, vector<2x64xf32>
    %c0_108 = arith.constant 0 : index
    %c0_109 = arith.constant 0 : index
    %193 = vector.load %arg17[%c0_108, %c0_109] : memref<2x16xf32, #tpu.memory_space<vmem>>, vector<2x16xf32>
    %c0_110 = arith.constant 0 : index
    %c0_111 = arith.constant 0 : index
    %194 = vector.load %arg18[%c0_110, %c0_111] : memref<2x16xf32, #tpu.memory_space<vmem>>, vector<2x16xf32>
    %cst_112 = arith.constant dense<0.000000e+00> : vector<2x64xf32>
    %195 = tpu.matmul %193, %26, %cst_112 {dimension_numbers = #tpu.dot_dimension_numbers<[1], [0], [0], [1], [0, 0, 1, 1], [], []>} : vector<2x16xf32>, vector<16x64xf32>, vector<2x64xf32> -> vector<2x64xf32>
    %196 = arith.addf %192, %195 : vector<2x64xf32>
    %197 = vector.extract_strided_slice %196 {offsets = [0, 0], sizes = [2, 16], strides = [1, 1]} : vector<2x64xf32> to vector<2x16xf32>
    %198 = arith.negf %197 : vector<2x16xf32>
    %199 = math.exp %198 : vector<2x16xf32>
    %cst_113 = arith.constant 1.000000e+00 : f32
    %200 = vector.broadcast %cst_113 : f32 to vector<2x16xf32>
    %201 = arith.addf %200, %199 : vector<2x16xf32>
    %202 = arith.divf %200, %201 : vector<2x16xf32>
    %203 = vector.extract_strided_slice %196 {offsets = [0, 16], sizes = [2, 16], strides = [1, 1]} : vector<2x64xf32> to vector<2x16xf32>
    %204 = arith.negf %203 : vector<2x16xf32>
    %205 = math.exp %204 : vector<2x16xf32>
    %cst_114 = arith.constant 1.000000e+00 : f32
    %206 = vector.broadcast %cst_114 : f32 to vector<2x16xf32>
    %207 = arith.addf %206, %205 : vector<2x16xf32>
    %208 = arith.divf %206, %207 : vector<2x16xf32>
    %209 = vector.extract_strided_slice %196 {offsets = [0, 32], sizes = [2, 16], strides = [1, 1]} : vector<2x64xf32> to vector<2x16xf32>
    %210 = math.tanh %209 : vector<2x16xf32>
    %211 = vector.extract_strided_slice %196 {offsets = [0, 48], sizes = [2, 16], strides = [1, 1]} : vector<2x64xf32> to vector<2x16xf32>
    %212 = arith.negf %211 : vector<2x16xf32>
    %213 = math.exp %212 : vector<2x16xf32>
    %cst_115 = arith.constant 1.000000e+00 : f32
    %214 = vector.broadcast %cst_115 : f32 to vector<2x16xf32>
    %215 = arith.addf %214, %213 : vector<2x16xf32>
    %216 = arith.divf %214, %215 : vector<2x16xf32>
    %217 = arith.mulf %208, %194 : vector<2x16xf32>
    %218 = arith.mulf %202, %210 : vector<2x16xf32>
    %219 = arith.addf %217, %218 : vector<2x16xf32>
    %220 = math.tanh %219 : vector<2x16xf32>
    %221 = arith.mulf %216, %220 : vector<2x16xf32>
    %c0_116 = arith.constant 0 : index
    %c0_117 = arith.constant 0 : index
    %222 = vector.load %arg17[%c0_116, %c0_117] : memref<2x16xf32, #tpu.memory_space<vmem>>, vector<2x16xf32>
    tpu.vector_store %arg17[%c0_116, %c0_117], %221 {strides = array<i32>} : memref<2x16xf32, #tpu.memory_space<vmem>>, vector<2x16xf32>,
    %c0_118 = arith.constant 0 : index
    %c0_119 = arith.constant 0 : index
    %223 = vector.load %arg18[%c0_118, %c0_119] : memref<2x16xf32, #tpu.memory_space<vmem>>, vector<2x16xf32>
    tpu.vector_store %arg18[%c0_118, %c0_119], %219 {strides = array<i32>} : memref<2x16xf32, #tpu.memory_space<vmem>>, vector<2x16xf32>,
    %c26_120 = arith.constant 26 : index
    %c0_121 = arith.constant 0 : index
    %224 = vector.load %arg14[%c26_120, %c0_121] : memref<32x16xf32, #tpu.memory_space<vmem>>, vector<2x16xf32>
    tpu.vector_store %arg14[%c26_120, %c0_121], %221 {strides = array<i32>} : memref<32x16xf32, #tpu.memory_space<vmem>>, vector<2x16xf32>,
    %c6 = arith.constant 6 : index
    %c0_122 = arith.constant 0 : index
    %225 = vector.load %arg19[%c6, %c0_122] : memref<32x64xf32, #tpu.memory_space<vmem>>, vector<2x64xf32>
    %c0_123 = arith.constant 0 : index
    %c0_124 = arith.constant 0 : index
    %226 = vector.load %arg15[%c0_123, %c0_124] : memref<2x16xf32, #tpu.memory_space<vmem>>, vector<2x16xf32>
    %c0_125 = arith.constant 0 : index
    %c0_126 = arith.constant 0 : index
    %227 = vector.load %arg16[%c0_125, %c0_126] : memref<2x16xf32, #tpu.memory_space<vmem>>, vector<2x16xf32>
    %cst_127 = arith.constant dense<0.000000e+00> : vector<2x64xf32>
    %228 = tpu.matmul %226, %25, %cst_127 {dimension_numbers = #tpu.dot_dimension_numbers<[1], [0], [0], [1], [0, 0, 1, 1], [], []>} : vector<2x16xf32>, vector<16x64xf32>, vector<2x64xf32> -> vector<2x64xf32>
    %229 = arith.addf %225, %228 : vector<2x64xf32>
    %230 = vector.extract_strided_slice %229 {offsets = [0, 0], sizes = [2, 16], strides = [1, 1]} : vector<2x64xf32> to vector<2x16xf32>
    %231 = arith.negf %230 : vector<2x16xf32>
    %232 = math.exp %231 : vector<2x16xf32>
    %cst_128 = arith.constant 1.000000e+00 : f32
    %233 = vector.broadcast %cst_128 : f32 to vector<2x16xf32>
    %234 = arith.addf %233, %232 : vector<2x16xf32>
    %235 = arith.divf %233, %234 : vector<2x16xf32>
    %236 = vector.extract_strided_slice %229 {offsets = [0, 16], sizes = [2, 16], strides = [1, 1]} : vector<2x64xf32> to vector<2x16xf32>
    %237 = arith.negf %236 : vector<2x16xf32>
    %238 = math.exp %237 : vector<2x16xf32>
    %cst_129 = arith.constant 1.000000e+00 : f32
    %239 = vector.broadcast %cst_129 : f32 to vector<2x16xf32>
    %240 = arith.addf %239, %238 : vector<2x16xf32>
    %241 = arith.divf %239, %240 : vector<2x16xf32>
    %242 = vector.extract_strided_slice %229 {offsets = [0, 32], sizes = [2, 16], strides = [1, 1]} : vector<2x64xf32> to vector<2x16xf32>
    %243 = math.tanh %242 : vector<2x16xf32>
    %244 = vector.extract_strided_slice %229 {offsets = [0, 48], sizes = [2, 16], strides = [1, 1]} : vector<2x64xf32> to vector<2x16xf32>
    %245 = arith.negf %244 : vector<2x16xf32>
    %246 = math.exp %245 : vector<2x16xf32>
    %cst_130 = arith.constant 1.000000e+00 : f32
    %247 = vector.broadcast %cst_130 : f32 to vector<2x16xf32>
    %248 = arith.addf %247, %246 : vector<2x16xf32>
    %249 = arith.divf %247, %248 : vector<2x16xf32>
    %250 = arith.mulf %241, %227 : vector<2x16xf32>
    %251 = arith.mulf %235, %243 : vector<2x16xf32>
    %252 = arith.addf %250, %251 : vector<2x16xf32>
    %253 = math.tanh %252 : vector<2x16xf32>
    %254 = arith.mulf %249, %253 : vector<2x16xf32>
    %c0_131 = arith.constant 0 : index
    %c0_132 = arith.constant 0 : index
    %255 = vector.load %arg15[%c0_131, %c0_132] : memref<2x16xf32, #tpu.memory_space<vmem>>, vector<2x16xf32>
    tpu.vector_store %arg15[%c0_131, %c0_132], %254 {strides = array<i32>} : memref<2x16xf32, #tpu.memory_space<vmem>>, vector<2x16xf32>,
    %c0_133 = arith.constant 0 : index
    %c0_134 = arith.constant 0 : index
    %256 = vector.load %arg16[%c0_133, %c0_134] : memref<2x16xf32, #tpu.memory_space<vmem>>, vector<2x16xf32>
    tpu.vector_store %arg16[%c0_133, %c0_134], %252 {strides = array<i32>} : memref<2x16xf32, #tpu.memory_space<vmem>>, vector<2x16xf32>,
    %c6_135 = arith.constant 6 : index
    %c0_136 = arith.constant 0 : index
    %257 = vector.load %arg13[%c6_135, %c0_136] : memref<32x16xf32, #tpu.memory_space<vmem>>, vector<2x16xf32>
    tpu.vector_store %arg13[%c6_135, %c0_136], %254 {strides = array<i32>} : memref<32x16xf32, #tpu.memory_space<vmem>>, vector<2x16xf32>,
    %c24 = arith.constant 24 : index
    %c0_137 = arith.constant 0 : index
    %258 = vector.load %arg20[%c24, %c0_137] : memref<32x64xf32, #tpu.memory_space<vmem>>, vector<2x64xf32>
    %c0_138 = arith.constant 0 : index
    %c0_139 = arith.constant 0 : index
    %259 = vector.load %arg17[%c0_138, %c0_139] : memref<2x16xf32, #tpu.memory_space<vmem>>, vector<2x16xf32>
    %c0_140 = arith.constant 0 : index
    %c0_141 = arith.constant 0 : index
    %260 = vector.load %arg18[%c0_140, %c0_141] : memref<2x16xf32, #tpu.memory_space<vmem>>, vector<2x16xf32>
    %cst_142 = arith.constant dense<0.000000e+00> : vector<2x64xf32>
    %261 = tpu.matmul %259, %26, %cst_142 {dimension_numbers = #tpu.dot_dimension_numbers<[1], [0], [0], [1], [0, 0, 1, 1], [], []>} : vector<2x16xf32>, vector<16x64xf32>, vector<2x64xf32> -> vector<2x64xf32>
    %262 = arith.addf %258, %261 : vector<2x64xf32>
    %263 = vector.extract_strided_slice %262 {offsets = [0, 0], sizes = [2, 16], strides = [1, 1]} : vector<2x64xf32> to vector<2x16xf32>
    %264 = arith.negf %263 : vector<2x16xf32>
    %265 = math.exp %264 : vector<2x16xf32>
    %cst_143 = arith.constant 1.000000e+00 : f32
    %266 = vector.broadcast %cst_143 : f32 to vector<2x16xf32>
    %267 = arith.addf %266, %265 : vector<2x16xf32>
    %268 = arith.divf %266, %267 : vector<2x16xf32>
    %269 = vector.extract_strided_slice %262 {offsets = [0, 16], sizes = [2, 16], strides = [1, 1]} : vector<2x64xf32> to vector<2x16xf32>
    %270 = arith.negf %269 : vector<2x16xf32>
    %271 = math.exp %270 : vector<2x16xf32>
    %cst_144 = arith.constant 1.000000e+00 : f32
    %272 = vector.broadcast %cst_144 : f32 to vector<2x16xf32>
    %273 = arith.addf %272, %271 : vector<2x16xf32>
    %274 = arith.divf %272, %273 : vector<2x16xf32>
    %275 = vector.extract_strided_slice %262 {offsets = [0, 32], sizes = [2, 16], strides = [1, 1]} : vector<2x64xf32> to vector<2x16xf32>
    %276 = math.tanh %275 : vector<2x16xf32>
    %277 = vector.extract_strided_slice %262 {offsets = [0, 48], sizes = [2, 16], strides = [1, 1]} : vector<2x64xf32> to vector<2x16xf32>
    %278 = arith.negf %277 : vector<2x16xf32>
    %279 = math.exp %278 : vector<2x16xf32>
    %cst_145 = arith.constant 1.000000e+00 : f32
    %280 = vector.broadcast %cst_145 : f32 to vector<2x16xf32>
    %281 = arith.addf %280, %279 : vector<2x16xf32>
    %282 = arith.divf %280, %281 : vector<2x16xf32>
    %283 = arith.mulf %274, %260 : vector<2x16xf32>
    %284 = arith.mulf %268, %276 : vector<2x16xf32>
    %285 = arith.addf %283, %284 : vector<2x16xf32>
    %286 = math.tanh %285 : vector<2x16xf32>
    %287 = arith.mulf %282, %286 : vector<2x16xf32>
    %c0_146 = arith.constant 0 : index
    %c0_147 = arith.constant 0 : index
    %288 = vector.load %arg17[%c0_146, %c0_147] : memref<2x16xf32, #tpu.memory_space<vmem>>, vector<2x16xf32>
    tpu.vector_store %arg17[%c0_146, %c0_147], %287 {strides = array<i32>} : memref<2x16xf32, #tpu.memory_space<vmem>>, vector<2x16xf32>,
    %c0_148 = arith.constant 0 : index
    %c0_149 = arith.constant 0 : index
    %289 = vector.load %arg18[%c0_148, %c0_149] : memref<2x16xf32, #tpu.memory_space<vmem>>, vector<2x16xf32>
    tpu.vector_store %arg18[%c0_148, %c0_149], %285 {strides = array<i32>} : memref<2x16xf32, #tpu.memory_space<vmem>>, vector<2x16xf32>,
    %c24_150 = arith.constant 24 : index
    %c0_151 = arith.constant 0 : index
    %290 = vector.load %arg14[%c24_150, %c0_151] : memref<32x16xf32, #tpu.memory_space<vmem>>, vector<2x16xf32>
    tpu.vector_store %arg14[%c24_150, %c0_151], %287 {strides = array<i32>} : memref<32x16xf32, #tpu.memory_space<vmem>>, vector<2x16xf32>,
    %c8 = arith.constant 8 : index
    %c0_152 = arith.constant 0 : index
    %291 = vector.load %arg19[%c8, %c0_152] : memref<32x64xf32, #tpu.memory_space<vmem>>, vector<2x64xf32>
    %c0_153 = arith.constant 0 : index
    %c0_154 = arith.constant 0 : index
    %292 = vector.load %arg15[%c0_153, %c0_154] : memref<2x16xf32, #tpu.memory_space<vmem>>, vector<2x16xf32>
    %c0_155 = arith.constant 0 : index
    %c0_156 = arith.constant 0 : index
    %293 = vector.load %arg16[%c0_155, %c0_156] : memref<2x16xf32, #tpu.memory_space<vmem>>, vector<2x16xf32>
    %cst_157 = arith.constant dense<0.000000e+00> : vector<2x64xf32>
    %294 = tpu.matmul %292, %25, %cst_157 {dimension_numbers = #tpu.dot_dimension_numbers<[1], [0], [0], [1], [0, 0, 1, 1], [], []>} : vector<2x16xf32>, vector<16x64xf32>, vector<2x64xf32> -> vector<2x64xf32>
    %295 = arith.addf %291, %294 : vector<2x64xf32>
    %296 = vector.extract_strided_slice %295 {offsets = [0, 0], sizes = [2, 16], strides = [1, 1]} : vector<2x64xf32> to vector<2x16xf32>
    %297 = arith.negf %296 : vector<2x16xf32>
    %298 = math.exp %297 : vector<2x16xf32>
    %cst_158 = arith.constant 1.000000e+00 : f32
    %299 = vector.broadcast %cst_158 : f32 to vector<2x16xf32>
    %300 = arith.addf %299, %298 : vector<2x16xf32>
    %301 = arith.divf %299, %300 : vector<2x16xf32>
    %302 = vector.extract_strided_slice %295 {offsets = [0, 16], sizes = [2, 16], strides = [1, 1]} : vector<2x64xf32> to vector<2x16xf32>
    %303 = arith.negf %302 : vector<2x16xf32>
    %304 = math.exp %303 : vector<2x16xf32>
    %cst_159 = arith.constant 1.000000e+00 : f32
    %305 = vector.broadcast %cst_159 : f32 to vector<2x16xf32>
    %306 = arith.addf %305, %304 : vector<2x16xf32>
    %307 = arith.divf %305, %306 : vector<2x16xf32>
    %308 = vector.extract_strided_slice %295 {offsets = [0, 32], sizes = [2, 16], strides = [1, 1]} : vector<2x64xf32> to vector<2x16xf32>
    %309 = math.tanh %308 : vector<2x16xf32>
    %310 = vector.extract_strided_slice %295 {offsets = [0, 48], sizes = [2, 16], strides = [1, 1]} : vector<2x64xf32> to vector<2x16xf32>
    %311 = arith.negf %310 : vector<2x16xf32>
    %312 = math.exp %311 : vector<2x16xf32>
    %cst_160 = arith.constant 1.000000e+00 : f32
    %313 = vector.broadcast %cst_160 : f32 to vector<2x16xf32>
    %314 = arith.addf %313, %312 : vector<2x16xf32>
    %315 = arith.divf %313, %314 : vector<2x16xf32>
    %316 = arith.mulf %307, %293 : vector<2x16xf32>
    %317 = arith.mulf %301, %309 : vector<2x16xf32>
    %318 = arith.addf %316, %317 : vector<2x16xf32>
    %319 = math.tanh %318 : vector<2x16xf32>
    %320 = arith.mulf %315, %319 : vector<2x16xf32>
    %c0_161 = arith.constant 0 : index
    %c0_162 = arith.constant 0 : index
    %321 = vector.load %arg15[%c0_161, %c0_162] : memref<2x16xf32, #tpu.memory_space<vmem>>, vector<2x16xf32>
    tpu.vector_store %arg15[%c0_161, %c0_162], %320 {strides = array<i32>} : memref<2x16xf32, #tpu.memory_space<vmem>>, vector<2x16xf32>,
    %c0_163 = arith.constant 0 : index
    %c0_164 = arith.constant 0 : index
    %322 = vector.load %arg16[%c0_163, %c0_164] : memref<2x16xf32, #tpu.memory_space<vmem>>, vector<2x16xf32>
    tpu.vector_store %arg16[%c0_163, %c0_164], %318 {strides = array<i32>} : memref<2x16xf32, #tpu.memory_space<vmem>>, vector<2x16xf32>,
    %c8_165 = arith.constant 8 : index
    %c0_166 = arith.constant 0 : index
    %323 = vector.load %arg13[%c8_165, %c0_166] : memref<32x16xf32, #tpu.memory_space<vmem>>, vector<2x16xf32>
    tpu.vector_store %arg13[%c8_165, %c0_166], %320 {strides = array<i32>} : memref<32x16xf32, #tpu.memory_space<vmem>>, vector<2x16xf32>,
    %c22 = arith.constant 22 : index
    %c0_167 = arith.constant 0 : index
    %324 = vector.load %arg20[%c22, %c0_167] : memref<32x64xf32, #tpu.memory_space<vmem>>, vector<2x64xf32>
    %c0_168 = arith.constant 0 : index
    %c0_169 = arith.constant 0 : index
    %325 = vector.load %arg17[%c0_168, %c0_169] : memref<2x16xf32, #tpu.memory_space<vmem>>, vector<2x16xf32>
    %c0_170 = arith.constant 0 : index
    %c0_171 = arith.constant 0 : index
    %326 = vector.load %arg18[%c0_170, %c0_171] : memref<2x16xf32, #tpu.memory_space<vmem>>, vector<2x16xf32>
    %cst_172 = arith.constant dense<0.000000e+00> : vector<2x64xf32>
    %327 = tpu.matmul %325, %26, %cst_172 {dimension_numbers = #tpu.dot_dimension_numbers<[1], [0], [0], [1], [0, 0, 1, 1], [], []>} : vector<2x16xf32>, vector<16x64xf32>, vector<2x64xf32> -> vector<2x64xf32>
    %328 = arith.addf %324, %327 : vector<2x64xf32>
    %329 = vector.extract_strided_slice %328 {offsets = [0, 0], sizes = [2, 16], strides = [1, 1]} : vector<2x64xf32> to vector<2x16xf32>
    %330 = arith.negf %329 : vector<2x16xf32>
    %331 = math.exp %330 : vector<2x16xf32>
    %cst_173 = arith.constant 1.000000e+00 : f32
    %332 = vector.broadcast %cst_173 : f32 to vector<2x16xf32>
    %333 = arith.addf %332, %331 : vector<2x16xf32>
    %334 = arith.divf %332, %333 : vector<2x16xf32>
    %335 = vector.extract_strided_slice %328 {offsets = [0, 16], sizes = [2, 16], strides = [1, 1]} : vector<2x64xf32> to vector<2x16xf32>
    %336 = arith.negf %335 : vector<2x16xf32>
    %337 = math.exp %336 : vector<2x16xf32>
    %cst_174 = arith.constant 1.000000e+00 : f32
    %338 = vector.broadcast %cst_174 : f32 to vector<2x16xf32>
    %339 = arith.addf %338, %337 : vector<2x16xf32>
    %340 = arith.divf %338, %339 : vector<2x16xf32>
    %341 = vector.extract_strided_slice %328 {offsets = [0, 32], sizes = [2, 16], strides = [1, 1]} : vector<2x64xf32> to vector<2x16xf32>
    %342 = math.tanh %341 : vector<2x16xf32>
    %343 = vector.extract_strided_slice %328 {offsets = [0, 48], sizes = [2, 16], strides = [1, 1]} : vector<2x64xf32> to vector<2x16xf32>
    %344 = arith.negf %343 : vector<2x16xf32>
    %345 = math.exp %344 : vector<2x16xf32>
    %cst_175 = arith.constant 1.000000e+00 : f32
    %346 = vector.broadcast %cst_175 : f32 to vector<2x16xf32>
    %347 = arith.addf %346, %345 : vector<2x16xf32>
    %348 = arith.divf %346, %347 : vector<2x16xf32>
    %349 = arith.mulf %340, %326 : vector<2x16xf32>
    %350 = arith.mulf %334, %342 : vector<2x16xf32>
    %351 = arith.addf %349, %350 : vector<2x16xf32>
    %352 = math.tanh %351 : vector<2x16xf32>
    %353 = arith.mulf %348, %352 : vector<2x16xf32>
    %c0_176 = arith.constant 0 : index
    %c0_177 = arith.constant 0 : index
    %354 = vector.load %arg17[%c0_176, %c0_177] : memref<2x16xf32, #tpu.memory_space<vmem>>, vector<2x16xf32>
    tpu.vector_store %arg17[%c0_176, %c0_177], %353 {strides = array<i32>} : memref<2x16xf32, #tpu.memory_space<vmem>>, vector<2x16xf32>,
    %c0_178 = arith.constant 0 : index
    %c0_179 = arith.constant 0 : index
    %355 = vector.load %arg18[%c0_178, %c0_179] : memref<2x16xf32, #tpu.memory_space<vmem>>, vector<2x16xf32>
    tpu.vector_store %arg18[%c0_178, %c0_179], %351 {strides = array<i32>} : memref<2x16xf32, #tpu.memory_space<vmem>>, vector<2x16xf32>,
    %c22_180 = arith.constant 22 : index
    %c0_181 = arith.constant 0 : index
    %356 = vector.load %arg14[%c22_180, %c0_181] : memref<32x16xf32, #tpu.memory_space<vmem>>, vector<2x16xf32>
    tpu.vector_store %arg14[%c22_180, %c0_181], %353 {strides = array<i32>} : memref<32x16xf32, #tpu.memory_space<vmem>>, vector<2x16xf32>,
    %c10 = arith.constant 10 : index
    %c0_182 = arith.constant 0 : index
    %357 = vector.load %arg19[%c10, %c0_182] : memref<32x64xf32, #tpu.memory_space<vmem>>, vector<2x64xf32>
    %c0_183 = arith.constant 0 : index
    %c0_184 = arith.constant 0 : index
    %358 = vector.load %arg15[%c0_183, %c0_184] : memref<2x16xf32, #tpu.memory_space<vmem>>, vector<2x16xf32>
    %c0_185 = arith.constant 0 : index
    %c0_186 = arith.constant 0 : index
    %359 = vector.load %arg16[%c0_185, %c0_186] : memref<2x16xf32, #tpu.memory_space<vmem>>, vector<2x16xf32>
    %cst_187 = arith.constant dense<0.000000e+00> : vector<2x64xf32>
    %360 = tpu.matmul %358, %25, %cst_187 {dimension_numbers = #tpu.dot_dimension_numbers<[1], [0], [0], [1], [0, 0, 1, 1], [], []>} : vector<2x16xf32>, vector<16x64xf32>, vector<2x64xf32> -> vector<2x64xf32>
    %361 = arith.addf %357, %360 : vector<2x64xf32>
    %362 = vector.extract_strided_slice %361 {offsets = [0, 0], sizes = [2, 16], strides = [1, 1]} : vector<2x64xf32> to vector<2x16xf32>
    %363 = arith.negf %362 : vector<2x16xf32>
    %364 = math.exp %363 : vector<2x16xf32>
    %cst_188 = arith.constant 1.000000e+00 : f32
    %365 = vector.broadcast %cst_188 : f32 to vector<2x16xf32>
    %366 = arith.addf %365, %364 : vector<2x16xf32>
    %367 = arith.divf %365, %366 : vector<2x16xf32>
    %368 = vector.extract_strided_slice %361 {offsets = [0, 16], sizes = [2, 16], strides = [1, 1]} : vector<2x64xf32> to vector<2x16xf32>
    %369 = arith.negf %368 : vector<2x16xf32>
    %370 = math.exp %369 : vector<2x16xf32>
    %cst_189 = arith.constant 1.000000e+00 : f32
    %371 = vector.broadcast %cst_189 : f32 to vector<2x16xf32>
    %372 = arith.addf %371, %370 : vector<2x16xf32>
    %373 = arith.divf %371, %372 : vector<2x16xf32>
    %374 = vector.extract_strided_slice %361 {offsets = [0, 32], sizes = [2, 16], strides = [1, 1]} : vector<2x64xf32> to vector<2x16xf32>
    %375 = math.tanh %374 : vector<2x16xf32>
    %376 = vector.extract_strided_slice %361 {offsets = [0, 48], sizes = [2, 16], strides = [1, 1]} : vector<2x64xf32> to vector<2x16xf32>
    %377 = arith.negf %376 : vector<2x16xf32>
    %378 = math.exp %377 : vector<2x16xf32>
    %cst_190 = arith.constant 1.000000e+00 : f32
    %379 = vector.broadcast %cst_190 : f32 to vector<2x16xf32>
    %380 = arith.addf %379, %378 : vector<2x16xf32>
    %381 = arith.divf %379, %380 : vector<2x16xf32>
    %382 = arith.mulf %373, %359 : vector<2x16xf32>
    %383 = arith.mulf %367, %375 : vector<2x16xf32>
    %384 = arith.addf %382, %383 : vector<2x16xf32>
    %385 = math.tanh %384 : vector<2x16xf32>
    %386 = arith.mulf %381, %385 : vector<2x16xf32>
    %c0_191 = arith.constant 0 : index
    %c0_192 = arith.constant 0 : index
    %387 = vector.load %arg15[%c0_191, %c0_192] : memref<2x16xf32, #tpu.memory_space<vmem>>, vector<2x16xf32>
    tpu.vector_store %arg15[%c0_191, %c0_192], %386 {strides = array<i32>} : memref<2x16xf32, #tpu.memory_space<vmem>>, vector<2x16xf32>,
    %c0_193 = arith.constant 0 : index
    %c0_194 = arith.constant 0 : index
    %388 = vector.load %arg16[%c0_193, %c0_194] : memref<2x16xf32, #tpu.memory_space<vmem>>, vector<2x16xf32>
    tpu.vector_store %arg16[%c0_193, %c0_194], %384 {strides = array<i32>} : memref<2x16xf32, #tpu.memory_space<vmem>>, vector<2x16xf32>,
    %c10_195 = arith.constant 10 : index
    %c0_196 = arith.constant 0 : index
    %389 = vector.load %arg13[%c10_195, %c0_196] : memref<32x16xf32, #tpu.memory_space<vmem>>, vector<2x16xf32>
    tpu.vector_store %arg13[%c10_195, %c0_196], %386 {strides = array<i32>} : memref<32x16xf32, #tpu.memory_space<vmem>>, vector<2x16xf32>,
    %c20 = arith.constant 20 : index
    %c0_197 = arith.constant 0 : index
    %390 = vector.load %arg20[%c20, %c0_197] : memref<32x64xf32, #tpu.memory_space<vmem>>, vector<2x64xf32>
    %c0_198 = arith.constant 0 : index
    %c0_199 = arith.constant 0 : index
    %391 = vector.load %arg17[%c0_198, %c0_199] : memref<2x16xf32, #tpu.memory_space<vmem>>, vector<2x16xf32>
    %c0_200 = arith.constant 0 : index
    %c0_201 = arith.constant 0 : index
    %392 = vector.load %arg18[%c0_200, %c0_201] : memref<2x16xf32, #tpu.memory_space<vmem>>, vector<2x16xf32>
    %cst_202 = arith.constant dense<0.000000e+00> : vector<2x64xf32>
    %393 = tpu.matmul %391, %26, %cst_202 {dimension_numbers = #tpu.dot_dimension_numbers<[1], [0], [0], [1], [0, 0, 1, 1], [], []>} : vector<2x16xf32>, vector<16x64xf32>, vector<2x64xf32> -> vector<2x64xf32>
    %394 = arith.addf %390, %393 : vector<2x64xf32>
    %395 = vector.extract_strided_slice %394 {offsets = [0, 0], sizes = [2, 16], strides = [1, 1]} : vector<2x64xf32> to vector<2x16xf32>
    %396 = arith.negf %395 : vector<2x16xf32>
    %397 = math.exp %396 : vector<2x16xf32>
    %cst_203 = arith.constant 1.000000e+00 : f32
    %398 = vector.broadcast %cst_203 : f32 to vector<2x16xf32>
    %399 = arith.addf %398, %397 : vector<2x16xf32>
    %400 = arith.divf %398, %399 : vector<2x16xf32>
    %401 = vector.extract_strided_slice %394 {offsets = [0, 16], sizes = [2, 16], strides = [1, 1]} : vector<2x64xf32> to vector<2x16xf32>
    %402 = arith.negf %401 : vector<2x16xf32>
    %403 = math.exp %402 : vector<2x16xf32>
    %cst_204 = arith.constant 1.000000e+00 : f32
    %404 = vector.broadcast %cst_204 : f32 to vector<2x16xf32>
    %405 = arith.addf %404, %403 : vector<2x16xf32>
    %406 = arith.divf %404, %405 : vector<2x16xf32>
    %407 = vector.extract_strided_slice %394 {offsets = [0, 32], sizes = [2, 16], strides = [1, 1]} : vector<2x64xf32> to vector<2x16xf32>
    %408 = math.tanh %407 : vector<2x16xf32>
    %409 = vector.extract_strided_slice %394 {offsets = [0, 48], sizes = [2, 16], strides = [1, 1]} : vector<2x64xf32> to vector<2x16xf32>
    %410 = arith.negf %409 : vector<2x16xf32>
    %411 = math.exp %410 : vector<2x16xf32>
    %cst_205 = arith.constant 1.000000e+00 : f32
    %412 = vector.broadcast %cst_205 : f32 to vector<2x16xf32>
    %413 = arith.addf %412, %411 : vector<2x16xf32>
    %414 = arith.divf %412, %413 : vector<2x16xf32>
    %415 = arith.mulf %406, %392 : vector<2x16xf32>
    %416 = arith.mulf %400, %408 : vector<2x16xf32>
    %417 = arith.addf %415, %416 : vector<2x16xf32>
    %418 = math.tanh %417 : vector<2x16xf32>
    %419 = arith.mulf %414, %418 : vector<2x16xf32>
    %c0_206 = arith.constant 0 : index
    %c0_207 = arith.constant 0 : index
    %420 = vector.load %arg17[%c0_206, %c0_207] : memref<2x16xf32, #tpu.memory_space<vmem>>, vector<2x16xf32>
    tpu.vector_store %arg17[%c0_206, %c0_207], %419 {strides = array<i32>} : memref<2x16xf32, #tpu.memory_space<vmem>>, vector<2x16xf32>,
    %c0_208 = arith.constant 0 : index
    %c0_209 = arith.constant 0 : index
    %421 = vector.load %arg18[%c0_208, %c0_209] : memref<2x16xf32, #tpu.memory_space<vmem>>, vector<2x16xf32>
    tpu.vector_store %arg18[%c0_208, %c0_209], %417 {strides = array<i32>} : memref<2x16xf32, #tpu.memory_space<vmem>>, vector<2x16xf32>,
    %c20_210 = arith.constant 20 : index
    %c0_211 = arith.constant 0 : index
    %422 = vector.load %arg14[%c20_210, %c0_211] : memref<32x16xf32, #tpu.memory_space<vmem>>, vector<2x16xf32>
    tpu.vector_store %arg14[%c20_210, %c0_211], %419 {strides = array<i32>} : memref<32x16xf32, #tpu.memory_space<vmem>>, vector<2x16xf32>,
    %c12 = arith.constant 12 : index
    %c0_212 = arith.constant 0 : index
    %423 = vector.load %arg19[%c12, %c0_212] : memref<32x64xf32, #tpu.memory_space<vmem>>, vector<2x64xf32>
    %c0_213 = arith.constant 0 : index
    %c0_214 = arith.constant 0 : index
    %424 = vector.load %arg15[%c0_213, %c0_214] : memref<2x16xf32, #tpu.memory_space<vmem>>, vector<2x16xf32>
    %c0_215 = arith.constant 0 : index
    %c0_216 = arith.constant 0 : index
    %425 = vector.load %arg16[%c0_215, %c0_216] : memref<2x16xf32, #tpu.memory_space<vmem>>, vector<2x16xf32>
    %cst_217 = arith.constant dense<0.000000e+00> : vector<2x64xf32>
    %426 = tpu.matmul %424, %25, %cst_217 {dimension_numbers = #tpu.dot_dimension_numbers<[1], [0], [0], [1], [0, 0, 1, 1], [], []>} : vector<2x16xf32>, vector<16x64xf32>, vector<2x64xf32> -> vector<2x64xf32>
    %427 = arith.addf %423, %426 : vector<2x64xf32>
    %428 = vector.extract_strided_slice %427 {offsets = [0, 0], sizes = [2, 16], strides = [1, 1]} : vector<2x64xf32> to vector<2x16xf32>
    %429 = arith.negf %428 : vector<2x16xf32>
    %430 = math.exp %429 : vector<2x16xf32>
    %cst_218 = arith.constant 1.000000e+00 : f32
    %431 = vector.broadcast %cst_218 : f32 to vector<2x16xf32>
    %432 = arith.addf %431, %430 : vector<2x16xf32>
    %433 = arith.divf %431, %432 : vector<2x16xf32>
    %434 = vector.extract_strided_slice %427 {offsets = [0, 16], sizes = [2, 16], strides = [1, 1]} : vector<2x64xf32> to vector<2x16xf32>
    %435 = arith.negf %434 : vector<2x16xf32>
    %436 = math.exp %435 : vector<2x16xf32>
    %cst_219 = arith.constant 1.000000e+00 : f32
    %437 = vector.broadcast %cst_219 : f32 to vector<2x16xf32>
    %438 = arith.addf %437, %436 : vector<2x16xf32>
    %439 = arith.divf %437, %438 : vector<2x16xf32>
    %440 = vector.extract_strided_slice %427 {offsets = [0, 32], sizes = [2, 16], strides = [1, 1]} : vector<2x64xf32> to vector<2x16xf32>
    %441 = math.tanh %440 : vector<2x16xf32>
    %442 = vector.extract_strided_slice %427 {offsets = [0, 48], sizes = [2, 16], strides = [1, 1]} : vector<2x64xf32> to vector<2x16xf32>
    %443 = arith.negf %442 : vector<2x16xf32>
    %444 = math.exp %443 : vector<2x16xf32>
    %cst_220 = arith.constant 1.000000e+00 : f32
    %445 = vector.broadcast %cst_220 : f32 to vector<2x16xf32>
    %446 = arith.addf %445, %444 : vector<2x16xf32>
    %447 = arith.divf %445, %446 : vector<2x16xf32>
    %448 = arith.mulf %439, %425 : vector<2x16xf32>
    %449 = arith.mulf %433, %441 : vector<2x16xf32>
    %450 = arith.addf %448, %449 : vector<2x16xf32>
    %451 = math.tanh %450 : vector<2x16xf32>
    %452 = arith.mulf %447, %451 : vector<2x16xf32>
    %c0_221 = arith.constant 0 : index
    %c0_222 = arith.constant 0 : index
    %453 = vector.load %arg15[%c0_221, %c0_222] : memref<2x16xf32, #tpu.memory_space<vmem>>, vector<2x16xf32>
    tpu.vector_store %arg15[%c0_221, %c0_222], %452 {strides = array<i32>} : memref<2x16xf32, #tpu.memory_space<vmem>>, vector<2x16xf32>,
    %c0_223 = arith.constant 0 : index
    %c0_224 = arith.constant 0 : index
    %454 = vector.load %arg16[%c0_223, %c0_224] : memref<2x16xf32, #tpu.memory_space<vmem>>, vector<2x16xf32>
    tpu.vector_store %arg16[%c0_223, %c0_224], %450 {strides = array<i32>} : memref<2x16xf32, #tpu.memory_space<vmem>>, vector<2x16xf32>,
    %c12_225 = arith.constant 12 : index
    %c0_226 = arith.constant 0 : index
    %455 = vector.load %arg13[%c12_225, %c0_226] : memref<32x16xf32, #tpu.memory_space<vmem>>, vector<2x16xf32>
    tpu.vector_store %arg13[%c12_225, %c0_226], %452 {strides = array<i32>} : memref<32x16xf32, #tpu.memory_space<vmem>>, vector<2x16xf32>,
    %c18 = arith.constant 18 : index
    %c0_227 = arith.constant 0 : index
    %456 = vector.load %arg20[%c18, %c0_227] : memref<32x64xf32, #tpu.memory_space<vmem>>, vector<2x64xf32>
    %c0_228 = arith.constant 0 : index
    %c0_229 = arith.constant 0 : index
    %457 = vector.load %arg17[%c0_228, %c0_229] : memref<2x16xf32, #tpu.memory_space<vmem>>, vector<2x16xf32>
    %c0_230 = arith.constant 0 : index
    %c0_231 = arith.constant 0 : index
    %458 = vector.load %arg18[%c0_230, %c0_231] : memref<2x16xf32, #tpu.memory_space<vmem>>, vector<2x16xf32>
    %cst_232 = arith.constant dense<0.000000e+00> : vector<2x64xf32>
    %459 = tpu.matmul %457, %26, %cst_232 {dimension_numbers = #tpu.dot_dimension_numbers<[1], [0], [0], [1], [0, 0, 1, 1], [], []>} : vector<2x16xf32>, vector<16x64xf32>, vector<2x64xf32> -> vector<2x64xf32>
    %460 = arith.addf %456, %459 : vector<2x64xf32>
    %461 = vector.extract_strided_slice %460 {offsets = [0, 0], sizes = [2, 16], strides = [1, 1]} : vector<2x64xf32> to vector<2x16xf32>
    %462 = arith.negf %461 : vector<2x16xf32>
    %463 = math.exp %462 : vector<2x16xf32>
    %cst_233 = arith.constant 1.000000e+00 : f32
    %464 = vector.broadcast %cst_233 : f32 to vector<2x16xf32>
    %465 = arith.addf %464, %463 : vector<2x16xf32>
    %466 = arith.divf %464, %465 : vector<2x16xf32>
    %467 = vector.extract_strided_slice %460 {offsets = [0, 16], sizes = [2, 16], strides = [1, 1]} : vector<2x64xf32> to vector<2x16xf32>
    %468 = arith.negf %467 : vector<2x16xf32>
    %469 = math.exp %468 : vector<2x16xf32>
    %cst_234 = arith.constant 1.000000e+00 : f32
    %470 = vector.broadcast %cst_234 : f32 to vector<2x16xf32>
    %471 = arith.addf %470, %469 : vector<2x16xf32>
    %472 = arith.divf %470, %471 : vector<2x16xf32>
    %473 = vector.extract_strided_slice %460 {offsets = [0, 32], sizes = [2, 16], strides = [1, 1]} : vector<2x64xf32> to vector<2x16xf32>
    %474 = math.tanh %473 : vector<2x16xf32>
    %475 = vector.extract_strided_slice %460 {offsets = [0, 48], sizes = [2, 16], strides = [1, 1]} : vector<2x64xf32> to vector<2x16xf32>
    %476 = arith.negf %475 : vector<2x16xf32>
    %477 = math.exp %476 : vector<2x16xf32>
    %cst_235 = arith.constant 1.000000e+00 : f32
    %478 = vector.broadcast %cst_235 : f32 to vector<2x16xf32>
    %479 = arith.addf %478, %477 : vector<2x16xf32>
    %480 = arith.divf %478, %479 : vector<2x16xf32>
    %481 = arith.mulf %472, %458 : vector<2x16xf32>
    %482 = arith.mulf %466, %474 : vector<2x16xf32>
    %483 = arith.addf %481, %482 : vector<2x16xf32>
    %484 = math.tanh %483 : vector<2x16xf32>
    %485 = arith.mulf %480, %484 : vector<2x16xf32>
    %c0_236 = arith.constant 0 : index
    %c0_237 = arith.constant 0 : index
    %486 = vector.load %arg17[%c0_236, %c0_237] : memref<2x16xf32, #tpu.memory_space<vmem>>, vector<2x16xf32>
    tpu.vector_store %arg17[%c0_236, %c0_237], %485 {strides = array<i32>} : memref<2x16xf32, #tpu.memory_space<vmem>>, vector<2x16xf32>,
    %c0_238 = arith.constant 0 : index
    %c0_239 = arith.constant 0 : index
    %487 = vector.load %arg18[%c0_238, %c0_239] : memref<2x16xf32, #tpu.memory_space<vmem>>, vector<2x16xf32>
    tpu.vector_store %arg18[%c0_238, %c0_239], %483 {strides = array<i32>} : memref<2x16xf32, #tpu.memory_space<vmem>>, vector<2x16xf32>,
    %c18_240 = arith.constant 18 : index
    %c0_241 = arith.constant 0 : index
    %488 = vector.load %arg14[%c18_240, %c0_241] : memref<32x16xf32, #tpu.memory_space<vmem>>, vector<2x16xf32>
    tpu.vector_store %arg14[%c18_240, %c0_241], %485 {strides = array<i32>} : memref<32x16xf32, #tpu.memory_space<vmem>>, vector<2x16xf32>,
    %c14 = arith.constant 14 : index
    %c0_242 = arith.constant 0 : index
    %489 = vector.load %arg19[%c14, %c0_242] : memref<32x64xf32, #tpu.memory_space<vmem>>, vector<2x64xf32>
    %c0_243 = arith.constant 0 : index
    %c0_244 = arith.constant 0 : index
    %490 = vector.load %arg15[%c0_243, %c0_244] : memref<2x16xf32, #tpu.memory_space<vmem>>, vector<2x16xf32>
    %c0_245 = arith.constant 0 : index
    %c0_246 = arith.constant 0 : index
    %491 = vector.load %arg16[%c0_245, %c0_246] : memref<2x16xf32, #tpu.memory_space<vmem>>, vector<2x16xf32>
    %cst_247 = arith.constant dense<0.000000e+00> : vector<2x64xf32>
    %492 = tpu.matmul %490, %25, %cst_247 {dimension_numbers = #tpu.dot_dimension_numbers<[1], [0], [0], [1], [0, 0, 1, 1], [], []>} : vector<2x16xf32>, vector<16x64xf32>, vector<2x64xf32> -> vector<2x64xf32>
    %493 = arith.addf %489, %492 : vector<2x64xf32>
    %494 = vector.extract_strided_slice %493 {offsets = [0, 0], sizes = [2, 16], strides = [1, 1]} : vector<2x64xf32> to vector<2x16xf32>
    %495 = arith.negf %494 : vector<2x16xf32>
    %496 = math.exp %495 : vector<2x16xf32>
    %cst_248 = arith.constant 1.000000e+00 : f32
    %497 = vector.broadcast %cst_248 : f32 to vector<2x16xf32>
    %498 = arith.addf %497, %496 : vector<2x16xf32>
    %499 = arith.divf %497, %498 : vector<2x16xf32>
    %500 = vector.extract_strided_slice %493 {offsets = [0, 16], sizes = [2, 16], strides = [1, 1]} : vector<2x64xf32> to vector<2x16xf32>
    %501 = arith.negf %500 : vector<2x16xf32>
    %502 = math.exp %501 : vector<2x16xf32>
    %cst_249 = arith.constant 1.000000e+00 : f32
    %503 = vector.broadcast %cst_249 : f32 to vector<2x16xf32>
    %504 = arith.addf %503, %502 : vector<2x16xf32>
    %505 = arith.divf %503, %504 : vector<2x16xf32>
    %506 = vector.extract_strided_slice %493 {offsets = [0, 32], sizes = [2, 16], strides = [1, 1]} : vector<2x64xf32> to vector<2x16xf32>
    %507 = math.tanh %506 : vector<2x16xf32>
    %508 = vector.extract_strided_slice %493 {offsets = [0, 48], sizes = [2, 16], strides = [1, 1]} : vector<2x64xf32> to vector<2x16xf32>
    %509 = arith.negf %508 : vector<2x16xf32>
    %510 = math.exp %509 : vector<2x16xf32>
    %cst_250 = arith.constant 1.000000e+00 : f32
    %511 = vector.broadcast %cst_250 : f32 to vector<2x16xf32>
    %512 = arith.addf %511, %510 : vector<2x16xf32>
    %513 = arith.divf %511, %512 : vector<2x16xf32>
    %514 = arith.mulf %505, %491 : vector<2x16xf32>
    %515 = arith.mulf %499, %507 : vector<2x16xf32>
    %516 = arith.addf %514, %515 : vector<2x16xf32>
    %517 = math.tanh %516 : vector<2x16xf32>
    %518 = arith.mulf %513, %517 : vector<2x16xf32>
    %c0_251 = arith.constant 0 : index
    %c0_252 = arith.constant 0 : index
    %519 = vector.load %arg15[%c0_251, %c0_252] : memref<2x16xf32, #tpu.memory_space<vmem>>, vector<2x16xf32>
    tpu.vector_store %arg15[%c0_251, %c0_252], %518 {strides = array<i32>} : memref<2x16xf32, #tpu.memory_space<vmem>>, vector<2x16xf32>,
    %c0_253 = arith.constant 0 : index
    %c0_254 = arith.constant 0 : index
    %520 = vector.load %arg16[%c0_253, %c0_254] : memref<2x16xf32, #tpu.memory_space<vmem>>, vector<2x16xf32>
    tpu.vector_store %arg16[%c0_253, %c0_254], %516 {strides = array<i32>} : memref<2x16xf32, #tpu.memory_space<vmem>>, vector<2x16xf32>,
    %c14_255 = arith.constant 14 : index
    %c0_256 = arith.constant 0 : index
    %521 = vector.load %arg13[%c14_255, %c0_256] : memref<32x16xf32, #tpu.memory_space<vmem>>, vector<2x16xf32>
    tpu.vector_store %arg13[%c14_255, %c0_256], %518 {strides = array<i32>} : memref<32x16xf32, #tpu.memory_space<vmem>>, vector<2x16xf32>,
    %c16 = arith.constant 16 : index
    %c0_257 = arith.constant 0 : index
    %522 = vector.load %arg20[%c16, %c0_257] : memref<32x64xf32, #tpu.memory_space<vmem>>, vector<2x64xf32>
    %c0_258 = arith.constant 0 : index
    %c0_259 = arith.constant 0 : index
    %523 = vector.load %arg17[%c0_258, %c0_259] : memref<2x16xf32, #tpu.memory_space<vmem>>, vector<2x16xf32>
    %c0_260 = arith.constant 0 : index
    %c0_261 = arith.constant 0 : index
    %524 = vector.load %arg18[%c0_260, %c0_261] : memref<2x16xf32, #tpu.memory_space<vmem>>, vector<2x16xf32>
    %cst_262 = arith.constant dense<0.000000e+00> : vector<2x64xf32>
    %525 = tpu.matmul %523, %26, %cst_262 {dimension_numbers = #tpu.dot_dimension_numbers<[1], [0], [0], [1], [0, 0, 1, 1], [], []>} : vector<2x16xf32>, vector<16x64xf32>, vector<2x64xf32> -> vector<2x64xf32>
    %526 = arith.addf %522, %525 : vector<2x64xf32>
    %527 = vector.extract_strided_slice %526 {offsets = [0, 0], sizes = [2, 16], strides = [1, 1]} : vector<2x64xf32> to vector<2x16xf32>
    %528 = arith.negf %527 : vector<2x16xf32>
    %529 = math.exp %528 : vector<2x16xf32>
    %cst_263 = arith.constant 1.000000e+00 : f32
    %530 = vector.broadcast %cst_263 : f32 to vector<2x16xf32>
    %531 = arith.addf %530, %529 : vector<2x16xf32>
    %532 = arith.divf %530, %531 : vector<2x16xf32>
    %533 = vector.extract_strided_slice %526 {offsets = [0, 16], sizes = [2, 16], strides = [1, 1]} : vector<2x64xf32> to vector<2x16xf32>
    %534 = arith.negf %533 : vector<2x16xf32>
    %535 = math.exp %534 : vector<2x16xf32>
    %cst_264 = arith.constant 1.000000e+00 : f32
    %536 = vector.broadcast %cst_264 : f32 to vector<2x16xf32>
    %537 = arith.addf %536, %535 : vector<2x16xf32>
    %538 = arith.divf %536, %537 : vector<2x16xf32>
    %539 = vector.extract_strided_slice %526 {offsets = [0, 32], sizes = [2, 16], strides = [1, 1]} : vector<2x64xf32> to vector<2x16xf32>
    %540 = math.tanh %539 : vector<2x16xf32>
    %541 = vector.extract_strided_slice %526 {offsets = [0, 48], sizes = [2, 16], strides = [1, 1]} : vector<2x64xf32> to vector<2x16xf32>
    %542 = arith.negf %541 : vector<2x16xf32>
    %543 = math.exp %542 : vector<2x16xf32>
    %cst_265 = arith.constant 1.000000e+00 : f32
    %544 = vector.broadcast %cst_265 : f32 to vector<2x16xf32>
    %545 = arith.addf %544, %543 : vector<2x16xf32>
    %546 = arith.divf %544, %545 : vector<2x16xf32>
    %547 = arith.mulf %538, %524 : vector<2x16xf32>
    %548 = arith.mulf %532, %540 : vector<2x16xf32>
    %549 = arith.addf %547, %548 : vector<2x16xf32>
    %550 = math.tanh %549 : vector<2x16xf32>
    %551 = arith.mulf %546, %550 : vector<2x16xf32>
    %c0_266 = arith.constant 0 : index
    %c0_267 = arith.constant 0 : index
    %552 = vector.load %arg17[%c0_266, %c0_267] : memref<2x16xf32, #tpu.memory_space<vmem>>, vector<2x16xf32>
    tpu.vector_store %arg17[%c0_266, %c0_267], %551 {strides = array<i32>} : memref<2x16xf32, #tpu.memory_space<vmem>>, vector<2x16xf32>,
    %c0_268 = arith.constant 0 : index
    %c0_269 = arith.constant 0 : index
    %553 = vector.load %arg18[%c0_268, %c0_269] : memref<2x16xf32, #tpu.memory_space<vmem>>, vector<2x16xf32>
    tpu.vector_store %arg18[%c0_268, %c0_269], %549 {strides = array<i32>} : memref<2x16xf32, #tpu.memory_space<vmem>>, vector<2x16xf32>,
    %c16_270 = arith.constant 16 : index
    %c0_271 = arith.constant 0 : index
    %554 = vector.load %arg14[%c16_270, %c0_271] : memref<32x16xf32, #tpu.memory_space<vmem>>, vector<2x16xf32>
    tpu.vector_store %arg14[%c16_270, %c0_271], %551 {strides = array<i32>} : memref<32x16xf32, #tpu.memory_space<vmem>>, vector<2x16xf32>,
    %c16_272 = arith.constant 16 : index
    %c0_273 = arith.constant 0 : index
    %555 = vector.load %arg19[%c16_272, %c0_273] : memref<32x64xf32, #tpu.memory_space<vmem>>, vector<2x64xf32>
    %c0_274 = arith.constant 0 : index
    %c0_275 = arith.constant 0 : index
    %556 = vector.load %arg15[%c0_274, %c0_275] : memref<2x16xf32, #tpu.memory_space<vmem>>, vector<2x16xf32>
    %c0_276 = arith.constant 0 : index
    %c0_277 = arith.constant 0 : index
    %557 = vector.load %arg16[%c0_276, %c0_277] : memref<2x16xf32, #tpu.memory_space<vmem>>, vector<2x16xf32>
    %cst_278 = arith.constant dense<0.000000e+00> : vector<2x64xf32>
    %558 = tpu.matmul %556, %25, %cst_278 {dimension_numbers = #tpu.dot_dimension_numbers<[1], [0], [0], [1], [0, 0, 1, 1], [], []>} : vector<2x16xf32>, vector<16x64xf32>, vector<2x64xf32> -> vector<2x64xf32>
    %559 = arith.addf %555, %558 : vector<2x64xf32>
    %560 = vector.extract_strided_slice %559 {offsets = [0, 0], sizes = [2, 16], strides = [1, 1]} : vector<2x64xf32> to vector<2x16xf32>
    %561 = arith.negf %560 : vector<2x16xf32>
    %562 = math.exp %561 : vector<2x16xf32>
    %cst_279 = arith.constant 1.000000e+00 : f32
    %563 = vector.broadcast %cst_279 : f32 to vector<2x16xf32>
    %564 = arith.addf %563, %562 : vector<2x16xf32>
    %565 = arith.divf %563, %564 : vector<2x16xf32>
    %566 = vector.extract_strided_slice %559 {offsets = [0, 16], sizes = [2, 16], strides = [1, 1]} : vector<2x64xf32> to vector<2x16xf32>
    %567 = arith.negf %566 : vector<2x16xf32>
    %568 = math.exp %567 : vector<2x16xf32>
    %cst_280 = arith.constant 1.000000e+00 : f32
    %569 = vector.broadcast %cst_280 : f32 to vector<2x16xf32>
    %570 = arith.addf %569, %568 : vector<2x16xf32>
    %571 = arith.divf %569, %570 : vector<2x16xf32>
    %572 = vector.extract_strided_slice %559 {offsets = [0, 32], sizes = [2, 16], strides = [1, 1]} : vector<2x64xf32> to vector<2x16xf32>
    %573 = math.tanh %572 : vector<2x16xf32>
    %574 = vector.extract_strided_slice %559 {offsets = [0, 48], sizes = [2, 16], strides = [1, 1]} : vector<2x64xf32> to vector<2x16xf32>
    %575 = arith.negf %574 : vector<2x16xf32>
    %576 = math.exp %575 : vector<2x16xf32>
    %cst_281 = arith.constant 1.000000e+00 : f32
    %577 = vector.broadcast %cst_281 : f32 to vector<2x16xf32>
    %578 = arith.addf %577, %576 : vector<2x16xf32>
    %579 = arith.divf %577, %578 : vector<2x16xf32>
    %580 = arith.mulf %571, %557 : vector<2x16xf32>
    %581 = arith.mulf %565, %573 : vector<2x16xf32>
    %582 = arith.addf %580, %581 : vector<2x16xf32>
    %583 = math.tanh %582 : vector<2x16xf32>
    %584 = arith.mulf %579, %583 : vector<2x16xf32>
    %c0_282 = arith.constant 0 : index
    %c0_283 = arith.constant 0 : index
    %585 = vector.load %arg15[%c0_282, %c0_283] : memref<2x16xf32, #tpu.memory_space<vmem>>, vector<2x16xf32>
    tpu.vector_store %arg15[%c0_282, %c0_283], %584 {strides = array<i32>} : memref<2x16xf32, #tpu.memory_space<vmem>>, vector<2x16xf32>,
    %c0_284 = arith.constant 0 : index
    %c0_285 = arith.constant 0 : index
    %586 = vector.load %arg16[%c0_284, %c0_285] : memref<2x16xf32, #tpu.memory_space<vmem>>, vector<2x16xf32>
    tpu.vector_store %arg16[%c0_284, %c0_285], %582 {strides = array<i32>} : memref<2x16xf32, #tpu.memory_space<vmem>>, vector<2x16xf32>,
    %c16_286 = arith.constant 16 : index
    %c0_287 = arith.constant 0 : index
    %587 = vector.load %arg13[%c16_286, %c0_287] : memref<32x16xf32, #tpu.memory_space<vmem>>, vector<2x16xf32>
    tpu.vector_store %arg13[%c16_286, %c0_287], %584 {strides = array<i32>} : memref<32x16xf32, #tpu.memory_space<vmem>>, vector<2x16xf32>,
    %c14_288 = arith.constant 14 : index
    %c0_289 = arith.constant 0 : index
    %588 = vector.load %arg20[%c14_288, %c0_289] : memref<32x64xf32, #tpu.memory_space<vmem>>, vector<2x64xf32>
    %c0_290 = arith.constant 0 : index
    %c0_291 = arith.constant 0 : index
    %589 = vector.load %arg17[%c0_290, %c0_291] : memref<2x16xf32, #tpu.memory_space<vmem>>, vector<2x16xf32>
    %c0_292 = arith.constant 0 : index
    %c0_293 = arith.constant 0 : index
    %590 = vector.load %arg18[%c0_292, %c0_293] : memref<2x16xf32, #tpu.memory_space<vmem>>, vector<2x16xf32>
    %cst_294 = arith.constant dense<0.000000e+00> : vector<2x64xf32>
    %591 = tpu.matmul %589, %26, %cst_294 {dimension_numbers = #tpu.dot_dimension_numbers<[1], [0], [0], [1], [0, 0, 1, 1], [], []>} : vector<2x16xf32>, vector<16x64xf32>, vector<2x64xf32> -> vector<2x64xf32>
    %592 = arith.addf %588, %591 : vector<2x64xf32>
    %593 = vector.extract_strided_slice %592 {offsets = [0, 0], sizes = [2, 16], strides = [1, 1]} : vector<2x64xf32> to vector<2x16xf32>
    %594 = arith.negf %593 : vector<2x16xf32>
    %595 = math.exp %594 : vector<2x16xf32>
    %cst_295 = arith.constant 1.000000e+00 : f32
    %596 = vector.broadcast %cst_295 : f32 to vector<2x16xf32>
    %597 = arith.addf %596, %595 : vector<2x16xf32>
    %598 = arith.divf %596, %597 : vector<2x16xf32>
    %599 = vector.extract_strided_slice %592 {offsets = [0, 16], sizes = [2, 16], strides = [1, 1]} : vector<2x64xf32> to vector<2x16xf32>
    %600 = arith.negf %599 : vector<2x16xf32>
    %601 = math.exp %600 : vector<2x16xf32>
    %cst_296 = arith.constant 1.000000e+00 : f32
    %602 = vector.broadcast %cst_296 : f32 to vector<2x16xf32>
    %603 = arith.addf %602, %601 : vector<2x16xf32>
    %604 = arith.divf %602, %603 : vector<2x16xf32>
    %605 = vector.extract_strided_slice %592 {offsets = [0, 32], sizes = [2, 16], strides = [1, 1]} : vector<2x64xf32> to vector<2x16xf32>
    %606 = math.tanh %605 : vector<2x16xf32>
    %607 = vector.extract_strided_slice %592 {offsets = [0, 48], sizes = [2, 16], strides = [1, 1]} : vector<2x64xf32> to vector<2x16xf32>
    %608 = arith.negf %607 : vector<2x16xf32>
    %609 = math.exp %608 : vector<2x16xf32>
    %cst_297 = arith.constant 1.000000e+00 : f32
    %610 = vector.broadcast %cst_297 : f32 to vector<2x16xf32>
    %611 = arith.addf %610, %609 : vector<2x16xf32>
    %612 = arith.divf %610, %611 : vector<2x16xf32>
    %613 = arith.mulf %604, %590 : vector<2x16xf32>
    %614 = arith.mulf %598, %606 : vector<2x16xf32>
    %615 = arith.addf %613, %614 : vector<2x16xf32>
    %616 = math.tanh %615 : vector<2x16xf32>
    %617 = arith.mulf %612, %616 : vector<2x16xf32>
    %c0_298 = arith.constant 0 : index
    %c0_299 = arith.constant 0 : index
    %618 = vector.load %arg17[%c0_298, %c0_299] : memref<2x16xf32, #tpu.memory_space<vmem>>, vector<2x16xf32>
    tpu.vector_store %arg17[%c0_298, %c0_299], %617 {strides = array<i32>} : memref<2x16xf32, #tpu.memory_space<vmem>>, vector<2x16xf32>,
    %c0_300 = arith.constant 0 : index
    %c0_301 = arith.constant 0 : index
    %619 = vector.load %arg18[%c0_300, %c0_301] : memref<2x16xf32, #tpu.memory_space<vmem>>, vector<2x16xf32>
    tpu.vector_store %arg18[%c0_300, %c0_301], %615 {strides = array<i32>} : memref<2x16xf32, #tpu.memory_space<vmem>>, vector<2x16xf32>,
    %c14_302 = arith.constant 14 : index
    %c0_303 = arith.constant 0 : index
    %620 = vector.load %arg14[%c14_302, %c0_303] : memref<32x16xf32, #tpu.memory_space<vmem>>, vector<2x16xf32>
    tpu.vector_store %arg14[%c14_302, %c0_303], %617 {strides = array<i32>} : memref<32x16xf32, #tpu.memory_space<vmem>>, vector<2x16xf32>,
    %c18_304 = arith.constant 18 : index
    %c0_305 = arith.constant 0 : index
    %621 = vector.load %arg19[%c18_304, %c0_305] : memref<32x64xf32, #tpu.memory_space<vmem>>, vector<2x64xf32>
    %c0_306 = arith.constant 0 : index
    %c0_307 = arith.constant 0 : index
    %622 = vector.load %arg15[%c0_306, %c0_307] : memref<2x16xf32, #tpu.memory_space<vmem>>, vector<2x16xf32>
    %c0_308 = arith.constant 0 : index
    %c0_309 = arith.constant 0 : index
    %623 = vector.load %arg16[%c0_308, %c0_309] : memref<2x16xf32, #tpu.memory_space<vmem>>, vector<2x16xf32>
    %cst_310 = arith.constant dense<0.000000e+00> : vector<2x64xf32>
    %624 = tpu.matmul %622, %25, %cst_310 {dimension_numbers = #tpu.dot_dimension_numbers<[1], [0], [0], [1], [0, 0, 1, 1], [], []>} : vector<2x16xf32>, vector<16x64xf32>, vector<2x64xf32> -> vector<2x64xf32>
    %625 = arith.addf %621, %624 : vector<2x64xf32>
    %626 = vector.extract_strided_slice %625 {offsets = [0, 0], sizes = [2, 16], strides = [1, 1]} : vector<2x64xf32> to vector<2x16xf32>
    %627 = arith.negf %626 : vector<2x16xf32>
    %628 = math.exp %627 : vector<2x16xf32>
    %cst_311 = arith.constant 1.000000e+00 : f32
    %629 = vector.broadcast %cst_311 : f32 to vector<2x16xf32>
    %630 = arith.addf %629, %628 : vector<2x16xf32>
    %631 = arith.divf %629, %630 : vector<2x16xf32>
    %632 = vector.extract_strided_slice %625 {offsets = [0, 16], sizes = [2, 16], strides = [1, 1]} : vector<2x64xf32> to vector<2x16xf32>
    %633 = arith.negf %632 : vector<2x16xf32>
    %634 = math.exp %633 : vector<2x16xf32>
    %cst_312 = arith.constant 1.000000e+00 : f32
    %635 = vector.broadcast %cst_312 : f32 to vector<2x16xf32>
    %636 = arith.addf %635, %634 : vector<2x16xf32>
    %637 = arith.divf %635, %636 : vector<2x16xf32>
    %638 = vector.extract_strided_slice %625 {offsets = [0, 32], sizes = [2, 16], strides = [1, 1]} : vector<2x64xf32> to vector<2x16xf32>
    %639 = math.tanh %638 : vector<2x16xf32>
    %640 = vector.extract_strided_slice %625 {offsets = [0, 48], sizes = [2, 16], strides = [1, 1]} : vector<2x64xf32> to vector<2x16xf32>
    %641 = arith.negf %640 : vector<2x16xf32>
    %642 = math.exp %641 : vector<2x16xf32>
    %cst_313 = arith.constant 1.000000e+00 : f32
    %643 = vector.broadcast %cst_313 : f32 to vector<2x16xf32>
    %644 = arith.addf %643, %642 : vector<2x16xf32>
    %645 = arith.divf %643, %644 : vector<2x16xf32>
    %646 = arith.mulf %637, %623 : vector<2x16xf32>
    %647 = arith.mulf %631, %639 : vector<2x16xf32>
    %648 = arith.addf %646, %647 : vector<2x16xf32>
    %649 = math.tanh %648 : vector<2x16xf32>
    %650 = arith.mulf %645, %649 : vector<2x16xf32>
    %c0_314 = arith.constant 0 : index
    %c0_315 = arith.constant 0 : index
    %651 = vector.load %arg15[%c0_314, %c0_315] : memref<2x16xf32, #tpu.memory_space<vmem>>, vector<2x16xf32>
    tpu.vector_store %arg15[%c0_314, %c0_315], %650 {strides = array<i32>} : memref<2x16xf32, #tpu.memory_space<vmem>>, vector<2x16xf32>,
    %c0_316 = arith.constant 0 : index
    %c0_317 = arith.constant 0 : index
    %652 = vector.load %arg16[%c0_316, %c0_317] : memref<2x16xf32, #tpu.memory_space<vmem>>, vector<2x16xf32>
    tpu.vector_store %arg16[%c0_316, %c0_317], %648 {strides = array<i32>} : memref<2x16xf32, #tpu.memory_space<vmem>>, vector<2x16xf32>,
    %c18_318 = arith.constant 18 : index
    %c0_319 = arith.constant 0 : index
    %653 = vector.load %arg13[%c18_318, %c0_319] : memref<32x16xf32, #tpu.memory_space<vmem>>, vector<2x16xf32>
    tpu.vector_store %arg13[%c18_318, %c0_319], %650 {strides = array<i32>} : memref<32x16xf32, #tpu.memory_space<vmem>>, vector<2x16xf32>,
    %c12_320 = arith.constant 12 : index
    %c0_321 = arith.constant 0 : index
    %654 = vector.load %arg20[%c12_320, %c0_321] : memref<32x64xf32, #tpu.memory_space<vmem>>, vector<2x64xf32>
    %c0_322 = arith.constant 0 : index
    %c0_323 = arith.constant 0 : index
    %655 = vector.load %arg17[%c0_322, %c0_323] : memref<2x16xf32, #tpu.memory_space<vmem>>, vector<2x16xf32>
    %c0_324 = arith.constant 0 : index
    %c0_325 = arith.constant 0 : index
    %656 = vector.load %arg18[%c0_324, %c0_325] : memref<2x16xf32, #tpu.memory_space<vmem>>, vector<2x16xf32>
    %cst_326 = arith.constant dense<0.000000e+00> : vector<2x64xf32>
    %657 = tpu.matmul %655, %26, %cst_326 {dimension_numbers = #tpu.dot_dimension_numbers<[1], [0], [0], [1], [0, 0, 1, 1], [], []>} : vector<2x16xf32>, vector<16x64xf32>, vector<2x64xf32> -> vector<2x64xf32>
    %658 = arith.addf %654, %657 : vector<2x64xf32>
    %659 = vector.extract_strided_slice %658 {offsets = [0, 0], sizes = [2, 16], strides = [1, 1]} : vector<2x64xf32> to vector<2x16xf32>
    %660 = arith.negf %659 : vector<2x16xf32>
    %661 = math.exp %660 : vector<2x16xf32>
    %cst_327 = arith.constant 1.000000e+00 : f32
    %662 = vector.broadcast %cst_327 : f32 to vector<2x16xf32>
    %663 = arith.addf %662, %661 : vector<2x16xf32>
    %664 = arith.divf %662, %663 : vector<2x16xf32>
    %665 = vector.extract_strided_slice %658 {offsets = [0, 16], sizes = [2, 16], strides = [1, 1]} : vector<2x64xf32> to vector<2x16xf32>
    %666 = arith.negf %665 : vector<2x16xf32>
    %667 = math.exp %666 : vector<2x16xf32>
    %cst_328 = arith.constant 1.000000e+00 : f32
    %668 = vector.broadcast %cst_328 : f32 to vector<2x16xf32>
    %669 = arith.addf %668, %667 : vector<2x16xf32>
    %670 = arith.divf %668, %669 : vector<2x16xf32>
    %671 = vector.extract_strided_slice %658 {offsets = [0, 32], sizes = [2, 16], strides = [1, 1]} : vector<2x64xf32> to vector<2x16xf32>
    %672 = math.tanh %671 : vector<2x16xf32>
    %673 = vector.extract_strided_slice %658 {offsets = [0, 48], sizes = [2, 16], strides = [1, 1]} : vector<2x64xf32> to vector<2x16xf32>
    %674 = arith.negf %673 : vector<2x16xf32>
    %675 = math.exp %674 : vector<2x16xf32>
    %cst_329 = arith.constant 1.000000e+00 : f32
    %676 = vector.broadcast %cst_329 : f32 to vector<2x16xf32>
    %677 = arith.addf %676, %675 : vector<2x16xf32>
    %678 = arith.divf %676, %677 : vector<2x16xf32>
    %679 = arith.mulf %670, %656 : vector<2x16xf32>
    %680 = arith.mulf %664, %672 : vector<2x16xf32>
    %681 = arith.addf %679, %680 : vector<2x16xf32>
    %682 = math.tanh %681 : vector<2x16xf32>
    %683 = arith.mulf %678, %682 : vector<2x16xf32>
    %c0_330 = arith.constant 0 : index
    %c0_331 = arith.constant 0 : index
    %684 = vector.load %arg17[%c0_330, %c0_331] : memref<2x16xf32, #tpu.memory_space<vmem>>, vector<2x16xf32>
    tpu.vector_store %arg17[%c0_330, %c0_331], %683 {strides = array<i32>} : memref<2x16xf32, #tpu.memory_space<vmem>>, vector<2x16xf32>,
    %c0_332 = arith.constant 0 : index
    %c0_333 = arith.constant 0 : index
    %685 = vector.load %arg18[%c0_332, %c0_333] : memref<2x16xf32, #tpu.memory_space<vmem>>, vector<2x16xf32>
    tpu.vector_store %arg18[%c0_332, %c0_333], %681 {strides = array<i32>} : memref<2x16xf32, #tpu.memory_space<vmem>>, vector<2x16xf32>,
    %c12_334 = arith.constant 12 : index
    %c0_335 = arith.constant 0 : index
    %686 = vector.load %arg14[%c12_334, %c0_335] : memref<32x16xf32, #tpu.memory_space<vmem>>, vector<2x16xf32>
    tpu.vector_store %arg14[%c12_334, %c0_335], %683 {strides = array<i32>} : memref<32x16xf32, #tpu.memory_space<vmem>>, vector<2x16xf32>,
    %c20_336 = arith.constant 20 : index
    %c0_337 = arith.constant 0 : index
    %687 = vector.load %arg19[%c20_336, %c0_337] : memref<32x64xf32, #tpu.memory_space<vmem>>, vector<2x64xf32>
    %c0_338 = arith.constant 0 : index
    %c0_339 = arith.constant 0 : index
    %688 = vector.load %arg15[%c0_338, %c0_339] : memref<2x16xf32, #tpu.memory_space<vmem>>, vector<2x16xf32>
    %c0_340 = arith.constant 0 : index
    %c0_341 = arith.constant 0 : index
    %689 = vector.load %arg16[%c0_340, %c0_341] : memref<2x16xf32, #tpu.memory_space<vmem>>, vector<2x16xf32>
    %cst_342 = arith.constant dense<0.000000e+00> : vector<2x64xf32>
    %690 = tpu.matmul %688, %25, %cst_342 {dimension_numbers = #tpu.dot_dimension_numbers<[1], [0], [0], [1], [0, 0, 1, 1], [], []>} : vector<2x16xf32>, vector<16x64xf32>, vector<2x64xf32> -> vector<2x64xf32>
    %691 = arith.addf %687, %690 : vector<2x64xf32>
    %692 = vector.extract_strided_slice %691 {offsets = [0, 0], sizes = [2, 16], strides = [1, 1]} : vector<2x64xf32> to vector<2x16xf32>
    %693 = arith.negf %692 : vector<2x16xf32>
    %694 = math.exp %693 : vector<2x16xf32>
    %cst_343 = arith.constant 1.000000e+00 : f32
    %695 = vector.broadcast %cst_343 : f32 to vector<2x16xf32>
    %696 = arith.addf %695, %694 : vector<2x16xf32>
    %697 = arith.divf %695, %696 : vector<2x16xf32>
    %698 = vector.extract_strided_slice %691 {offsets = [0, 16], sizes = [2, 16], strides = [1, 1]} : vector<2x64xf32> to vector<2x16xf32>
    %699 = arith.negf %698 : vector<2x16xf32>
    %700 = math.exp %699 : vector<2x16xf32>
    %cst_344 = arith.constant 1.000000e+00 : f32
    %701 = vector.broadcast %cst_344 : f32 to vector<2x16xf32>
    %702 = arith.addf %701, %700 : vector<2x16xf32>
    %703 = arith.divf %701, %702 : vector<2x16xf32>
    %704 = vector.extract_strided_slice %691 {offsets = [0, 32], sizes = [2, 16], strides = [1, 1]} : vector<2x64xf32> to vector<2x16xf32>
    %705 = math.tanh %704 : vector<2x16xf32>
    %706 = vector.extract_strided_slice %691 {offsets = [0, 48], sizes = [2, 16], strides = [1, 1]} : vector<2x64xf32> to vector<2x16xf32>
    %707 = arith.negf %706 : vector<2x16xf32>
    %708 = math.exp %707 : vector<2x16xf32>
    %cst_345 = arith.constant 1.000000e+00 : f32
    %709 = vector.broadcast %cst_345 : f32 to vector<2x16xf32>
    %710 = arith.addf %709, %708 : vector<2x16xf32>
    %711 = arith.divf %709, %710 : vector<2x16xf32>
    %712 = arith.mulf %703, %689 : vector<2x16xf32>
    %713 = arith.mulf %697, %705 : vector<2x16xf32>
    %714 = arith.addf %712, %713 : vector<2x16xf32>
    %715 = math.tanh %714 : vector<2x16xf32>
    %716 = arith.mulf %711, %715 : vector<2x16xf32>
    %c0_346 = arith.constant 0 : index
    %c0_347 = arith.constant 0 : index
    %717 = vector.load %arg15[%c0_346, %c0_347] : memref<2x16xf32, #tpu.memory_space<vmem>>, vector<2x16xf32>
    tpu.vector_store %arg15[%c0_346, %c0_347], %716 {strides = array<i32>} : memref<2x16xf32, #tpu.memory_space<vmem>>, vector<2x16xf32>,
    %c0_348 = arith.constant 0 : index
    %c0_349 = arith.constant 0 : index
    %718 = vector.load %arg16[%c0_348, %c0_349] : memref<2x16xf32, #tpu.memory_space<vmem>>, vector<2x16xf32>
    tpu.vector_store %arg16[%c0_348, %c0_349], %714 {strides = array<i32>} : memref<2x16xf32, #tpu.memory_space<vmem>>, vector<2x16xf32>,
    %c20_350 = arith.constant 20 : index
    %c0_351 = arith.constant 0 : index
    %719 = vector.load %arg13[%c20_350, %c0_351] : memref<32x16xf32, #tpu.memory_space<vmem>>, vector<2x16xf32>
    tpu.vector_store %arg13[%c20_350, %c0_351], %716 {strides = array<i32>} : memref<32x16xf32, #tpu.memory_space<vmem>>, vector<2x16xf32>,
    %c10_352 = arith.constant 10 : index
    %c0_353 = arith.constant 0 : index
    %720 = vector.load %arg20[%c10_352, %c0_353] : memref<32x64xf32, #tpu.memory_space<vmem>>, vector<2x64xf32>
    %c0_354 = arith.constant 0 : index
    %c0_355 = arith.constant 0 : index
    %721 = vector.load %arg17[%c0_354, %c0_355] : memref<2x16xf32, #tpu.memory_space<vmem>>, vector<2x16xf32>
    %c0_356 = arith.constant 0 : index
    %c0_357 = arith.constant 0 : index
    %722 = vector.load %arg18[%c0_356, %c0_357] : memref<2x16xf32, #tpu.memory_space<vmem>>, vector<2x16xf32>
    %cst_358 = arith.constant dense<0.000000e+00> : vector<2x64xf32>
    %723 = tpu.matmul %721, %26, %cst_358 {dimension_numbers = #tpu.dot_dimension_numbers<[1], [0], [0], [1], [0, 0, 1, 1], [], []>} : vector<2x16xf32>, vector<16x64xf32>, vector<2x64xf32> -> vector<2x64xf32>
    %724 = arith.addf %720, %723 : vector<2x64xf32>
    %725 = vector.extract_strided_slice %724 {offsets = [0, 0], sizes = [2, 16], strides = [1, 1]} : vector<2x64xf32> to vector<2x16xf32>
    %726 = arith.negf %725 : vector<2x16xf32>
    %727 = math.exp %726 : vector<2x16xf32>
    %cst_359 = arith.constant 1.000000e+00 : f32
    %728 = vector.broadcast %cst_359 : f32 to vector<2x16xf32>
    %729 = arith.addf %728, %727 : vector<2x16xf32>
    %730 = arith.divf %728, %729 : vector<2x16xf32>
    %731 = vector.extract_strided_slice %724 {offsets = [0, 16], sizes = [2, 16], strides = [1, 1]} : vector<2x64xf32> to vector<2x16xf32>
    %732 = arith.negf %731 : vector<2x16xf32>
    %733 = math.exp %732 : vector<2x16xf32>
    %cst_360 = arith.constant 1.000000e+00 : f32
    %734 = vector.broadcast %cst_360 : f32 to vector<2x16xf32>
    %735 = arith.addf %734, %733 : vector<2x16xf32>
    %736 = arith.divf %734, %735 : vector<2x16xf32>
    %737 = vector.extract_strided_slice %724 {offsets = [0, 32], sizes = [2, 16], strides = [1, 1]} : vector<2x64xf32> to vector<2x16xf32>
    %738 = math.tanh %737 : vector<2x16xf32>
    %739 = vector.extract_strided_slice %724 {offsets = [0, 48], sizes = [2, 16], strides = [1, 1]} : vector<2x64xf32> to vector<2x16xf32>
    %740 = arith.negf %739 : vector<2x16xf32>
    %741 = math.exp %740 : vector<2x16xf32>
    %cst_361 = arith.constant 1.000000e+00 : f32
    %742 = vector.broadcast %cst_361 : f32 to vector<2x16xf32>
    %743 = arith.addf %742, %741 : vector<2x16xf32>
    %744 = arith.divf %742, %743 : vector<2x16xf32>
    %745 = arith.mulf %736, %722 : vector<2x16xf32>
    %746 = arith.mulf %730, %738 : vector<2x16xf32>
    %747 = arith.addf %745, %746 : vector<2x16xf32>
    %748 = math.tanh %747 : vector<2x16xf32>
    %749 = arith.mulf %744, %748 : vector<2x16xf32>
    %c0_362 = arith.constant 0 : index
    %c0_363 = arith.constant 0 : index
    %750 = vector.load %arg17[%c0_362, %c0_363] : memref<2x16xf32, #tpu.memory_space<vmem>>, vector<2x16xf32>
    tpu.vector_store %arg17[%c0_362, %c0_363], %749 {strides = array<i32>} : memref<2x16xf32, #tpu.memory_space<vmem>>, vector<2x16xf32>,
    %c0_364 = arith.constant 0 : index
    %c0_365 = arith.constant 0 : index
    %751 = vector.load %arg18[%c0_364, %c0_365] : memref<2x16xf32, #tpu.memory_space<vmem>>, vector<2x16xf32>
    tpu.vector_store %arg18[%c0_364, %c0_365], %747 {strides = array<i32>} : memref<2x16xf32, #tpu.memory_space<vmem>>, vector<2x16xf32>,
    %c10_366 = arith.constant 10 : index
    %c0_367 = arith.constant 0 : index
    %752 = vector.load %arg14[%c10_366, %c0_367] : memref<32x16xf32, #tpu.memory_space<vmem>>, vector<2x16xf32>
    tpu.vector_store %arg14[%c10_366, %c0_367], %749 {strides = array<i32>} : memref<32x16xf32, #tpu.memory_space<vmem>>, vector<2x16xf32>,
    %c22_368 = arith.constant 22 : index
    %c0_369 = arith.constant 0 : index
    %753 = vector.load %arg19[%c22_368, %c0_369] : memref<32x64xf32, #tpu.memory_space<vmem>>, vector<2x64xf32>
    %c0_370 = arith.constant 0 : index
    %c0_371 = arith.constant 0 : index
    %754 = vector.load %arg15[%c0_370, %c0_371] : memref<2x16xf32, #tpu.memory_space<vmem>>, vector<2x16xf32>
    %c0_372 = arith.constant 0 : index
    %c0_373 = arith.constant 0 : index
    %755 = vector.load %arg16[%c0_372, %c0_373] : memref<2x16xf32, #tpu.memory_space<vmem>>, vector<2x16xf32>
    %cst_374 = arith.constant dense<0.000000e+00> : vector<2x64xf32>
    %756 = tpu.matmul %754, %25, %cst_374 {dimension_numbers = #tpu.dot_dimension_numbers<[1], [0], [0], [1], [0, 0, 1, 1], [], []>} : vector<2x16xf32>, vector<16x64xf32>, vector<2x64xf32> -> vector<2x64xf32>
    %757 = arith.addf %753, %756 : vector<2x64xf32>
    %758 = vector.extract_strided_slice %757 {offsets = [0, 0], sizes = [2, 16], strides = [1, 1]} : vector<2x64xf32> to vector<2x16xf32>
    %759 = arith.negf %758 : vector<2x16xf32>
    %760 = math.exp %759 : vector<2x16xf32>
    %cst_375 = arith.constant 1.000000e+00 : f32
    %761 = vector.broadcast %cst_375 : f32 to vector<2x16xf32>
    %762 = arith.addf %761, %760 : vector<2x16xf32>
    %763 = arith.divf %761, %762 : vector<2x16xf32>
    %764 = vector.extract_strided_slice %757 {offsets = [0, 16], sizes = [2, 16], strides = [1, 1]} : vector<2x64xf32> to vector<2x16xf32>
    %765 = arith.negf %764 : vector<2x16xf32>
    %766 = math.exp %765 : vector<2x16xf32>
    %cst_376 = arith.constant 1.000000e+00 : f32
    %767 = vector.broadcast %cst_376 : f32 to vector<2x16xf32>
    %768 = arith.addf %767, %766 : vector<2x16xf32>
    %769 = arith.divf %767, %768 : vector<2x16xf32>
    %770 = vector.extract_strided_slice %757 {offsets = [0, 32], sizes = [2, 16], strides = [1, 1]} : vector<2x64xf32> to vector<2x16xf32>
    %771 = math.tanh %770 : vector<2x16xf32>
    %772 = vector.extract_strided_slice %757 {offsets = [0, 48], sizes = [2, 16], strides = [1, 1]} : vector<2x64xf32> to vector<2x16xf32>
    %773 = arith.negf %772 : vector<2x16xf32>
    %774 = math.exp %773 : vector<2x16xf32>
    %cst_377 = arith.constant 1.000000e+00 : f32
    %775 = vector.broadcast %cst_377 : f32 to vector<2x16xf32>
    %776 = arith.addf %775, %774 : vector<2x16xf32>
    %777 = arith.divf %775, %776 : vector<2x16xf32>
    %778 = arith.mulf %769, %755 : vector<2x16xf32>
    %779 = arith.mulf %763, %771 : vector<2x16xf32>
    %780 = arith.addf %778, %779 : vector<2x16xf32>
    %781 = math.tanh %780 : vector<2x16xf32>
    %782 = arith.mulf %777, %781 : vector<2x16xf32>
    %c0_378 = arith.constant 0 : index
    %c0_379 = arith.constant 0 : index
    %783 = vector.load %arg15[%c0_378, %c0_379] : memref<2x16xf32, #tpu.memory_space<vmem>>, vector<2x16xf32>
    tpu.vector_store %arg15[%c0_378, %c0_379], %782 {strides = array<i32>} : memref<2x16xf32, #tpu.memory_space<vmem>>, vector<2x16xf32>,
    %c0_380 = arith.constant 0 : index
    %c0_381 = arith.constant 0 : index
    %784 = vector.load %arg16[%c0_380, %c0_381] : memref<2x16xf32, #tpu.memory_space<vmem>>, vector<2x16xf32>
    tpu.vector_store %arg16[%c0_380, %c0_381], %780 {strides = array<i32>} : memref<2x16xf32, #tpu.memory_space<vmem>>, vector<2x16xf32>,
    %c22_382 = arith.constant 22 : index
    %c0_383 = arith.constant 0 : index
    %785 = vector.load %arg13[%c22_382, %c0_383] : memref<32x16xf32, #tpu.memory_space<vmem>>, vector<2x16xf32>
    tpu.vector_store %arg13[%c22_382, %c0_383], %782 {strides = array<i32>} : memref<32x16xf32, #tpu.memory_space<vmem>>, vector<2x16xf32>,
    %c8_384 = arith.constant 8 : index
    %c0_385 = arith.constant 0 : index
    %786 = vector.load %arg20[%c8_384, %c0_385] : memref<32x64xf32, #tpu.memory_space<vmem>>, vector<2x64xf32>
    %c0_386 = arith.constant 0 : index
    %c0_387 = arith.constant 0 : index
    %787 = vector.load %arg17[%c0_386, %c0_387] : memref<2x16xf32, #tpu.memory_space<vmem>>, vector<2x16xf32>
    %c0_388 = arith.constant 0 : index
    %c0_389 = arith.constant 0 : index
    %788 = vector.load %arg18[%c0_388, %c0_389] : memref<2x16xf32, #tpu.memory_space<vmem>>, vector<2x16xf32>
    %cst_390 = arith.constant dense<0.000000e+00> : vector<2x64xf32>
    %789 = tpu.matmul %787, %26, %cst_390 {dimension_numbers = #tpu.dot_dimension_numbers<[1], [0], [0], [1], [0, 0, 1, 1], [], []>} : vector<2x16xf32>, vector<16x64xf32>, vector<2x64xf32> -> vector<2x64xf32>
    %790 = arith.addf %786, %789 : vector<2x64xf32>
    %791 = vector.extract_strided_slice %790 {offsets = [0, 0], sizes = [2, 16], strides = [1, 1]} : vector<2x64xf32> to vector<2x16xf32>
    %792 = arith.negf %791 : vector<2x16xf32>
    %793 = math.exp %792 : vector<2x16xf32>
    %cst_391 = arith.constant 1.000000e+00 : f32
    %794 = vector.broadcast %cst_391 : f32 to vector<2x16xf32>
    %795 = arith.addf %794, %793 : vector<2x16xf32>
    %796 = arith.divf %794, %795 : vector<2x16xf32>
    %797 = vector.extract_strided_slice %790 {offsets = [0, 16], sizes = [2, 16], strides = [1, 1]} : vector<2x64xf32> to vector<2x16xf32>
    %798 = arith.negf %797 : vector<2x16xf32>
    %799 = math.exp %798 : vector<2x16xf32>
    %cst_392 = arith.constant 1.000000e+00 : f32
    %800 = vector.broadcast %cst_392 : f32 to vector<2x16xf32>
    %801 = arith.addf %800, %799 : vector<2x16xf32>
    %802 = arith.divf %800, %801 : vector<2x16xf32>
    %803 = vector.extract_strided_slice %790 {offsets = [0, 32], sizes = [2, 16], strides = [1, 1]} : vector<2x64xf32> to vector<2x16xf32>
    %804 = math.tanh %803 : vector<2x16xf32>
    %805 = vector.extract_strided_slice %790 {offsets = [0, 48], sizes = [2, 16], strides = [1, 1]} : vector<2x64xf32> to vector<2x16xf32>
    %806 = arith.negf %805 : vector<2x16xf32>
    %807 = math.exp %806 : vector<2x16xf32>
    %cst_393 = arith.constant 1.000000e+00 : f32
    %808 = vector.broadcast %cst_393 : f32 to vector<2x16xf32>
    %809 = arith.addf %808, %807 : vector<2x16xf32>
    %810 = arith.divf %808, %809 : vector<2x16xf32>
    %811 = arith.mulf %802, %788 : vector<2x16xf32>
    %812 = arith.mulf %796, %804 : vector<2x16xf32>
    %813 = arith.addf %811, %812 : vector<2x16xf32>
    %814 = math.tanh %813 : vector<2x16xf32>
    %815 = arith.mulf %810, %814 : vector<2x16xf32>
    %c0_394 = arith.constant 0 : index
    %c0_395 = arith.constant 0 : index
    %816 = vector.load %arg17[%c0_394, %c0_395] : memref<2x16xf32, #tpu.memory_space<vmem>>, vector<2x16xf32>
    tpu.vector_store %arg17[%c0_394, %c0_395], %815 {strides = array<i32>} : memref<2x16xf32, #tpu.memory_space<vmem>>, vector<2x16xf32>,
    %c0_396 = arith.constant 0 : index
    %c0_397 = arith.constant 0 : index
    %817 = vector.load %arg18[%c0_396, %c0_397] : memref<2x16xf32, #tpu.memory_space<vmem>>, vector<2x16xf32>
    tpu.vector_store %arg18[%c0_396, %c0_397], %813 {strides = array<i32>} : memref<2x16xf32, #tpu.memory_space<vmem>>, vector<2x16xf32>,
    %c8_398 = arith.constant 8 : index
    %c0_399 = arith.constant 0 : index
    %818 = vector.load %arg14[%c8_398, %c0_399] : memref<32x16xf32, #tpu.memory_space<vmem>>, vector<2x16xf32>
    tpu.vector_store %arg14[%c8_398, %c0_399], %815 {strides = array<i32>} : memref<32x16xf32, #tpu.memory_space<vmem>>, vector<2x16xf32>,
    %c24_400 = arith.constant 24 : index
    %c0_401 = arith.constant 0 : index
    %819 = vector.load %arg19[%c24_400, %c0_401] : memref<32x64xf32, #tpu.memory_space<vmem>>, vector<2x64xf32>
    %c0_402 = arith.constant 0 : index
    %c0_403 = arith.constant 0 : index
    %820 = vector.load %arg15[%c0_402, %c0_403] : memref<2x16xf32, #tpu.memory_space<vmem>>, vector<2x16xf32>
    %c0_404 = arith.constant 0 : index
    %c0_405 = arith.constant 0 : index
    %821 = vector.load %arg16[%c0_404, %c0_405] : memref<2x16xf32, #tpu.memory_space<vmem>>, vector<2x16xf32>
    %cst_406 = arith.constant dense<0.000000e+00> : vector<2x64xf32>
    %822 = tpu.matmul %820, %25, %cst_406 {dimension_numbers = #tpu.dot_dimension_numbers<[1], [0], [0], [1], [0, 0, 1, 1], [], []>} : vector<2x16xf32>, vector<16x64xf32>, vector<2x64xf32> -> vector<2x64xf32>
    %823 = arith.addf %819, %822 : vector<2x64xf32>
    %824 = vector.extract_strided_slice %823 {offsets = [0, 0], sizes = [2, 16], strides = [1, 1]} : vector<2x64xf32> to vector<2x16xf32>
    %825 = arith.negf %824 : vector<2x16xf32>
    %826 = math.exp %825 : vector<2x16xf32>
    %cst_407 = arith.constant 1.000000e+00 : f32
    %827 = vector.broadcast %cst_407 : f32 to vector<2x16xf32>
    %828 = arith.addf %827, %826 : vector<2x16xf32>
    %829 = arith.divf %827, %828 : vector<2x16xf32>
    %830 = vector.extract_strided_slice %823 {offsets = [0, 16], sizes = [2, 16], strides = [1, 1]} : vector<2x64xf32> to vector<2x16xf32>
    %831 = arith.negf %830 : vector<2x16xf32>
    %832 = math.exp %831 : vector<2x16xf32>
    %cst_408 = arith.constant 1.000000e+00 : f32
    %833 = vector.broadcast %cst_408 : f32 to vector<2x16xf32>
    %834 = arith.addf %833, %832 : vector<2x16xf32>
    %835 = arith.divf %833, %834 : vector<2x16xf32>
    %836 = vector.extract_strided_slice %823 {offsets = [0, 32], sizes = [2, 16], strides = [1, 1]} : vector<2x64xf32> to vector<2x16xf32>
    %837 = math.tanh %836 : vector<2x16xf32>
    %838 = vector.extract_strided_slice %823 {offsets = [0, 48], sizes = [2, 16], strides = [1, 1]} : vector<2x64xf32> to vector<2x16xf32>
    %839 = arith.negf %838 : vector<2x16xf32>
    %840 = math.exp %839 : vector<2x16xf32>
    %cst_409 = arith.constant 1.000000e+00 : f32
    %841 = vector.broadcast %cst_409 : f32 to vector<2x16xf32>
    %842 = arith.addf %841, %840 : vector<2x16xf32>
    %843 = arith.divf %841, %842 : vector<2x16xf32>
    %844 = arith.mulf %835, %821 : vector<2x16xf32>
    %845 = arith.mulf %829, %837 : vector<2x16xf32>
    %846 = arith.addf %844, %845 : vector<2x16xf32>
    %847 = math.tanh %846 : vector<2x16xf32>
    %848 = arith.mulf %843, %847 : vector<2x16xf32>
    %c0_410 = arith.constant 0 : index
    %c0_411 = arith.constant 0 : index
    %849 = vector.load %arg15[%c0_410, %c0_411] : memref<2x16xf32, #tpu.memory_space<vmem>>, vector<2x16xf32>
    tpu.vector_store %arg15[%c0_410, %c0_411], %848 {strides = array<i32>} : memref<2x16xf32, #tpu.memory_space<vmem>>, vector<2x16xf32>,
    %c0_412 = arith.constant 0 : index
    %c0_413 = arith.constant 0 : index
    %850 = vector.load %arg16[%c0_412, %c0_413] : memref<2x16xf32, #tpu.memory_space<vmem>>, vector<2x16xf32>
    tpu.vector_store %arg16[%c0_412, %c0_413], %846 {strides = array<i32>} : memref<2x16xf32, #tpu.memory_space<vmem>>, vector<2x16xf32>,
    %c24_414 = arith.constant 24 : index
    %c0_415 = arith.constant 0 : index
    %851 = vector.load %arg13[%c24_414, %c0_415] : memref<32x16xf32, #tpu.memory_space<vmem>>, vector<2x16xf32>
    tpu.vector_store %arg13[%c24_414, %c0_415], %848 {strides = array<i32>} : memref<32x16xf32, #tpu.memory_space<vmem>>, vector<2x16xf32>,
    %c6_416 = arith.constant 6 : index
    %c0_417 = arith.constant 0 : index
    %852 = vector.load %arg20[%c6_416, %c0_417] : memref<32x64xf32, #tpu.memory_space<vmem>>, vector<2x64xf32>
    %c0_418 = arith.constant 0 : index
    %c0_419 = arith.constant 0 : index
    %853 = vector.load %arg17[%c0_418, %c0_419] : memref<2x16xf32, #tpu.memory_space<vmem>>, vector<2x16xf32>
    %c0_420 = arith.constant 0 : index
    %c0_421 = arith.constant 0 : index
    %854 = vector.load %arg18[%c0_420, %c0_421] : memref<2x16xf32, #tpu.memory_space<vmem>>, vector<2x16xf32>
    %cst_422 = arith.constant dense<0.000000e+00> : vector<2x64xf32>
    %855 = tpu.matmul %853, %26, %cst_422 {dimension_numbers = #tpu.dot_dimension_numbers<[1], [0], [0], [1], [0, 0, 1, 1], [], []>} : vector<2x16xf32>, vector<16x64xf32>, vector<2x64xf32> -> vector<2x64xf32>
    %856 = arith.addf %852, %855 : vector<2x64xf32>
    %857 = vector.extract_strided_slice %856 {offsets = [0, 0], sizes = [2, 16], strides = [1, 1]} : vector<2x64xf32> to vector<2x16xf32>
    %858 = arith.negf %857 : vector<2x16xf32>
    %859 = math.exp %858 : vector<2x16xf32>
    %cst_423 = arith.constant 1.000000e+00 : f32
    %860 = vector.broadcast %cst_423 : f32 to vector<2x16xf32>
    %861 = arith.addf %860, %859 : vector<2x16xf32>
    %862 = arith.divf %860, %861 : vector<2x16xf32>
    %863 = vector.extract_strided_slice %856 {offsets = [0, 16], sizes = [2, 16], strides = [1, 1]} : vector<2x64xf32> to vector<2x16xf32>
    %864 = arith.negf %863 : vector<2x16xf32>
    %865 = math.exp %864 : vector<2x16xf32>
    %cst_424 = arith.constant 1.000000e+00 : f32
    %866 = vector.broadcast %cst_424 : f32 to vector<2x16xf32>
    %867 = arith.addf %866, %865 : vector<2x16xf32>
    %868 = arith.divf %866, %867 : vector<2x16xf32>
    %869 = vector.extract_strided_slice %856 {offsets = [0, 32], sizes = [2, 16], strides = [1, 1]} : vector<2x64xf32> to vector<2x16xf32>
    %870 = math.tanh %869 : vector<2x16xf32>
    %871 = vector.extract_strided_slice %856 {offsets = [0, 48], sizes = [2, 16], strides = [1, 1]} : vector<2x64xf32> to vector<2x16xf32>
    %872 = arith.negf %871 : vector<2x16xf32>
    %873 = math.exp %872 : vector<2x16xf32>
    %cst_425 = arith.constant 1.000000e+00 : f32
    %874 = vector.broadcast %cst_425 : f32 to vector<2x16xf32>
    %875 = arith.addf %874, %873 : vector<2x16xf32>
    %876 = arith.divf %874, %875 : vector<2x16xf32>
    %877 = arith.mulf %868, %854 : vector<2x16xf32>
    %878 = arith.mulf %862, %870 : vector<2x16xf32>
    %879 = arith.addf %877, %878 : vector<2x16xf32>
    %880 = math.tanh %879 : vector<2x16xf32>
    %881 = arith.mulf %876, %880 : vector<2x16xf32>
    %c0_426 = arith.constant 0 : index
    %c0_427 = arith.constant 0 : index
    %882 = vector.load %arg17[%c0_426, %c0_427] : memref<2x16xf32, #tpu.memory_space<vmem>>, vector<2x16xf32>
    tpu.vector_store %arg17[%c0_426, %c0_427], %881 {strides = array<i32>} : memref<2x16xf32, #tpu.memory_space<vmem>>, vector<2x16xf32>,
    %c0_428 = arith.constant 0 : index
    %c0_429 = arith.constant 0 : index
    %883 = vector.load %arg18[%c0_428, %c0_429] : memref<2x16xf32, #tpu.memory_space<vmem>>, vector<2x16xf32>
    tpu.vector_store %arg18[%c0_428, %c0_429], %879 {strides = array<i32>} : memref<2x16xf32, #tpu.memory_space<vmem>>, vector<2x16xf32>,
    %c6_430 = arith.constant 6 : index
    %c0_431 = arith.constant 0 : index
    %884 = vector.load %arg14[%c6_430, %c0_431] : memref<32x16xf32, #tpu.memory_space<vmem>>, vector<2x16xf32>
    tpu.vector_store %arg14[%c6_430, %c0_431], %881 {strides = array<i32>} : memref<32x16xf32, #tpu.memory_space<vmem>>, vector<2x16xf32>,
    %c26_432 = arith.constant 26 : index
    %c0_433 = arith.constant 0 : index
    %885 = vector.load %arg19[%c26_432, %c0_433] : memref<32x64xf32, #tpu.memory_space<vmem>>, vector<2x64xf32>
    %c0_434 = arith.constant 0 : index
    %c0_435 = arith.constant 0 : index
    %886 = vector.load %arg15[%c0_434, %c0_435] : memref<2x16xf32, #tpu.memory_space<vmem>>, vector<2x16xf32>
    %c0_436 = arith.constant 0 : index
    %c0_437 = arith.constant 0 : index
    %887 = vector.load %arg16[%c0_436, %c0_437] : memref<2x16xf32, #tpu.memory_space<vmem>>, vector<2x16xf32>
    %cst_438 = arith.constant dense<0.000000e+00> : vector<2x64xf32>
    %888 = tpu.matmul %886, %25, %cst_438 {dimension_numbers = #tpu.dot_dimension_numbers<[1], [0], [0], [1], [0, 0, 1, 1], [], []>} : vector<2x16xf32>, vector<16x64xf32>, vector<2x64xf32> -> vector<2x64xf32>
    %889 = arith.addf %885, %888 : vector<2x64xf32>
    %890 = vector.extract_strided_slice %889 {offsets = [0, 0], sizes = [2, 16], strides = [1, 1]} : vector<2x64xf32> to vector<2x16xf32>
    %891 = arith.negf %890 : vector<2x16xf32>
    %892 = math.exp %891 : vector<2x16xf32>
    %cst_439 = arith.constant 1.000000e+00 : f32
    %893 = vector.broadcast %cst_439 : f32 to vector<2x16xf32>
    %894 = arith.addf %893, %892 : vector<2x16xf32>
    %895 = arith.divf %893, %894 : vector<2x16xf32>
    %896 = vector.extract_strided_slice %889 {offsets = [0, 16], sizes = [2, 16], strides = [1, 1]} : vector<2x64xf32> to vector<2x16xf32>
    %897 = arith.negf %896 : vector<2x16xf32>
    %898 = math.exp %897 : vector<2x16xf32>
    %cst_440 = arith.constant 1.000000e+00 : f32
    %899 = vector.broadcast %cst_440 : f32 to vector<2x16xf32>
    %900 = arith.addf %899, %898 : vector<2x16xf32>
    %901 = arith.divf %899, %900 : vector<2x16xf32>
    %902 = vector.extract_strided_slice %889 {offsets = [0, 32], sizes = [2, 16], strides = [1, 1]} : vector<2x64xf32> to vector<2x16xf32>
    %903 = math.tanh %902 : vector<2x16xf32>
    %904 = vector.extract_strided_slice %889 {offsets = [0, 48], sizes = [2, 16], strides = [1, 1]} : vector<2x64xf32> to vector<2x16xf32>
    %905 = arith.negf %904 : vector<2x16xf32>
    %906 = math.exp %905 : vector<2x16xf32>
    %cst_441 = arith.constant 1.000000e+00 : f32
    %907 = vector.broadcast %cst_441 : f32 to vector<2x16xf32>
    %908 = arith.addf %907, %906 : vector<2x16xf32>
    %909 = arith.divf %907, %908 : vector<2x16xf32>
    %910 = arith.mulf %901, %887 : vector<2x16xf32>
    %911 = arith.mulf %895, %903 : vector<2x16xf32>
    %912 = arith.addf %910, %911 : vector<2x16xf32>
    %913 = math.tanh %912 : vector<2x16xf32>
    %914 = arith.mulf %909, %913 : vector<2x16xf32>
    %c0_442 = arith.constant 0 : index
    %c0_443 = arith.constant 0 : index
    %915 = vector.load %arg15[%c0_442, %c0_443] : memref<2x16xf32, #tpu.memory_space<vmem>>, vector<2x16xf32>
    tpu.vector_store %arg15[%c0_442, %c0_443], %914 {strides = array<i32>} : memref<2x16xf32, #tpu.memory_space<vmem>>, vector<2x16xf32>,
    %c0_444 = arith.constant 0 : index
    %c0_445 = arith.constant 0 : index
    %916 = vector.load %arg16[%c0_444, %c0_445] : memref<2x16xf32, #tpu.memory_space<vmem>>, vector<2x16xf32>
    tpu.vector_store %arg16[%c0_444, %c0_445], %912 {strides = array<i32>} : memref<2x16xf32, #tpu.memory_space<vmem>>, vector<2x16xf32>,
    %c26_446 = arith.constant 26 : index
    %c0_447 = arith.constant 0 : index
    %917 = vector.load %arg13[%c26_446, %c0_447] : memref<32x16xf32, #tpu.memory_space<vmem>>, vector<2x16xf32>
    tpu.vector_store %arg13[%c26_446, %c0_447], %914 {strides = array<i32>} : memref<32x16xf32, #tpu.memory_space<vmem>>, vector<2x16xf32>,
    %c4_448 = arith.constant 4 : index
    %c0_449 = arith.constant 0 : index
    %918 = vector.load %arg20[%c4_448, %c0_449] : memref<32x64xf32, #tpu.memory_space<vmem>>, vector<2x64xf32>
    %c0_450 = arith.constant 0 : index
    %c0_451 = arith.constant 0 : index
    %919 = vector.load %arg17[%c0_450, %c0_451] : memref<2x16xf32, #tpu.memory_space<vmem>>, vector<2x16xf32>
    %c0_452 = arith.constant 0 : index
    %c0_453 = arith.constant 0 : index
    %920 = vector.load %arg18[%c0_452, %c0_453] : memref<2x16xf32, #tpu.memory_space<vmem>>, vector<2x16xf32>
    %cst_454 = arith.constant dense<0.000000e+00> : vector<2x64xf32>
    %921 = tpu.matmul %919, %26, %cst_454 {dimension_numbers = #tpu.dot_dimension_numbers<[1], [0], [0], [1], [0, 0, 1, 1], [], []>} : vector<2x16xf32>, vector<16x64xf32>, vector<2x64xf32> -> vector<2x64xf32>
    %922 = arith.addf %918, %921 : vector<2x64xf32>
    %923 = vector.extract_strided_slice %922 {offsets = [0, 0], sizes = [2, 16], strides = [1, 1]} : vector<2x64xf32> to vector<2x16xf32>
    %924 = arith.negf %923 : vector<2x16xf32>
    %925 = math.exp %924 : vector<2x16xf32>
    %cst_455 = arith.constant 1.000000e+00 : f32
    %926 = vector.broadcast %cst_455 : f32 to vector<2x16xf32>
    %927 = arith.addf %926, %925 : vector<2x16xf32>
    %928 = arith.divf %926, %927 : vector<2x16xf32>
    %929 = vector.extract_strided_slice %922 {offsets = [0, 16], sizes = [2, 16], strides = [1, 1]} : vector<2x64xf32> to vector<2x16xf32>
    %930 = arith.negf %929 : vector<2x16xf32>
    %931 = math.exp %930 : vector<2x16xf32>
    %cst_456 = arith.constant 1.000000e+00 : f32
    %932 = vector.broadcast %cst_456 : f32 to vector<2x16xf32>
    %933 = arith.addf %932, %931 : vector<2x16xf32>
    %934 = arith.divf %932, %933 : vector<2x16xf32>
    %935 = vector.extract_strided_slice %922 {offsets = [0, 32], sizes = [2, 16], strides = [1, 1]} : vector<2x64xf32> to vector<2x16xf32>
    %936 = math.tanh %935 : vector<2x16xf32>
    %937 = vector.extract_strided_slice %922 {offsets = [0, 48], sizes = [2, 16], strides = [1, 1]} : vector<2x64xf32> to vector<2x16xf32>
    %938 = arith.negf %937 : vector<2x16xf32>
    %939 = math.exp %938 : vector<2x16xf32>
    %cst_457 = arith.constant 1.000000e+00 : f32
    %940 = vector.broadcast %cst_457 : f32 to vector<2x16xf32>
    %941 = arith.addf %940, %939 : vector<2x16xf32>
    %942 = arith.divf %940, %941 : vector<2x16xf32>
    %943 = arith.mulf %934, %920 : vector<2x16xf32>
    %944 = arith.mulf %928, %936 : vector<2x16xf32>
    %945 = arith.addf %943, %944 : vector<2x16xf32>
    %946 = math.tanh %945 : vector<2x16xf32>
    %947 = arith.mulf %942, %946 : vector<2x16xf32>
    %c0_458 = arith.constant 0 : index
    %c0_459 = arith.constant 0 : index
    %948 = vector.load %arg17[%c0_458, %c0_459] : memref<2x16xf32, #tpu.memory_space<vmem>>, vector<2x16xf32>
    tpu.vector_store %arg17[%c0_458, %c0_459], %947 {strides = array<i32>} : memref<2x16xf32, #tpu.memory_space<vmem>>, vector<2x16xf32>,
    %c0_460 = arith.constant 0 : index
    %c0_461 = arith.constant 0 : index
    %949 = vector.load %arg18[%c0_460, %c0_461] : memref<2x16xf32, #tpu.memory_space<vmem>>, vector<2x16xf32>
    tpu.vector_store %arg18[%c0_460, %c0_461], %945 {strides = array<i32>} : memref<2x16xf32, #tpu.memory_space<vmem>>, vector<2x16xf32>,
    %c4_462 = arith.constant 4 : index
    %c0_463 = arith.constant 0 : index
    %950 = vector.load %arg14[%c4_462, %c0_463] : memref<32x16xf32, #tpu.memory_space<vmem>>, vector<2x16xf32>
    tpu.vector_store %arg14[%c4_462, %c0_463], %947 {strides = array<i32>} : memref<32x16xf32, #tpu.memory_space<vmem>>, vector<2x16xf32>,
    %c28_464 = arith.constant 28 : index
    %c0_465 = arith.constant 0 : index
    %951 = vector.load %arg19[%c28_464, %c0_465] : memref<32x64xf32, #tpu.memory_space<vmem>>, vector<2x64xf32>
    %c0_466 = arith.constant 0 : index
    %c0_467 = arith.constant 0 : index
    %952 = vector.load %arg15[%c0_466, %c0_467] : memref<2x16xf32, #tpu.memory_space<vmem>>, vector<2x16xf32>
    %c0_468 = arith.constant 0 : index
    %c0_469 = arith.constant 0 : index
    %953 = vector.load %arg16[%c0_468, %c0_469] : memref<2x16xf32, #tpu.memory_space<vmem>>, vector<2x16xf32>
    %cst_470 = arith.constant dense<0.000000e+00> : vector<2x64xf32>
    %954 = tpu.matmul %952, %25, %cst_470 {dimension_numbers = #tpu.dot_dimension_numbers<[1], [0], [0], [1], [0, 0, 1, 1], [], []>} : vector<2x16xf32>, vector<16x64xf32>, vector<2x64xf32> -> vector<2x64xf32>
    %955 = arith.addf %951, %954 : vector<2x64xf32>
    %956 = vector.extract_strided_slice %955 {offsets = [0, 0], sizes = [2, 16], strides = [1, 1]} : vector<2x64xf32> to vector<2x16xf32>
    %957 = arith.negf %956 : vector<2x16xf32>
    %958 = math.exp %957 : vector<2x16xf32>
    %cst_471 = arith.constant 1.000000e+00 : f32
    %959 = vector.broadcast %cst_471 : f32 to vector<2x16xf32>
    %960 = arith.addf %959, %958 : vector<2x16xf32>
    %961 = arith.divf %959, %960 : vector<2x16xf32>
    %962 = vector.extract_strided_slice %955 {offsets = [0, 16], sizes = [2, 16], strides = [1, 1]} : vector<2x64xf32> to vector<2x16xf32>
    %963 = arith.negf %962 : vector<2x16xf32>
    %964 = math.exp %963 : vector<2x16xf32>
    %cst_472 = arith.constant 1.000000e+00 : f32
    %965 = vector.broadcast %cst_472 : f32 to vector<2x16xf32>
    %966 = arith.addf %965, %964 : vector<2x16xf32>
    %967 = arith.divf %965, %966 : vector<2x16xf32>
    %968 = vector.extract_strided_slice %955 {offsets = [0, 32], sizes = [2, 16], strides = [1, 1]} : vector<2x64xf32> to vector<2x16xf32>
    %969 = math.tanh %968 : vector<2x16xf32>
    %970 = vector.extract_strided_slice %955 {offsets = [0, 48], sizes = [2, 16], strides = [1, 1]} : vector<2x64xf32> to vector<2x16xf32>
    %971 = arith.negf %970 : vector<2x16xf32>
    %972 = math.exp %971 : vector<2x16xf32>
    %cst_473 = arith.constant 1.000000e+00 : f32
    %973 = vector.broadcast %cst_473 : f32 to vector<2x16xf32>
    %974 = arith.addf %973, %972 : vector<2x16xf32>
    %975 = arith.divf %973, %974 : vector<2x16xf32>
    %976 = arith.mulf %967, %953 : vector<2x16xf32>
    %977 = arith.mulf %961, %969 : vector<2x16xf32>
    %978 = arith.addf %976, %977 : vector<2x16xf32>
    %979 = math.tanh %978 : vector<2x16xf32>
    %980 = arith.mulf %975, %979 : vector<2x16xf32>
    %c0_474 = arith.constant 0 : index
    %c0_475 = arith.constant 0 : index
    %981 = vector.load %arg15[%c0_474, %c0_475] : memref<2x16xf32, #tpu.memory_space<vmem>>, vector<2x16xf32>
    tpu.vector_store %arg15[%c0_474, %c0_475], %980 {strides = array<i32>} : memref<2x16xf32, #tpu.memory_space<vmem>>, vector<2x16xf32>,
    %c0_476 = arith.constant 0 : index
    %c0_477 = arith.constant 0 : index
    %982 = vector.load %arg16[%c0_476, %c0_477] : memref<2x16xf32, #tpu.memory_space<vmem>>, vector<2x16xf32>
    tpu.vector_store %arg16[%c0_476, %c0_477], %978 {strides = array<i32>} : memref<2x16xf32, #tpu.memory_space<vmem>>, vector<2x16xf32>,
    %c28_478 = arith.constant 28 : index
    %c0_479 = arith.constant 0 : index
    %983 = vector.load %arg13[%c28_478, %c0_479] : memref<32x16xf32, #tpu.memory_space<vmem>>, vector<2x16xf32>
    tpu.vector_store %arg13[%c28_478, %c0_479], %980 {strides = array<i32>} : memref<32x16xf32, #tpu.memory_space<vmem>>, vector<2x16xf32>,
    %c2_480 = arith.constant 2 : index
    %c0_481 = arith.constant 0 : index
    %984 = vector.load %arg20[%c2_480, %c0_481] : memref<32x64xf32, #tpu.memory_space<vmem>>, vector<2x64xf32>
    %c0_482 = arith.constant 0 : index
    %c0_483 = arith.constant 0 : index
    %985 = vector.load %arg17[%c0_482, %c0_483] : memref<2x16xf32, #tpu.memory_space<vmem>>, vector<2x16xf32>
    %c0_484 = arith.constant 0 : index
    %c0_485 = arith.constant 0 : index
    %986 = vector.load %arg18[%c0_484, %c0_485] : memref<2x16xf32, #tpu.memory_space<vmem>>, vector<2x16xf32>
    %cst_486 = arith.constant dense<0.000000e+00> : vector<2x64xf32>
    %987 = tpu.matmul %985, %26, %cst_486 {dimension_numbers = #tpu.dot_dimension_numbers<[1], [0], [0], [1], [0, 0, 1, 1], [], []>} : vector<2x16xf32>, vector<16x64xf32>, vector<2x64xf32> -> vector<2x64xf32>
    %988 = arith.addf %984, %987 : vector<2x64xf32>
    %989 = vector.extract_strided_slice %988 {offsets = [0, 0], sizes = [2, 16], strides = [1, 1]} : vector<2x64xf32> to vector<2x16xf32>
    %990 = arith.negf %989 : vector<2x16xf32>
    %991 = math.exp %990 : vector<2x16xf32>
    %cst_487 = arith.constant 1.000000e+00 : f32
    %992 = vector.broadcast %cst_487 : f32 to vector<2x16xf32>
    %993 = arith.addf %992, %991 : vector<2x16xf32>
    %994 = arith.divf %992, %993 : vector<2x16xf32>
    %995 = vector.extract_strided_slice %988 {offsets = [0, 16], sizes = [2, 16], strides = [1, 1]} : vector<2x64xf32> to vector<2x16xf32>
    %996 = arith.negf %995 : vector<2x16xf32>
    %997 = math.exp %996 : vector<2x16xf32>
    %cst_488 = arith.constant 1.000000e+00 : f32
    %998 = vector.broadcast %cst_488 : f32 to vector<2x16xf32>
    %999 = arith.addf %998, %997 : vector<2x16xf32>
    %1000 = arith.divf %998, %999 : vector<2x16xf32>
    %1001 = vector.extract_strided_slice %988 {offsets = [0, 32], sizes = [2, 16], strides = [1, 1]} : vector<2x64xf32> to vector<2x16xf32>
    %1002 = math.tanh %1001 : vector<2x16xf32>
    %1003 = vector.extract_strided_slice %988 {offsets = [0, 48], sizes = [2, 16], strides = [1, 1]} : vector<2x64xf32> to vector<2x16xf32>
    %1004 = arith.negf %1003 : vector<2x16xf32>
    %1005 = math.exp %1004 : vector<2x16xf32>
    %cst_489 = arith.constant 1.000000e+00 : f32
    %1006 = vector.broadcast %cst_489 : f32 to vector<2x16xf32>
    %1007 = arith.addf %1006, %1005 : vector<2x16xf32>
    %1008 = arith.divf %1006, %1007 : vector<2x16xf32>
    %1009 = arith.mulf %1000, %986 : vector<2x16xf32>
    %1010 = arith.mulf %994, %1002 : vector<2x16xf32>
    %1011 = arith.addf %1009, %1010 : vector<2x16xf32>
    %1012 = math.tanh %1011 : vector<2x16xf32>
    %1013 = arith.mulf %1008, %1012 : vector<2x16xf32>
    %c0_490 = arith.constant 0 : index
    %c0_491 = arith.constant 0 : index
    %1014 = vector.load %arg17[%c0_490, %c0_491] : memref<2x16xf32, #tpu.memory_space<vmem>>, vector<2x16xf32>
    tpu.vector_store %arg17[%c0_490, %c0_491], %1013 {strides = array<i32>} : memref<2x16xf32, #tpu.memory_space<vmem>>, vector<2x16xf32>,
    %c0_492 = arith.constant 0 : index
    %c0_493 = arith.constant 0 : index
    %1015 = vector.load %arg18[%c0_492, %c0_493] : memref<2x16xf32, #tpu.memory_space<vmem>>, vector<2x16xf32>
    tpu.vector_store %arg18[%c0_492, %c0_493], %1011 {strides = array<i32>} : memref<2x16xf32, #tpu.memory_space<vmem>>, vector<2x16xf32>,
    %c2_494 = arith.constant 2 : index
    %c0_495 = arith.constant 0 : index
    %1016 = vector.load %arg14[%c2_494, %c0_495] : memref<32x16xf32, #tpu.memory_space<vmem>>, vector<2x16xf32>
    tpu.vector_store %arg14[%c2_494, %c0_495], %1013 {strides = array<i32>} : memref<32x16xf32, #tpu.memory_space<vmem>>, vector<2x16xf32>,
    %c30_496 = arith.constant 30 : index
    %c0_497 = arith.constant 0 : index
    %1017 = vector.load %arg19[%c30_496, %c0_497] : memref<32x64xf32, #tpu.memory_space<vmem>>, vector<2x64xf32>
    %c0_498 = arith.constant 0 : index
    %c0_499 = arith.constant 0 : index
    %1018 = vector.load %arg15[%c0_498, %c0_499] : memref<2x16xf32, #tpu.memory_space<vmem>>, vector<2x16xf32>
    %c0_500 = arith.constant 0 : index
    %c0_501 = arith.constant 0 : index
    %1019 = vector.load %arg16[%c0_500, %c0_501] : memref<2x16xf32, #tpu.memory_space<vmem>>, vector<2x16xf32>
    %cst_502 = arith.constant dense<0.000000e+00> : vector<2x64xf32>
    %1020 = tpu.matmul %1018, %25, %cst_502 {dimension_numbers = #tpu.dot_dimension_numbers<[1], [0], [0], [1], [0, 0, 1, 1], [], []>} : vector<2x16xf32>, vector<16x64xf32>, vector<2x64xf32> -> vector<2x64xf32>
    %1021 = arith.addf %1017, %1020 : vector<2x64xf32>
    %1022 = vector.extract_strided_slice %1021 {offsets = [0, 0], sizes = [2, 16], strides = [1, 1]} : vector<2x64xf32> to vector<2x16xf32>
    %1023 = arith.negf %1022 : vector<2x16xf32>
    %1024 = math.exp %1023 : vector<2x16xf32>
    %cst_503 = arith.constant 1.000000e+00 : f32
    %1025 = vector.broadcast %cst_503 : f32 to vector<2x16xf32>
    %1026 = arith.addf %1025, %1024 : vector<2x16xf32>
    %1027 = arith.divf %1025, %1026 : vector<2x16xf32>
    %1028 = vector.extract_strided_slice %1021 {offsets = [0, 16], sizes = [2, 16], strides = [1, 1]} : vector<2x64xf32> to vector<2x16xf32>
    %1029 = arith.negf %1028 : vector<2x16xf32>
    %1030 = math.exp %1029 : vector<2x16xf32>
    %cst_504 = arith.constant 1.000000e+00 : f32
    %1031 = vector.broadcast %cst_504 : f32 to vector<2x16xf32>
    %1032 = arith.addf %1031, %1030 : vector<2x16xf32>
    %1033 = arith.divf %1031, %1032 : vector<2x16xf32>
    %1034 = vector.extract_strided_slice %1021 {offsets = [0, 32], sizes = [2, 16], strides = [1, 1]} : vector<2x64xf32> to vector<2x16xf32>
    %1035 = math.tanh %1034 : vector<2x16xf32>
    %1036 = vector.extract_strided_slice %1021 {offsets = [0, 48], sizes = [2, 16], strides = [1, 1]} : vector<2x64xf32> to vector<2x16xf32>
    %1037 = arith.negf %1036 : vector<2x16xf32>
    %1038 = math.exp %1037 : vector<2x16xf32>
    %cst_505 = arith.constant 1.000000e+00 : f32
    %1039 = vector.broadcast %cst_505 : f32 to vector<2x16xf32>
    %1040 = arith.addf %1039, %1038 : vector<2x16xf32>
    %1041 = arith.divf %1039, %1040 : vector<2x16xf32>
    %1042 = arith.mulf %1033, %1019 : vector<2x16xf32>
    %1043 = arith.mulf %1027, %1035 : vector<2x16xf32>
    %1044 = arith.addf %1042, %1043 : vector<2x16xf32>
    %1045 = math.tanh %1044 : vector<2x16xf32>
    %1046 = arith.mulf %1041, %1045 : vector<2x16xf32>
    %c0_506 = arith.constant 0 : index
    %c0_507 = arith.constant 0 : index
    %1047 = vector.load %arg15[%c0_506, %c0_507] : memref<2x16xf32, #tpu.memory_space<vmem>>, vector<2x16xf32>
    tpu.vector_store %arg15[%c0_506, %c0_507], %1046 {strides = array<i32>} : memref<2x16xf32, #tpu.memory_space<vmem>>, vector<2x16xf32>,
    %c0_508 = arith.constant 0 : index
    %c0_509 = arith.constant 0 : index
    %1048 = vector.load %arg16[%c0_508, %c0_509] : memref<2x16xf32, #tpu.memory_space<vmem>>, vector<2x16xf32>
    tpu.vector_store %arg16[%c0_508, %c0_509], %1044 {strides = array<i32>} : memref<2x16xf32, #tpu.memory_space<vmem>>, vector<2x16xf32>,
    %c30_510 = arith.constant 30 : index
    %c0_511 = arith.constant 0 : index
    %1049 = vector.load %arg13[%c30_510, %c0_511] : memref<32x16xf32, #tpu.memory_space<vmem>>, vector<2x16xf32>
    tpu.vector_store %arg13[%c30_510, %c0_511], %1046 {strides = array<i32>} : memref<32x16xf32, #tpu.memory_space<vmem>>, vector<2x16xf32>,
    %c0_512 = arith.constant 0 : index
    %c0_513 = arith.constant 0 : index
    %1050 = vector.load %arg20[%c0_512, %c0_513] : memref<32x64xf32, #tpu.memory_space<vmem>>, vector<2x64xf32>
    %c0_514 = arith.constant 0 : index
    %c0_515 = arith.constant 0 : index
    %1051 = vector.load %arg17[%c0_514, %c0_515] : memref<2x16xf32, #tpu.memory_space<vmem>>, vector<2x16xf32>
    %c0_516 = arith.constant 0 : index
    %c0_517 = arith.constant 0 : index
    %1052 = vector.load %arg18[%c0_516, %c0_517] : memref<2x16xf32, #tpu.memory_space<vmem>>, vector<2x16xf32>
    %cst_518 = arith.constant dense<0.000000e+00> : vector<2x64xf32>
    %1053 = tpu.matmul %1051, %26, %cst_518 {dimension_numbers = #tpu.dot_dimension_numbers<[1], [0], [0], [1], [0, 0, 1, 1], [], []>} : vector<2x16xf32>, vector<16x64xf32>, vector<2x64xf32> -> vector<2x64xf32>
    %1054 = arith.addf %1050, %1053 : vector<2x64xf32>
    %1055 = vector.extract_strided_slice %1054 {offsets = [0, 0], sizes = [2, 16], strides = [1, 1]} : vector<2x64xf32> to vector<2x16xf32>
    %1056 = arith.negf %1055 : vector<2x16xf32>
    %1057 = math.exp %1056 : vector<2x16xf32>
    %cst_519 = arith.constant 1.000000e+00 : f32
    %1058 = vector.broadcast %cst_519 : f32 to vector<2x16xf32>
    %1059 = arith.addf %1058, %1057 : vector<2x16xf32>
    %1060 = arith.divf %1058, %1059 : vector<2x16xf32>
    %1061 = vector.extract_strided_slice %1054 {offsets = [0, 16], sizes = [2, 16], strides = [1, 1]} : vector<2x64xf32> to vector<2x16xf32>
    %1062 = arith.negf %1061 : vector<2x16xf32>
    %1063 = math.exp %1062 : vector<2x16xf32>
    %cst_520 = arith.constant 1.000000e+00 : f32
    %1064 = vector.broadcast %cst_520 : f32 to vector<2x16xf32>
    %1065 = arith.addf %1064, %1063 : vector<2x16xf32>
    %1066 = arith.divf %1064, %1065 : vector<2x16xf32>
    %1067 = vector.extract_strided_slice %1054 {offsets = [0, 32], sizes = [2, 16], strides = [1, 1]} : vector<2x64xf32> to vector<2x16xf32>
    %1068 = math.tanh %1067 : vector<2x16xf32>
    %1069 = vector.extract_strided_slice %1054 {offsets = [0, 48], sizes = [2, 16], strides = [1, 1]} : vector<2x64xf32> to vector<2x16xf32>
    %1070 = arith.negf %1069 : vector<2x16xf32>
    %1071 = math.exp %1070 : vector<2x16xf32>
    %cst_521 = arith.constant 1.000000e+00 : f32
    %1072 = vector.broadcast %cst_521 : f32 to vector<2x16xf32>
    %1073 = arith.addf %1072, %1071 : vector<2x16xf32>
    %1074 = arith.divf %1072, %1073 : vector<2x16xf32>
    %1075 = arith.mulf %1066, %1052 : vector<2x16xf32>
    %1076 = arith.mulf %1060, %1068 : vector<2x16xf32>
    %1077 = arith.addf %1075, %1076 : vector<2x16xf32>
    %1078 = math.tanh %1077 : vector<2x16xf32>
    %1079 = arith.mulf %1074, %1078 : vector<2x16xf32>
    %c0_522 = arith.constant 0 : index
    %c0_523 = arith.constant 0 : index
    %1080 = vector.load %arg17[%c0_522, %c0_523] : memref<2x16xf32, #tpu.memory_space<vmem>>, vector<2x16xf32>
    tpu.vector_store %arg17[%c0_522, %c0_523], %1079 {strides = array<i32>} : memref<2x16xf32, #tpu.memory_space<vmem>>, vector<2x16xf32>,
    %c0_524 = arith.constant 0 : index
    %c0_525 = arith.constant 0 : index
    %1081 = vector.load %arg18[%c0_524, %c0_525] : memref<2x16xf32, #tpu.memory_space<vmem>>, vector<2x16xf32>
    tpu.vector_store %arg18[%c0_524, %c0_525], %1077 {strides = array<i32>} : memref<2x16xf32, #tpu.memory_space<vmem>>, vector<2x16xf32>,
    %c0_526 = arith.constant 0 : index
    %c0_527 = arith.constant 0 : index
    %1082 = vector.load %arg14[%c0_526, %c0_527] : memref<32x16xf32, #tpu.memory_space<vmem>>, vector<2x16xf32>
    tpu.vector_store %arg14[%c0_526, %c0_527], %1079 {strides = array<i32>} : memref<32x16xf32, #tpu.memory_space<vmem>>, vector<2x16xf32>,
    return
  }
  func.func @transform_0(%arg0: i32) -> (i32, i32) {
    %c0_i32 = arith.constant 0 : i32
    %c0_i32_0 = arith.constant 0 : i32
    return %arg0, %c0_i32 : i32, i32
  }
  func.func @transform_1(%arg0: i32) -> (i32, i32) {
    %c0_i32 = arith.constant 0 : i32
    %c0_i32_0 = arith.constant 0 : i32
    return %arg0, %c0_i32 : i32, i32
  }
  func.func @transform_2(%arg0: i32) -> (i32, i32) {
    %c0_i32 = arith.constant 0 : i32
    %0 = arith.subi %c0_i32, %arg0 : i32
    %c0_i32_0 = arith.constant 0 : i32
    %c0_i32_1 = arith.constant 0 : i32
    return %0, %c0_i32_0 : i32, i32
  }
  func.func @transform_3(%arg0: i32) -> (i32, i32) {
    %c0_i32 = arith.constant 0 : i32
    %0 = arith.subi %c0_i32, %arg0 : i32
    %c0_i32_0 = arith.constant 0 : i32
    %c0_i32_1 = arith.constant 0 : i32
    return %0, %c0_i32_0 : i32, i32
  }
  func.func @transform_4(%arg0: i32) -> (i32, i32) {
    %c0_i32 = arith.constant 0 : i32
    %c0_i32_0 = arith.constant 0 : i32
    %c0_i32_1 = arith.constant 0 : i32
    return %c0_i32, %c0_i32_0 : i32, i32
  }
  func.func @transform_5(%arg0: i32) -> (i32, i32) {
    %c0_i32 = arith.constant 0 : i32
    %c0_i32_0 = arith.constant 0 : i32
    %c0_i32_1 = arith.constant 0 : i32
    return %c0_i32, %c0_i32_0 : i32, i32
  }
  func.func @transform_6(%arg0: i32) -> (i32, i32) {
    %c0_i32 = arith.constant 0 : i32
    %c0_i32_0 = arith.constant 0 : i32
    %c0_i32_1 = arith.constant 0 : i32
    return %c0_i32, %c0_i32_0 : i32, i32
  }
  func.func @transform_7(%arg0: i32) -> (i32, i32) {
    %c0_i32 = arith.constant 0 : i32
    %c0_i32_0 = arith.constant 0 : i32
    %c0_i32_1 = arith.constant 0 : i32
    return %c0_i32, %c0_i32_0 : i32, i32
  }
  func.func @transform_8(%arg0: i32) -> (i32, i32) {
    %c0_i32 = arith.constant 0 : i32
    %c0_i32_0 = arith.constant 0 : i32
    %c0_i32_1 = arith.constant 0 : i32
    return %c0_i32, %c0_i32_0 : i32, i32
  }
  func.func @transform_9(%arg0: i32) -> (i32, i32) {
    %c0_i32 = arith.constant 0 : i32
    %c0_i32_0 = arith.constant 0 : i32
    %c0_i32_1 = arith.constant 0 : i32
    return %c0_i32, %c0_i32_0 : i32, i32
  }
  func.func @transform_10(%arg0: i32) -> (i32, i32) {
    %c0_i32 = arith.constant 0 : i32
    %c0_i32_0 = arith.constant 0 : i32
    %c0_i32_1 = arith.constant 0 : i32
    return %c0_i32, %c0_i32_0 : i32, i32
  }
  func.func @transform_11(%arg0: i32) -> (i32, i32) {
    %c0_i32 = arith.constant 0 : i32
    %c0_i32_0 = arith.constant 0 : i32
    %c0_i32_1 = arith.constant 0 : i32
    return %c0_i32, %c0_i32_0 : i32, i32
  }
  func.func @transform_12(%arg0: i32) -> (i32, i32) {
    %c0_i32 = arith.constant 0 : i32
    %c0_i32_0 = arith.constant 0 : i32
    return %arg0, %c0_i32 : i32, i32
  }
  func.func @transform_13(%arg0: i32) -> (i32, i32) {
    %c0_i32 = arith.constant 0 : i32
    %0 = arith.subi %c0_i32, %arg0 : i32
    %c0_i32_0 = arith.constant 0 : i32
    %c0_i32_1 = arith.constant 0 : i32
    return %0, %c0_i32_0 : i32, i32
  }
}

module attributes {stable_mosaic.version = 11 : i64} {
  func.func @_bilstm_fused_kernel(%arg0: i32, %arg1: memref<32x16xf32, #tpu.memory_space<vmem>>, %arg2: memref<32x16xf32, #tpu.memory_space<vmem>>, %arg3: memref<16x64xf32, #tpu.memory_space<vmem>>, %arg4: memref<16x64xf32, #tpu.memory_space<vmem>>, %arg5: memref<1x64xf32, #tpu.memory_space<vmem>>, %arg6: memref<1x64xf32, #tpu.memory_space<vmem>>, %arg7: memref<16x64xf32, #tpu.memory_space<vmem>>, %arg8: memref<16x64xf32, #tpu.memory_space<vmem>>, %arg9: memref<32x16xf32, #tpu.memory_space<vmem>>, %arg10: memref<32x16xf32, #tpu.memory_space<vmem>>, %arg11: memref<2x16xf32, #tpu.memory_space<vmem>>, %arg12: memref<2x16xf32, #tpu.memory_space<vmem>>, %arg13: memref<2x16xf32, #tpu.memory_space<vmem>>, %arg14: memref<2x16xf32, #tpu.memory_space<vmem>>, %arg15: memref<32x64xf32, #tpu.memory_space<vmem>>, %arg16: memref<32x64xf32, #tpu.memory_space<vmem>>) attributes {dimension_semantics = [#tpu.dimension_semantics<arbitrary>], iteration_bounds = array<i64: 1>, scalar_prefetch = 0 : i64, scratch_operands = 6 : i64, tpu.core_type = #tpu.core_type<tc>, window_params = [{transform_indices = @transform_0, window_bounds = array<i64: 32, 16>}, {transform_indices = @transform_1, window_bounds = array<i64: 32, 16>}, {pipeline_mode = #tpu.pipeline_mode<synchronous>, transform_indices = @transform_2, window_bounds = array<i64: 16, 64>}, {pipeline_mode = #tpu.pipeline_mode<synchronous>, transform_indices = @transform_3, window_bounds = array<i64: 16, 64>}, {pipeline_mode = #tpu.pipeline_mode<synchronous>, transform_indices = @transform_4, window_bounds = array<i64: 1, 64>}, {pipeline_mode = #tpu.pipeline_mode<synchronous>, transform_indices = @transform_5, window_bounds = array<i64: 1, 64>}, {pipeline_mode = #tpu.pipeline_mode<synchronous>, transform_indices = @transform_6, window_bounds = array<i64: 16, 64>}, {pipeline_mode = #tpu.pipeline_mode<synchronous>, transform_indices = @transform_7, window_bounds = array<i64: 16, 64>}, {transform_indices = @transform_8, window_bounds = array<i64: 32, 16>}, {transform_indices = @transform_9, window_bounds = array<i64: 32, 16>}]} {
    %c0_i32 = arith.constant 0 : i32
    %0 = arith.cmpi eq, %arg0, %c0_i32 : i32
    %1 = arith.extui %0 : i1 to i32
    %c0_i32_0 = arith.constant 0 : i32
    %2 = arith.cmpi ne, %1, %c0_i32_0 : i32
    scf.if %2 {
      %cst_518 = arith.constant 0.000000e+00 : f32
      %1075 = vector.broadcast %cst_518 : f32 to vector<2x16xf32>
      %c0_519 = arith.constant 0 : index
      %c0_520 = arith.constant 0 : index
      %1076 = vector.load %arg11[%c0_519, %c0_520] : memref<2x16xf32, #tpu.memory_space<vmem>>, vector<2x16xf32>
      tpu.vector_store %arg11[%c0_519, %c0_520], %1075 {strides = array<i32>} : memref<2x16xf32, #tpu.memory_space<vmem>>, vector<2x16xf32>,
      %cst_521 = arith.constant 0.000000e+00 : f32
      %1077 = vector.broadcast %cst_521 : f32 to vector<2x16xf32>
      %c0_522 = arith.constant 0 : index
      %c0_523 = arith.constant 0 : index
      %1078 = vector.load %arg12[%c0_522, %c0_523] : memref<2x16xf32, #tpu.memory_space<vmem>>, vector<2x16xf32>
      tpu.vector_store %arg12[%c0_522, %c0_523], %1077 {strides = array<i32>} : memref<2x16xf32, #tpu.memory_space<vmem>>, vector<2x16xf32>,
      %cst_524 = arith.constant 0.000000e+00 : f32
      %1079 = vector.broadcast %cst_524 : f32 to vector<2x16xf32>
      %c0_525 = arith.constant 0 : index
      %c0_526 = arith.constant 0 : index
      %1080 = vector.load %arg13[%c0_525, %c0_526] : memref<2x16xf32, #tpu.memory_space<vmem>>, vector<2x16xf32>
      tpu.vector_store %arg13[%c0_525, %c0_526], %1079 {strides = array<i32>} : memref<2x16xf32, #tpu.memory_space<vmem>>, vector<2x16xf32>,
      %cst_527 = arith.constant 0.000000e+00 : f32
      %1081 = vector.broadcast %cst_527 : f32 to vector<2x16xf32>
      %c0_528 = arith.constant 0 : index
      %c0_529 = arith.constant 0 : index
      %1082 = vector.load %arg14[%c0_528, %c0_529] : memref<2x16xf32, #tpu.memory_space<vmem>>, vector<2x16xf32>
      tpu.vector_store %arg14[%c0_528, %c0_529], %1081 {strides = array<i32>} : memref<2x16xf32, #tpu.memory_space<vmem>>, vector<2x16xf32>,
    } else {
    }
    %c0 = arith.constant 0 : index
    %c0_1 = arith.constant 0 : index
    %3 = vector.load %arg5[%c0, %c0_1] : memref<1x64xf32, #tpu.memory_space<vmem>>, vector<1x64xf32>
    %c0_2 = arith.constant 0 : index
    %c0_3 = arith.constant 0 : index
    %4 = vector.load %arg6[%c0_2, %c0_3] : memref<1x64xf32, #tpu.memory_space<vmem>>, vector<1x64xf32>
    %c0_4 = arith.constant 0 : index
    %c0_5 = arith.constant 0 : index
    %5 = vector.load %arg1[%c0_4, %c0_5] : memref<32x16xf32, #tpu.memory_space<vmem>>, vector<32x16xf32>
    %c0_6 = arith.constant 0 : index
    %c0_7 = arith.constant 0 : index
    %6 = vector.load %arg3[%c0_6, %c0_7] : memref<16x64xf32, #tpu.memory_space<vmem>>, vector<16x64xf32>
    %cst = arith.constant dense<0.000000e+00> : vector<32x64xf32>
    %7 = tpu.matmul %5, %6, %cst {dimension_numbers = #tpu.dot_dimension_numbers<[1], [0], [0], [1], [0, 0, 1, 1], [], []>} : vector<32x16xf32>, vector<16x64xf32>, vector<32x64xf32> -> vector<32x64xf32>
    %8 = vector.broadcast %3 : vector<1x64xf32> to vector<32x64xf32>
    %9 = arith.addf %8, %7 : vector<32x64xf32>
    %c0_8 = arith.constant 0 : index
    %c0_9 = arith.constant 0 : index
    %10 = vector.load %arg2[%c0_8, %c0_9] : memref<32x16xf32, #tpu.memory_space<vmem>>, vector<32x16xf32>
    %c0_10 = arith.constant 0 : index
    %c0_11 = arith.constant 0 : index
    %11 = vector.load %arg4[%c0_10, %c0_11] : memref<16x64xf32, #tpu.memory_space<vmem>>, vector<16x64xf32>
    %cst_12 = arith.constant dense<0.000000e+00> : vector<32x64xf32>
    %12 = tpu.matmul %10, %11, %cst_12 {dimension_numbers = #tpu.dot_dimension_numbers<[1], [0], [0], [1], [0, 0, 1, 1], [], []>} : vector<32x16xf32>, vector<16x64xf32>, vector<32x64xf32> -> vector<32x64xf32>
    %13 = vector.broadcast %4 : vector<1x64xf32> to vector<32x64xf32>
    %14 = arith.addf %13, %12 : vector<32x64xf32>
    %c0_13 = arith.constant 0 : index
    %c0_14 = arith.constant 0 : index
    %15 = vector.load %arg15[%c0_13, %c0_14] : memref<32x64xf32, #tpu.memory_space<vmem>>, vector<32x64xf32>
    tpu.vector_store %arg15[%c0_13, %c0_14], %9 {strides = array<i32>} : memref<32x64xf32, #tpu.memory_space<vmem>>, vector<32x64xf32>,
    %c0_15 = arith.constant 0 : index
    %c0_16 = arith.constant 0 : index
    %16 = vector.load %arg16[%c0_15, %c0_16] : memref<32x64xf32, #tpu.memory_space<vmem>>, vector<32x64xf32>
    tpu.vector_store %arg16[%c0_15, %c0_16], %14 {strides = array<i32>} : memref<32x64xf32, #tpu.memory_space<vmem>>, vector<32x64xf32>,
    %c0_17 = arith.constant 0 : index
    %c0_18 = arith.constant 0 : index
    %17 = vector.load %arg7[%c0_17, %c0_18] : memref<16x64xf32, #tpu.memory_space<vmem>>, vector<16x64xf32>
    %c0_19 = arith.constant 0 : index
    %c0_20 = arith.constant 0 : index
    %18 = vector.load %arg8[%c0_19, %c0_20] : memref<16x64xf32, #tpu.memory_space<vmem>>, vector<16x64xf32>
    %c0_21 = arith.constant 0 : index
    %c0_22 = arith.constant 0 : index
    %19 = vector.load %arg15[%c0_21, %c0_22] : memref<32x64xf32, #tpu.memory_space<vmem>>, vector<2x64xf32>
    %c0_23 = arith.constant 0 : index
    %c0_24 = arith.constant 0 : index
    %20 = vector.load %arg11[%c0_23, %c0_24] : memref<2x16xf32, #tpu.memory_space<vmem>>, vector<2x16xf32>
    %c0_25 = arith.constant 0 : index
    %c0_26 = arith.constant 0 : index
    %21 = vector.load %arg12[%c0_25, %c0_26] : memref<2x16xf32, #tpu.memory_space<vmem>>, vector<2x16xf32>
    %cst_27 = arith.constant dense<0.000000e+00> : vector<2x64xf32>
    %22 = tpu.matmul %20, %17, %cst_27 {dimension_numbers = #tpu.dot_dimension_numbers<[1], [0], [0], [1], [0, 0, 1, 1], [], []>} : vector<2x16xf32>, vector<16x64xf32>, vector<2x64xf32> -> vector<2x64xf32>
    %23 = arith.addf %19, %22 : vector<2x64xf32>
    %24 = vector.extract_strided_slice %23 {offsets = [0, 0], sizes = [2, 16], strides = [1, 1]} : vector<2x64xf32> to vector<2x16xf32>
    %25 = arith.negf %24 : vector<2x16xf32>
    %26 = math.exp %25 : vector<2x16xf32>
    %cst_28 = arith.constant 1.000000e+00 : f32
    %27 = vector.broadcast %cst_28 : f32 to vector<2x16xf32>
    %28 = arith.addf %27, %26 : vector<2x16xf32>
    %29 = arith.divf %27, %28 : vector<2x16xf32>
    %30 = vector.extract_strided_slice %23 {offsets = [0, 16], sizes = [2, 16], strides = [1, 1]} : vector<2x64xf32> to vector<2x16xf32>
    %31 = arith.negf %30 : vector<2x16xf32>
    %32 = math.exp %31 : vector<2x16xf32>
    %cst_29 = arith.constant 1.000000e+00 : f32
    %33 = vector.broadcast %cst_29 : f32 to vector<2x16xf32>
    %34 = arith.addf %33, %32 : vector<2x16xf32>
    %35 = arith.divf %33, %34 : vector<2x16xf32>
    %36 = vector.extract_strided_slice %23 {offsets = [0, 32], sizes = [2, 16], strides = [1, 1]} : vector<2x64xf32> to vector<2x16xf32>
    %37 = math.tanh %36 : vector<2x16xf32>
    %38 = vector.extract_strided_slice %23 {offsets = [0, 48], sizes = [2, 16], strides = [1, 1]} : vector<2x64xf32> to vector<2x16xf32>
    %39 = arith.negf %38 : vector<2x16xf32>
    %40 = math.exp %39 : vector<2x16xf32>
    %cst_30 = arith.constant 1.000000e+00 : f32
    %41 = vector.broadcast %cst_30 : f32 to vector<2x16xf32>
    %42 = arith.addf %41, %40 : vector<2x16xf32>
    %43 = arith.divf %41, %42 : vector<2x16xf32>
    %44 = arith.mulf %35, %21 : vector<2x16xf32>
    %45 = arith.mulf %29, %37 : vector<2x16xf32>
    %46 = arith.addf %44, %45 : vector<2x16xf32>
    %47 = math.tanh %46 : vector<2x16xf32>
    %48 = arith.mulf %43, %47 : vector<2x16xf32>
    %c0_31 = arith.constant 0 : index
    %c0_32 = arith.constant 0 : index
    %49 = vector.load %arg11[%c0_31, %c0_32] : memref<2x16xf32, #tpu.memory_space<vmem>>, vector<2x16xf32>
    tpu.vector_store %arg11[%c0_31, %c0_32], %48 {strides = array<i32>} : memref<2x16xf32, #tpu.memory_space<vmem>>, vector<2x16xf32>,
    %c0_33 = arith.constant 0 : index
    %c0_34 = arith.constant 0 : index
    %50 = vector.load %arg12[%c0_33, %c0_34] : memref<2x16xf32, #tpu.memory_space<vmem>>, vector<2x16xf32>
    tpu.vector_store %arg12[%c0_33, %c0_34], %46 {strides = array<i32>} : memref<2x16xf32, #tpu.memory_space<vmem>>, vector<2x16xf32>,
    %c0_35 = arith.constant 0 : index
    %c0_36 = arith.constant 0 : index
    %51 = vector.load %arg9[%c0_35, %c0_36] : memref<32x16xf32, #tpu.memory_space<vmem>>, vector<2x16xf32>
    tpu.vector_store %arg9[%c0_35, %c0_36], %48 {strides = array<i32>} : memref<32x16xf32, #tpu.memory_space<vmem>>, vector<2x16xf32>,
    %c30 = arith.constant 30 : index
    %c0_37 = arith.constant 0 : index
    %52 = vector.load %arg16[%c30, %c0_37] : memref<32x64xf32, #tpu.memory_space<vmem>>, vector<2x64xf32>
    %c0_38 = arith.constant 0 : index
    %c0_39 = arith.constant 0 : index
    %53 = vector.load %arg13[%c0_38, %c0_39] : memref<2x16xf32, #tpu.memory_space<vmem>>, vector<2x16xf32>
    %c0_40 = arith.constant 0 : index
    %c0_41 = arith.constant 0 : index
    %54 = vector.load %arg14[%c0_40, %c0_41] : memref<2x16xf32, #tpu.memory_space<vmem>>, vector<2x16xf32>
    %cst_42 = arith.constant dense<0.000000e+00> : vector<2x64xf32>
    %55 = tpu.matmul %53, %18, %cst_42 {dimension_numbers = #tpu.dot_dimension_numbers<[1], [0], [0], [1], [0, 0, 1, 1], [], []>} : vector<2x16xf32>, vector<16x64xf32>, vector<2x64xf32> -> vector<2x64xf32>
    %56 = arith.addf %52, %55 : vector<2x64xf32>
    %57 = vector.extract_strided_slice %56 {offsets = [0, 0], sizes = [2, 16], strides = [1, 1]} : vector<2x64xf32> to vector<2x16xf32>
    %58 = arith.negf %57 : vector<2x16xf32>
    %59 = math.exp %58 : vector<2x16xf32>
    %cst_43 = arith.constant 1.000000e+00 : f32
    %60 = vector.broadcast %cst_43 : f32 to vector<2x16xf32>
    %61 = arith.addf %60, %59 : vector<2x16xf32>
    %62 = arith.divf %60, %61 : vector<2x16xf32>
    %63 = vector.extract_strided_slice %56 {offsets = [0, 16], sizes = [2, 16], strides = [1, 1]} : vector<2x64xf32> to vector<2x16xf32>
    %64 = arith.negf %63 : vector<2x16xf32>
    %65 = math.exp %64 : vector<2x16xf32>
    %cst_44 = arith.constant 1.000000e+00 : f32
    %66 = vector.broadcast %cst_44 : f32 to vector<2x16xf32>
    %67 = arith.addf %66, %65 : vector<2x16xf32>
    %68 = arith.divf %66, %67 : vector<2x16xf32>
    %69 = vector.extract_strided_slice %56 {offsets = [0, 32], sizes = [2, 16], strides = [1, 1]} : vector<2x64xf32> to vector<2x16xf32>
    %70 = math.tanh %69 : vector<2x16xf32>
    %71 = vector.extract_strided_slice %56 {offsets = [0, 48], sizes = [2, 16], strides = [1, 1]} : vector<2x64xf32> to vector<2x16xf32>
    %72 = arith.negf %71 : vector<2x16xf32>
    %73 = math.exp %72 : vector<2x16xf32>
    %cst_45 = arith.constant 1.000000e+00 : f32
    %74 = vector.broadcast %cst_45 : f32 to vector<2x16xf32>
    %75 = arith.addf %74, %73 : vector<2x16xf32>
    %76 = arith.divf %74, %75 : vector<2x16xf32>
    %77 = arith.mulf %68, %54 : vector<2x16xf32>
    %78 = arith.mulf %62, %70 : vector<2x16xf32>
    %79 = arith.addf %77, %78 : vector<2x16xf32>
    %80 = math.tanh %79 : vector<2x16xf32>
    %81 = arith.mulf %76, %80 : vector<2x16xf32>
    %c0_46 = arith.constant 0 : index
    %c0_47 = arith.constant 0 : index
    %82 = vector.load %arg13[%c0_46, %c0_47] : memref<2x16xf32, #tpu.memory_space<vmem>>, vector<2x16xf32>
    tpu.vector_store %arg13[%c0_46, %c0_47], %81 {strides = array<i32>} : memref<2x16xf32, #tpu.memory_space<vmem>>, vector<2x16xf32>,
    %c0_48 = arith.constant 0 : index
    %c0_49 = arith.constant 0 : index
    %83 = vector.load %arg14[%c0_48, %c0_49] : memref<2x16xf32, #tpu.memory_space<vmem>>, vector<2x16xf32>
    tpu.vector_store %arg14[%c0_48, %c0_49], %79 {strides = array<i32>} : memref<2x16xf32, #tpu.memory_space<vmem>>, vector<2x16xf32>,
    %c30_50 = arith.constant 30 : index
    %c0_51 = arith.constant 0 : index
    %84 = vector.load %arg10[%c30_50, %c0_51] : memref<32x16xf32, #tpu.memory_space<vmem>>, vector<2x16xf32>
    tpu.vector_store %arg10[%c30_50, %c0_51], %81 {strides = array<i32>} : memref<32x16xf32, #tpu.memory_space<vmem>>, vector<2x16xf32>,
    %c2 = arith.constant 2 : index
    %c0_52 = arith.constant 0 : index
    %85 = vector.load %arg15[%c2, %c0_52] : memref<32x64xf32, #tpu.memory_space<vmem>>, vector<2x64xf32>
    %c0_53 = arith.constant 0 : index
    %c0_54 = arith.constant 0 : index
    %86 = vector.load %arg11[%c0_53, %c0_54] : memref<2x16xf32, #tpu.memory_space<vmem>>, vector<2x16xf32>
    %c0_55 = arith.constant 0 : index
    %c0_56 = arith.constant 0 : index
    %87 = vector.load %arg12[%c0_55, %c0_56] : memref<2x16xf32, #tpu.memory_space<vmem>>, vector<2x16xf32>
    %cst_57 = arith.constant dense<0.000000e+00> : vector<2x64xf32>
    %88 = tpu.matmul %86, %17, %cst_57 {dimension_numbers = #tpu.dot_dimension_numbers<[1], [0], [0], [1], [0, 0, 1, 1], [], []>} : vector<2x16xf32>, vector<16x64xf32>, vector<2x64xf32> -> vector<2x64xf32>
    %89 = arith.addf %85, %88 : vector<2x64xf32>
    %90 = vector.extract_strided_slice %89 {offsets = [0, 0], sizes = [2, 16], strides = [1, 1]} : vector<2x64xf32> to vector<2x16xf32>
    %91 = arith.negf %90 : vector<2x16xf32>
    %92 = math.exp %91 : vector<2x16xf32>
    %cst_58 = arith.constant 1.000000e+00 : f32
    %93 = vector.broadcast %cst_58 : f32 to vector<2x16xf32>
    %94 = arith.addf %93, %92 : vector<2x16xf32>
    %95 = arith.divf %93, %94 : vector<2x16xf32>
    %96 = vector.extract_strided_slice %89 {offsets = [0, 16], sizes = [2, 16], strides = [1, 1]} : vector<2x64xf32> to vector<2x16xf32>
    %97 = arith.negf %96 : vector<2x16xf32>
    %98 = math.exp %97 : vector<2x16xf32>
    %cst_59 = arith.constant 1.000000e+00 : f32
    %99 = vector.broadcast %cst_59 : f32 to vector<2x16xf32>
    %100 = arith.addf %99, %98 : vector<2x16xf32>
    %101 = arith.divf %99, %100 : vector<2x16xf32>
    %102 = vector.extract_strided_slice %89 {offsets = [0, 32], sizes = [2, 16], strides = [1, 1]} : vector<2x64xf32> to vector<2x16xf32>
    %103 = math.tanh %102 : vector<2x16xf32>
    %104 = vector.extract_strided_slice %89 {offsets = [0, 48], sizes = [2, 16], strides = [1, 1]} : vector<2x64xf32> to vector<2x16xf32>
    %105 = arith.negf %104 : vector<2x16xf32>
    %106 = math.exp %105 : vector<2x16xf32>
    %cst_60 = arith.constant 1.000000e+00 : f32
    %107 = vector.broadcast %cst_60 : f32 to vector<2x16xf32>
    %108 = arith.addf %107, %106 : vector<2x16xf32>
    %109 = arith.divf %107, %108 : vector<2x16xf32>
    %110 = arith.mulf %101, %87 : vector<2x16xf32>
    %111 = arith.mulf %95, %103 : vector<2x16xf32>
    %112 = arith.addf %110, %111 : vector<2x16xf32>
    %113 = math.tanh %112 : vector<2x16xf32>
    %114 = arith.mulf %109, %113 : vector<2x16xf32>
    %c0_61 = arith.constant 0 : index
    %c0_62 = arith.constant 0 : index
    %115 = vector.load %arg11[%c0_61, %c0_62] : memref<2x16xf32, #tpu.memory_space<vmem>>, vector<2x16xf32>
    tpu.vector_store %arg11[%c0_61, %c0_62], %114 {strides = array<i32>} : memref<2x16xf32, #tpu.memory_space<vmem>>, vector<2x16xf32>,
    %c0_63 = arith.constant 0 : index
    %c0_64 = arith.constant 0 : index
    %116 = vector.load %arg12[%c0_63, %c0_64] : memref<2x16xf32, #tpu.memory_space<vmem>>, vector<2x16xf32>
    tpu.vector_store %arg12[%c0_63, %c0_64], %112 {strides = array<i32>} : memref<2x16xf32, #tpu.memory_space<vmem>>, vector<2x16xf32>,
    %c2_65 = arith.constant 2 : index
    %c0_66 = arith.constant 0 : index
    %117 = vector.load %arg9[%c2_65, %c0_66] : memref<32x16xf32, #tpu.memory_space<vmem>>, vector<2x16xf32>
    tpu.vector_store %arg9[%c2_65, %c0_66], %114 {strides = array<i32>} : memref<32x16xf32, #tpu.memory_space<vmem>>, vector<2x16xf32>,
    %c28 = arith.constant 28 : index
    %c0_67 = arith.constant 0 : index
    %118 = vector.load %arg16[%c28, %c0_67] : memref<32x64xf32, #tpu.memory_space<vmem>>, vector<2x64xf32>
    %c0_68 = arith.constant 0 : index
    %c0_69 = arith.constant 0 : index
    %119 = vector.load %arg13[%c0_68, %c0_69] : memref<2x16xf32, #tpu.memory_space<vmem>>, vector<2x16xf32>
    %c0_70 = arith.constant 0 : index
    %c0_71 = arith.constant 0 : index
    %120 = vector.load %arg14[%c0_70, %c0_71] : memref<2x16xf32, #tpu.memory_space<vmem>>, vector<2x16xf32>
    %cst_72 = arith.constant dense<0.000000e+00> : vector<2x64xf32>
    %121 = tpu.matmul %119, %18, %cst_72 {dimension_numbers = #tpu.dot_dimension_numbers<[1], [0], [0], [1], [0, 0, 1, 1], [], []>} : vector<2x16xf32>, vector<16x64xf32>, vector<2x64xf32> -> vector<2x64xf32>
    %122 = arith.addf %118, %121 : vector<2x64xf32>
    %123 = vector.extract_strided_slice %122 {offsets = [0, 0], sizes = [2, 16], strides = [1, 1]} : vector<2x64xf32> to vector<2x16xf32>
    %124 = arith.negf %123 : vector<2x16xf32>
    %125 = math.exp %124 : vector<2x16xf32>
    %cst_73 = arith.constant 1.000000e+00 : f32
    %126 = vector.broadcast %cst_73 : f32 to vector<2x16xf32>
    %127 = arith.addf %126, %125 : vector<2x16xf32>
    %128 = arith.divf %126, %127 : vector<2x16xf32>
    %129 = vector.extract_strided_slice %122 {offsets = [0, 16], sizes = [2, 16], strides = [1, 1]} : vector<2x64xf32> to vector<2x16xf32>
    %130 = arith.negf %129 : vector<2x16xf32>
    %131 = math.exp %130 : vector<2x16xf32>
    %cst_74 = arith.constant 1.000000e+00 : f32
    %132 = vector.broadcast %cst_74 : f32 to vector<2x16xf32>
    %133 = arith.addf %132, %131 : vector<2x16xf32>
    %134 = arith.divf %132, %133 : vector<2x16xf32>
    %135 = vector.extract_strided_slice %122 {offsets = [0, 32], sizes = [2, 16], strides = [1, 1]} : vector<2x64xf32> to vector<2x16xf32>
    %136 = math.tanh %135 : vector<2x16xf32>
    %137 = vector.extract_strided_slice %122 {offsets = [0, 48], sizes = [2, 16], strides = [1, 1]} : vector<2x64xf32> to vector<2x16xf32>
    %138 = arith.negf %137 : vector<2x16xf32>
    %139 = math.exp %138 : vector<2x16xf32>
    %cst_75 = arith.constant 1.000000e+00 : f32
    %140 = vector.broadcast %cst_75 : f32 to vector<2x16xf32>
    %141 = arith.addf %140, %139 : vector<2x16xf32>
    %142 = arith.divf %140, %141 : vector<2x16xf32>
    %143 = arith.mulf %134, %120 : vector<2x16xf32>
    %144 = arith.mulf %128, %136 : vector<2x16xf32>
    %145 = arith.addf %143, %144 : vector<2x16xf32>
    %146 = math.tanh %145 : vector<2x16xf32>
    %147 = arith.mulf %142, %146 : vector<2x16xf32>
    %c0_76 = arith.constant 0 : index
    %c0_77 = arith.constant 0 : index
    %148 = vector.load %arg13[%c0_76, %c0_77] : memref<2x16xf32, #tpu.memory_space<vmem>>, vector<2x16xf32>
    tpu.vector_store %arg13[%c0_76, %c0_77], %147 {strides = array<i32>} : memref<2x16xf32, #tpu.memory_space<vmem>>, vector<2x16xf32>,
    %c0_78 = arith.constant 0 : index
    %c0_79 = arith.constant 0 : index
    %149 = vector.load %arg14[%c0_78, %c0_79] : memref<2x16xf32, #tpu.memory_space<vmem>>, vector<2x16xf32>
    tpu.vector_store %arg14[%c0_78, %c0_79], %145 {strides = array<i32>} : memref<2x16xf32, #tpu.memory_space<vmem>>, vector<2x16xf32>,
    %c28_80 = arith.constant 28 : index
    %c0_81 = arith.constant 0 : index
    %150 = vector.load %arg10[%c28_80, %c0_81] : memref<32x16xf32, #tpu.memory_space<vmem>>, vector<2x16xf32>
    tpu.vector_store %arg10[%c28_80, %c0_81], %147 {strides = array<i32>} : memref<32x16xf32, #tpu.memory_space<vmem>>, vector<2x16xf32>,
    %c4 = arith.constant 4 : index
    %c0_82 = arith.constant 0 : index
    %151 = vector.load %arg15[%c4, %c0_82] : memref<32x64xf32, #tpu.memory_space<vmem>>, vector<2x64xf32>
    %c0_83 = arith.constant 0 : index
    %c0_84 = arith.constant 0 : index
    %152 = vector.load %arg11[%c0_83, %c0_84] : memref<2x16xf32, #tpu.memory_space<vmem>>, vector<2x16xf32>
    %c0_85 = arith.constant 0 : index
    %c0_86 = arith.constant 0 : index
    %153 = vector.load %arg12[%c0_85, %c0_86] : memref<2x16xf32, #tpu.memory_space<vmem>>, vector<2x16xf32>
    %cst_87 = arith.constant dense<0.000000e+00> : vector<2x64xf32>
    %154 = tpu.matmul %152, %17, %cst_87 {dimension_numbers = #tpu.dot_dimension_numbers<[1], [0], [0], [1], [0, 0, 1, 1], [], []>} : vector<2x16xf32>, vector<16x64xf32>, vector<2x64xf32> -> vector<2x64xf32>
    %155 = arith.addf %151, %154 : vector<2x64xf32>
    %156 = vector.extract_strided_slice %155 {offsets = [0, 0], sizes = [2, 16], strides = [1, 1]} : vector<2x64xf32> to vector<2x16xf32>
    %157 = arith.negf %156 : vector<2x16xf32>
    %158 = math.exp %157 : vector<2x16xf32>
    %cst_88 = arith.constant 1.000000e+00 : f32
    %159 = vector.broadcast %cst_88 : f32 to vector<2x16xf32>
    %160 = arith.addf %159, %158 : vector<2x16xf32>
    %161 = arith.divf %159, %160 : vector<2x16xf32>
    %162 = vector.extract_strided_slice %155 {offsets = [0, 16], sizes = [2, 16], strides = [1, 1]} : vector<2x64xf32> to vector<2x16xf32>
    %163 = arith.negf %162 : vector<2x16xf32>
    %164 = math.exp %163 : vector<2x16xf32>
    %cst_89 = arith.constant 1.000000e+00 : f32
    %165 = vector.broadcast %cst_89 : f32 to vector<2x16xf32>
    %166 = arith.addf %165, %164 : vector<2x16xf32>
    %167 = arith.divf %165, %166 : vector<2x16xf32>
    %168 = vector.extract_strided_slice %155 {offsets = [0, 32], sizes = [2, 16], strides = [1, 1]} : vector<2x64xf32> to vector<2x16xf32>
    %169 = math.tanh %168 : vector<2x16xf32>
    %170 = vector.extract_strided_slice %155 {offsets = [0, 48], sizes = [2, 16], strides = [1, 1]} : vector<2x64xf32> to vector<2x16xf32>
    %171 = arith.negf %170 : vector<2x16xf32>
    %172 = math.exp %171 : vector<2x16xf32>
    %cst_90 = arith.constant 1.000000e+00 : f32
    %173 = vector.broadcast %cst_90 : f32 to vector<2x16xf32>
    %174 = arith.addf %173, %172 : vector<2x16xf32>
    %175 = arith.divf %173, %174 : vector<2x16xf32>
    %176 = arith.mulf %167, %153 : vector<2x16xf32>
    %177 = arith.mulf %161, %169 : vector<2x16xf32>
    %178 = arith.addf %176, %177 : vector<2x16xf32>
    %179 = math.tanh %178 : vector<2x16xf32>
    %180 = arith.mulf %175, %179 : vector<2x16xf32>
    %c0_91 = arith.constant 0 : index
    %c0_92 = arith.constant 0 : index
    %181 = vector.load %arg11[%c0_91, %c0_92] : memref<2x16xf32, #tpu.memory_space<vmem>>, vector<2x16xf32>
    tpu.vector_store %arg11[%c0_91, %c0_92], %180 {strides = array<i32>} : memref<2x16xf32, #tpu.memory_space<vmem>>, vector<2x16xf32>,
    %c0_93 = arith.constant 0 : index
    %c0_94 = arith.constant 0 : index
    %182 = vector.load %arg12[%c0_93, %c0_94] : memref<2x16xf32, #tpu.memory_space<vmem>>, vector<2x16xf32>
    tpu.vector_store %arg12[%c0_93, %c0_94], %178 {strides = array<i32>} : memref<2x16xf32, #tpu.memory_space<vmem>>, vector<2x16xf32>,
    %c4_95 = arith.constant 4 : index
    %c0_96 = arith.constant 0 : index
    %183 = vector.load %arg9[%c4_95, %c0_96] : memref<32x16xf32, #tpu.memory_space<vmem>>, vector<2x16xf32>
    tpu.vector_store %arg9[%c4_95, %c0_96], %180 {strides = array<i32>} : memref<32x16xf32, #tpu.memory_space<vmem>>, vector<2x16xf32>,
    %c26 = arith.constant 26 : index
    %c0_97 = arith.constant 0 : index
    %184 = vector.load %arg16[%c26, %c0_97] : memref<32x64xf32, #tpu.memory_space<vmem>>, vector<2x64xf32>
    %c0_98 = arith.constant 0 : index
    %c0_99 = arith.constant 0 : index
    %185 = vector.load %arg13[%c0_98, %c0_99] : memref<2x16xf32, #tpu.memory_space<vmem>>, vector<2x16xf32>
    %c0_100 = arith.constant 0 : index
    %c0_101 = arith.constant 0 : index
    %186 = vector.load %arg14[%c0_100, %c0_101] : memref<2x16xf32, #tpu.memory_space<vmem>>, vector<2x16xf32>
    %cst_102 = arith.constant dense<0.000000e+00> : vector<2x64xf32>
    %187 = tpu.matmul %185, %18, %cst_102 {dimension_numbers = #tpu.dot_dimension_numbers<[1], [0], [0], [1], [0, 0, 1, 1], [], []>} : vector<2x16xf32>, vector<16x64xf32>, vector<2x64xf32> -> vector<2x64xf32>
    %188 = arith.addf %184, %187 : vector<2x64xf32>
    %189 = vector.extract_strided_slice %188 {offsets = [0, 0], sizes = [2, 16], strides = [1, 1]} : vector<2x64xf32> to vector<2x16xf32>
    %190 = arith.negf %189 : vector<2x16xf32>
    %191 = math.exp %190 : vector<2x16xf32>
    %cst_103 = arith.constant 1.000000e+00 : f32
    %192 = vector.broadcast %cst_103 : f32 to vector<2x16xf32>
    %193 = arith.addf %192, %191 : vector<2x16xf32>
    %194 = arith.divf %192, %193 : vector<2x16xf32>
    %195 = vector.extract_strided_slice %188 {offsets = [0, 16], sizes = [2, 16], strides = [1, 1]} : vector<2x64xf32> to vector<2x16xf32>
    %196 = arith.negf %195 : vector<2x16xf32>
    %197 = math.exp %196 : vector<2x16xf32>
    %cst_104 = arith.constant 1.000000e+00 : f32
    %198 = vector.broadcast %cst_104 : f32 to vector<2x16xf32>
    %199 = arith.addf %198, %197 : vector<2x16xf32>
    %200 = arith.divf %198, %199 : vector<2x16xf32>
    %201 = vector.extract_strided_slice %188 {offsets = [0, 32], sizes = [2, 16], strides = [1, 1]} : vector<2x64xf32> to vector<2x16xf32>
    %202 = math.tanh %201 : vector<2x16xf32>
    %203 = vector.extract_strided_slice %188 {offsets = [0, 48], sizes = [2, 16], strides = [1, 1]} : vector<2x64xf32> to vector<2x16xf32>
    %204 = arith.negf %203 : vector<2x16xf32>
    %205 = math.exp %204 : vector<2x16xf32>
    %cst_105 = arith.constant 1.000000e+00 : f32
    %206 = vector.broadcast %cst_105 : f32 to vector<2x16xf32>
    %207 = arith.addf %206, %205 : vector<2x16xf32>
    %208 = arith.divf %206, %207 : vector<2x16xf32>
    %209 = arith.mulf %200, %186 : vector<2x16xf32>
    %210 = arith.mulf %194, %202 : vector<2x16xf32>
    %211 = arith.addf %209, %210 : vector<2x16xf32>
    %212 = math.tanh %211 : vector<2x16xf32>
    %213 = arith.mulf %208, %212 : vector<2x16xf32>
    %c0_106 = arith.constant 0 : index
    %c0_107 = arith.constant 0 : index
    %214 = vector.load %arg13[%c0_106, %c0_107] : memref<2x16xf32, #tpu.memory_space<vmem>>, vector<2x16xf32>
    tpu.vector_store %arg13[%c0_106, %c0_107], %213 {strides = array<i32>} : memref<2x16xf32, #tpu.memory_space<vmem>>, vector<2x16xf32>,
    %c0_108 = arith.constant 0 : index
    %c0_109 = arith.constant 0 : index
    %215 = vector.load %arg14[%c0_108, %c0_109] : memref<2x16xf32, #tpu.memory_space<vmem>>, vector<2x16xf32>
    tpu.vector_store %arg14[%c0_108, %c0_109], %211 {strides = array<i32>} : memref<2x16xf32, #tpu.memory_space<vmem>>, vector<2x16xf32>,
    %c26_110 = arith.constant 26 : index
    %c0_111 = arith.constant 0 : index
    %216 = vector.load %arg10[%c26_110, %c0_111] : memref<32x16xf32, #tpu.memory_space<vmem>>, vector<2x16xf32>
    tpu.vector_store %arg10[%c26_110, %c0_111], %213 {strides = array<i32>} : memref<32x16xf32, #tpu.memory_space<vmem>>, vector<2x16xf32>,
    %c6 = arith.constant 6 : index
    %c0_112 = arith.constant 0 : index
    %217 = vector.load %arg15[%c6, %c0_112] : memref<32x64xf32, #tpu.memory_space<vmem>>, vector<2x64xf32>
    %c0_113 = arith.constant 0 : index
    %c0_114 = arith.constant 0 : index
    %218 = vector.load %arg11[%c0_113, %c0_114] : memref<2x16xf32, #tpu.memory_space<vmem>>, vector<2x16xf32>
    %c0_115 = arith.constant 0 : index
    %c0_116 = arith.constant 0 : index
    %219 = vector.load %arg12[%c0_115, %c0_116] : memref<2x16xf32, #tpu.memory_space<vmem>>, vector<2x16xf32>
    %cst_117 = arith.constant dense<0.000000e+00> : vector<2x64xf32>
    %220 = tpu.matmul %218, %17, %cst_117 {dimension_numbers = #tpu.dot_dimension_numbers<[1], [0], [0], [1], [0, 0, 1, 1], [], []>} : vector<2x16xf32>, vector<16x64xf32>, vector<2x64xf32> -> vector<2x64xf32>
    %221 = arith.addf %217, %220 : vector<2x64xf32>
    %222 = vector.extract_strided_slice %221 {offsets = [0, 0], sizes = [2, 16], strides = [1, 1]} : vector<2x64xf32> to vector<2x16xf32>
    %223 = arith.negf %222 : vector<2x16xf32>
    %224 = math.exp %223 : vector<2x16xf32>
    %cst_118 = arith.constant 1.000000e+00 : f32
    %225 = vector.broadcast %cst_118 : f32 to vector<2x16xf32>
    %226 = arith.addf %225, %224 : vector<2x16xf32>
    %227 = arith.divf %225, %226 : vector<2x16xf32>
    %228 = vector.extract_strided_slice %221 {offsets = [0, 16], sizes = [2, 16], strides = [1, 1]} : vector<2x64xf32> to vector<2x16xf32>
    %229 = arith.negf %228 : vector<2x16xf32>
    %230 = math.exp %229 : vector<2x16xf32>
    %cst_119 = arith.constant 1.000000e+00 : f32
    %231 = vector.broadcast %cst_119 : f32 to vector<2x16xf32>
    %232 = arith.addf %231, %230 : vector<2x16xf32>
    %233 = arith.divf %231, %232 : vector<2x16xf32>
    %234 = vector.extract_strided_slice %221 {offsets = [0, 32], sizes = [2, 16], strides = [1, 1]} : vector<2x64xf32> to vector<2x16xf32>
    %235 = math.tanh %234 : vector<2x16xf32>
    %236 = vector.extract_strided_slice %221 {offsets = [0, 48], sizes = [2, 16], strides = [1, 1]} : vector<2x64xf32> to vector<2x16xf32>
    %237 = arith.negf %236 : vector<2x16xf32>
    %238 = math.exp %237 : vector<2x16xf32>
    %cst_120 = arith.constant 1.000000e+00 : f32
    %239 = vector.broadcast %cst_120 : f32 to vector<2x16xf32>
    %240 = arith.addf %239, %238 : vector<2x16xf32>
    %241 = arith.divf %239, %240 : vector<2x16xf32>
    %242 = arith.mulf %233, %219 : vector<2x16xf32>
    %243 = arith.mulf %227, %235 : vector<2x16xf32>
    %244 = arith.addf %242, %243 : vector<2x16xf32>
    %245 = math.tanh %244 : vector<2x16xf32>
    %246 = arith.mulf %241, %245 : vector<2x16xf32>
    %c0_121 = arith.constant 0 : index
    %c0_122 = arith.constant 0 : index
    %247 = vector.load %arg11[%c0_121, %c0_122] : memref<2x16xf32, #tpu.memory_space<vmem>>, vector<2x16xf32>
    tpu.vector_store %arg11[%c0_121, %c0_122], %246 {strides = array<i32>} : memref<2x16xf32, #tpu.memory_space<vmem>>, vector<2x16xf32>,
    %c0_123 = arith.constant 0 : index
    %c0_124 = arith.constant 0 : index
    %248 = vector.load %arg12[%c0_123, %c0_124] : memref<2x16xf32, #tpu.memory_space<vmem>>, vector<2x16xf32>
    tpu.vector_store %arg12[%c0_123, %c0_124], %244 {strides = array<i32>} : memref<2x16xf32, #tpu.memory_space<vmem>>, vector<2x16xf32>,
    %c6_125 = arith.constant 6 : index
    %c0_126 = arith.constant 0 : index
    %249 = vector.load %arg9[%c6_125, %c0_126] : memref<32x16xf32, #tpu.memory_space<vmem>>, vector<2x16xf32>
    tpu.vector_store %arg9[%c6_125, %c0_126], %246 {strides = array<i32>} : memref<32x16xf32, #tpu.memory_space<vmem>>, vector<2x16xf32>,
    %c24 = arith.constant 24 : index
    %c0_127 = arith.constant 0 : index
    %250 = vector.load %arg16[%c24, %c0_127] : memref<32x64xf32, #tpu.memory_space<vmem>>, vector<2x64xf32>
    %c0_128 = arith.constant 0 : index
    %c0_129 = arith.constant 0 : index
    %251 = vector.load %arg13[%c0_128, %c0_129] : memref<2x16xf32, #tpu.memory_space<vmem>>, vector<2x16xf32>
    %c0_130 = arith.constant 0 : index
    %c0_131 = arith.constant 0 : index
    %252 = vector.load %arg14[%c0_130, %c0_131] : memref<2x16xf32, #tpu.memory_space<vmem>>, vector<2x16xf32>
    %cst_132 = arith.constant dense<0.000000e+00> : vector<2x64xf32>
    %253 = tpu.matmul %251, %18, %cst_132 {dimension_numbers = #tpu.dot_dimension_numbers<[1], [0], [0], [1], [0, 0, 1, 1], [], []>} : vector<2x16xf32>, vector<16x64xf32>, vector<2x64xf32> -> vector<2x64xf32>
    %254 = arith.addf %250, %253 : vector<2x64xf32>
    %255 = vector.extract_strided_slice %254 {offsets = [0, 0], sizes = [2, 16], strides = [1, 1]} : vector<2x64xf32> to vector<2x16xf32>
    %256 = arith.negf %255 : vector<2x16xf32>
    %257 = math.exp %256 : vector<2x16xf32>
    %cst_133 = arith.constant 1.000000e+00 : f32
    %258 = vector.broadcast %cst_133 : f32 to vector<2x16xf32>
    %259 = arith.addf %258, %257 : vector<2x16xf32>
    %260 = arith.divf %258, %259 : vector<2x16xf32>
    %261 = vector.extract_strided_slice %254 {offsets = [0, 16], sizes = [2, 16], strides = [1, 1]} : vector<2x64xf32> to vector<2x16xf32>
    %262 = arith.negf %261 : vector<2x16xf32>
    %263 = math.exp %262 : vector<2x16xf32>
    %cst_134 = arith.constant 1.000000e+00 : f32
    %264 = vector.broadcast %cst_134 : f32 to vector<2x16xf32>
    %265 = arith.addf %264, %263 : vector<2x16xf32>
    %266 = arith.divf %264, %265 : vector<2x16xf32>
    %267 = vector.extract_strided_slice %254 {offsets = [0, 32], sizes = [2, 16], strides = [1, 1]} : vector<2x64xf32> to vector<2x16xf32>
    %268 = math.tanh %267 : vector<2x16xf32>
    %269 = vector.extract_strided_slice %254 {offsets = [0, 48], sizes = [2, 16], strides = [1, 1]} : vector<2x64xf32> to vector<2x16xf32>
    %270 = arith.negf %269 : vector<2x16xf32>
    %271 = math.exp %270 : vector<2x16xf32>
    %cst_135 = arith.constant 1.000000e+00 : f32
    %272 = vector.broadcast %cst_135 : f32 to vector<2x16xf32>
    %273 = arith.addf %272, %271 : vector<2x16xf32>
    %274 = arith.divf %272, %273 : vector<2x16xf32>
    %275 = arith.mulf %266, %252 : vector<2x16xf32>
    %276 = arith.mulf %260, %268 : vector<2x16xf32>
    %277 = arith.addf %275, %276 : vector<2x16xf32>
    %278 = math.tanh %277 : vector<2x16xf32>
    %279 = arith.mulf %274, %278 : vector<2x16xf32>
    %c0_136 = arith.constant 0 : index
    %c0_137 = arith.constant 0 : index
    %280 = vector.load %arg13[%c0_136, %c0_137] : memref<2x16xf32, #tpu.memory_space<vmem>>, vector<2x16xf32>
    tpu.vector_store %arg13[%c0_136, %c0_137], %279 {strides = array<i32>} : memref<2x16xf32, #tpu.memory_space<vmem>>, vector<2x16xf32>,
    %c0_138 = arith.constant 0 : index
    %c0_139 = arith.constant 0 : index
    %281 = vector.load %arg14[%c0_138, %c0_139] : memref<2x16xf32, #tpu.memory_space<vmem>>, vector<2x16xf32>
    tpu.vector_store %arg14[%c0_138, %c0_139], %277 {strides = array<i32>} : memref<2x16xf32, #tpu.memory_space<vmem>>, vector<2x16xf32>,
    %c24_140 = arith.constant 24 : index
    %c0_141 = arith.constant 0 : index
    %282 = vector.load %arg10[%c24_140, %c0_141] : memref<32x16xf32, #tpu.memory_space<vmem>>, vector<2x16xf32>
    tpu.vector_store %arg10[%c24_140, %c0_141], %279 {strides = array<i32>} : memref<32x16xf32, #tpu.memory_space<vmem>>, vector<2x16xf32>,
    %c8 = arith.constant 8 : index
    %c0_142 = arith.constant 0 : index
    %283 = vector.load %arg15[%c8, %c0_142] : memref<32x64xf32, #tpu.memory_space<vmem>>, vector<2x64xf32>
    %c0_143 = arith.constant 0 : index
    %c0_144 = arith.constant 0 : index
    %284 = vector.load %arg11[%c0_143, %c0_144] : memref<2x16xf32, #tpu.memory_space<vmem>>, vector<2x16xf32>
    %c0_145 = arith.constant 0 : index
    %c0_146 = arith.constant 0 : index
    %285 = vector.load %arg12[%c0_145, %c0_146] : memref<2x16xf32, #tpu.memory_space<vmem>>, vector<2x16xf32>
    %cst_147 = arith.constant dense<0.000000e+00> : vector<2x64xf32>
    %286 = tpu.matmul %284, %17, %cst_147 {dimension_numbers = #tpu.dot_dimension_numbers<[1], [0], [0], [1], [0, 0, 1, 1], [], []>} : vector<2x16xf32>, vector<16x64xf32>, vector<2x64xf32> -> vector<2x64xf32>
    %287 = arith.addf %283, %286 : vector<2x64xf32>
    %288 = vector.extract_strided_slice %287 {offsets = [0, 0], sizes = [2, 16], strides = [1, 1]} : vector<2x64xf32> to vector<2x16xf32>
    %289 = arith.negf %288 : vector<2x16xf32>
    %290 = math.exp %289 : vector<2x16xf32>
    %cst_148 = arith.constant 1.000000e+00 : f32
    %291 = vector.broadcast %cst_148 : f32 to vector<2x16xf32>
    %292 = arith.addf %291, %290 : vector<2x16xf32>
    %293 = arith.divf %291, %292 : vector<2x16xf32>
    %294 = vector.extract_strided_slice %287 {offsets = [0, 16], sizes = [2, 16], strides = [1, 1]} : vector<2x64xf32> to vector<2x16xf32>
    %295 = arith.negf %294 : vector<2x16xf32>
    %296 = math.exp %295 : vector<2x16xf32>
    %cst_149 = arith.constant 1.000000e+00 : f32
    %297 = vector.broadcast %cst_149 : f32 to vector<2x16xf32>
    %298 = arith.addf %297, %296 : vector<2x16xf32>
    %299 = arith.divf %297, %298 : vector<2x16xf32>
    %300 = vector.extract_strided_slice %287 {offsets = [0, 32], sizes = [2, 16], strides = [1, 1]} : vector<2x64xf32> to vector<2x16xf32>
    %301 = math.tanh %300 : vector<2x16xf32>
    %302 = vector.extract_strided_slice %287 {offsets = [0, 48], sizes = [2, 16], strides = [1, 1]} : vector<2x64xf32> to vector<2x16xf32>
    %303 = arith.negf %302 : vector<2x16xf32>
    %304 = math.exp %303 : vector<2x16xf32>
    %cst_150 = arith.constant 1.000000e+00 : f32
    %305 = vector.broadcast %cst_150 : f32 to vector<2x16xf32>
    %306 = arith.addf %305, %304 : vector<2x16xf32>
    %307 = arith.divf %305, %306 : vector<2x16xf32>
    %308 = arith.mulf %299, %285 : vector<2x16xf32>
    %309 = arith.mulf %293, %301 : vector<2x16xf32>
    %310 = arith.addf %308, %309 : vector<2x16xf32>
    %311 = math.tanh %310 : vector<2x16xf32>
    %312 = arith.mulf %307, %311 : vector<2x16xf32>
    %c0_151 = arith.constant 0 : index
    %c0_152 = arith.constant 0 : index
    %313 = vector.load %arg11[%c0_151, %c0_152] : memref<2x16xf32, #tpu.memory_space<vmem>>, vector<2x16xf32>
    tpu.vector_store %arg11[%c0_151, %c0_152], %312 {strides = array<i32>} : memref<2x16xf32, #tpu.memory_space<vmem>>, vector<2x16xf32>,
    %c0_153 = arith.constant 0 : index
    %c0_154 = arith.constant 0 : index
    %314 = vector.load %arg12[%c0_153, %c0_154] : memref<2x16xf32, #tpu.memory_space<vmem>>, vector<2x16xf32>
    tpu.vector_store %arg12[%c0_153, %c0_154], %310 {strides = array<i32>} : memref<2x16xf32, #tpu.memory_space<vmem>>, vector<2x16xf32>,
    %c8_155 = arith.constant 8 : index
    %c0_156 = arith.constant 0 : index
    %315 = vector.load %arg9[%c8_155, %c0_156] : memref<32x16xf32, #tpu.memory_space<vmem>>, vector<2x16xf32>
    tpu.vector_store %arg9[%c8_155, %c0_156], %312 {strides = array<i32>} : memref<32x16xf32, #tpu.memory_space<vmem>>, vector<2x16xf32>,
    %c22 = arith.constant 22 : index
    %c0_157 = arith.constant 0 : index
    %316 = vector.load %arg16[%c22, %c0_157] : memref<32x64xf32, #tpu.memory_space<vmem>>, vector<2x64xf32>
    %c0_158 = arith.constant 0 : index
    %c0_159 = arith.constant 0 : index
    %317 = vector.load %arg13[%c0_158, %c0_159] : memref<2x16xf32, #tpu.memory_space<vmem>>, vector<2x16xf32>
    %c0_160 = arith.constant 0 : index
    %c0_161 = arith.constant 0 : index
    %318 = vector.load %arg14[%c0_160, %c0_161] : memref<2x16xf32, #tpu.memory_space<vmem>>, vector<2x16xf32>
    %cst_162 = arith.constant dense<0.000000e+00> : vector<2x64xf32>
    %319 = tpu.matmul %317, %18, %cst_162 {dimension_numbers = #tpu.dot_dimension_numbers<[1], [0], [0], [1], [0, 0, 1, 1], [], []>} : vector<2x16xf32>, vector<16x64xf32>, vector<2x64xf32> -> vector<2x64xf32>
    %320 = arith.addf %316, %319 : vector<2x64xf32>
    %321 = vector.extract_strided_slice %320 {offsets = [0, 0], sizes = [2, 16], strides = [1, 1]} : vector<2x64xf32> to vector<2x16xf32>
    %322 = arith.negf %321 : vector<2x16xf32>
    %323 = math.exp %322 : vector<2x16xf32>
    %cst_163 = arith.constant 1.000000e+00 : f32
    %324 = vector.broadcast %cst_163 : f32 to vector<2x16xf32>
    %325 = arith.addf %324, %323 : vector<2x16xf32>
    %326 = arith.divf %324, %325 : vector<2x16xf32>
    %327 = vector.extract_strided_slice %320 {offsets = [0, 16], sizes = [2, 16], strides = [1, 1]} : vector<2x64xf32> to vector<2x16xf32>
    %328 = arith.negf %327 : vector<2x16xf32>
    %329 = math.exp %328 : vector<2x16xf32>
    %cst_164 = arith.constant 1.000000e+00 : f32
    %330 = vector.broadcast %cst_164 : f32 to vector<2x16xf32>
    %331 = arith.addf %330, %329 : vector<2x16xf32>
    %332 = arith.divf %330, %331 : vector<2x16xf32>
    %333 = vector.extract_strided_slice %320 {offsets = [0, 32], sizes = [2, 16], strides = [1, 1]} : vector<2x64xf32> to vector<2x16xf32>
    %334 = math.tanh %333 : vector<2x16xf32>
    %335 = vector.extract_strided_slice %320 {offsets = [0, 48], sizes = [2, 16], strides = [1, 1]} : vector<2x64xf32> to vector<2x16xf32>
    %336 = arith.negf %335 : vector<2x16xf32>
    %337 = math.exp %336 : vector<2x16xf32>
    %cst_165 = arith.constant 1.000000e+00 : f32
    %338 = vector.broadcast %cst_165 : f32 to vector<2x16xf32>
    %339 = arith.addf %338, %337 : vector<2x16xf32>
    %340 = arith.divf %338, %339 : vector<2x16xf32>
    %341 = arith.mulf %332, %318 : vector<2x16xf32>
    %342 = arith.mulf %326, %334 : vector<2x16xf32>
    %343 = arith.addf %341, %342 : vector<2x16xf32>
    %344 = math.tanh %343 : vector<2x16xf32>
    %345 = arith.mulf %340, %344 : vector<2x16xf32>
    %c0_166 = arith.constant 0 : index
    %c0_167 = arith.constant 0 : index
    %346 = vector.load %arg13[%c0_166, %c0_167] : memref<2x16xf32, #tpu.memory_space<vmem>>, vector<2x16xf32>
    tpu.vector_store %arg13[%c0_166, %c0_167], %345 {strides = array<i32>} : memref<2x16xf32, #tpu.memory_space<vmem>>, vector<2x16xf32>,
    %c0_168 = arith.constant 0 : index
    %c0_169 = arith.constant 0 : index
    %347 = vector.load %arg14[%c0_168, %c0_169] : memref<2x16xf32, #tpu.memory_space<vmem>>, vector<2x16xf32>
    tpu.vector_store %arg14[%c0_168, %c0_169], %343 {strides = array<i32>} : memref<2x16xf32, #tpu.memory_space<vmem>>, vector<2x16xf32>,
    %c22_170 = arith.constant 22 : index
    %c0_171 = arith.constant 0 : index
    %348 = vector.load %arg10[%c22_170, %c0_171] : memref<32x16xf32, #tpu.memory_space<vmem>>, vector<2x16xf32>
    tpu.vector_store %arg10[%c22_170, %c0_171], %345 {strides = array<i32>} : memref<32x16xf32, #tpu.memory_space<vmem>>, vector<2x16xf32>,
    %c10 = arith.constant 10 : index
    %c0_172 = arith.constant 0 : index
    %349 = vector.load %arg15[%c10, %c0_172] : memref<32x64xf32, #tpu.memory_space<vmem>>, vector<2x64xf32>
    %c0_173 = arith.constant 0 : index
    %c0_174 = arith.constant 0 : index
    %350 = vector.load %arg11[%c0_173, %c0_174] : memref<2x16xf32, #tpu.memory_space<vmem>>, vector<2x16xf32>
    %c0_175 = arith.constant 0 : index
    %c0_176 = arith.constant 0 : index
    %351 = vector.load %arg12[%c0_175, %c0_176] : memref<2x16xf32, #tpu.memory_space<vmem>>, vector<2x16xf32>
    %cst_177 = arith.constant dense<0.000000e+00> : vector<2x64xf32>
    %352 = tpu.matmul %350, %17, %cst_177 {dimension_numbers = #tpu.dot_dimension_numbers<[1], [0], [0], [1], [0, 0, 1, 1], [], []>} : vector<2x16xf32>, vector<16x64xf32>, vector<2x64xf32> -> vector<2x64xf32>
    %353 = arith.addf %349, %352 : vector<2x64xf32>
    %354 = vector.extract_strided_slice %353 {offsets = [0, 0], sizes = [2, 16], strides = [1, 1]} : vector<2x64xf32> to vector<2x16xf32>
    %355 = arith.negf %354 : vector<2x16xf32>
    %356 = math.exp %355 : vector<2x16xf32>
    %cst_178 = arith.constant 1.000000e+00 : f32
    %357 = vector.broadcast %cst_178 : f32 to vector<2x16xf32>
    %358 = arith.addf %357, %356 : vector<2x16xf32>
    %359 = arith.divf %357, %358 : vector<2x16xf32>
    %360 = vector.extract_strided_slice %353 {offsets = [0, 16], sizes = [2, 16], strides = [1, 1]} : vector<2x64xf32> to vector<2x16xf32>
    %361 = arith.negf %360 : vector<2x16xf32>
    %362 = math.exp %361 : vector<2x16xf32>
    %cst_179 = arith.constant 1.000000e+00 : f32
    %363 = vector.broadcast %cst_179 : f32 to vector<2x16xf32>
    %364 = arith.addf %363, %362 : vector<2x16xf32>
    %365 = arith.divf %363, %364 : vector<2x16xf32>
    %366 = vector.extract_strided_slice %353 {offsets = [0, 32], sizes = [2, 16], strides = [1, 1]} : vector<2x64xf32> to vector<2x16xf32>
    %367 = math.tanh %366 : vector<2x16xf32>
    %368 = vector.extract_strided_slice %353 {offsets = [0, 48], sizes = [2, 16], strides = [1, 1]} : vector<2x64xf32> to vector<2x16xf32>
    %369 = arith.negf %368 : vector<2x16xf32>
    %370 = math.exp %369 : vector<2x16xf32>
    %cst_180 = arith.constant 1.000000e+00 : f32
    %371 = vector.broadcast %cst_180 : f32 to vector<2x16xf32>
    %372 = arith.addf %371, %370 : vector<2x16xf32>
    %373 = arith.divf %371, %372 : vector<2x16xf32>
    %374 = arith.mulf %365, %351 : vector<2x16xf32>
    %375 = arith.mulf %359, %367 : vector<2x16xf32>
    %376 = arith.addf %374, %375 : vector<2x16xf32>
    %377 = math.tanh %376 : vector<2x16xf32>
    %378 = arith.mulf %373, %377 : vector<2x16xf32>
    %c0_181 = arith.constant 0 : index
    %c0_182 = arith.constant 0 : index
    %379 = vector.load %arg11[%c0_181, %c0_182] : memref<2x16xf32, #tpu.memory_space<vmem>>, vector<2x16xf32>
    tpu.vector_store %arg11[%c0_181, %c0_182], %378 {strides = array<i32>} : memref<2x16xf32, #tpu.memory_space<vmem>>, vector<2x16xf32>,
    %c0_183 = arith.constant 0 : index
    %c0_184 = arith.constant 0 : index
    %380 = vector.load %arg12[%c0_183, %c0_184] : memref<2x16xf32, #tpu.memory_space<vmem>>, vector<2x16xf32>
    tpu.vector_store %arg12[%c0_183, %c0_184], %376 {strides = array<i32>} : memref<2x16xf32, #tpu.memory_space<vmem>>, vector<2x16xf32>,
    %c10_185 = arith.constant 10 : index
    %c0_186 = arith.constant 0 : index
    %381 = vector.load %arg9[%c10_185, %c0_186] : memref<32x16xf32, #tpu.memory_space<vmem>>, vector<2x16xf32>
    tpu.vector_store %arg9[%c10_185, %c0_186], %378 {strides = array<i32>} : memref<32x16xf32, #tpu.memory_space<vmem>>, vector<2x16xf32>,
    %c20 = arith.constant 20 : index
    %c0_187 = arith.constant 0 : index
    %382 = vector.load %arg16[%c20, %c0_187] : memref<32x64xf32, #tpu.memory_space<vmem>>, vector<2x64xf32>
    %c0_188 = arith.constant 0 : index
    %c0_189 = arith.constant 0 : index
    %383 = vector.load %arg13[%c0_188, %c0_189] : memref<2x16xf32, #tpu.memory_space<vmem>>, vector<2x16xf32>
    %c0_190 = arith.constant 0 : index
    %c0_191 = arith.constant 0 : index
    %384 = vector.load %arg14[%c0_190, %c0_191] : memref<2x16xf32, #tpu.memory_space<vmem>>, vector<2x16xf32>
    %cst_192 = arith.constant dense<0.000000e+00> : vector<2x64xf32>
    %385 = tpu.matmul %383, %18, %cst_192 {dimension_numbers = #tpu.dot_dimension_numbers<[1], [0], [0], [1], [0, 0, 1, 1], [], []>} : vector<2x16xf32>, vector<16x64xf32>, vector<2x64xf32> -> vector<2x64xf32>
    %386 = arith.addf %382, %385 : vector<2x64xf32>
    %387 = vector.extract_strided_slice %386 {offsets = [0, 0], sizes = [2, 16], strides = [1, 1]} : vector<2x64xf32> to vector<2x16xf32>
    %388 = arith.negf %387 : vector<2x16xf32>
    %389 = math.exp %388 : vector<2x16xf32>
    %cst_193 = arith.constant 1.000000e+00 : f32
    %390 = vector.broadcast %cst_193 : f32 to vector<2x16xf32>
    %391 = arith.addf %390, %389 : vector<2x16xf32>
    %392 = arith.divf %390, %391 : vector<2x16xf32>
    %393 = vector.extract_strided_slice %386 {offsets = [0, 16], sizes = [2, 16], strides = [1, 1]} : vector<2x64xf32> to vector<2x16xf32>
    %394 = arith.negf %393 : vector<2x16xf32>
    %395 = math.exp %394 : vector<2x16xf32>
    %cst_194 = arith.constant 1.000000e+00 : f32
    %396 = vector.broadcast %cst_194 : f32 to vector<2x16xf32>
    %397 = arith.addf %396, %395 : vector<2x16xf32>
    %398 = arith.divf %396, %397 : vector<2x16xf32>
    %399 = vector.extract_strided_slice %386 {offsets = [0, 32], sizes = [2, 16], strides = [1, 1]} : vector<2x64xf32> to vector<2x16xf32>
    %400 = math.tanh %399 : vector<2x16xf32>
    %401 = vector.extract_strided_slice %386 {offsets = [0, 48], sizes = [2, 16], strides = [1, 1]} : vector<2x64xf32> to vector<2x16xf32>
    %402 = arith.negf %401 : vector<2x16xf32>
    %403 = math.exp %402 : vector<2x16xf32>
    %cst_195 = arith.constant 1.000000e+00 : f32
    %404 = vector.broadcast %cst_195 : f32 to vector<2x16xf32>
    %405 = arith.addf %404, %403 : vector<2x16xf32>
    %406 = arith.divf %404, %405 : vector<2x16xf32>
    %407 = arith.mulf %398, %384 : vector<2x16xf32>
    %408 = arith.mulf %392, %400 : vector<2x16xf32>
    %409 = arith.addf %407, %408 : vector<2x16xf32>
    %410 = math.tanh %409 : vector<2x16xf32>
    %411 = arith.mulf %406, %410 : vector<2x16xf32>
    %c0_196 = arith.constant 0 : index
    %c0_197 = arith.constant 0 : index
    %412 = vector.load %arg13[%c0_196, %c0_197] : memref<2x16xf32, #tpu.memory_space<vmem>>, vector<2x16xf32>
    tpu.vector_store %arg13[%c0_196, %c0_197], %411 {strides = array<i32>} : memref<2x16xf32, #tpu.memory_space<vmem>>, vector<2x16xf32>,
    %c0_198 = arith.constant 0 : index
    %c0_199 = arith.constant 0 : index
    %413 = vector.load %arg14[%c0_198, %c0_199] : memref<2x16xf32, #tpu.memory_space<vmem>>, vector<2x16xf32>
    tpu.vector_store %arg14[%c0_198, %c0_199], %409 {strides = array<i32>} : memref<2x16xf32, #tpu.memory_space<vmem>>, vector<2x16xf32>,
    %c20_200 = arith.constant 20 : index
    %c0_201 = arith.constant 0 : index
    %414 = vector.load %arg10[%c20_200, %c0_201] : memref<32x16xf32, #tpu.memory_space<vmem>>, vector<2x16xf32>
    tpu.vector_store %arg10[%c20_200, %c0_201], %411 {strides = array<i32>} : memref<32x16xf32, #tpu.memory_space<vmem>>, vector<2x16xf32>,
    %c12 = arith.constant 12 : index
    %c0_202 = arith.constant 0 : index
    %415 = vector.load %arg15[%c12, %c0_202] : memref<32x64xf32, #tpu.memory_space<vmem>>, vector<2x64xf32>
    %c0_203 = arith.constant 0 : index
    %c0_204 = arith.constant 0 : index
    %416 = vector.load %arg11[%c0_203, %c0_204] : memref<2x16xf32, #tpu.memory_space<vmem>>, vector<2x16xf32>
    %c0_205 = arith.constant 0 : index
    %c0_206 = arith.constant 0 : index
    %417 = vector.load %arg12[%c0_205, %c0_206] : memref<2x16xf32, #tpu.memory_space<vmem>>, vector<2x16xf32>
    %cst_207 = arith.constant dense<0.000000e+00> : vector<2x64xf32>
    %418 = tpu.matmul %416, %17, %cst_207 {dimension_numbers = #tpu.dot_dimension_numbers<[1], [0], [0], [1], [0, 0, 1, 1], [], []>} : vector<2x16xf32>, vector<16x64xf32>, vector<2x64xf32> -> vector<2x64xf32>
    %419 = arith.addf %415, %418 : vector<2x64xf32>
    %420 = vector.extract_strided_slice %419 {offsets = [0, 0], sizes = [2, 16], strides = [1, 1]} : vector<2x64xf32> to vector<2x16xf32>
    %421 = arith.negf %420 : vector<2x16xf32>
    %422 = math.exp %421 : vector<2x16xf32>
    %cst_208 = arith.constant 1.000000e+00 : f32
    %423 = vector.broadcast %cst_208 : f32 to vector<2x16xf32>
    %424 = arith.addf %423, %422 : vector<2x16xf32>
    %425 = arith.divf %423, %424 : vector<2x16xf32>
    %426 = vector.extract_strided_slice %419 {offsets = [0, 16], sizes = [2, 16], strides = [1, 1]} : vector<2x64xf32> to vector<2x16xf32>
    %427 = arith.negf %426 : vector<2x16xf32>
    %428 = math.exp %427 : vector<2x16xf32>
    %cst_209 = arith.constant 1.000000e+00 : f32
    %429 = vector.broadcast %cst_209 : f32 to vector<2x16xf32>
    %430 = arith.addf %429, %428 : vector<2x16xf32>
    %431 = arith.divf %429, %430 : vector<2x16xf32>
    %432 = vector.extract_strided_slice %419 {offsets = [0, 32], sizes = [2, 16], strides = [1, 1]} : vector<2x64xf32> to vector<2x16xf32>
    %433 = math.tanh %432 : vector<2x16xf32>
    %434 = vector.extract_strided_slice %419 {offsets = [0, 48], sizes = [2, 16], strides = [1, 1]} : vector<2x64xf32> to vector<2x16xf32>
    %435 = arith.negf %434 : vector<2x16xf32>
    %436 = math.exp %435 : vector<2x16xf32>
    %cst_210 = arith.constant 1.000000e+00 : f32
    %437 = vector.broadcast %cst_210 : f32 to vector<2x16xf32>
    %438 = arith.addf %437, %436 : vector<2x16xf32>
    %439 = arith.divf %437, %438 : vector<2x16xf32>
    %440 = arith.mulf %431, %417 : vector<2x16xf32>
    %441 = arith.mulf %425, %433 : vector<2x16xf32>
    %442 = arith.addf %440, %441 : vector<2x16xf32>
    %443 = math.tanh %442 : vector<2x16xf32>
    %444 = arith.mulf %439, %443 : vector<2x16xf32>
    %c0_211 = arith.constant 0 : index
    %c0_212 = arith.constant 0 : index
    %445 = vector.load %arg11[%c0_211, %c0_212] : memref<2x16xf32, #tpu.memory_space<vmem>>, vector<2x16xf32>
    tpu.vector_store %arg11[%c0_211, %c0_212], %444 {strides = array<i32>} : memref<2x16xf32, #tpu.memory_space<vmem>>, vector<2x16xf32>,
    %c0_213 = arith.constant 0 : index
    %c0_214 = arith.constant 0 : index
    %446 = vector.load %arg12[%c0_213, %c0_214] : memref<2x16xf32, #tpu.memory_space<vmem>>, vector<2x16xf32>
    tpu.vector_store %arg12[%c0_213, %c0_214], %442 {strides = array<i32>} : memref<2x16xf32, #tpu.memory_space<vmem>>, vector<2x16xf32>,
    %c12_215 = arith.constant 12 : index
    %c0_216 = arith.constant 0 : index
    %447 = vector.load %arg9[%c12_215, %c0_216] : memref<32x16xf32, #tpu.memory_space<vmem>>, vector<2x16xf32>
    tpu.vector_store %arg9[%c12_215, %c0_216], %444 {strides = array<i32>} : memref<32x16xf32, #tpu.memory_space<vmem>>, vector<2x16xf32>,
    %c18 = arith.constant 18 : index
    %c0_217 = arith.constant 0 : index
    %448 = vector.load %arg16[%c18, %c0_217] : memref<32x64xf32, #tpu.memory_space<vmem>>, vector<2x64xf32>
    %c0_218 = arith.constant 0 : index
    %c0_219 = arith.constant 0 : index
    %449 = vector.load %arg13[%c0_218, %c0_219] : memref<2x16xf32, #tpu.memory_space<vmem>>, vector<2x16xf32>
    %c0_220 = arith.constant 0 : index
    %c0_221 = arith.constant 0 : index
    %450 = vector.load %arg14[%c0_220, %c0_221] : memref<2x16xf32, #tpu.memory_space<vmem>>, vector<2x16xf32>
    %cst_222 = arith.constant dense<0.000000e+00> : vector<2x64xf32>
    %451 = tpu.matmul %449, %18, %cst_222 {dimension_numbers = #tpu.dot_dimension_numbers<[1], [0], [0], [1], [0, 0, 1, 1], [], []>} : vector<2x16xf32>, vector<16x64xf32>, vector<2x64xf32> -> vector<2x64xf32>
    %452 = arith.addf %448, %451 : vector<2x64xf32>
    %453 = vector.extract_strided_slice %452 {offsets = [0, 0], sizes = [2, 16], strides = [1, 1]} : vector<2x64xf32> to vector<2x16xf32>
    %454 = arith.negf %453 : vector<2x16xf32>
    %455 = math.exp %454 : vector<2x16xf32>
    %cst_223 = arith.constant 1.000000e+00 : f32
    %456 = vector.broadcast %cst_223 : f32 to vector<2x16xf32>
    %457 = arith.addf %456, %455 : vector<2x16xf32>
    %458 = arith.divf %456, %457 : vector<2x16xf32>
    %459 = vector.extract_strided_slice %452 {offsets = [0, 16], sizes = [2, 16], strides = [1, 1]} : vector<2x64xf32> to vector<2x16xf32>
    %460 = arith.negf %459 : vector<2x16xf32>
    %461 = math.exp %460 : vector<2x16xf32>
    %cst_224 = arith.constant 1.000000e+00 : f32
    %462 = vector.broadcast %cst_224 : f32 to vector<2x16xf32>
    %463 = arith.addf %462, %461 : vector<2x16xf32>
    %464 = arith.divf %462, %463 : vector<2x16xf32>
    %465 = vector.extract_strided_slice %452 {offsets = [0, 32], sizes = [2, 16], strides = [1, 1]} : vector<2x64xf32> to vector<2x16xf32>
    %466 = math.tanh %465 : vector<2x16xf32>
    %467 = vector.extract_strided_slice %452 {offsets = [0, 48], sizes = [2, 16], strides = [1, 1]} : vector<2x64xf32> to vector<2x16xf32>
    %468 = arith.negf %467 : vector<2x16xf32>
    %469 = math.exp %468 : vector<2x16xf32>
    %cst_225 = arith.constant 1.000000e+00 : f32
    %470 = vector.broadcast %cst_225 : f32 to vector<2x16xf32>
    %471 = arith.addf %470, %469 : vector<2x16xf32>
    %472 = arith.divf %470, %471 : vector<2x16xf32>
    %473 = arith.mulf %464, %450 : vector<2x16xf32>
    %474 = arith.mulf %458, %466 : vector<2x16xf32>
    %475 = arith.addf %473, %474 : vector<2x16xf32>
    %476 = math.tanh %475 : vector<2x16xf32>
    %477 = arith.mulf %472, %476 : vector<2x16xf32>
    %c0_226 = arith.constant 0 : index
    %c0_227 = arith.constant 0 : index
    %478 = vector.load %arg13[%c0_226, %c0_227] : memref<2x16xf32, #tpu.memory_space<vmem>>, vector<2x16xf32>
    tpu.vector_store %arg13[%c0_226, %c0_227], %477 {strides = array<i32>} : memref<2x16xf32, #tpu.memory_space<vmem>>, vector<2x16xf32>,
    %c0_228 = arith.constant 0 : index
    %c0_229 = arith.constant 0 : index
    %479 = vector.load %arg14[%c0_228, %c0_229] : memref<2x16xf32, #tpu.memory_space<vmem>>, vector<2x16xf32>
    tpu.vector_store %arg14[%c0_228, %c0_229], %475 {strides = array<i32>} : memref<2x16xf32, #tpu.memory_space<vmem>>, vector<2x16xf32>,
    %c18_230 = arith.constant 18 : index
    %c0_231 = arith.constant 0 : index
    %480 = vector.load %arg10[%c18_230, %c0_231] : memref<32x16xf32, #tpu.memory_space<vmem>>, vector<2x16xf32>
    tpu.vector_store %arg10[%c18_230, %c0_231], %477 {strides = array<i32>} : memref<32x16xf32, #tpu.memory_space<vmem>>, vector<2x16xf32>,
    %c14 = arith.constant 14 : index
    %c0_232 = arith.constant 0 : index
    %481 = vector.load %arg15[%c14, %c0_232] : memref<32x64xf32, #tpu.memory_space<vmem>>, vector<2x64xf32>
    %c0_233 = arith.constant 0 : index
    %c0_234 = arith.constant 0 : index
    %482 = vector.load %arg11[%c0_233, %c0_234] : memref<2x16xf32, #tpu.memory_space<vmem>>, vector<2x16xf32>
    %c0_235 = arith.constant 0 : index
    %c0_236 = arith.constant 0 : index
    %483 = vector.load %arg12[%c0_235, %c0_236] : memref<2x16xf32, #tpu.memory_space<vmem>>, vector<2x16xf32>
    %cst_237 = arith.constant dense<0.000000e+00> : vector<2x64xf32>
    %484 = tpu.matmul %482, %17, %cst_237 {dimension_numbers = #tpu.dot_dimension_numbers<[1], [0], [0], [1], [0, 0, 1, 1], [], []>} : vector<2x16xf32>, vector<16x64xf32>, vector<2x64xf32> -> vector<2x64xf32>
    %485 = arith.addf %481, %484 : vector<2x64xf32>
    %486 = vector.extract_strided_slice %485 {offsets = [0, 0], sizes = [2, 16], strides = [1, 1]} : vector<2x64xf32> to vector<2x16xf32>
    %487 = arith.negf %486 : vector<2x16xf32>
    %488 = math.exp %487 : vector<2x16xf32>
    %cst_238 = arith.constant 1.000000e+00 : f32
    %489 = vector.broadcast %cst_238 : f32 to vector<2x16xf32>
    %490 = arith.addf %489, %488 : vector<2x16xf32>
    %491 = arith.divf %489, %490 : vector<2x16xf32>
    %492 = vector.extract_strided_slice %485 {offsets = [0, 16], sizes = [2, 16], strides = [1, 1]} : vector<2x64xf32> to vector<2x16xf32>
    %493 = arith.negf %492 : vector<2x16xf32>
    %494 = math.exp %493 : vector<2x16xf32>
    %cst_239 = arith.constant 1.000000e+00 : f32
    %495 = vector.broadcast %cst_239 : f32 to vector<2x16xf32>
    %496 = arith.addf %495, %494 : vector<2x16xf32>
    %497 = arith.divf %495, %496 : vector<2x16xf32>
    %498 = vector.extract_strided_slice %485 {offsets = [0, 32], sizes = [2, 16], strides = [1, 1]} : vector<2x64xf32> to vector<2x16xf32>
    %499 = math.tanh %498 : vector<2x16xf32>
    %500 = vector.extract_strided_slice %485 {offsets = [0, 48], sizes = [2, 16], strides = [1, 1]} : vector<2x64xf32> to vector<2x16xf32>
    %501 = arith.negf %500 : vector<2x16xf32>
    %502 = math.exp %501 : vector<2x16xf32>
    %cst_240 = arith.constant 1.000000e+00 : f32
    %503 = vector.broadcast %cst_240 : f32 to vector<2x16xf32>
    %504 = arith.addf %503, %502 : vector<2x16xf32>
    %505 = arith.divf %503, %504 : vector<2x16xf32>
    %506 = arith.mulf %497, %483 : vector<2x16xf32>
    %507 = arith.mulf %491, %499 : vector<2x16xf32>
    %508 = arith.addf %506, %507 : vector<2x16xf32>
    %509 = math.tanh %508 : vector<2x16xf32>
    %510 = arith.mulf %505, %509 : vector<2x16xf32>
    %c0_241 = arith.constant 0 : index
    %c0_242 = arith.constant 0 : index
    %511 = vector.load %arg11[%c0_241, %c0_242] : memref<2x16xf32, #tpu.memory_space<vmem>>, vector<2x16xf32>
    tpu.vector_store %arg11[%c0_241, %c0_242], %510 {strides = array<i32>} : memref<2x16xf32, #tpu.memory_space<vmem>>, vector<2x16xf32>,
    %c0_243 = arith.constant 0 : index
    %c0_244 = arith.constant 0 : index
    %512 = vector.load %arg12[%c0_243, %c0_244] : memref<2x16xf32, #tpu.memory_space<vmem>>, vector<2x16xf32>
    tpu.vector_store %arg12[%c0_243, %c0_244], %508 {strides = array<i32>} : memref<2x16xf32, #tpu.memory_space<vmem>>, vector<2x16xf32>,
    %c14_245 = arith.constant 14 : index
    %c0_246 = arith.constant 0 : index
    %513 = vector.load %arg9[%c14_245, %c0_246] : memref<32x16xf32, #tpu.memory_space<vmem>>, vector<2x16xf32>
    tpu.vector_store %arg9[%c14_245, %c0_246], %510 {strides = array<i32>} : memref<32x16xf32, #tpu.memory_space<vmem>>, vector<2x16xf32>,
    %c16 = arith.constant 16 : index
    %c0_247 = arith.constant 0 : index
    %514 = vector.load %arg16[%c16, %c0_247] : memref<32x64xf32, #tpu.memory_space<vmem>>, vector<2x64xf32>
    %c0_248 = arith.constant 0 : index
    %c0_249 = arith.constant 0 : index
    %515 = vector.load %arg13[%c0_248, %c0_249] : memref<2x16xf32, #tpu.memory_space<vmem>>, vector<2x16xf32>
    %c0_250 = arith.constant 0 : index
    %c0_251 = arith.constant 0 : index
    %516 = vector.load %arg14[%c0_250, %c0_251] : memref<2x16xf32, #tpu.memory_space<vmem>>, vector<2x16xf32>
    %cst_252 = arith.constant dense<0.000000e+00> : vector<2x64xf32>
    %517 = tpu.matmul %515, %18, %cst_252 {dimension_numbers = #tpu.dot_dimension_numbers<[1], [0], [0], [1], [0, 0, 1, 1], [], []>} : vector<2x16xf32>, vector<16x64xf32>, vector<2x64xf32> -> vector<2x64xf32>
    %518 = arith.addf %514, %517 : vector<2x64xf32>
    %519 = vector.extract_strided_slice %518 {offsets = [0, 0], sizes = [2, 16], strides = [1, 1]} : vector<2x64xf32> to vector<2x16xf32>
    %520 = arith.negf %519 : vector<2x16xf32>
    %521 = math.exp %520 : vector<2x16xf32>
    %cst_253 = arith.constant 1.000000e+00 : f32
    %522 = vector.broadcast %cst_253 : f32 to vector<2x16xf32>
    %523 = arith.addf %522, %521 : vector<2x16xf32>
    %524 = arith.divf %522, %523 : vector<2x16xf32>
    %525 = vector.extract_strided_slice %518 {offsets = [0, 16], sizes = [2, 16], strides = [1, 1]} : vector<2x64xf32> to vector<2x16xf32>
    %526 = arith.negf %525 : vector<2x16xf32>
    %527 = math.exp %526 : vector<2x16xf32>
    %cst_254 = arith.constant 1.000000e+00 : f32
    %528 = vector.broadcast %cst_254 : f32 to vector<2x16xf32>
    %529 = arith.addf %528, %527 : vector<2x16xf32>
    %530 = arith.divf %528, %529 : vector<2x16xf32>
    %531 = vector.extract_strided_slice %518 {offsets = [0, 32], sizes = [2, 16], strides = [1, 1]} : vector<2x64xf32> to vector<2x16xf32>
    %532 = math.tanh %531 : vector<2x16xf32>
    %533 = vector.extract_strided_slice %518 {offsets = [0, 48], sizes = [2, 16], strides = [1, 1]} : vector<2x64xf32> to vector<2x16xf32>
    %534 = arith.negf %533 : vector<2x16xf32>
    %535 = math.exp %534 : vector<2x16xf32>
    %cst_255 = arith.constant 1.000000e+00 : f32
    %536 = vector.broadcast %cst_255 : f32 to vector<2x16xf32>
    %537 = arith.addf %536, %535 : vector<2x16xf32>
    %538 = arith.divf %536, %537 : vector<2x16xf32>
    %539 = arith.mulf %530, %516 : vector<2x16xf32>
    %540 = arith.mulf %524, %532 : vector<2x16xf32>
    %541 = arith.addf %539, %540 : vector<2x16xf32>
    %542 = math.tanh %541 : vector<2x16xf32>
    %543 = arith.mulf %538, %542 : vector<2x16xf32>
    %c0_256 = arith.constant 0 : index
    %c0_257 = arith.constant 0 : index
    %544 = vector.load %arg13[%c0_256, %c0_257] : memref<2x16xf32, #tpu.memory_space<vmem>>, vector<2x16xf32>
    tpu.vector_store %arg13[%c0_256, %c0_257], %543 {strides = array<i32>} : memref<2x16xf32, #tpu.memory_space<vmem>>, vector<2x16xf32>,
    %c0_258 = arith.constant 0 : index
    %c0_259 = arith.constant 0 : index
    %545 = vector.load %arg14[%c0_258, %c0_259] : memref<2x16xf32, #tpu.memory_space<vmem>>, vector<2x16xf32>
    tpu.vector_store %arg14[%c0_258, %c0_259], %541 {strides = array<i32>} : memref<2x16xf32, #tpu.memory_space<vmem>>, vector<2x16xf32>,
    %c16_260 = arith.constant 16 : index
    %c0_261 = arith.constant 0 : index
    %546 = vector.load %arg10[%c16_260, %c0_261] : memref<32x16xf32, #tpu.memory_space<vmem>>, vector<2x16xf32>
    tpu.vector_store %arg10[%c16_260, %c0_261], %543 {strides = array<i32>} : memref<32x16xf32, #tpu.memory_space<vmem>>, vector<2x16xf32>,
    %c16_262 = arith.constant 16 : index
    %c0_263 = arith.constant 0 : index
    %547 = vector.load %arg15[%c16_262, %c0_263] : memref<32x64xf32, #tpu.memory_space<vmem>>, vector<2x64xf32>
    %c0_264 = arith.constant 0 : index
    %c0_265 = arith.constant 0 : index
    %548 = vector.load %arg11[%c0_264, %c0_265] : memref<2x16xf32, #tpu.memory_space<vmem>>, vector<2x16xf32>
    %c0_266 = arith.constant 0 : index
    %c0_267 = arith.constant 0 : index
    %549 = vector.load %arg12[%c0_266, %c0_267] : memref<2x16xf32, #tpu.memory_space<vmem>>, vector<2x16xf32>
    %cst_268 = arith.constant dense<0.000000e+00> : vector<2x64xf32>
    %550 = tpu.matmul %548, %17, %cst_268 {dimension_numbers = #tpu.dot_dimension_numbers<[1], [0], [0], [1], [0, 0, 1, 1], [], []>} : vector<2x16xf32>, vector<16x64xf32>, vector<2x64xf32> -> vector<2x64xf32>
    %551 = arith.addf %547, %550 : vector<2x64xf32>
    %552 = vector.extract_strided_slice %551 {offsets = [0, 0], sizes = [2, 16], strides = [1, 1]} : vector<2x64xf32> to vector<2x16xf32>
    %553 = arith.negf %552 : vector<2x16xf32>
    %554 = math.exp %553 : vector<2x16xf32>
    %cst_269 = arith.constant 1.000000e+00 : f32
    %555 = vector.broadcast %cst_269 : f32 to vector<2x16xf32>
    %556 = arith.addf %555, %554 : vector<2x16xf32>
    %557 = arith.divf %555, %556 : vector<2x16xf32>
    %558 = vector.extract_strided_slice %551 {offsets = [0, 16], sizes = [2, 16], strides = [1, 1]} : vector<2x64xf32> to vector<2x16xf32>
    %559 = arith.negf %558 : vector<2x16xf32>
    %560 = math.exp %559 : vector<2x16xf32>
    %cst_270 = arith.constant 1.000000e+00 : f32
    %561 = vector.broadcast %cst_270 : f32 to vector<2x16xf32>
    %562 = arith.addf %561, %560 : vector<2x16xf32>
    %563 = arith.divf %561, %562 : vector<2x16xf32>
    %564 = vector.extract_strided_slice %551 {offsets = [0, 32], sizes = [2, 16], strides = [1, 1]} : vector<2x64xf32> to vector<2x16xf32>
    %565 = math.tanh %564 : vector<2x16xf32>
    %566 = vector.extract_strided_slice %551 {offsets = [0, 48], sizes = [2, 16], strides = [1, 1]} : vector<2x64xf32> to vector<2x16xf32>
    %567 = arith.negf %566 : vector<2x16xf32>
    %568 = math.exp %567 : vector<2x16xf32>
    %cst_271 = arith.constant 1.000000e+00 : f32
    %569 = vector.broadcast %cst_271 : f32 to vector<2x16xf32>
    %570 = arith.addf %569, %568 : vector<2x16xf32>
    %571 = arith.divf %569, %570 : vector<2x16xf32>
    %572 = arith.mulf %563, %549 : vector<2x16xf32>
    %573 = arith.mulf %557, %565 : vector<2x16xf32>
    %574 = arith.addf %572, %573 : vector<2x16xf32>
    %575 = math.tanh %574 : vector<2x16xf32>
    %576 = arith.mulf %571, %575 : vector<2x16xf32>
    %c0_272 = arith.constant 0 : index
    %c0_273 = arith.constant 0 : index
    %577 = vector.load %arg11[%c0_272, %c0_273] : memref<2x16xf32, #tpu.memory_space<vmem>>, vector<2x16xf32>
    tpu.vector_store %arg11[%c0_272, %c0_273], %576 {strides = array<i32>} : memref<2x16xf32, #tpu.memory_space<vmem>>, vector<2x16xf32>,
    %c0_274 = arith.constant 0 : index
    %c0_275 = arith.constant 0 : index
    %578 = vector.load %arg12[%c0_274, %c0_275] : memref<2x16xf32, #tpu.memory_space<vmem>>, vector<2x16xf32>
    tpu.vector_store %arg12[%c0_274, %c0_275], %574 {strides = array<i32>} : memref<2x16xf32, #tpu.memory_space<vmem>>, vector<2x16xf32>,
    %c16_276 = arith.constant 16 : index
    %c0_277 = arith.constant 0 : index
    %579 = vector.load %arg9[%c16_276, %c0_277] : memref<32x16xf32, #tpu.memory_space<vmem>>, vector<2x16xf32>
    tpu.vector_store %arg9[%c16_276, %c0_277], %576 {strides = array<i32>} : memref<32x16xf32, #tpu.memory_space<vmem>>, vector<2x16xf32>,
    %c14_278 = arith.constant 14 : index
    %c0_279 = arith.constant 0 : index
    %580 = vector.load %arg16[%c14_278, %c0_279] : memref<32x64xf32, #tpu.memory_space<vmem>>, vector<2x64xf32>
    %c0_280 = arith.constant 0 : index
    %c0_281 = arith.constant 0 : index
    %581 = vector.load %arg13[%c0_280, %c0_281] : memref<2x16xf32, #tpu.memory_space<vmem>>, vector<2x16xf32>
    %c0_282 = arith.constant 0 : index
    %c0_283 = arith.constant 0 : index
    %582 = vector.load %arg14[%c0_282, %c0_283] : memref<2x16xf32, #tpu.memory_space<vmem>>, vector<2x16xf32>
    %cst_284 = arith.constant dense<0.000000e+00> : vector<2x64xf32>
    %583 = tpu.matmul %581, %18, %cst_284 {dimension_numbers = #tpu.dot_dimension_numbers<[1], [0], [0], [1], [0, 0, 1, 1], [], []>} : vector<2x16xf32>, vector<16x64xf32>, vector<2x64xf32> -> vector<2x64xf32>
    %584 = arith.addf %580, %583 : vector<2x64xf32>
    %585 = vector.extract_strided_slice %584 {offsets = [0, 0], sizes = [2, 16], strides = [1, 1]} : vector<2x64xf32> to vector<2x16xf32>
    %586 = arith.negf %585 : vector<2x16xf32>
    %587 = math.exp %586 : vector<2x16xf32>
    %cst_285 = arith.constant 1.000000e+00 : f32
    %588 = vector.broadcast %cst_285 : f32 to vector<2x16xf32>
    %589 = arith.addf %588, %587 : vector<2x16xf32>
    %590 = arith.divf %588, %589 : vector<2x16xf32>
    %591 = vector.extract_strided_slice %584 {offsets = [0, 16], sizes = [2, 16], strides = [1, 1]} : vector<2x64xf32> to vector<2x16xf32>
    %592 = arith.negf %591 : vector<2x16xf32>
    %593 = math.exp %592 : vector<2x16xf32>
    %cst_286 = arith.constant 1.000000e+00 : f32
    %594 = vector.broadcast %cst_286 : f32 to vector<2x16xf32>
    %595 = arith.addf %594, %593 : vector<2x16xf32>
    %596 = arith.divf %594, %595 : vector<2x16xf32>
    %597 = vector.extract_strided_slice %584 {offsets = [0, 32], sizes = [2, 16], strides = [1, 1]} : vector<2x64xf32> to vector<2x16xf32>
    %598 = math.tanh %597 : vector<2x16xf32>
    %599 = vector.extract_strided_slice %584 {offsets = [0, 48], sizes = [2, 16], strides = [1, 1]} : vector<2x64xf32> to vector<2x16xf32>
    %600 = arith.negf %599 : vector<2x16xf32>
    %601 = math.exp %600 : vector<2x16xf32>
    %cst_287 = arith.constant 1.000000e+00 : f32
    %602 = vector.broadcast %cst_287 : f32 to vector<2x16xf32>
    %603 = arith.addf %602, %601 : vector<2x16xf32>
    %604 = arith.divf %602, %603 : vector<2x16xf32>
    %605 = arith.mulf %596, %582 : vector<2x16xf32>
    %606 = arith.mulf %590, %598 : vector<2x16xf32>
    %607 = arith.addf %605, %606 : vector<2x16xf32>
    %608 = math.tanh %607 : vector<2x16xf32>
    %609 = arith.mulf %604, %608 : vector<2x16xf32>
    %c0_288 = arith.constant 0 : index
    %c0_289 = arith.constant 0 : index
    %610 = vector.load %arg13[%c0_288, %c0_289] : memref<2x16xf32, #tpu.memory_space<vmem>>, vector<2x16xf32>
    tpu.vector_store %arg13[%c0_288, %c0_289], %609 {strides = array<i32>} : memref<2x16xf32, #tpu.memory_space<vmem>>, vector<2x16xf32>,
    %c0_290 = arith.constant 0 : index
    %c0_291 = arith.constant 0 : index
    %611 = vector.load %arg14[%c0_290, %c0_291] : memref<2x16xf32, #tpu.memory_space<vmem>>, vector<2x16xf32>
    tpu.vector_store %arg14[%c0_290, %c0_291], %607 {strides = array<i32>} : memref<2x16xf32, #tpu.memory_space<vmem>>, vector<2x16xf32>,
    %c14_292 = arith.constant 14 : index
    %c0_293 = arith.constant 0 : index
    %612 = vector.load %arg10[%c14_292, %c0_293] : memref<32x16xf32, #tpu.memory_space<vmem>>, vector<2x16xf32>
    tpu.vector_store %arg10[%c14_292, %c0_293], %609 {strides = array<i32>} : memref<32x16xf32, #tpu.memory_space<vmem>>, vector<2x16xf32>,
    %c18_294 = arith.constant 18 : index
    %c0_295 = arith.constant 0 : index
    %613 = vector.load %arg15[%c18_294, %c0_295] : memref<32x64xf32, #tpu.memory_space<vmem>>, vector<2x64xf32>
    %c0_296 = arith.constant 0 : index
    %c0_297 = arith.constant 0 : index
    %614 = vector.load %arg11[%c0_296, %c0_297] : memref<2x16xf32, #tpu.memory_space<vmem>>, vector<2x16xf32>
    %c0_298 = arith.constant 0 : index
    %c0_299 = arith.constant 0 : index
    %615 = vector.load %arg12[%c0_298, %c0_299] : memref<2x16xf32, #tpu.memory_space<vmem>>, vector<2x16xf32>
    %cst_300 = arith.constant dense<0.000000e+00> : vector<2x64xf32>
    %616 = tpu.matmul %614, %17, %cst_300 {dimension_numbers = #tpu.dot_dimension_numbers<[1], [0], [0], [1], [0, 0, 1, 1], [], []>} : vector<2x16xf32>, vector<16x64xf32>, vector<2x64xf32> -> vector<2x64xf32>
    %617 = arith.addf %613, %616 : vector<2x64xf32>
    %618 = vector.extract_strided_slice %617 {offsets = [0, 0], sizes = [2, 16], strides = [1, 1]} : vector<2x64xf32> to vector<2x16xf32>
    %619 = arith.negf %618 : vector<2x16xf32>
    %620 = math.exp %619 : vector<2x16xf32>
    %cst_301 = arith.constant 1.000000e+00 : f32
    %621 = vector.broadcast %cst_301 : f32 to vector<2x16xf32>
    %622 = arith.addf %621, %620 : vector<2x16xf32>
    %623 = arith.divf %621, %622 : vector<2x16xf32>
    %624 = vector.extract_strided_slice %617 {offsets = [0, 16], sizes = [2, 16], strides = [1, 1]} : vector<2x64xf32> to vector<2x16xf32>
    %625 = arith.negf %624 : vector<2x16xf32>
    %626 = math.exp %625 : vector<2x16xf32>
    %cst_302 = arith.constant 1.000000e+00 : f32
    %627 = vector.broadcast %cst_302 : f32 to vector<2x16xf32>
    %628 = arith.addf %627, %626 : vector<2x16xf32>
    %629 = arith.divf %627, %628 : vector<2x16xf32>
    %630 = vector.extract_strided_slice %617 {offsets = [0, 32], sizes = [2, 16], strides = [1, 1]} : vector<2x64xf32> to vector<2x16xf32>
    %631 = math.tanh %630 : vector<2x16xf32>
    %632 = vector.extract_strided_slice %617 {offsets = [0, 48], sizes = [2, 16], strides = [1, 1]} : vector<2x64xf32> to vector<2x16xf32>
    %633 = arith.negf %632 : vector<2x16xf32>
    %634 = math.exp %633 : vector<2x16xf32>
    %cst_303 = arith.constant 1.000000e+00 : f32
    %635 = vector.broadcast %cst_303 : f32 to vector<2x16xf32>
    %636 = arith.addf %635, %634 : vector<2x16xf32>
    %637 = arith.divf %635, %636 : vector<2x16xf32>
    %638 = arith.mulf %629, %615 : vector<2x16xf32>
    %639 = arith.mulf %623, %631 : vector<2x16xf32>
    %640 = arith.addf %638, %639 : vector<2x16xf32>
    %641 = math.tanh %640 : vector<2x16xf32>
    %642 = arith.mulf %637, %641 : vector<2x16xf32>
    %c0_304 = arith.constant 0 : index
    %c0_305 = arith.constant 0 : index
    %643 = vector.load %arg11[%c0_304, %c0_305] : memref<2x16xf32, #tpu.memory_space<vmem>>, vector<2x16xf32>
    tpu.vector_store %arg11[%c0_304, %c0_305], %642 {strides = array<i32>} : memref<2x16xf32, #tpu.memory_space<vmem>>, vector<2x16xf32>,
    %c0_306 = arith.constant 0 : index
    %c0_307 = arith.constant 0 : index
    %644 = vector.load %arg12[%c0_306, %c0_307] : memref<2x16xf32, #tpu.memory_space<vmem>>, vector<2x16xf32>
    tpu.vector_store %arg12[%c0_306, %c0_307], %640 {strides = array<i32>} : memref<2x16xf32, #tpu.memory_space<vmem>>, vector<2x16xf32>,
    %c18_308 = arith.constant 18 : index
    %c0_309 = arith.constant 0 : index
    %645 = vector.load %arg9[%c18_308, %c0_309] : memref<32x16xf32, #tpu.memory_space<vmem>>, vector<2x16xf32>
    tpu.vector_store %arg9[%c18_308, %c0_309], %642 {strides = array<i32>} : memref<32x16xf32, #tpu.memory_space<vmem>>, vector<2x16xf32>,
    %c12_310 = arith.constant 12 : index
    %c0_311 = arith.constant 0 : index
    %646 = vector.load %arg16[%c12_310, %c0_311] : memref<32x64xf32, #tpu.memory_space<vmem>>, vector<2x64xf32>
    %c0_312 = arith.constant 0 : index
    %c0_313 = arith.constant 0 : index
    %647 = vector.load %arg13[%c0_312, %c0_313] : memref<2x16xf32, #tpu.memory_space<vmem>>, vector<2x16xf32>
    %c0_314 = arith.constant 0 : index
    %c0_315 = arith.constant 0 : index
    %648 = vector.load %arg14[%c0_314, %c0_315] : memref<2x16xf32, #tpu.memory_space<vmem>>, vector<2x16xf32>
    %cst_316 = arith.constant dense<0.000000e+00> : vector<2x64xf32>
    %649 = tpu.matmul %647, %18, %cst_316 {dimension_numbers = #tpu.dot_dimension_numbers<[1], [0], [0], [1], [0, 0, 1, 1], [], []>} : vector<2x16xf32>, vector<16x64xf32>, vector<2x64xf32> -> vector<2x64xf32>
    %650 = arith.addf %646, %649 : vector<2x64xf32>
    %651 = vector.extract_strided_slice %650 {offsets = [0, 0], sizes = [2, 16], strides = [1, 1]} : vector<2x64xf32> to vector<2x16xf32>
    %652 = arith.negf %651 : vector<2x16xf32>
    %653 = math.exp %652 : vector<2x16xf32>
    %cst_317 = arith.constant 1.000000e+00 : f32
    %654 = vector.broadcast %cst_317 : f32 to vector<2x16xf32>
    %655 = arith.addf %654, %653 : vector<2x16xf32>
    %656 = arith.divf %654, %655 : vector<2x16xf32>
    %657 = vector.extract_strided_slice %650 {offsets = [0, 16], sizes = [2, 16], strides = [1, 1]} : vector<2x64xf32> to vector<2x16xf32>
    %658 = arith.negf %657 : vector<2x16xf32>
    %659 = math.exp %658 : vector<2x16xf32>
    %cst_318 = arith.constant 1.000000e+00 : f32
    %660 = vector.broadcast %cst_318 : f32 to vector<2x16xf32>
    %661 = arith.addf %660, %659 : vector<2x16xf32>
    %662 = arith.divf %660, %661 : vector<2x16xf32>
    %663 = vector.extract_strided_slice %650 {offsets = [0, 32], sizes = [2, 16], strides = [1, 1]} : vector<2x64xf32> to vector<2x16xf32>
    %664 = math.tanh %663 : vector<2x16xf32>
    %665 = vector.extract_strided_slice %650 {offsets = [0, 48], sizes = [2, 16], strides = [1, 1]} : vector<2x64xf32> to vector<2x16xf32>
    %666 = arith.negf %665 : vector<2x16xf32>
    %667 = math.exp %666 : vector<2x16xf32>
    %cst_319 = arith.constant 1.000000e+00 : f32
    %668 = vector.broadcast %cst_319 : f32 to vector<2x16xf32>
    %669 = arith.addf %668, %667 : vector<2x16xf32>
    %670 = arith.divf %668, %669 : vector<2x16xf32>
    %671 = arith.mulf %662, %648 : vector<2x16xf32>
    %672 = arith.mulf %656, %664 : vector<2x16xf32>
    %673 = arith.addf %671, %672 : vector<2x16xf32>
    %674 = math.tanh %673 : vector<2x16xf32>
    %675 = arith.mulf %670, %674 : vector<2x16xf32>
    %c0_320 = arith.constant 0 : index
    %c0_321 = arith.constant 0 : index
    %676 = vector.load %arg13[%c0_320, %c0_321] : memref<2x16xf32, #tpu.memory_space<vmem>>, vector<2x16xf32>
    tpu.vector_store %arg13[%c0_320, %c0_321], %675 {strides = array<i32>} : memref<2x16xf32, #tpu.memory_space<vmem>>, vector<2x16xf32>,
    %c0_322 = arith.constant 0 : index
    %c0_323 = arith.constant 0 : index
    %677 = vector.load %arg14[%c0_322, %c0_323] : memref<2x16xf32, #tpu.memory_space<vmem>>, vector<2x16xf32>
    tpu.vector_store %arg14[%c0_322, %c0_323], %673 {strides = array<i32>} : memref<2x16xf32, #tpu.memory_space<vmem>>, vector<2x16xf32>,
    %c12_324 = arith.constant 12 : index
    %c0_325 = arith.constant 0 : index
    %678 = vector.load %arg10[%c12_324, %c0_325] : memref<32x16xf32, #tpu.memory_space<vmem>>, vector<2x16xf32>
    tpu.vector_store %arg10[%c12_324, %c0_325], %675 {strides = array<i32>} : memref<32x16xf32, #tpu.memory_space<vmem>>, vector<2x16xf32>,
    %c20_326 = arith.constant 20 : index
    %c0_327 = arith.constant 0 : index
    %679 = vector.load %arg15[%c20_326, %c0_327] : memref<32x64xf32, #tpu.memory_space<vmem>>, vector<2x64xf32>
    %c0_328 = arith.constant 0 : index
    %c0_329 = arith.constant 0 : index
    %680 = vector.load %arg11[%c0_328, %c0_329] : memref<2x16xf32, #tpu.memory_space<vmem>>, vector<2x16xf32>
    %c0_330 = arith.constant 0 : index
    %c0_331 = arith.constant 0 : index
    %681 = vector.load %arg12[%c0_330, %c0_331] : memref<2x16xf32, #tpu.memory_space<vmem>>, vector<2x16xf32>
    %cst_332 = arith.constant dense<0.000000e+00> : vector<2x64xf32>
    %682 = tpu.matmul %680, %17, %cst_332 {dimension_numbers = #tpu.dot_dimension_numbers<[1], [0], [0], [1], [0, 0, 1, 1], [], []>} : vector<2x16xf32>, vector<16x64xf32>, vector<2x64xf32> -> vector<2x64xf32>
    %683 = arith.addf %679, %682 : vector<2x64xf32>
    %684 = vector.extract_strided_slice %683 {offsets = [0, 0], sizes = [2, 16], strides = [1, 1]} : vector<2x64xf32> to vector<2x16xf32>
    %685 = arith.negf %684 : vector<2x16xf32>
    %686 = math.exp %685 : vector<2x16xf32>
    %cst_333 = arith.constant 1.000000e+00 : f32
    %687 = vector.broadcast %cst_333 : f32 to vector<2x16xf32>
    %688 = arith.addf %687, %686 : vector<2x16xf32>
    %689 = arith.divf %687, %688 : vector<2x16xf32>
    %690 = vector.extract_strided_slice %683 {offsets = [0, 16], sizes = [2, 16], strides = [1, 1]} : vector<2x64xf32> to vector<2x16xf32>
    %691 = arith.negf %690 : vector<2x16xf32>
    %692 = math.exp %691 : vector<2x16xf32>
    %cst_334 = arith.constant 1.000000e+00 : f32
    %693 = vector.broadcast %cst_334 : f32 to vector<2x16xf32>
    %694 = arith.addf %693, %692 : vector<2x16xf32>
    %695 = arith.divf %693, %694 : vector<2x16xf32>
    %696 = vector.extract_strided_slice %683 {offsets = [0, 32], sizes = [2, 16], strides = [1, 1]} : vector<2x64xf32> to vector<2x16xf32>
    %697 = math.tanh %696 : vector<2x16xf32>
    %698 = vector.extract_strided_slice %683 {offsets = [0, 48], sizes = [2, 16], strides = [1, 1]} : vector<2x64xf32> to vector<2x16xf32>
    %699 = arith.negf %698 : vector<2x16xf32>
    %700 = math.exp %699 : vector<2x16xf32>
    %cst_335 = arith.constant 1.000000e+00 : f32
    %701 = vector.broadcast %cst_335 : f32 to vector<2x16xf32>
    %702 = arith.addf %701, %700 : vector<2x16xf32>
    %703 = arith.divf %701, %702 : vector<2x16xf32>
    %704 = arith.mulf %695, %681 : vector<2x16xf32>
    %705 = arith.mulf %689, %697 : vector<2x16xf32>
    %706 = arith.addf %704, %705 : vector<2x16xf32>
    %707 = math.tanh %706 : vector<2x16xf32>
    %708 = arith.mulf %703, %707 : vector<2x16xf32>
    %c0_336 = arith.constant 0 : index
    %c0_337 = arith.constant 0 : index
    %709 = vector.load %arg11[%c0_336, %c0_337] : memref<2x16xf32, #tpu.memory_space<vmem>>, vector<2x16xf32>
    tpu.vector_store %arg11[%c0_336, %c0_337], %708 {strides = array<i32>} : memref<2x16xf32, #tpu.memory_space<vmem>>, vector<2x16xf32>,
    %c0_338 = arith.constant 0 : index
    %c0_339 = arith.constant 0 : index
    %710 = vector.load %arg12[%c0_338, %c0_339] : memref<2x16xf32, #tpu.memory_space<vmem>>, vector<2x16xf32>
    tpu.vector_store %arg12[%c0_338, %c0_339], %706 {strides = array<i32>} : memref<2x16xf32, #tpu.memory_space<vmem>>, vector<2x16xf32>,
    %c20_340 = arith.constant 20 : index
    %c0_341 = arith.constant 0 : index
    %711 = vector.load %arg9[%c20_340, %c0_341] : memref<32x16xf32, #tpu.memory_space<vmem>>, vector<2x16xf32>
    tpu.vector_store %arg9[%c20_340, %c0_341], %708 {strides = array<i32>} : memref<32x16xf32, #tpu.memory_space<vmem>>, vector<2x16xf32>,
    %c10_342 = arith.constant 10 : index
    %c0_343 = arith.constant 0 : index
    %712 = vector.load %arg16[%c10_342, %c0_343] : memref<32x64xf32, #tpu.memory_space<vmem>>, vector<2x64xf32>
    %c0_344 = arith.constant 0 : index
    %c0_345 = arith.constant 0 : index
    %713 = vector.load %arg13[%c0_344, %c0_345] : memref<2x16xf32, #tpu.memory_space<vmem>>, vector<2x16xf32>
    %c0_346 = arith.constant 0 : index
    %c0_347 = arith.constant 0 : index
    %714 = vector.load %arg14[%c0_346, %c0_347] : memref<2x16xf32, #tpu.memory_space<vmem>>, vector<2x16xf32>
    %cst_348 = arith.constant dense<0.000000e+00> : vector<2x64xf32>
    %715 = tpu.matmul %713, %18, %cst_348 {dimension_numbers = #tpu.dot_dimension_numbers<[1], [0], [0], [1], [0, 0, 1, 1], [], []>} : vector<2x16xf32>, vector<16x64xf32>, vector<2x64xf32> -> vector<2x64xf32>
    %716 = arith.addf %712, %715 : vector<2x64xf32>
    %717 = vector.extract_strided_slice %716 {offsets = [0, 0], sizes = [2, 16], strides = [1, 1]} : vector<2x64xf32> to vector<2x16xf32>
    %718 = arith.negf %717 : vector<2x16xf32>
    %719 = math.exp %718 : vector<2x16xf32>
    %cst_349 = arith.constant 1.000000e+00 : f32
    %720 = vector.broadcast %cst_349 : f32 to vector<2x16xf32>
    %721 = arith.addf %720, %719 : vector<2x16xf32>
    %722 = arith.divf %720, %721 : vector<2x16xf32>
    %723 = vector.extract_strided_slice %716 {offsets = [0, 16], sizes = [2, 16], strides = [1, 1]} : vector<2x64xf32> to vector<2x16xf32>
    %724 = arith.negf %723 : vector<2x16xf32>
    %725 = math.exp %724 : vector<2x16xf32>
    %cst_350 = arith.constant 1.000000e+00 : f32
    %726 = vector.broadcast %cst_350 : f32 to vector<2x16xf32>
    %727 = arith.addf %726, %725 : vector<2x16xf32>
    %728 = arith.divf %726, %727 : vector<2x16xf32>
    %729 = vector.extract_strided_slice %716 {offsets = [0, 32], sizes = [2, 16], strides = [1, 1]} : vector<2x64xf32> to vector<2x16xf32>
    %730 = math.tanh %729 : vector<2x16xf32>
    %731 = vector.extract_strided_slice %716 {offsets = [0, 48], sizes = [2, 16], strides = [1, 1]} : vector<2x64xf32> to vector<2x16xf32>
    %732 = arith.negf %731 : vector<2x16xf32>
    %733 = math.exp %732 : vector<2x16xf32>
    %cst_351 = arith.constant 1.000000e+00 : f32
    %734 = vector.broadcast %cst_351 : f32 to vector<2x16xf32>
    %735 = arith.addf %734, %733 : vector<2x16xf32>
    %736 = arith.divf %734, %735 : vector<2x16xf32>
    %737 = arith.mulf %728, %714 : vector<2x16xf32>
    %738 = arith.mulf %722, %730 : vector<2x16xf32>
    %739 = arith.addf %737, %738 : vector<2x16xf32>
    %740 = math.tanh %739 : vector<2x16xf32>
    %741 = arith.mulf %736, %740 : vector<2x16xf32>
    %c0_352 = arith.constant 0 : index
    %c0_353 = arith.constant 0 : index
    %742 = vector.load %arg13[%c0_352, %c0_353] : memref<2x16xf32, #tpu.memory_space<vmem>>, vector<2x16xf32>
    tpu.vector_store %arg13[%c0_352, %c0_353], %741 {strides = array<i32>} : memref<2x16xf32, #tpu.memory_space<vmem>>, vector<2x16xf32>,
    %c0_354 = arith.constant 0 : index
    %c0_355 = arith.constant 0 : index
    %743 = vector.load %arg14[%c0_354, %c0_355] : memref<2x16xf32, #tpu.memory_space<vmem>>, vector<2x16xf32>
    tpu.vector_store %arg14[%c0_354, %c0_355], %739 {strides = array<i32>} : memref<2x16xf32, #tpu.memory_space<vmem>>, vector<2x16xf32>,
    %c10_356 = arith.constant 10 : index
    %c0_357 = arith.constant 0 : index
    %744 = vector.load %arg10[%c10_356, %c0_357] : memref<32x16xf32, #tpu.memory_space<vmem>>, vector<2x16xf32>
    tpu.vector_store %arg10[%c10_356, %c0_357], %741 {strides = array<i32>} : memref<32x16xf32, #tpu.memory_space<vmem>>, vector<2x16xf32>,
    %c22_358 = arith.constant 22 : index
    %c0_359 = arith.constant 0 : index
    %745 = vector.load %arg15[%c22_358, %c0_359] : memref<32x64xf32, #tpu.memory_space<vmem>>, vector<2x64xf32>
    %c0_360 = arith.constant 0 : index
    %c0_361 = arith.constant 0 : index
    %746 = vector.load %arg11[%c0_360, %c0_361] : memref<2x16xf32, #tpu.memory_space<vmem>>, vector<2x16xf32>
    %c0_362 = arith.constant 0 : index
    %c0_363 = arith.constant 0 : index
    %747 = vector.load %arg12[%c0_362, %c0_363] : memref<2x16xf32, #tpu.memory_space<vmem>>, vector<2x16xf32>
    %cst_364 = arith.constant dense<0.000000e+00> : vector<2x64xf32>
    %748 = tpu.matmul %746, %17, %cst_364 {dimension_numbers = #tpu.dot_dimension_numbers<[1], [0], [0], [1], [0, 0, 1, 1], [], []>} : vector<2x16xf32>, vector<16x64xf32>, vector<2x64xf32> -> vector<2x64xf32>
    %749 = arith.addf %745, %748 : vector<2x64xf32>
    %750 = vector.extract_strided_slice %749 {offsets = [0, 0], sizes = [2, 16], strides = [1, 1]} : vector<2x64xf32> to vector<2x16xf32>
    %751 = arith.negf %750 : vector<2x16xf32>
    %752 = math.exp %751 : vector<2x16xf32>
    %cst_365 = arith.constant 1.000000e+00 : f32
    %753 = vector.broadcast %cst_365 : f32 to vector<2x16xf32>
    %754 = arith.addf %753, %752 : vector<2x16xf32>
    %755 = arith.divf %753, %754 : vector<2x16xf32>
    %756 = vector.extract_strided_slice %749 {offsets = [0, 16], sizes = [2, 16], strides = [1, 1]} : vector<2x64xf32> to vector<2x16xf32>
    %757 = arith.negf %756 : vector<2x16xf32>
    %758 = math.exp %757 : vector<2x16xf32>
    %cst_366 = arith.constant 1.000000e+00 : f32
    %759 = vector.broadcast %cst_366 : f32 to vector<2x16xf32>
    %760 = arith.addf %759, %758 : vector<2x16xf32>
    %761 = arith.divf %759, %760 : vector<2x16xf32>
    %762 = vector.extract_strided_slice %749 {offsets = [0, 32], sizes = [2, 16], strides = [1, 1]} : vector<2x64xf32> to vector<2x16xf32>
    %763 = math.tanh %762 : vector<2x16xf32>
    %764 = vector.extract_strided_slice %749 {offsets = [0, 48], sizes = [2, 16], strides = [1, 1]} : vector<2x64xf32> to vector<2x16xf32>
    %765 = arith.negf %764 : vector<2x16xf32>
    %766 = math.exp %765 : vector<2x16xf32>
    %cst_367 = arith.constant 1.000000e+00 : f32
    %767 = vector.broadcast %cst_367 : f32 to vector<2x16xf32>
    %768 = arith.addf %767, %766 : vector<2x16xf32>
    %769 = arith.divf %767, %768 : vector<2x16xf32>
    %770 = arith.mulf %761, %747 : vector<2x16xf32>
    %771 = arith.mulf %755, %763 : vector<2x16xf32>
    %772 = arith.addf %770, %771 : vector<2x16xf32>
    %773 = math.tanh %772 : vector<2x16xf32>
    %774 = arith.mulf %769, %773 : vector<2x16xf32>
    %c0_368 = arith.constant 0 : index
    %c0_369 = arith.constant 0 : index
    %775 = vector.load %arg11[%c0_368, %c0_369] : memref<2x16xf32, #tpu.memory_space<vmem>>, vector<2x16xf32>
    tpu.vector_store %arg11[%c0_368, %c0_369], %774 {strides = array<i32>} : memref<2x16xf32, #tpu.memory_space<vmem>>, vector<2x16xf32>,
    %c0_370 = arith.constant 0 : index
    %c0_371 = arith.constant 0 : index
    %776 = vector.load %arg12[%c0_370, %c0_371] : memref<2x16xf32, #tpu.memory_space<vmem>>, vector<2x16xf32>
    tpu.vector_store %arg12[%c0_370, %c0_371], %772 {strides = array<i32>} : memref<2x16xf32, #tpu.memory_space<vmem>>, vector<2x16xf32>,
    %c22_372 = arith.constant 22 : index
    %c0_373 = arith.constant 0 : index
    %777 = vector.load %arg9[%c22_372, %c0_373] : memref<32x16xf32, #tpu.memory_space<vmem>>, vector<2x16xf32>
    tpu.vector_store %arg9[%c22_372, %c0_373], %774 {strides = array<i32>} : memref<32x16xf32, #tpu.memory_space<vmem>>, vector<2x16xf32>,
    %c8_374 = arith.constant 8 : index
    %c0_375 = arith.constant 0 : index
    %778 = vector.load %arg16[%c8_374, %c0_375] : memref<32x64xf32, #tpu.memory_space<vmem>>, vector<2x64xf32>
    %c0_376 = arith.constant 0 : index
    %c0_377 = arith.constant 0 : index
    %779 = vector.load %arg13[%c0_376, %c0_377] : memref<2x16xf32, #tpu.memory_space<vmem>>, vector<2x16xf32>
    %c0_378 = arith.constant 0 : index
    %c0_379 = arith.constant 0 : index
    %780 = vector.load %arg14[%c0_378, %c0_379] : memref<2x16xf32, #tpu.memory_space<vmem>>, vector<2x16xf32>
    %cst_380 = arith.constant dense<0.000000e+00> : vector<2x64xf32>
    %781 = tpu.matmul %779, %18, %cst_380 {dimension_numbers = #tpu.dot_dimension_numbers<[1], [0], [0], [1], [0, 0, 1, 1], [], []>} : vector<2x16xf32>, vector<16x64xf32>, vector<2x64xf32> -> vector<2x64xf32>
    %782 = arith.addf %778, %781 : vector<2x64xf32>
    %783 = vector.extract_strided_slice %782 {offsets = [0, 0], sizes = [2, 16], strides = [1, 1]} : vector<2x64xf32> to vector<2x16xf32>
    %784 = arith.negf %783 : vector<2x16xf32>
    %785 = math.exp %784 : vector<2x16xf32>
    %cst_381 = arith.constant 1.000000e+00 : f32
    %786 = vector.broadcast %cst_381 : f32 to vector<2x16xf32>
    %787 = arith.addf %786, %785 : vector<2x16xf32>
    %788 = arith.divf %786, %787 : vector<2x16xf32>
    %789 = vector.extract_strided_slice %782 {offsets = [0, 16], sizes = [2, 16], strides = [1, 1]} : vector<2x64xf32> to vector<2x16xf32>
    %790 = arith.negf %789 : vector<2x16xf32>
    %791 = math.exp %790 : vector<2x16xf32>
    %cst_382 = arith.constant 1.000000e+00 : f32
    %792 = vector.broadcast %cst_382 : f32 to vector<2x16xf32>
    %793 = arith.addf %792, %791 : vector<2x16xf32>
    %794 = arith.divf %792, %793 : vector<2x16xf32>
    %795 = vector.extract_strided_slice %782 {offsets = [0, 32], sizes = [2, 16], strides = [1, 1]} : vector<2x64xf32> to vector<2x16xf32>
    %796 = math.tanh %795 : vector<2x16xf32>
    %797 = vector.extract_strided_slice %782 {offsets = [0, 48], sizes = [2, 16], strides = [1, 1]} : vector<2x64xf32> to vector<2x16xf32>
    %798 = arith.negf %797 : vector<2x16xf32>
    %799 = math.exp %798 : vector<2x16xf32>
    %cst_383 = arith.constant 1.000000e+00 : f32
    %800 = vector.broadcast %cst_383 : f32 to vector<2x16xf32>
    %801 = arith.addf %800, %799 : vector<2x16xf32>
    %802 = arith.divf %800, %801 : vector<2x16xf32>
    %803 = arith.mulf %794, %780 : vector<2x16xf32>
    %804 = arith.mulf %788, %796 : vector<2x16xf32>
    %805 = arith.addf %803, %804 : vector<2x16xf32>
    %806 = math.tanh %805 : vector<2x16xf32>
    %807 = arith.mulf %802, %806 : vector<2x16xf32>
    %c0_384 = arith.constant 0 : index
    %c0_385 = arith.constant 0 : index
    %808 = vector.load %arg13[%c0_384, %c0_385] : memref<2x16xf32, #tpu.memory_space<vmem>>, vector<2x16xf32>
    tpu.vector_store %arg13[%c0_384, %c0_385], %807 {strides = array<i32>} : memref<2x16xf32, #tpu.memory_space<vmem>>, vector<2x16xf32>,
    %c0_386 = arith.constant 0 : index
    %c0_387 = arith.constant 0 : index
    %809 = vector.load %arg14[%c0_386, %c0_387] : memref<2x16xf32, #tpu.memory_space<vmem>>, vector<2x16xf32>
    tpu.vector_store %arg14[%c0_386, %c0_387], %805 {strides = array<i32>} : memref<2x16xf32, #tpu.memory_space<vmem>>, vector<2x16xf32>,
    %c8_388 = arith.constant 8 : index
    %c0_389 = arith.constant 0 : index
    %810 = vector.load %arg10[%c8_388, %c0_389] : memref<32x16xf32, #tpu.memory_space<vmem>>, vector<2x16xf32>
    tpu.vector_store %arg10[%c8_388, %c0_389], %807 {strides = array<i32>} : memref<32x16xf32, #tpu.memory_space<vmem>>, vector<2x16xf32>,
    %c24_390 = arith.constant 24 : index
    %c0_391 = arith.constant 0 : index
    %811 = vector.load %arg15[%c24_390, %c0_391] : memref<32x64xf32, #tpu.memory_space<vmem>>, vector<2x64xf32>
    %c0_392 = arith.constant 0 : index
    %c0_393 = arith.constant 0 : index
    %812 = vector.load %arg11[%c0_392, %c0_393] : memref<2x16xf32, #tpu.memory_space<vmem>>, vector<2x16xf32>
    %c0_394 = arith.constant 0 : index
    %c0_395 = arith.constant 0 : index
    %813 = vector.load %arg12[%c0_394, %c0_395] : memref<2x16xf32, #tpu.memory_space<vmem>>, vector<2x16xf32>
    %cst_396 = arith.constant dense<0.000000e+00> : vector<2x64xf32>
    %814 = tpu.matmul %812, %17, %cst_396 {dimension_numbers = #tpu.dot_dimension_numbers<[1], [0], [0], [1], [0, 0, 1, 1], [], []>} : vector<2x16xf32>, vector<16x64xf32>, vector<2x64xf32> -> vector<2x64xf32>
    %815 = arith.addf %811, %814 : vector<2x64xf32>
    %816 = vector.extract_strided_slice %815 {offsets = [0, 0], sizes = [2, 16], strides = [1, 1]} : vector<2x64xf32> to vector<2x16xf32>
    %817 = arith.negf %816 : vector<2x16xf32>
    %818 = math.exp %817 : vector<2x16xf32>
    %cst_397 = arith.constant 1.000000e+00 : f32
    %819 = vector.broadcast %cst_397 : f32 to vector<2x16xf32>
    %820 = arith.addf %819, %818 : vector<2x16xf32>
    %821 = arith.divf %819, %820 : vector<2x16xf32>
    %822 = vector.extract_strided_slice %815 {offsets = [0, 16], sizes = [2, 16], strides = [1, 1]} : vector<2x64xf32> to vector<2x16xf32>
    %823 = arith.negf %822 : vector<2x16xf32>
    %824 = math.exp %823 : vector<2x16xf32>
    %cst_398 = arith.constant 1.000000e+00 : f32
    %825 = vector.broadcast %cst_398 : f32 to vector<2x16xf32>
    %826 = arith.addf %825, %824 : vector<2x16xf32>
    %827 = arith.divf %825, %826 : vector<2x16xf32>
    %828 = vector.extract_strided_slice %815 {offsets = [0, 32], sizes = [2, 16], strides = [1, 1]} : vector<2x64xf32> to vector<2x16xf32>
    %829 = math.tanh %828 : vector<2x16xf32>
    %830 = vector.extract_strided_slice %815 {offsets = [0, 48], sizes = [2, 16], strides = [1, 1]} : vector<2x64xf32> to vector<2x16xf32>
    %831 = arith.negf %830 : vector<2x16xf32>
    %832 = math.exp %831 : vector<2x16xf32>
    %cst_399 = arith.constant 1.000000e+00 : f32
    %833 = vector.broadcast %cst_399 : f32 to vector<2x16xf32>
    %834 = arith.addf %833, %832 : vector<2x16xf32>
    %835 = arith.divf %833, %834 : vector<2x16xf32>
    %836 = arith.mulf %827, %813 : vector<2x16xf32>
    %837 = arith.mulf %821, %829 : vector<2x16xf32>
    %838 = arith.addf %836, %837 : vector<2x16xf32>
    %839 = math.tanh %838 : vector<2x16xf32>
    %840 = arith.mulf %835, %839 : vector<2x16xf32>
    %c0_400 = arith.constant 0 : index
    %c0_401 = arith.constant 0 : index
    %841 = vector.load %arg11[%c0_400, %c0_401] : memref<2x16xf32, #tpu.memory_space<vmem>>, vector<2x16xf32>
    tpu.vector_store %arg11[%c0_400, %c0_401], %840 {strides = array<i32>} : memref<2x16xf32, #tpu.memory_space<vmem>>, vector<2x16xf32>,
    %c0_402 = arith.constant 0 : index
    %c0_403 = arith.constant 0 : index
    %842 = vector.load %arg12[%c0_402, %c0_403] : memref<2x16xf32, #tpu.memory_space<vmem>>, vector<2x16xf32>
    tpu.vector_store %arg12[%c0_402, %c0_403], %838 {strides = array<i32>} : memref<2x16xf32, #tpu.memory_space<vmem>>, vector<2x16xf32>,
    %c24_404 = arith.constant 24 : index
    %c0_405 = arith.constant 0 : index
    %843 = vector.load %arg9[%c24_404, %c0_405] : memref<32x16xf32, #tpu.memory_space<vmem>>, vector<2x16xf32>
    tpu.vector_store %arg9[%c24_404, %c0_405], %840 {strides = array<i32>} : memref<32x16xf32, #tpu.memory_space<vmem>>, vector<2x16xf32>,
    %c6_406 = arith.constant 6 : index
    %c0_407 = arith.constant 0 : index
    %844 = vector.load %arg16[%c6_406, %c0_407] : memref<32x64xf32, #tpu.memory_space<vmem>>, vector<2x64xf32>
    %c0_408 = arith.constant 0 : index
    %c0_409 = arith.constant 0 : index
    %845 = vector.load %arg13[%c0_408, %c0_409] : memref<2x16xf32, #tpu.memory_space<vmem>>, vector<2x16xf32>
    %c0_410 = arith.constant 0 : index
    %c0_411 = arith.constant 0 : index
    %846 = vector.load %arg14[%c0_410, %c0_411] : memref<2x16xf32, #tpu.memory_space<vmem>>, vector<2x16xf32>
    %cst_412 = arith.constant dense<0.000000e+00> : vector<2x64xf32>
    %847 = tpu.matmul %845, %18, %cst_412 {dimension_numbers = #tpu.dot_dimension_numbers<[1], [0], [0], [1], [0, 0, 1, 1], [], []>} : vector<2x16xf32>, vector<16x64xf32>, vector<2x64xf32> -> vector<2x64xf32>
    %848 = arith.addf %844, %847 : vector<2x64xf32>
    %849 = vector.extract_strided_slice %848 {offsets = [0, 0], sizes = [2, 16], strides = [1, 1]} : vector<2x64xf32> to vector<2x16xf32>
    %850 = arith.negf %849 : vector<2x16xf32>
    %851 = math.exp %850 : vector<2x16xf32>
    %cst_413 = arith.constant 1.000000e+00 : f32
    %852 = vector.broadcast %cst_413 : f32 to vector<2x16xf32>
    %853 = arith.addf %852, %851 : vector<2x16xf32>
    %854 = arith.divf %852, %853 : vector<2x16xf32>
    %855 = vector.extract_strided_slice %848 {offsets = [0, 16], sizes = [2, 16], strides = [1, 1]} : vector<2x64xf32> to vector<2x16xf32>
    %856 = arith.negf %855 : vector<2x16xf32>
    %857 = math.exp %856 : vector<2x16xf32>
    %cst_414 = arith.constant 1.000000e+00 : f32
    %858 = vector.broadcast %cst_414 : f32 to vector<2x16xf32>
    %859 = arith.addf %858, %857 : vector<2x16xf32>
    %860 = arith.divf %858, %859 : vector<2x16xf32>
    %861 = vector.extract_strided_slice %848 {offsets = [0, 32], sizes = [2, 16], strides = [1, 1]} : vector<2x64xf32> to vector<2x16xf32>
    %862 = math.tanh %861 : vector<2x16xf32>
    %863 = vector.extract_strided_slice %848 {offsets = [0, 48], sizes = [2, 16], strides = [1, 1]} : vector<2x64xf32> to vector<2x16xf32>
    %864 = arith.negf %863 : vector<2x16xf32>
    %865 = math.exp %864 : vector<2x16xf32>
    %cst_415 = arith.constant 1.000000e+00 : f32
    %866 = vector.broadcast %cst_415 : f32 to vector<2x16xf32>
    %867 = arith.addf %866, %865 : vector<2x16xf32>
    %868 = arith.divf %866, %867 : vector<2x16xf32>
    %869 = arith.mulf %860, %846 : vector<2x16xf32>
    %870 = arith.mulf %854, %862 : vector<2x16xf32>
    %871 = arith.addf %869, %870 : vector<2x16xf32>
    %872 = math.tanh %871 : vector<2x16xf32>
    %873 = arith.mulf %868, %872 : vector<2x16xf32>
    %c0_416 = arith.constant 0 : index
    %c0_417 = arith.constant 0 : index
    %874 = vector.load %arg13[%c0_416, %c0_417] : memref<2x16xf32, #tpu.memory_space<vmem>>, vector<2x16xf32>
    tpu.vector_store %arg13[%c0_416, %c0_417], %873 {strides = array<i32>} : memref<2x16xf32, #tpu.memory_space<vmem>>, vector<2x16xf32>,
    %c0_418 = arith.constant 0 : index
    %c0_419 = arith.constant 0 : index
    %875 = vector.load %arg14[%c0_418, %c0_419] : memref<2x16xf32, #tpu.memory_space<vmem>>, vector<2x16xf32>
    tpu.vector_store %arg14[%c0_418, %c0_419], %871 {strides = array<i32>} : memref<2x16xf32, #tpu.memory_space<vmem>>, vector<2x16xf32>,
    %c6_420 = arith.constant 6 : index
    %c0_421 = arith.constant 0 : index
    %876 = vector.load %arg10[%c6_420, %c0_421] : memref<32x16xf32, #tpu.memory_space<vmem>>, vector<2x16xf32>
    tpu.vector_store %arg10[%c6_420, %c0_421], %873 {strides = array<i32>} : memref<32x16xf32, #tpu.memory_space<vmem>>, vector<2x16xf32>,
    %c26_422 = arith.constant 26 : index
    %c0_423 = arith.constant 0 : index
    %877 = vector.load %arg15[%c26_422, %c0_423] : memref<32x64xf32, #tpu.memory_space<vmem>>, vector<2x64xf32>
    %c0_424 = arith.constant 0 : index
    %c0_425 = arith.constant 0 : index
    %878 = vector.load %arg11[%c0_424, %c0_425] : memref<2x16xf32, #tpu.memory_space<vmem>>, vector<2x16xf32>
    %c0_426 = arith.constant 0 : index
    %c0_427 = arith.constant 0 : index
    %879 = vector.load %arg12[%c0_426, %c0_427] : memref<2x16xf32, #tpu.memory_space<vmem>>, vector<2x16xf32>
    %cst_428 = arith.constant dense<0.000000e+00> : vector<2x64xf32>
    %880 = tpu.matmul %878, %17, %cst_428 {dimension_numbers = #tpu.dot_dimension_numbers<[1], [0], [0], [1], [0, 0, 1, 1], [], []>} : vector<2x16xf32>, vector<16x64xf32>, vector<2x64xf32> -> vector<2x64xf32>
    %881 = arith.addf %877, %880 : vector<2x64xf32>
    %882 = vector.extract_strided_slice %881 {offsets = [0, 0], sizes = [2, 16], strides = [1, 1]} : vector<2x64xf32> to vector<2x16xf32>
    %883 = arith.negf %882 : vector<2x16xf32>
    %884 = math.exp %883 : vector<2x16xf32>
    %cst_429 = arith.constant 1.000000e+00 : f32
    %885 = vector.broadcast %cst_429 : f32 to vector<2x16xf32>
    %886 = arith.addf %885, %884 : vector<2x16xf32>
    %887 = arith.divf %885, %886 : vector<2x16xf32>
    %888 = vector.extract_strided_slice %881 {offsets = [0, 16], sizes = [2, 16], strides = [1, 1]} : vector<2x64xf32> to vector<2x16xf32>
    %889 = arith.negf %888 : vector<2x16xf32>
    %890 = math.exp %889 : vector<2x16xf32>
    %cst_430 = arith.constant 1.000000e+00 : f32
    %891 = vector.broadcast %cst_430 : f32 to vector<2x16xf32>
    %892 = arith.addf %891, %890 : vector<2x16xf32>
    %893 = arith.divf %891, %892 : vector<2x16xf32>
    %894 = vector.extract_strided_slice %881 {offsets = [0, 32], sizes = [2, 16], strides = [1, 1]} : vector<2x64xf32> to vector<2x16xf32>
    %895 = math.tanh %894 : vector<2x16xf32>
    %896 = vector.extract_strided_slice %881 {offsets = [0, 48], sizes = [2, 16], strides = [1, 1]} : vector<2x64xf32> to vector<2x16xf32>
    %897 = arith.negf %896 : vector<2x16xf32>
    %898 = math.exp %897 : vector<2x16xf32>
    %cst_431 = arith.constant 1.000000e+00 : f32
    %899 = vector.broadcast %cst_431 : f32 to vector<2x16xf32>
    %900 = arith.addf %899, %898 : vector<2x16xf32>
    %901 = arith.divf %899, %900 : vector<2x16xf32>
    %902 = arith.mulf %893, %879 : vector<2x16xf32>
    %903 = arith.mulf %887, %895 : vector<2x16xf32>
    %904 = arith.addf %902, %903 : vector<2x16xf32>
    %905 = math.tanh %904 : vector<2x16xf32>
    %906 = arith.mulf %901, %905 : vector<2x16xf32>
    %c0_432 = arith.constant 0 : index
    %c0_433 = arith.constant 0 : index
    %907 = vector.load %arg11[%c0_432, %c0_433] : memref<2x16xf32, #tpu.memory_space<vmem>>, vector<2x16xf32>
    tpu.vector_store %arg11[%c0_432, %c0_433], %906 {strides = array<i32>} : memref<2x16xf32, #tpu.memory_space<vmem>>, vector<2x16xf32>,
    %c0_434 = arith.constant 0 : index
    %c0_435 = arith.constant 0 : index
    %908 = vector.load %arg12[%c0_434, %c0_435] : memref<2x16xf32, #tpu.memory_space<vmem>>, vector<2x16xf32>
    tpu.vector_store %arg12[%c0_434, %c0_435], %904 {strides = array<i32>} : memref<2x16xf32, #tpu.memory_space<vmem>>, vector<2x16xf32>,
    %c26_436 = arith.constant 26 : index
    %c0_437 = arith.constant 0 : index
    %909 = vector.load %arg9[%c26_436, %c0_437] : memref<32x16xf32, #tpu.memory_space<vmem>>, vector<2x16xf32>
    tpu.vector_store %arg9[%c26_436, %c0_437], %906 {strides = array<i32>} : memref<32x16xf32, #tpu.memory_space<vmem>>, vector<2x16xf32>,
    %c4_438 = arith.constant 4 : index
    %c0_439 = arith.constant 0 : index
    %910 = vector.load %arg16[%c4_438, %c0_439] : memref<32x64xf32, #tpu.memory_space<vmem>>, vector<2x64xf32>
    %c0_440 = arith.constant 0 : index
    %c0_441 = arith.constant 0 : index
    %911 = vector.load %arg13[%c0_440, %c0_441] : memref<2x16xf32, #tpu.memory_space<vmem>>, vector<2x16xf32>
    %c0_442 = arith.constant 0 : index
    %c0_443 = arith.constant 0 : index
    %912 = vector.load %arg14[%c0_442, %c0_443] : memref<2x16xf32, #tpu.memory_space<vmem>>, vector<2x16xf32>
    %cst_444 = arith.constant dense<0.000000e+00> : vector<2x64xf32>
    %913 = tpu.matmul %911, %18, %cst_444 {dimension_numbers = #tpu.dot_dimension_numbers<[1], [0], [0], [1], [0, 0, 1, 1], [], []>} : vector<2x16xf32>, vector<16x64xf32>, vector<2x64xf32> -> vector<2x64xf32>
    %914 = arith.addf %910, %913 : vector<2x64xf32>
    %915 = vector.extract_strided_slice %914 {offsets = [0, 0], sizes = [2, 16], strides = [1, 1]} : vector<2x64xf32> to vector<2x16xf32>
    %916 = arith.negf %915 : vector<2x16xf32>
    %917 = math.exp %916 : vector<2x16xf32>
    %cst_445 = arith.constant 1.000000e+00 : f32
    %918 = vector.broadcast %cst_445 : f32 to vector<2x16xf32>
    %919 = arith.addf %918, %917 : vector<2x16xf32>
    %920 = arith.divf %918, %919 : vector<2x16xf32>
    %921 = vector.extract_strided_slice %914 {offsets = [0, 16], sizes = [2, 16], strides = [1, 1]} : vector<2x64xf32> to vector<2x16xf32>
    %922 = arith.negf %921 : vector<2x16xf32>
    %923 = math.exp %922 : vector<2x16xf32>
    %cst_446 = arith.constant 1.000000e+00 : f32
    %924 = vector.broadcast %cst_446 : f32 to vector<2x16xf32>
    %925 = arith.addf %924, %923 : vector<2x16xf32>
    %926 = arith.divf %924, %925 : vector<2x16xf32>
    %927 = vector.extract_strided_slice %914 {offsets = [0, 32], sizes = [2, 16], strides = [1, 1]} : vector<2x64xf32> to vector<2x16xf32>
    %928 = math.tanh %927 : vector<2x16xf32>
    %929 = vector.extract_strided_slice %914 {offsets = [0, 48], sizes = [2, 16], strides = [1, 1]} : vector<2x64xf32> to vector<2x16xf32>
    %930 = arith.negf %929 : vector<2x16xf32>
    %931 = math.exp %930 : vector<2x16xf32>
    %cst_447 = arith.constant 1.000000e+00 : f32
    %932 = vector.broadcast %cst_447 : f32 to vector<2x16xf32>
    %933 = arith.addf %932, %931 : vector<2x16xf32>
    %934 = arith.divf %932, %933 : vector<2x16xf32>
    %935 = arith.mulf %926, %912 : vector<2x16xf32>
    %936 = arith.mulf %920, %928 : vector<2x16xf32>
    %937 = arith.addf %935, %936 : vector<2x16xf32>
    %938 = math.tanh %937 : vector<2x16xf32>
    %939 = arith.mulf %934, %938 : vector<2x16xf32>
    %c0_448 = arith.constant 0 : index
    %c0_449 = arith.constant 0 : index
    %940 = vector.load %arg13[%c0_448, %c0_449] : memref<2x16xf32, #tpu.memory_space<vmem>>, vector<2x16xf32>
    tpu.vector_store %arg13[%c0_448, %c0_449], %939 {strides = array<i32>} : memref<2x16xf32, #tpu.memory_space<vmem>>, vector<2x16xf32>,
    %c0_450 = arith.constant 0 : index
    %c0_451 = arith.constant 0 : index
    %941 = vector.load %arg14[%c0_450, %c0_451] : memref<2x16xf32, #tpu.memory_space<vmem>>, vector<2x16xf32>
    tpu.vector_store %arg14[%c0_450, %c0_451], %937 {strides = array<i32>} : memref<2x16xf32, #tpu.memory_space<vmem>>, vector<2x16xf32>,
    %c4_452 = arith.constant 4 : index
    %c0_453 = arith.constant 0 : index
    %942 = vector.load %arg10[%c4_452, %c0_453] : memref<32x16xf32, #tpu.memory_space<vmem>>, vector<2x16xf32>
    tpu.vector_store %arg10[%c4_452, %c0_453], %939 {strides = array<i32>} : memref<32x16xf32, #tpu.memory_space<vmem>>, vector<2x16xf32>,
    %c28_454 = arith.constant 28 : index
    %c0_455 = arith.constant 0 : index
    %943 = vector.load %arg15[%c28_454, %c0_455] : memref<32x64xf32, #tpu.memory_space<vmem>>, vector<2x64xf32>
    %c0_456 = arith.constant 0 : index
    %c0_457 = arith.constant 0 : index
    %944 = vector.load %arg11[%c0_456, %c0_457] : memref<2x16xf32, #tpu.memory_space<vmem>>, vector<2x16xf32>
    %c0_458 = arith.constant 0 : index
    %c0_459 = arith.constant 0 : index
    %945 = vector.load %arg12[%c0_458, %c0_459] : memref<2x16xf32, #tpu.memory_space<vmem>>, vector<2x16xf32>
    %cst_460 = arith.constant dense<0.000000e+00> : vector<2x64xf32>
    %946 = tpu.matmul %944, %17, %cst_460 {dimension_numbers = #tpu.dot_dimension_numbers<[1], [0], [0], [1], [0, 0, 1, 1], [], []>} : vector<2x16xf32>, vector<16x64xf32>, vector<2x64xf32> -> vector<2x64xf32>
    %947 = arith.addf %943, %946 : vector<2x64xf32>
    %948 = vector.extract_strided_slice %947 {offsets = [0, 0], sizes = [2, 16], strides = [1, 1]} : vector<2x64xf32> to vector<2x16xf32>
    %949 = arith.negf %948 : vector<2x16xf32>
    %950 = math.exp %949 : vector<2x16xf32>
    %cst_461 = arith.constant 1.000000e+00 : f32
    %951 = vector.broadcast %cst_461 : f32 to vector<2x16xf32>
    %952 = arith.addf %951, %950 : vector<2x16xf32>
    %953 = arith.divf %951, %952 : vector<2x16xf32>
    %954 = vector.extract_strided_slice %947 {offsets = [0, 16], sizes = [2, 16], strides = [1, 1]} : vector<2x64xf32> to vector<2x16xf32>
    %955 = arith.negf %954 : vector<2x16xf32>
    %956 = math.exp %955 : vector<2x16xf32>
    %cst_462 = arith.constant 1.000000e+00 : f32
    %957 = vector.broadcast %cst_462 : f32 to vector<2x16xf32>
    %958 = arith.addf %957, %956 : vector<2x16xf32>
    %959 = arith.divf %957, %958 : vector<2x16xf32>
    %960 = vector.extract_strided_slice %947 {offsets = [0, 32], sizes = [2, 16], strides = [1, 1]} : vector<2x64xf32> to vector<2x16xf32>
    %961 = math.tanh %960 : vector<2x16xf32>
    %962 = vector.extract_strided_slice %947 {offsets = [0, 48], sizes = [2, 16], strides = [1, 1]} : vector<2x64xf32> to vector<2x16xf32>
    %963 = arith.negf %962 : vector<2x16xf32>
    %964 = math.exp %963 : vector<2x16xf32>
    %cst_463 = arith.constant 1.000000e+00 : f32
    %965 = vector.broadcast %cst_463 : f32 to vector<2x16xf32>
    %966 = arith.addf %965, %964 : vector<2x16xf32>
    %967 = arith.divf %965, %966 : vector<2x16xf32>
    %968 = arith.mulf %959, %945 : vector<2x16xf32>
    %969 = arith.mulf %953, %961 : vector<2x16xf32>
    %970 = arith.addf %968, %969 : vector<2x16xf32>
    %971 = math.tanh %970 : vector<2x16xf32>
    %972 = arith.mulf %967, %971 : vector<2x16xf32>
    %c0_464 = arith.constant 0 : index
    %c0_465 = arith.constant 0 : index
    %973 = vector.load %arg11[%c0_464, %c0_465] : memref<2x16xf32, #tpu.memory_space<vmem>>, vector<2x16xf32>
    tpu.vector_store %arg11[%c0_464, %c0_465], %972 {strides = array<i32>} : memref<2x16xf32, #tpu.memory_space<vmem>>, vector<2x16xf32>,
    %c0_466 = arith.constant 0 : index
    %c0_467 = arith.constant 0 : index
    %974 = vector.load %arg12[%c0_466, %c0_467] : memref<2x16xf32, #tpu.memory_space<vmem>>, vector<2x16xf32>
    tpu.vector_store %arg12[%c0_466, %c0_467], %970 {strides = array<i32>} : memref<2x16xf32, #tpu.memory_space<vmem>>, vector<2x16xf32>,
    %c28_468 = arith.constant 28 : index
    %c0_469 = arith.constant 0 : index
    %975 = vector.load %arg9[%c28_468, %c0_469] : memref<32x16xf32, #tpu.memory_space<vmem>>, vector<2x16xf32>
    tpu.vector_store %arg9[%c28_468, %c0_469], %972 {strides = array<i32>} : memref<32x16xf32, #tpu.memory_space<vmem>>, vector<2x16xf32>,
    %c2_470 = arith.constant 2 : index
    %c0_471 = arith.constant 0 : index
    %976 = vector.load %arg16[%c2_470, %c0_471] : memref<32x64xf32, #tpu.memory_space<vmem>>, vector<2x64xf32>
    %c0_472 = arith.constant 0 : index
    %c0_473 = arith.constant 0 : index
    %977 = vector.load %arg13[%c0_472, %c0_473] : memref<2x16xf32, #tpu.memory_space<vmem>>, vector<2x16xf32>
    %c0_474 = arith.constant 0 : index
    %c0_475 = arith.constant 0 : index
    %978 = vector.load %arg14[%c0_474, %c0_475] : memref<2x16xf32, #tpu.memory_space<vmem>>, vector<2x16xf32>
    %cst_476 = arith.constant dense<0.000000e+00> : vector<2x64xf32>
    %979 = tpu.matmul %977, %18, %cst_476 {dimension_numbers = #tpu.dot_dimension_numbers<[1], [0], [0], [1], [0, 0, 1, 1], [], []>} : vector<2x16xf32>, vector<16x64xf32>, vector<2x64xf32> -> vector<2x64xf32>
    %980 = arith.addf %976, %979 : vector<2x64xf32>
    %981 = vector.extract_strided_slice %980 {offsets = [0, 0], sizes = [2, 16], strides = [1, 1]} : vector<2x64xf32> to vector<2x16xf32>
    %982 = arith.negf %981 : vector<2x16xf32>
    %983 = math.exp %982 : vector<2x16xf32>
    %cst_477 = arith.constant 1.000000e+00 : f32
    %984 = vector.broadcast %cst_477 : f32 to vector<2x16xf32>
    %985 = arith.addf %984, %983 : vector<2x16xf32>
    %986 = arith.divf %984, %985 : vector<2x16xf32>
    %987 = vector.extract_strided_slice %980 {offsets = [0, 16], sizes = [2, 16], strides = [1, 1]} : vector<2x64xf32> to vector<2x16xf32>
    %988 = arith.negf %987 : vector<2x16xf32>
    %989 = math.exp %988 : vector<2x16xf32>
    %cst_478 = arith.constant 1.000000e+00 : f32
    %990 = vector.broadcast %cst_478 : f32 to vector<2x16xf32>
    %991 = arith.addf %990, %989 : vector<2x16xf32>
    %992 = arith.divf %990, %991 : vector<2x16xf32>
    %993 = vector.extract_strided_slice %980 {offsets = [0, 32], sizes = [2, 16], strides = [1, 1]} : vector<2x64xf32> to vector<2x16xf32>
    %994 = math.tanh %993 : vector<2x16xf32>
    %995 = vector.extract_strided_slice %980 {offsets = [0, 48], sizes = [2, 16], strides = [1, 1]} : vector<2x64xf32> to vector<2x16xf32>
    %996 = arith.negf %995 : vector<2x16xf32>
    %997 = math.exp %996 : vector<2x16xf32>
    %cst_479 = arith.constant 1.000000e+00 : f32
    %998 = vector.broadcast %cst_479 : f32 to vector<2x16xf32>
    %999 = arith.addf %998, %997 : vector<2x16xf32>
    %1000 = arith.divf %998, %999 : vector<2x16xf32>
    %1001 = arith.mulf %992, %978 : vector<2x16xf32>
    %1002 = arith.mulf %986, %994 : vector<2x16xf32>
    %1003 = arith.addf %1001, %1002 : vector<2x16xf32>
    %1004 = math.tanh %1003 : vector<2x16xf32>
    %1005 = arith.mulf %1000, %1004 : vector<2x16xf32>
    %c0_480 = arith.constant 0 : index
    %c0_481 = arith.constant 0 : index
    %1006 = vector.load %arg13[%c0_480, %c0_481] : memref<2x16xf32, #tpu.memory_space<vmem>>, vector<2x16xf32>
    tpu.vector_store %arg13[%c0_480, %c0_481], %1005 {strides = array<i32>} : memref<2x16xf32, #tpu.memory_space<vmem>>, vector<2x16xf32>,
    %c0_482 = arith.constant 0 : index
    %c0_483 = arith.constant 0 : index
    %1007 = vector.load %arg14[%c0_482, %c0_483] : memref<2x16xf32, #tpu.memory_space<vmem>>, vector<2x16xf32>
    tpu.vector_store %arg14[%c0_482, %c0_483], %1003 {strides = array<i32>} : memref<2x16xf32, #tpu.memory_space<vmem>>, vector<2x16xf32>,
    %c2_484 = arith.constant 2 : index
    %c0_485 = arith.constant 0 : index
    %1008 = vector.load %arg10[%c2_484, %c0_485] : memref<32x16xf32, #tpu.memory_space<vmem>>, vector<2x16xf32>
    tpu.vector_store %arg10[%c2_484, %c0_485], %1005 {strides = array<i32>} : memref<32x16xf32, #tpu.memory_space<vmem>>, vector<2x16xf32>,
    %c30_486 = arith.constant 30 : index
    %c0_487 = arith.constant 0 : index
    %1009 = vector.load %arg15[%c30_486, %c0_487] : memref<32x64xf32, #tpu.memory_space<vmem>>, vector<2x64xf32>
    %c0_488 = arith.constant 0 : index
    %c0_489 = arith.constant 0 : index
    %1010 = vector.load %arg11[%c0_488, %c0_489] : memref<2x16xf32, #tpu.memory_space<vmem>>, vector<2x16xf32>
    %c0_490 = arith.constant 0 : index
    %c0_491 = arith.constant 0 : index
    %1011 = vector.load %arg12[%c0_490, %c0_491] : memref<2x16xf32, #tpu.memory_space<vmem>>, vector<2x16xf32>
    %cst_492 = arith.constant dense<0.000000e+00> : vector<2x64xf32>
    %1012 = tpu.matmul %1010, %17, %cst_492 {dimension_numbers = #tpu.dot_dimension_numbers<[1], [0], [0], [1], [0, 0, 1, 1], [], []>} : vector<2x16xf32>, vector<16x64xf32>, vector<2x64xf32> -> vector<2x64xf32>
    %1013 = arith.addf %1009, %1012 : vector<2x64xf32>
    %1014 = vector.extract_strided_slice %1013 {offsets = [0, 0], sizes = [2, 16], strides = [1, 1]} : vector<2x64xf32> to vector<2x16xf32>
    %1015 = arith.negf %1014 : vector<2x16xf32>
    %1016 = math.exp %1015 : vector<2x16xf32>
    %cst_493 = arith.constant 1.000000e+00 : f32
    %1017 = vector.broadcast %cst_493 : f32 to vector<2x16xf32>
    %1018 = arith.addf %1017, %1016 : vector<2x16xf32>
    %1019 = arith.divf %1017, %1018 : vector<2x16xf32>
    %1020 = vector.extract_strided_slice %1013 {offsets = [0, 16], sizes = [2, 16], strides = [1, 1]} : vector<2x64xf32> to vector<2x16xf32>
    %1021 = arith.negf %1020 : vector<2x16xf32>
    %1022 = math.exp %1021 : vector<2x16xf32>
    %cst_494 = arith.constant 1.000000e+00 : f32
    %1023 = vector.broadcast %cst_494 : f32 to vector<2x16xf32>
    %1024 = arith.addf %1023, %1022 : vector<2x16xf32>
    %1025 = arith.divf %1023, %1024 : vector<2x16xf32>
    %1026 = vector.extract_strided_slice %1013 {offsets = [0, 32], sizes = [2, 16], strides = [1, 1]} : vector<2x64xf32> to vector<2x16xf32>
    %1027 = math.tanh %1026 : vector<2x16xf32>
    %1028 = vector.extract_strided_slice %1013 {offsets = [0, 48], sizes = [2, 16], strides = [1, 1]} : vector<2x64xf32> to vector<2x16xf32>
    %1029 = arith.negf %1028 : vector<2x16xf32>
    %1030 = math.exp %1029 : vector<2x16xf32>
    %cst_495 = arith.constant 1.000000e+00 : f32
    %1031 = vector.broadcast %cst_495 : f32 to vector<2x16xf32>
    %1032 = arith.addf %1031, %1030 : vector<2x16xf32>
    %1033 = arith.divf %1031, %1032 : vector<2x16xf32>
    %1034 = arith.mulf %1025, %1011 : vector<2x16xf32>
    %1035 = arith.mulf %1019, %1027 : vector<2x16xf32>
    %1036 = arith.addf %1034, %1035 : vector<2x16xf32>
    %1037 = math.tanh %1036 : vector<2x16xf32>
    %1038 = arith.mulf %1033, %1037 : vector<2x16xf32>
    %c0_496 = arith.constant 0 : index
    %c0_497 = arith.constant 0 : index
    %1039 = vector.load %arg11[%c0_496, %c0_497] : memref<2x16xf32, #tpu.memory_space<vmem>>, vector<2x16xf32>
    tpu.vector_store %arg11[%c0_496, %c0_497], %1038 {strides = array<i32>} : memref<2x16xf32, #tpu.memory_space<vmem>>, vector<2x16xf32>,
    %c0_498 = arith.constant 0 : index
    %c0_499 = arith.constant 0 : index
    %1040 = vector.load %arg12[%c0_498, %c0_499] : memref<2x16xf32, #tpu.memory_space<vmem>>, vector<2x16xf32>
    tpu.vector_store %arg12[%c0_498, %c0_499], %1036 {strides = array<i32>} : memref<2x16xf32, #tpu.memory_space<vmem>>, vector<2x16xf32>,
    %c30_500 = arith.constant 30 : index
    %c0_501 = arith.constant 0 : index
    %1041 = vector.load %arg9[%c30_500, %c0_501] : memref<32x16xf32, #tpu.memory_space<vmem>>, vector<2x16xf32>
    tpu.vector_store %arg9[%c30_500, %c0_501], %1038 {strides = array<i32>} : memref<32x16xf32, #tpu.memory_space<vmem>>, vector<2x16xf32>,
    %c0_502 = arith.constant 0 : index
    %c0_503 = arith.constant 0 : index
    %1042 = vector.load %arg16[%c0_502, %c0_503] : memref<32x64xf32, #tpu.memory_space<vmem>>, vector<2x64xf32>
    %c0_504 = arith.constant 0 : index
    %c0_505 = arith.constant 0 : index
    %1043 = vector.load %arg13[%c0_504, %c0_505] : memref<2x16xf32, #tpu.memory_space<vmem>>, vector<2x16xf32>
    %c0_506 = arith.constant 0 : index
    %c0_507 = arith.constant 0 : index
    %1044 = vector.load %arg14[%c0_506, %c0_507] : memref<2x16xf32, #tpu.memory_space<vmem>>, vector<2x16xf32>
    %cst_508 = arith.constant dense<0.000000e+00> : vector<2x64xf32>
    %1045 = tpu.matmul %1043, %18, %cst_508 {dimension_numbers = #tpu.dot_dimension_numbers<[1], [0], [0], [1], [0, 0, 1, 1], [], []>} : vector<2x16xf32>, vector<16x64xf32>, vector<2x64xf32> -> vector<2x64xf32>
    %1046 = arith.addf %1042, %1045 : vector<2x64xf32>
    %1047 = vector.extract_strided_slice %1046 {offsets = [0, 0], sizes = [2, 16], strides = [1, 1]} : vector<2x64xf32> to vector<2x16xf32>
    %1048 = arith.negf %1047 : vector<2x16xf32>
    %1049 = math.exp %1048 : vector<2x16xf32>
    %cst_509 = arith.constant 1.000000e+00 : f32
    %1050 = vector.broadcast %cst_509 : f32 to vector<2x16xf32>
    %1051 = arith.addf %1050, %1049 : vector<2x16xf32>
    %1052 = arith.divf %1050, %1051 : vector<2x16xf32>
    %1053 = vector.extract_strided_slice %1046 {offsets = [0, 16], sizes = [2, 16], strides = [1, 1]} : vector<2x64xf32> to vector<2x16xf32>
    %1054 = arith.negf %1053 : vector<2x16xf32>
    %1055 = math.exp %1054 : vector<2x16xf32>
    %cst_510 = arith.constant 1.000000e+00 : f32
    %1056 = vector.broadcast %cst_510 : f32 to vector<2x16xf32>
    %1057 = arith.addf %1056, %1055 : vector<2x16xf32>
    %1058 = arith.divf %1056, %1057 : vector<2x16xf32>
    %1059 = vector.extract_strided_slice %1046 {offsets = [0, 32], sizes = [2, 16], strides = [1, 1]} : vector<2x64xf32> to vector<2x16xf32>
    %1060 = math.tanh %1059 : vector<2x16xf32>
    %1061 = vector.extract_strided_slice %1046 {offsets = [0, 48], sizes = [2, 16], strides = [1, 1]} : vector<2x64xf32> to vector<2x16xf32>
    %1062 = arith.negf %1061 : vector<2x16xf32>
    %1063 = math.exp %1062 : vector<2x16xf32>
    %cst_511 = arith.constant 1.000000e+00 : f32
    %1064 = vector.broadcast %cst_511 : f32 to vector<2x16xf32>
    %1065 = arith.addf %1064, %1063 : vector<2x16xf32>
    %1066 = arith.divf %1064, %1065 : vector<2x16xf32>
    %1067 = arith.mulf %1058, %1044 : vector<2x16xf32>
    %1068 = arith.mulf %1052, %1060 : vector<2x16xf32>
    %1069 = arith.addf %1067, %1068 : vector<2x16xf32>
    %1070 = math.tanh %1069 : vector<2x16xf32>
    %1071 = arith.mulf %1066, %1070 : vector<2x16xf32>
    %c0_512 = arith.constant 0 : index
    %c0_513 = arith.constant 0 : index
    %1072 = vector.load %arg13[%c0_512, %c0_513] : memref<2x16xf32, #tpu.memory_space<vmem>>, vector<2x16xf32>
    tpu.vector_store %arg13[%c0_512, %c0_513], %1071 {strides = array<i32>} : memref<2x16xf32, #tpu.memory_space<vmem>>, vector<2x16xf32>,
    %c0_514 = arith.constant 0 : index
    %c0_515 = arith.constant 0 : index
    %1073 = vector.load %arg14[%c0_514, %c0_515] : memref<2x16xf32, #tpu.memory_space<vmem>>, vector<2x16xf32>
    tpu.vector_store %arg14[%c0_514, %c0_515], %1069 {strides = array<i32>} : memref<2x16xf32, #tpu.memory_space<vmem>>, vector<2x16xf32>,
    %c0_516 = arith.constant 0 : index
    %c0_517 = arith.constant 0 : index
    %1074 = vector.load %arg10[%c0_516, %c0_517] : memref<32x16xf32, #tpu.memory_space<vmem>>, vector<2x16xf32>
    tpu.vector_store %arg10[%c0_516, %c0_517], %1071 {strides = array<i32>} : memref<32x16xf32, #tpu.memory_space<vmem>>, vector<2x16xf32>,
    return
  }
  func.func @transform_0(%arg0: i32) -> (i32, i32) {
    %c0_i32 = arith.constant 0 : i32
    %c0_i32_0 = arith.constant 0 : i32
    return %arg0, %c0_i32 : i32, i32
  }
  func.func @transform_1(%arg0: i32) -> (i32, i32) {
    %c0_i32 = arith.constant 0 : i32
    %0 = arith.subi %c0_i32, %arg0 : i32
    %c0_i32_0 = arith.constant 0 : i32
    %c0_i32_1 = arith.constant 0 : i32
    return %0, %c0_i32_0 : i32, i32
  }
  func.func @transform_2(%arg0: i32) -> (i32, i32) {
    %c0_i32 = arith.constant 0 : i32
    %c0_i32_0 = arith.constant 0 : i32
    %c0_i32_1 = arith.constant 0 : i32
    return %c0_i32, %c0_i32_0 : i32, i32
  }
  func.func @transform_3(%arg0: i32) -> (i32, i32) {
    %c0_i32 = arith.constant 0 : i32
    %c0_i32_0 = arith.constant 0 : i32
    %c0_i32_1 = arith.constant 0 : i32
    return %c0_i32, %c0_i32_0 : i32, i32
  }
  func.func @transform_4(%arg0: i32) -> (i32, i32) {
    %c0_i32 = arith.constant 0 : i32
    %c0_i32_0 = arith.constant 0 : i32
    %c0_i32_1 = arith.constant 0 : i32
    return %c0_i32, %c0_i32_0 : i32, i32
  }
  func.func @transform_5(%arg0: i32) -> (i32, i32) {
    %c0_i32 = arith.constant 0 : i32
    %c0_i32_0 = arith.constant 0 : i32
    %c0_i32_1 = arith.constant 0 : i32
    return %c0_i32, %c0_i32_0 : i32, i32
  }
  func.func @transform_6(%arg0: i32) -> (i32, i32) {
    %c0_i32 = arith.constant 0 : i32
    %c0_i32_0 = arith.constant 0 : i32
    %c0_i32_1 = arith.constant 0 : i32
    return %c0_i32, %c0_i32_0 : i32, i32
  }
  func.func @transform_7(%arg0: i32) -> (i32, i32) {
    %c0_i32 = arith.constant 0 : i32
    %c0_i32_0 = arith.constant 0 : i32
    %c0_i32_1 = arith.constant 0 : i32
    return %c0_i32, %c0_i32_0 : i32, i32
  }
  func.func @transform_8(%arg0: i32) -> (i32, i32) {
    %c0_i32 = arith.constant 0 : i32
    %c0_i32_0 = arith.constant 0 : i32
    return %arg0, %c0_i32 : i32, i32
  }
  func.func @transform_9(%arg0: i32) -> (i32, i32) {
    %c0_i32 = arith.constant 0 : i32
    %0 = arith.subi %c0_i32, %arg0 : i32
    %c0_i32_0 = arith.constant 0 : i32
    %c0_i32_1 = arith.constant 0 : i32
    return %0, %c0_i32_0 : i32, i32
  }
}

</mosaic_0001>

<bundles_post_ra>
// kernel: basic_rnn_forward.5
= control target key start
LH: loop header
LB: loop body
LE: loop exit
PB: predicated region body
PF: predicated region fallthrough
CT: control target
= control target key end

     0   :  { %vm25_vm0 = vcmask 130048   ;;  %s200_s5 = smov 112   ;;  %s201_s8 = smov 16   ;;  %vm179_vm1 = vcmask 261248   ;;  %s338_s0 = inlined_call_operand.vmem [shape: f32[32,16], index: 0, kind: input, shape index: {}]   ;;  %s339_s1 = inlined_call_operand.vmem [shape: f32[32,16], index: 1, kind: input, shape index: {}]   ;;  %s340_s3 = inlined_call_operand.vmem [shape: f32[1,32], index: 3, kind: input, shape index: {}]   ;;  %s341_s2 = inlined_call_operand.vmem [shape: f32[1,32], index: 2, kind: input, shape index: {}]   ;;  %s342_s4 = inlined_call_operand.vmem [shape: f32[32,32], index: 4, kind: output, shape index: {}]  }
   0x1   :  { %v19_v0 = vld [vmem:[%s338_s0 + $0x10] sm:$0xff]  ;;  %v17_v1 = vld [vmem:[%s338_s0] sm:$0xff]  ;;  %v20_v2 = vld [vmem:[%s338_s0 + $0x18] sm:$0xff] }
   0x2   :  { %v32_v3 = vsel %vm25_vm0, %v19_v0, 0.0  ;;  %v26_v4 = vsel %vm25_vm0, %v17_v1, 0.0  ;;  %v18_v5 = vld [vmem:[%s338_s0 + $0x8] sm:$0xff]  ;;  %v35_v6 = vsel %vm25_vm0, %v20_v2, 0.0  ;;  %v21_v9 = vld [vmem:[%s339_s1] sm:$0xff]  ;;  %v24_v12 = vld [vmem:[%s339_s1 + $0x18] sm:$0xff] }
   0x3   :  { %33 = vadd.xlane.f32.xlu1 %v32_v3  ;;  %27 = vadd.xlane.f32.xlu0 %v26_v4  ;;  %v29_v7 = vsel %vm25_vm0, %v18_v5, 0.0  ;;  %v22_v8 = vld [vmem:[%s339_s1 + $0x8] sm:$0xff]  ;;  %v38_v11 = vsel %vm25_vm0, %v21_v9, 0.0  ;;  %v23_v13 = vld [vmem:[%s339_s1 + $0x10] sm:$0xff]  ;;  %v47_v14 = vsel %vm25_vm0, %v24_v12, 0.0 }
   0x4   :  { %v41_v10 = vsel %vm25_vm0, %v22_v8, 0.0  ;;  %v44_v15 = vsel %vm25_vm0, %v23_v13, 0.0  ;;  %v294_v56 = vld [vmem:[%s340_s3] ss:$0 sm:$0xff] }
   0x5   :  { %v188_v57 = vld [vmem:[%s341_s2] ss:$0 sm:$0xff] }
   0x7   :  { %36 = vadd.xlane.f32.xlu1 %v35_v6  ;;  %30 = vadd.xlane.f32.xlu0 %v29_v7 }
   0xb   :  { %42 = vadd.xlane.f32.xlu1 %v41_v10  ;;  %39 = vadd.xlane.f32.xlu0 %v38_v11 }
   0xf   :  { %48 = vadd.xlane.f32.xlu1 %v47_v14  ;;  %45 = vadd.xlane.f32.xlu0 %v44_v15 }
  0x8c   :  { %v34_v16 = vpop.xlane.xlu1 %33  ;;  %v28_v17 = vpop.xlane.xlu0 %27 }
  0x90   :  { %v37_v18 = vpop.xlane.xlu1 %36  ;;  %v31_v19 = vpop.xlane.xlu0 %30 }
  0x94   :  { %v43_v20 = vpop.xlane.xlu1 %42  ;;  %v40_v21 = vpop.xlane.xlu0 %39 }
  0x95   :  { %v51_v22 = vadd.f32 %v43_v20, %v31_v19  ;;  %v50_v23 = vadd.f32 %v40_v21, %v28_v17 }
  0x97   :  { %v56_v24 = vmul.f32 0.03125, %v51_v22  ;;  %v55_v25 = vmul.f32 0.03125, %v50_v23 }
  0x98   :  { %v49_v26 = vpop.xlane.xlu1 %48  ;;  %v46_v27 = vpop.xlane.xlu0 %45 }
  0x99   :  { %v259_v28 = vsub.f32 %v18_v5, %v56_v24  ;;  %v261_v29 = vsub.f32 %v17_v1, %v55_v25  ;;  %v53_v30 = vadd.f32 %v49_v26, %v37_v18  ;;  %v52_v31 = vadd.f32 %v46_v27, %v34_v16 }
  0x9a   :  { %v64_v36 = vsub.f32 %v22_v8, %v56_v24  ;;  %v267_v37 = vsub.f32 %v21_v9, %v55_v25 }
  0x9b   :  { %v68_v32 = vmul.f32 %v259_v28, %v259_v28  ;;  %v67_v33 = vmul.f32 %v261_v29, %v261_v29  ;;  %v58_v34 = vmul.f32 0.03125, %v53_v30  ;;  %v57_v35 = vmul.f32 0.03125, %v52_v31 }
  0x9c   :  { %v84_v44 = vmul.f32 %v64_v36, %v64_v36  ;;  %v83_v45 = vmul.f32 %v267_v37, %v267_v37 }
  0x9d   :  { %v74_v38 = vsel %vm25_vm0, %v68_v32, 0.0  ;;  %v71_v39 = vsel %vm25_vm0, %v67_v33, 0.0  ;;  %v271_v40 = vsub.f32 %v20_v2, %v58_v34  ;;  %v273_v41 = vsub.f32 %v19_v0, %v57_v35 }
  0x9e   :  { %75 = vadd.xlane.f32.xlu1 %v74_v38  ;;  %72 = vadd.xlane.f32.xlu0 %v71_v39  ;;  %v66_v46 = vsub.f32 %v24_v12, %v58_v34  ;;  %v281_v47 = vsub.f32 %v23_v13, %v57_v35  ;;  %v90_v50 = vsel %vm25_vm0, %v84_v44, 0.0  ;;  %v87_v51 = vsel %vm25_vm0, %v83_v45, 0.0 }
  0x9f   :  { %v70_v42 = vmul.f32 %v271_v40, %v271_v40  ;;  %v69_v43 = vmul.f32 %v273_v41, %v273_v41 }
  0xa0   :  { %v86_v52 = vmul.f32 %v66_v46, %v66_v46  ;;  %v85_v53 = vmul.f32 %v281_v47, %v281_v47 }
  0xa1   :  { %v80_v48 = vsel %vm25_vm0, %v70_v42, 0.0  ;;  %v77_v49 = vsel %vm25_vm0, %v69_v43, 0.0 }
  0xa2   :  { %81 = vadd.xlane.f32.xlu1 %v80_v48  ;;  %78 = vadd.xlane.f32.xlu0 %v77_v49  ;;  %v96_v54 = vsel %vm25_vm0, %v86_v52, 0.0  ;;  %v93_v55 = vsel %vm25_vm0, %v85_v53, 0.0 }
  0xa6   :  { %91 = vadd.xlane.f32.xlu1 %v90_v50  ;;  %88 = vadd.xlane.f32.xlu0 %v87_v51 }
  0xaa   :  { %97 = vadd.xlane.f32.xlu1 %v96_v54  ;;  %94 = vadd.xlane.f32.xlu0 %v93_v55 }
  0xbb   :  { %156 = vrot.lane.b32.xlu1 %v294_v56, %s200_s5 }
  0xc0   :  { %149 = vrot.lane.b32.xlu0 %v188_v57, %s200_s5 }
 0x127   :  { %v76_v58 = vpop.xlane.xlu1 %75  ;;  %v73_v59 = vpop.xlane.xlu0 %72 }
 0x12b   :  { %v82_v60 = vpop.xlane.xlu1 %81  ;;  %v79_v61 = vpop.xlane.xlu0 %78 }
 0x12f   :  { %v92_v62 = vpop.xlane.xlu1 %91  ;;  %v89_v63 = vpop.xlane.xlu0 %88 }
 0x130   :  { %v100_v0 = vadd.f32 %v92_v62, %v76_v58  ;;  %v99_v1 = vadd.f32 %v89_v63, %v73_v59 }
 0x132   :  { %v104_v2 = vmul.f32 0.03125, %v100_v0  ;;  %v103_v3 = vmul.f32 0.03125, %v99_v1 }
 0x133   :  { %v98_v4 = vpop.xlane.xlu1 %97  ;;  %v95_v5 = vpop.xlane.xlu0 %94 }
 0x134   :  { %v108_v6 = vadd.f32 1e-05, %v104_v2  ;;  %v107_v7 = vadd.f32 1e-05, %v103_v3  ;;  %v102_v8 = vadd.f32 %v98_v4, %v82_v60  ;;  %v101_v9 = vadd.f32 %v95_v5, %v79_v61 }
 0x136   :  { %192 = vrsqrt.f32 %v108_v6  ;;  %v106_v10 = vmul.f32 0.03125, %v102_v8  ;;  %v105_v11 = vmul.f32 0.03125, %v101_v9 }
 0x137   :  { %194 = vrsqrt.f32 %v107_v7  ;;  %v150_v17 = vpop.permute.xlu0 %149  ;;  %v157_v21 = vpop.permute.xlu1 %156 }
 0x138   :  { %v110_v12 = vadd.f32 1e-05, %v106_v10  ;;  %v109_v13 = vadd.f32 1e-05, %v105_v11 }
 0x13a   :  { %196 = vrsqrt.f32 %v110_v12 }
 0x13b   :  { %198 = vrsqrt.f32 %v109_v13 }
 0x143   :  { %v193_v14 = vpop.eup %192 }
 0x144   :  { %v195_v15 = vpop.eup %194  ;;  %v146_v16 = vmul.f32 %v193_v14, %v64_v36  ;;  %v118_v18 = vmul.f32 %v193_v14, %v259_v28 }
 0x145   :  { %v145_v19 = vmul.f32 %v195_v15, %v267_v37  ;;  %v117_v20 = vmul.f32 %v195_v15, %v261_v29 }
 0x146   :  { %v128_v22 = vmul.f32 %v188_v57, %v118_v18  ;;  %v153_v30 = vmul.f32 %v150_v17, %v146_v16 }
 0x147   :  { %v197_v23 = vpop.eup %196  ;;  %v152_v24 = vmul.f32 %v150_v17, %v145_v19  ;;  %v127_v25 = vmul.f32 %v188_v57, %v117_v20 }
 0x148   :  { %v199_v26 = vpop.eup %198  ;;  %v148_v27 = vmul.f32 %v197_v23, %v66_v46  ;;  %v138_v31 = vadd.f32 %v294_v56, %v128_v22  ;;  %v120_v32 = vmul.f32 %v197_v23, %v271_v40 }
 0x149   :  { %v147_v33 = vmul.f32 %v199_v26, %v281_v47  ;;  %v159_v34 = vadd.f32 %v157_v21, %v152_v24  ;;  %v137_v28 = vadd.f32 %v294_v56, %v127_v25  ;;  %v119_v35 = vmul.f32 %v199_v26, %v273_v41 }
 0x14a   :  { %142 = vst.msk [vmem:[%s342_s4 + $0x8] sm:$0xff] %vm25_vm0, %v138_v31  ;;  %v130_v29 = vmul.f32 %v188_v57, %v120_v32  ;;  %v155_v39 = vmul.f32 %v150_v17, %v148_v27  ;;  %v160_v41 = vadd.f32 %v157_v21, %v153_v30 }
 0x14b   :  { %v154_v36 = vmul.f32 %v150_v17, %v147_v33  ;;  %167 = vrot.lane.b32.xlu1 %v159_v34, %s201_s8  ;;  %141 = vst.msk [vmem:[%s342_s4] sm:$0xff] %vm25_vm0, %v137_v28  ;;  %v129_v37 = vmul.f32 %v188_v57, %v119_v35 }
 0x14c   :  { %v140_v38 = vadd.f32 %v294_v56, %v130_v29  ;;  %v162_v43 = vadd.f32 %v157_v21, %v155_v39 }
 0x14d   :  { %v161_v40 = vadd.f32 %v157_v21, %v154_v36  ;;  %v139_v42 = vadd.f32 %v294_v56, %v129_v37 }
 0x14e   :  { %144 = vst.msk [vmem:[%s342_s4 + $0x18] sm:$0xff] %vm25_vm0, %v140_v38 }
 0x14f   :  { %171 = vrot.lane.b32.xlu0 %v161_v40, %s201_s8  ;;  %169 = vrot.lane.b32.xlu1 %v160_v41, %s201_s8  ;;  %143 = vst.msk [vmem:[%s342_s4 + $0x10] sm:$0xff] %vm25_vm0, %v139_v42 }
 0x153   :  { %173 = vrot.lane.b32.xlu1 %v162_v43, %s201_s8 }
 0x1bd   :  { %v168_v44 = vpop.permute.xlu1 %167 }
 0x1be   :  { %180 = vst.msk [vmem:[%s342_s4] sm:$0xff] %vm179_vm1, %v168_v44 }
 0x1c1   :  { %v172_v45 = vpop.permute.xlu0 %171  ;;  %v170_v46 = vpop.permute.xlu1 %169 }
 0x1c2   :  { %182 = vst.msk [vmem:[%s342_s4 + $0x10] sm:$0xff] %vm179_vm1, %v172_v45  ;;  %181 = vst.msk [vmem:[%s342_s4 + $0x8] sm:$0xff] %vm179_vm1, %v170_v46 }
 0x1c5   :  { %v174_v47 = vpop.permute.xlu1 %173 }
 0x1c6   :  { %183 = vst.msk [vmem:[%s342_s4 + $0x18] sm:$0xff] %vm179_vm1, %v174_v47 }

// kernel: basic_rnn_forward.4
= control target key start
LH: loop header
LB: loop body
LE: loop exit
PB: predicated region body
PF: predicated region fallthrough
CT: control target
= control target key end

     0   :  { %vm105_vm0 = vcmask 123904   ;;  %v5058_v3 = vmov 0.0   ;;  %vm118_vm1 = vcmask 130048   ;;  %vm5059_vm2 = vmmov 0   ;;  %s5064_s22 = smov 112   ;;  %s5913_s4 = inlined_call_operand.vmem [shape: f32[16,64], index: 4, kind: input, shape index: {}]   ;;  %s5914_s6 = inlined_call_operand.vmem [shape: f32[16,64], index: 6, kind: input, shape index: {}]   ;;  %s5915_s0 = inlined_call_operand.vmem [shape: f32[32,16], index: 0, kind: input, shape index: {}, may-alias: {0,2}]   ;;  %s5916_s2 = inlined_call_operand.vmem [shape: f32[32,16], index: 2, kind: input, shape index: {}, may-alias: {0,2}]   ;;  %s5917_s5 = inlined_call_operand.vmem [shape: f32[16,64], index: 5, kind: input, shape index: {}]   ;;  %s5918_s7 = inlined_call_operand.vmem [shape: f32[16,64], index: 7, kind: input, shape index: {}]   ;;  %s5919_s1 = inlined_call_operand.vmem [shape: f32[32,16], index: 1, kind: input, shape index: {}, may-alias: {1,3}]   ;;  %s5920_s3 = inlined_call_operand.vmem [shape: f32[32,16], index: 3, kind: input, shape index: {}, may-alias: {1,3}]   ;;  %s5921_s10 = inlined_call_operand.vmem [shape: f32[16,64], index: 10, kind: input, shape index: {}]   ;;  %s5922_s11 = inlined_call_operand.vmem [shape: f32[16,64], index: 11, kind: input, shape index: {}]   ;;  %s5923_s8 = inlined_call_operand.vmem [shape: f32[1,64], index: 8, kind: input, shape index: {}]   ;;  %s5924_s9 = inlined_call_operand.vmem [shape: f32[1,64], index: 9, kind: input, shape index: {}]   ;;  %s5925_s12 = inlined_call_operand.vmem [shape: f32[32,16], index: 12, kind: output, shape index: {0}]   ;;  %s5926_s13 = inlined_call_operand.vmem [shape: f32[32,16], index: 13, kind: output, shape index: {1}]  }
   0x1   :  { %v117_v0 = vld [vmem:[%s5913_s4 + $0x8] sm:$0xff]  ;;  %v116_v2 = vld [vmem:[%s5913_s4] sm:$0xff]  ;;  %106 = vst.msk [vmem:[#allocation2] sm:$0x3] %vm105_vm0, %v5058_v3  ;;  %107 = vst.msk [vmem:[#allocation3] sm:$0x3] %vm105_vm0, %v5058_v3 }
   0x2   :  { %v231_v1 = vld [vmem:[%s5914_s6 + $0x8] sm:$0xff]  ;;  %108 = vst.msk [vmem:[#allocation4] sm:$0x3] %vm105_vm0, %v5058_v3  ;;  %109 = vst.msk [vmem:[#allocation5] sm:$0x3] %vm105_vm0, %v5058_v3  ;;  %4523 = vmatprep.subr.mxu0 %v117_v0  ;;  %v230_v4 = vld [vmem:[%s5914_s6] sm:$0xff] }
   0x3   :  { %4533 = vmatprep.subr.mxu1 %v231_v1  ;;  %v112_v5 = vld [vmem:[%s5915_s0] sm:$0xff]  ;;  %4524 = vmatpush3.msra.mxu0 %v117_v0  ;;  %v113_v7 = vld [vmem:[%s5915_s0 + $0x8] sm:$0xff]  ;;  %v114_v11 = vld [vmem:[%s5915_s0 + $0x10] sm:$0xff]  ;;  %vm553_vm3 = vcmask 523264  }
   0x4   :  { %4534 = vmatpush3.msra.mxu1 %v231_v1  ;;  %v226_v6 = vld [vmem:[%s5916_s2] sm:$0xff]  ;;  %4525 = vmatprep.subr.mxu0 %v116_v2  ;;  %v227_v8 = vld [vmem:[%s5916_s2 + $0x8] sm:$0xff]  ;;  %v228_v12 = vld [vmem:[%s5916_s2 + $0x10] sm:$0xff] }
   0x5   :  { %4535 = vmatprep.subr.mxu1 %v230_v4  ;;  %4526 = vmatpush3.msra.mxu0 %v116_v2  ;;  %v344_v9 = vld [vmem:[%s5917_s5 + $0x8] sm:$0xff]  ;;  %v115_v13 = vld [vmem:[%s5915_s0 + $0x18] sm:$0xff]  ;;  %v343_v15 = vld [vmem:[%s5917_s5] sm:$0xff]  ;;  %s5063_s5 = smov 80  }
   0x6   :  { %4527 = vmatprep.mubr.msk.f32.mxu0 %vm118_vm1, %v112_v5  ;;  %v451_v10 = vld [vmem:[%s5918_s7 + $0x8] sm:$0xff]  ;;  %4536 = vmatpush3.msra.mxu1 %v230_v4  ;;  %v229_v14 = vld [vmem:[%s5916_s2 + $0x18] sm:$0xff]  ;;  %v450_v16 = vld [vmem:[%s5918_s7] sm:$0xff] }
   0x7   :  { %4537 = vmatprep.mubr.msk.f32.mxu1 %vm118_vm1, %v226_v6  ;;  %4528 = vmatmul.mubr.msk.f32.vlgmr.msra.gmra.mxu0 %vm118_vm1, %v113_v7  ;;  %v339_v17 = vld [vmem:[%s5919_s1] sm:$0xff]  ;;  %v340_v19 = vld [vmem:[%s5919_s1 + $0x8] sm:$0xff]  ;;  %v341_v21 = vld [vmem:[%s5919_s1 + $0x10] sm:$0xff] }
   0x8   :  { %4538 = vmatmul.mubr.msk.f32.vlgmr.msra.gmra.mxu1 %vm118_vm1, %v227_v8  ;;  %4543 = vmatprep.subr.mxu0 %v344_v9  ;;  %v446_v18 = vld [vmem:[%s5920_s3] sm:$0xff]  ;;  %v447_v20 = vld [vmem:[%s5920_s3 + $0x8] sm:$0xff]  ;;  %v448_v22 = vld [vmem:[%s5920_s3 + $0x10] sm:$0xff] }
   0x9   :  { %4553 = vmatprep.subr.mxu1 %v451_v10  ;;  %4544 = vmatpush3.msra.mxu0 %v344_v9  ;;  %v5224_v23 = vld [vmem:[%s5921_s10 + $0x8] sm:$0xff]  ;;  %v342_v25 = vld [vmem:[%s5919_s1 + $0x18] sm:$0xff]  ;;  %v5245_v27 = vld [vmem:[%s5921_s10] sm:$0xff] }
   0xa   :  { %4530 = vmatprep.mubr.msk.f32.mxu0 %vm118_vm1, %v114_v11  ;;  %4540 = vmatprep.mubr.msk.f32.mxu1 %vm118_vm1, %v228_v12  ;;  %v5229_v24 = vld [vmem:[%s5922_s11 + $0x8] sm:$0xff]  ;;  %v449_v26 = vld [vmem:[%s5920_s3 + $0x18] sm:$0xff]  ;;  %v5253_v28 = vld [vmem:[%s5922_s11] sm:$0xff]  ;;  %s5060_s3 = smov 16  }
   0xb   :  { %4554 = vmatpush3.msra.mxu1 %v451_v10  ;;  %4531 = vmatmul.mubr.msk.f32.gmra.mxu0 %vm118_vm1, %v115_v13  ;;  %v567_v29 = vld [vmem:[#allocation2] sm:$0x3]  ;;  %v684_v30 = vld [vmem:[#allocation4] sm:$0x3]  ;;  %v568_v31 = vld [vmem:[#allocation3] sm:$0x3] }
   0xc   :  { %4541 = vmatmul.mubr.msk.f32.gmra.mxu1 %vm118_vm1, %v229_v14  ;;  %4545 = vmatprep.subr.mxu0 %v343_v15  ;;  %v685_v32 = vld [vmem:[#allocation5] sm:$0x3]  ;;  %v4325_v37 = vld [vmem:[%s5923_s8] ss:$0 sm:$0xff]  ;;  %s5061_s8 = smov 96  }
   0xd   :  { %4555 = vmatprep.subr.mxu1 %v450_v16  ;;  %4546 = vmatpush3.msra.mxu0 %v343_v15  ;;  %v4330_v38 = vld [vmem:[%s5924_s9] ss:$0 sm:$0xff]  ;;  %s5062_s9 = smov 32  }
   0xe   :  { %4547 = vmatprep.mubr.msk.f32.mxu0 %vm118_vm1, %v339_v17  ;;  %4556 = vmatpush3.msra.mxu1 %v450_v16 }
   0xf   :  { %4557 = vmatprep.mubr.msk.f32.mxu1 %vm118_vm1, %v446_v18  ;;  %4548 = vmatmul.mubr.msk.f32.vlgmr.msra.gmra.mxu0 %vm118_vm1, %v340_v19 }
  0x10   :  { %4558 = vmatmul.mubr.msk.f32.vlgmr.msra.gmra.mxu1 %vm118_vm1, %v447_v20  ;;  %4550 = vmatprep.mubr.msk.f32.mxu0 %vm118_vm1, %v341_v21 }
  0x11   :  { %4560 = vmatprep.mubr.msk.f32.mxu1 %vm118_vm1, %v448_v22  ;;  %4563 = vmatprep.subr.mxu0 %v5058_v3 }
  0x12   :  { %4570 = vmatprep.subr.mxu1 %v5058_v3  ;;  %4564 = vmatpush3.msra.mxu0 %v5224_v23 }
  0x13   :  { %4571 = vmatpush3.msra.mxu1 %v5229_v24  ;;  %4551 = vmatmul.mubr.msk.f32.gmra.mxu0 %vm118_vm1, %v342_v25 }
  0x14   :  { %4561 = vmatmul.mubr.msk.f32.gmra.mxu1 %vm118_vm1, %v449_v26  ;;  %4565 = vmatprep.subr.mxu0 %v5058_v3 }
  0x15   :  { %4567 = vmatprep.mubr.msk.f32.mxu0 %vm5059_vm2, %v5058_v3  ;;  %4566 = vmatpush3.msra.mxu0 %v5245_v27 }
  0x16   :  { %4572 = vmatprep.subr.mxu1 %v5058_v3  ;;  %4574 = vmatprep.mubr.msk.f32.mxu1 %vm5059_vm2, %v5058_v3 }
  0x17   :  { %4573 = vmatpush3.msra.mxu1 %v5253_v28  ;;  %4568 = vmatmul.mubr.msk.f32.vlgmr.msra.gmra.mxu0 %vm118_vm1, %v567_v29 }
  0x18   :  { %4575 = vmatmul.mubr.msk.f32.vlgmr.msra.gmra.mxu1 %vm118_vm1, %v684_v30  ;;  %651 = vrot.lane.b32.xlu1 %v568_v31, %s5060_s3 }
  0x19   :  { %4577 = vmatprep.subr.mxu0 %v5058_v3  ;;  %4581 = vmatprep.mubr.msk.f32.mxu0 %vm5059_vm2, %v5058_v3 }
  0x1a   :  { %4578 = vmatpush3.msra.mxu0 %v5224_v23  ;;  %4584 = vmatprep.subr.mxu1 %v5058_v3 }
  0x1b   :  { %4579 = vmatprep.subr.mxu0 %v5058_v3  ;;  %4585 = vmatpush3.msra.mxu1 %v5229_v24 }
  0x1c   :  { %4580 = vmatpush3.msra.mxu0 %v5245_v27  ;;  %768 = vrot.lane.b32.xlu1 %v685_v32, %s5060_s3 }
  0x1d   :  { %4586 = vmatprep.subr.mxu1 %v5058_v3  ;;  %4588 = vmatprep.mubr.msk.f32.mxu1 %vm5059_vm2, %v5058_v3 }
  0x1e   :  { %4587 = vmatpush3.msra.mxu1 %v5253_v28  ;;  %4591 = vmatprep.subr.mxu0 %v5058_v3 }
  0x1f   :  { %4598 = vmatprep.subr.mxu1 %v5058_v3 }
  0x8a   :  { %v652_v30 = vpop.permute.xlu1 %651 }
  0x8e   :  { %v769_v32 = vpop.permute.xlu1 %768 }
  0xc7   :  { %v4529_v33 = vpop.f32.mrf.mxu0 }
  0xc8   :  { %v4539_v34 = vpop.f32.mrf.mxu1  ;;  %v223_v43 = vadd.f32 %v4529_v33, %v4325_v37 }
  0xc9   :  { %v197_v35 = vpop.f32.mrf.mxu0  ;;  %v336_v44 = vadd.f32 %v4539_v34, %v4330_v38 }
  0xca   :  { %v310_v36 = vpop.f32.mrf.mxu1  ;;  %v222_v47 = vadd.f32 %v4325_v37, %v197_v35 }
  0xcb   :  { %v4532_v39 = vpop.f32.mrf.mxu0  ;;  %v335_v48 = vadd.f32 %v4330_v38, %v310_v36 }
  0xcc   :  { %v4542_v40 = vpop.f32.mrf.mxu1  ;;  %v225_v53 = vadd.f32 %v4532_v39, %v4325_v37 }
  0xcd   :  { %v207_v41 = vpop.f32.mrf.mxu0  ;;  %v338_v54 = vadd.f32 %v4542_v40, %v4330_v38 }
  0xce   :  { %v320_v42 = vpop.f32.mrf.mxu1  ;;  %v224_v59 = vadd.f32 %v4325_v37, %v207_v41 }
  0xcf   :  { %v4549_v45 = vpop.f32.mrf.mxu0  ;;  %v337_v60 = vadd.f32 %v4330_v38, %v320_v42 }
  0xd0   :  { %v4559_v46 = vpop.f32.mrf.mxu1  ;;  %v443_v49 = vadd.f32 %v4549_v45, %v223_v43 }
  0xd1   :  { %v550_v50 = vadd.f32 %v4559_v46, %v336_v44  ;;  %v423_v51 = vpop.f32.mrf.mxu0 }
  0xd2   :  { %v530_v52 = vpop.f32.mrf.mxu1  ;;  %555 = vst.msk [vmem:[#allocation6 + $0x8] sm:$0xff] %vm553_vm3, %v443_v49  ;;  %v442_v55 = vadd.f32 %v423_v51, %v222_v47 }
  0xd3   :  { %559 = vst.msk [vmem:[#allocation7 + $0x8] sm:$0xff] %vm553_vm3, %v550_v50  ;;  %v549_v56 = vadd.f32 %v530_v52, %v335_v48  ;;  %v4552_v57 = vpop.f32.mrf.mxu0 }
  0xd4   :  { %v4562_v58 = vpop.f32.mrf.mxu1  ;;  %554 = vst.msk [vmem:[#allocation6] sm:$0xff] %vm553_vm3, %v442_v55  ;;  %v445_v61 = vadd.f32 %v4552_v57, %v225_v53 }
  0xd5   :  { %558 = vst.msk [vmem:[#allocation7] sm:$0xff] %vm553_vm3, %v549_v56  ;;  %v552_v62 = vadd.f32 %v4562_v58, %v338_v54  ;;  %v433_v63 = vpop.f32.mrf.mxu0 }
  0xd6   :  { %v540_v0 = vpop.f32.mrf.mxu1  ;;  %557 = vst.msk [vmem:[#allocation6 + $0x18] sm:$0xff] %vm553_vm3, %v445_v61  ;;  %v444_v1 = vadd.f32 %v433_v63, %v224_v59 }
  0xd7   :  { %561 = vst.msk [vmem:[#allocation7 + $0x18] sm:$0xff] %vm553_vm3, %v552_v62  ;;  %v551_v2 = vadd.f32 %v540_v0, %v337_v60  ;;  %v638_v4 = vpop.f32.mrf.mxu0 }
  0xd8   :  { %v755_v5 = vpop.f32.mrf.mxu1  ;;  %556 = vst.msk [vmem:[#allocation6 + $0x10] sm:$0xff] %vm553_vm3, %v444_v1 }
  0xd9   :  { %560 = vst.msk [vmem:[#allocation7 + $0x10] sm:$0xff] %vm553_vm3, %v551_v2  ;;  %v4569_v6 = vpop.f32.mrf.mxu0 }
  0xda   :  { %v4576_v7 = vpop.f32.mrf.mxu1 }
  0xdb   :  { %v566_v8 = vld [vmem:[#allocation6] sm:$0x3]  ;;  %v799_v50 = vld [vmem:[#allocation6 + $0x2] sm:$0x3] }
  0xdc   :  { %v642_v9 = vadd.f32 %v638_v4, %v566_v8 }
  0xde   :  { %v683_v10 = vld [vmem:[#allocation7 + $0x1e] sm:$0x3]  ;;  %4794 = vtanh.f32 %v642_v9  ;;  %v4340_v14 = vmul.f32 -1.442695, %v642_v9  ;;  %v915_v54 = vld [vmem:[#allocation7 + $0x1c] sm:$0x3] }
  0xdf   :  { %v759_v11 = vadd.f32 %v755_v5, %v683_v10 }
  0xe1   :  { %4796 = vtanh.f32 %v759_v11  ;;  %v4342_v15 = vmul.f32 -1.442695, %v759_v11 }
  0xe2   :  { %4798 = vpow2.f32 %v4340_v14 }
  0xe3   :  { %4800 = vpow2.f32 %v4342_v15 }
  0xeb   :  { %v4795_v12 = vpop.eup %4794 }
  0xec   :  { %656 = vrot.lane.b32.xlu0 %v4795_v12, %s5061_s8 }
  0xee   :  { %v4797_v13 = vpop.eup %4796 }
  0xef   :  { %v4799_v16 = vpop.eup %4798 }
  0xf0   :  { %773 = vrot.lane.b32.xlu0 %v4797_v13, %s5061_s8  ;;  %v646_v17 = vadd.f32 1.0, %v4799_v16  ;;  %v4801_v18 = vpop.eup %4800 }
  0xf1   :  { %v763_v19 = vadd.f32 1.0, %v4801_v18 }
  0xf2   :  { %4802 = vrcp.f32 %v646_v17 }
  0xf3   :  { %4804 = vrcp.f32 %v763_v19 }
  0xff   :  { %v4803_v20 = vpop.eup %4802 }
 0x100   :  { %v4805_v25 = vpop.eup %4804  ;;  %v654_v31 = vmul.f32 %v4803_v20, %v652_v30 }
 0x101   :  { %v771_v35 = vmul.f32 %v4805_v25, %v769_v32 }
 0x15e   :  { %v657_v21 = vpop.permute.xlu0 %656 }
 0x15f   :  { %v659_v22 = vmul.f32 %v4803_v20, %v657_v21 }
 0x161   :  { %661 = vrot.lane.b32.xlu0 %v659_v22, %s5060_s3 }
 0x162   :  { %v774_v26 = vpop.permute.xlu0 %773 }
 0x163   :  { %v776_v29 = vmul.f32 %v4805_v25, %v774_v26 }
 0x165   :  { %778 = vrot.lane.b32.xlu1 %v776_v29, %s5060_s3 }
 0x1d3   :  { %v662_v33 = vpop.permute.xlu0 %661 }
 0x1d4   :  { %v664_v34 = vadd.f32 %v662_v33, %v654_v31 }
 0x1d6   :  { %4806 = vtanh.f32 %v664_v34 }
 0x1d7   :  { %v779_v36 = vpop.permute.xlu1 %778 }
 0x1d8   :  { %v781_v37 = vadd.f32 %v779_v36, %v771_v35  ;;  %v1031_v35 = vld [vmem:[#allocation6 + $0x4] sm:$0x3] }
 0x1da   :  { %4808 = vtanh.f32 %v781_v37 }
 0x1e3   :  { %v4807_v38 = vpop.eup %4806 }
 0x1e4   :  { %667 = vrot.lane.b32.xlu0 %v4807_v38, %s5062_s9 }
 0x1e7   :  { %v4809_v39 = vpop.eup %4808 }
 0x1e8   :  { %784 = vrot.lane.b32.xlu1 %v4809_v39, %s5062_s9  ;;  %v1147_v39 = vld [vmem:[#allocation7 + $0x1a] sm:$0x3] }
 0x256   :  { %v668_v40 = vpop.permute.xlu0 %667 }
 0x257   :  { %v670_v41 = vmul.f32 %v4803_v20, %v668_v40 }
 0x259   :  { %672 = vrot.lane.b32.xlu0 %v670_v41, %s5063_s5 }
 0x25a   :  { %v785_v42 = vpop.permute.xlu1 %784 }
 0x25b   :  { %v787_v43 = vmul.f32 %v4805_v25, %v785_v42 }
 0x25d   :  { %789 = vrot.lane.b32.xlu1 %v787_v43, %s5063_s5  ;;  %678 = vrot.lane.b32.xlu0 %v664_v34, %s5064_s22 }
 0x261   :  { %794 = vrot.lane.b32.xlu1 %v781_v37, %s5064_s22 }
 0x2cb   :  { %v673_v44 = vpop.permute.xlu0 %672 }
 0x2cc   :  { %676 = vst.msk [vmem:[#allocation2] sm:$0x3] %vm105_vm0, %v673_v44  ;;  %682 = vst.msk [vmem:[%s5925_s12] sm:$0x3] %vm105_vm0, %v673_v44 }
 0x2cf   :  { %v790_v45 = vpop.permute.xlu1 %789  ;;  %v679_v46 = vpop.permute.xlu0 %678 }
 0x2d0   :  { %792 = vst.msk [vmem:[#allocation4] sm:$0x3] %vm105_vm0, %v790_v45  ;;  %798 = vst.msk [vmem:[%s5926_s13 + $0x1e] sm:$0x3] %vm105_vm0, %v790_v45 }
 0x2d1   :  { %681 = vst.msk [vmem:[#allocation3] sm:$0x3] %vm105_vm0, %v679_v46 }
 0x2d3   :  { %v800_v47 = vld [vmem:[#allocation2] sm:$0x3]  ;;  %v795_v48 = vpop.permute.xlu1 %794 }
 0x2d4   :  { %797 = vst.msk [vmem:[#allocation5] sm:$0x3] %vm105_vm0, %v795_v48  ;;  %4582 = vmatmul.mubr.msk.f32.vlgmr.msra.gmra.mxu0 %vm118_vm1, %v800_v47 }
 0x2d5   :  { %4592 = vmatpush3.msra.mxu0 %v5224_v23  ;;  %4595 = vmatprep.mubr.msk.f32.mxu0 %vm5059_vm2, %v5058_v3 }
 0x2d6   :  { %4593 = vmatprep.subr.mxu0 %v5058_v3 }
 0x2d7   :  { %v916_v49 = vld [vmem:[#allocation4] sm:$0x3]  ;;  %4594 = vmatpush3.msra.mxu0 %v5245_v27 }
 0x2d8   :  { %4589 = vmatmul.mubr.msk.f32.vlgmr.msra.gmra.mxu1 %vm118_vm1, %v916_v49  ;;  %4605 = vmatprep.subr.mxu0 %v5058_v3  ;;  %v801_v60 = vld [vmem:[#allocation3] sm:$0x3] }
 0x2d9   :  { %4599 = vmatpush3.msra.mxu1 %v5229_v24  ;;  %4602 = vmatprep.mubr.msk.f32.mxu1 %vm5059_vm2, %v5058_v3 }
 0x2da   :  { %4600 = vmatprep.subr.mxu1 %v5058_v3 }
 0x2db   :  { %4601 = vmatpush3.msra.mxu1 %v5253_v28  ;;  %v917_v61 = vld [vmem:[#allocation5] sm:$0x3] }
 0x2dc   :  { %4612 = vmatprep.subr.mxu1 %v5058_v3 }
 0x394   :  { %v871_v51 = vpop.f32.mrf.mxu0 }
 0x395   :  { %v875_v52 = vadd.f32 %v871_v51, %v799_v50 }
 0x396   :  { %v4583_v53 = vpop.f32.mrf.mxu0 }
 0x397   :  { %4810 = vtanh.f32 %v875_v52  ;;  %v4344_v62 = vmul.f32 -1.442695, %v875_v52 }
 0x398   :  { %v987_v55 = vpop.f32.mrf.mxu1 }
 0x399   :  { %v991_v56 = vadd.f32 %v987_v55, %v915_v54 }
 0x39a   :  { %v4590_v57 = vpop.f32.mrf.mxu1 }
 0x39b   :  { %4812 = vtanh.f32 %v991_v56  ;;  %v4346_v63 = vmul.f32 -1.442695, %v991_v56 }
 0x39c   :  { %4814 = vpow2.f32 %v4344_v62 }
 0x39d   :  { %4816 = vpow2.f32 %v4346_v63 }
 0x3a4   :  { %v4811_v58 = vpop.eup %4810 }
 0x3a5   :  { %889 = vrot.lane.b32.xlu0 %v4811_v58, %s5061_s8 }
 0x3a8   :  { %v4813_v59 = vpop.eup %4812 }
 0x3a9   :  { %1005 = vrot.lane.b32.xlu1 %v4813_v59, %s5061_s8  ;;  %884 = vrot.lane.b32.xlu0 %v801_v60, %s5060_s3  ;;  %v4815_v0 = vpop.eup %4814 }
 0x3aa   :  { %v879_v1 = vadd.f32 1.0, %v4815_v0  ;;  %v4817_v2 = vpop.eup %4816 }
 0x3ab   :  { %v995_v4 = vadd.f32 1.0, %v4817_v2 }
 0x3ac   :  { %4818 = vrcp.f32 %v879_v1 }
 0x3ad   :  { %1000 = vrot.lane.b32.xlu1 %v917_v61, %s5060_s3  ;;  %4820 = vrcp.f32 %v995_v4 }
 0x3b9   :  { %v4819_v5 = vpop.eup %4818 }
 0x3ba   :  { %v4821_v8 = vpop.eup %4820 }
 0x417   :  { %v890_v6 = vpop.permute.xlu0 %889 }
 0x418   :  { %v892_v7 = vmul.f32 %v4819_v5, %v890_v6 }
 0x41a   :  { %894 = vrot.lane.b32.xlu0 %v892_v7, %s5060_s3 }
 0x41b   :  { %v1006_v9 = vpop.permute.xlu1 %1005  ;;  %v885_v11 = vpop.permute.xlu0 %884 }
 0x41c   :  { %v1008_v10 = vmul.f32 %v4821_v8, %v1006_v9  ;;  %v887_v12 = vmul.f32 %v4819_v5, %v885_v11 }
 0x41e   :  { %1010 = vrot.lane.b32.xlu1 %v1008_v10, %s5060_s3 }
 0x41f   :  { %v1001_v13 = vpop.permute.xlu1 %1000 }
 0x420   :  { %v1003_v16 = vmul.f32 %v4821_v8, %v1001_v13 }
 0x48c   :  { %v895_v14 = vpop.permute.xlu0 %894 }
 0x48d   :  { %v897_v15 = vadd.f32 %v895_v14, %v887_v12 }
 0x48f   :  { %4822 = vtanh.f32 %v897_v15 }
 0x490   :  { %v1011_v17 = vpop.permute.xlu1 %1010 }
 0x491   :  { %v1013_v18 = vadd.f32 %v1011_v17, %v1003_v16  ;;  %v1263_v16 = vld [vmem:[#allocation6 + $0x6] sm:$0x3] }
 0x493   :  { %4824 = vtanh.f32 %v1013_v18 }
 0x49c   :  { %v4823_v19 = vpop.eup %4822 }
 0x49d   :  { %900 = vrot.lane.b32.xlu0 %v4823_v19, %s5062_s9 }
 0x4a0   :  { %v4825_v20 = vpop.eup %4824 }
 0x4a1   :  { %1016 = vrot.lane.b32.xlu1 %v4825_v20, %s5062_s9  ;;  %v1379_v20 = vld [vmem:[#allocation7 + $0x18] sm:$0x3] }
 0x50f   :  { %v901_v21 = vpop.permute.xlu0 %900 }
 0x510   :  { %v903_v22 = vmul.f32 %v4819_v5, %v901_v21 }
 0x512   :  { %905 = vrot.lane.b32.xlu0 %v903_v22, %s5063_s5 }
 0x513   :  { %v1017_v25 = vpop.permute.xlu1 %1016 }
 0x514   :  { %v1019_v26 = vmul.f32 %v4821_v8, %v1017_v25 }
 0x516   :  { %1021 = vrot.lane.b32.xlu1 %v1019_v26, %s5063_s5  ;;  %910 = vrot.lane.b32.xlu0 %v897_v15, %s5064_s22 }
 0x51a   :  { %1026 = vrot.lane.b32.xlu1 %v1013_v18, %s5064_s22 }
 0x584   :  { %v906_v29 = vpop.permute.xlu0 %905 }
 0x585   :  { %908 = vst.msk [vmem:[#allocation2] sm:$0x3] %vm105_vm0, %v906_v29  ;;  %914 = vst.msk [vmem:[%s5925_s12 + $0x2] sm:$0x3] %vm105_vm0, %v906_v29 }
 0x588   :  { %v1022_v30 = vpop.permute.xlu1 %1021  ;;  %v911_v31 = vpop.permute.xlu0 %910 }
 0x589   :  { %1024 = vst.msk [vmem:[#allocation4] sm:$0x3] %vm105_vm0, %v1022_v30  ;;  %1030 = vst.msk [vmem:[%s5926_s13 + $0x1c] sm:$0x3] %vm105_vm0, %v1022_v30 }
 0x58a   :  { %913 = vst.msk [vmem:[#allocation3] sm:$0x3] %vm105_vm0, %v911_v31 }
 0x58c   :  { %v1032_v32 = vld [vmem:[#allocation2] sm:$0x3]  ;;  %v1027_v33 = vpop.permute.xlu1 %1026 }
 0x58d   :  { %1029 = vst.msk [vmem:[#allocation5] sm:$0x3] %vm105_vm0, %v1027_v33  ;;  %4596 = vmatmul.mubr.msk.f32.vlgmr.msra.gmra.mxu0 %vm118_vm1, %v1032_v32 }
 0x58e   :  { %4606 = vmatpush3.msra.mxu0 %v5224_v23  ;;  %4609 = vmatprep.mubr.msk.f32.mxu0 %vm5059_vm2, %v5058_v3 }
 0x58f   :  { %4607 = vmatprep.subr.mxu0 %v5058_v3 }
 0x590   :  { %v1148_v34 = vld [vmem:[#allocation4] sm:$0x3]  ;;  %4608 = vmatpush3.msra.mxu0 %v5245_v27 }
 0x591   :  { %4603 = vmatmul.mubr.msk.f32.vlgmr.msra.gmra.mxu1 %vm118_vm1, %v1148_v34  ;;  %4619 = vmatprep.subr.mxu0 %v5058_v3  ;;  %v1033_v45 = vld [vmem:[#allocation3] sm:$0x3] }
 0x592   :  { %4613 = vmatpush3.msra.mxu1 %v5229_v24  ;;  %4616 = vmatprep.mubr.msk.f32.mxu1 %vm5059_vm2, %v5058_v3 }
 0x593   :  { %4614 = vmatprep.subr.mxu1 %v5058_v3 }
 0x594   :  { %4615 = vmatpush3.msra.mxu1 %v5253_v28  ;;  %v1149_v46 = vld [vmem:[#allocation5] sm:$0x3] }
 0x595   :  { %4626 = vmatprep.subr.mxu1 %v5058_v3 }
 0x64d   :  { %v1103_v36 = vpop.f32.mrf.mxu0 }
 0x64e   :  { %v1107_v37 = vadd.f32 %v1103_v36, %v1031_v35 }
 0x64f   :  { %v4597_v38 = vpop.f32.mrf.mxu0 }
 0x650   :  { %4826 = vtanh.f32 %v1107_v37  ;;  %v4348_v47 = vmul.f32 -1.442695, %v1107_v37 }
 0x651   :  { %v1219_v40 = vpop.f32.mrf.mxu1 }
 0x652   :  { %v1223_v41 = vadd.f32 %v1219_v40, %v1147_v39 }
 0x653   :  { %v4604_v42 = vpop.f32.mrf.mxu1 }
 0x654   :  { %4828 = vtanh.f32 %v1223_v41  ;;  %v4350_v48 = vmul.f32 -1.442695, %v1223_v41 }
 0x655   :  { %4830 = vpow2.f32 %v4348_v47 }
 0x656   :  { %4832 = vpow2.f32 %v4350_v48 }
 0x65d   :  { %v4827_v43 = vpop.eup %4826 }
 0x65e   :  { %1121 = vrot.lane.b32.xlu0 %v4827_v43, %s5061_s8 }
 0x661   :  { %v4829_v44 = vpop.eup %4828 }
 0x662   :  { %1237 = vrot.lane.b32.xlu1 %v4829_v44, %s5061_s8  ;;  %1116 = vrot.lane.b32.xlu0 %v1033_v45, %s5060_s3  ;;  %v4831_v49 = vpop.eup %4830 }
 0x663   :  { %v1111_v50 = vadd.f32 1.0, %v4831_v49  ;;  %v4833_v51 = vpop.eup %4832 }
 0x664   :  { %v1227_v52 = vadd.f32 1.0, %v4833_v51 }
 0x665   :  { %4834 = vrcp.f32 %v1111_v50 }
 0x666   :  { %1232 = vrot.lane.b32.xlu1 %v1149_v46, %s5060_s3  ;;  %4836 = vrcp.f32 %v1227_v52 }
 0x672   :  { %v4835_v53 = vpop.eup %4834 }
 0x673   :  { %v4837_v56 = vpop.eup %4836 }
 0x6d0   :  { %v1122_v54 = vpop.permute.xlu0 %1121 }
 0x6d1   :  { %v1124_v55 = vmul.f32 %v4835_v53, %v1122_v54 }
 0x6d3   :  { %1126 = vrot.lane.b32.xlu0 %v1124_v55, %s5060_s3 }
 0x6d4   :  { %v1238_v57 = vpop.permute.xlu1 %1237  ;;  %v1117_v59 = vpop.permute.xlu0 %1116 }
 0x6d5   :  { %v1240_v58 = vmul.f32 %v4837_v56, %v1238_v57  ;;  %v1119_v60 = vmul.f32 %v4835_v53, %v1117_v59 }
 0x6d7   :  { %1242 = vrot.lane.b32.xlu1 %v1240_v58, %s5060_s3 }
 0x6d8   :  { %v1233_v61 = vpop.permute.xlu1 %1232 }
 0x6d9   :  { %v1235_v0 = vmul.f32 %v4837_v56, %v1233_v61 }
 0x745   :  { %v1127_v62 = vpop.permute.xlu0 %1126 }
 0x746   :  { %v1129_v63 = vadd.f32 %v1127_v62, %v1119_v60 }
 0x748   :  { %4838 = vtanh.f32 %v1129_v63 }
 0x749   :  { %v1243_v1 = vpop.permute.xlu1 %1242 }
 0x74a   :  { %v1245_v2 = vadd.f32 %v1243_v1, %v1235_v0  ;;  %v1495_v0 = vld [vmem:[#allocation6 + $0x8] sm:$0x3] }
 0x74c   :  { %4840 = vtanh.f32 %v1245_v2 }
 0x755   :  { %v4839_v4 = vpop.eup %4838 }
 0x756   :  { %1132 = vrot.lane.b32.xlu0 %v4839_v4, %s5062_s9 }
 0x759   :  { %v4841_v5 = vpop.eup %4840 }
 0x75a   :  { %1248 = vrot.lane.b32.xlu1 %v4841_v5, %s5062_s9  ;;  %v1611_v5 = vld [vmem:[#allocation7 + $0x16] sm:$0x3] }
 0x7c8   :  { %v1133_v6 = vpop.permute.xlu0 %1132 }
 0x7c9   :  { %v1135_v7 = vmul.f32 %v4835_v53, %v1133_v6 }
 0x7cb   :  { %1137 = vrot.lane.b32.xlu0 %v1135_v7, %s5063_s5 }
 0x7cc   :  { %v1249_v8 = vpop.permute.xlu1 %1248 }
 0x7cd   :  { %v1251_v9 = vmul.f32 %v4837_v56, %v1249_v8 }
 0x7cf   :  { %1253 = vrot.lane.b32.xlu1 %v1251_v9, %s5063_s5  ;;  %1142 = vrot.lane.b32.xlu0 %v1129_v63, %s5064_s22 }
 0x7d3   :  { %1258 = vrot.lane.b32.xlu1 %v1245_v2, %s5064_s22 }
 0x83d   :  { %v1138_v10 = vpop.permute.xlu0 %1137 }
 0x83e   :  { %1140 = vst.msk [vmem:[#allocation2] sm:$0x3] %vm105_vm0, %v1138_v10  ;;  %1146 = vst.msk [vmem:[%s5925_s12 + $0x4] sm:$0x3] %vm105_vm0, %v1138_v10 }
 0x841   :  { %v1254_v11 = vpop.permute.xlu1 %1253  ;;  %v1143_v12 = vpop.permute.xlu0 %1142 }
 0x842   :  { %1256 = vst.msk [vmem:[#allocation4] sm:$0x3] %vm105_vm0, %v1254_v11  ;;  %1262 = vst.msk [vmem:[%s5926_s13 + $0x1a] sm:$0x3] %vm105_vm0, %v1254_v11 }
 0x843   :  { %1145 = vst.msk [vmem:[#allocation3] sm:$0x3] %vm105_vm0, %v1143_v12 }
 0x845   :  { %v1264_v13 = vld [vmem:[#allocation2] sm:$0x3]  ;;  %v1259_v14 = vpop.permute.xlu1 %1258 }
 0x846   :  { %1261 = vst.msk [vmem:[#allocation5] sm:$0x3] %vm105_vm0, %v1259_v14  ;;  %4610 = vmatmul.mubr.msk.f32.vlgmr.msra.gmra.mxu0 %vm118_vm1, %v1264_v13 }
 0x847   :  { %4620 = vmatpush3.msra.mxu0 %v5224_v23  ;;  %4623 = vmatprep.mubr.msk.f32.mxu0 %vm5059_vm2, %v5058_v3 }
 0x848   :  { %4621 = vmatprep.subr.mxu0 %v5058_v3 }
 0x849   :  { %v1380_v15 = vld [vmem:[#allocation4] sm:$0x3]  ;;  %4622 = vmatpush3.msra.mxu0 %v5245_v27 }
 0x84a   :  { %4617 = vmatmul.mubr.msk.f32.vlgmr.msra.gmra.mxu1 %vm118_vm1, %v1380_v15  ;;  %4633 = vmatprep.subr.mxu0 %v5058_v3  ;;  %v1265_v30 = vld [vmem:[#allocation3] sm:$0x3] }
 0x84b   :  { %4627 = vmatpush3.msra.mxu1 %v5229_v24  ;;  %4630 = vmatprep.mubr.msk.f32.mxu1 %vm5059_vm2, %v5058_v3 }
 0x84c   :  { %4628 = vmatprep.subr.mxu1 %v5058_v3 }
 0x84d   :  { %4629 = vmatpush3.msra.mxu1 %v5253_v28  ;;  %v1381_v31 = vld [vmem:[#allocation5] sm:$0x3] }
 0x84e   :  { %4640 = vmatprep.subr.mxu1 %v5058_v3 }
 0x906   :  { %v1335_v17 = vpop.f32.mrf.mxu0 }
 0x907   :  { %v1339_v18 = vadd.f32 %v1335_v17, %v1263_v16 }
 0x908   :  { %v4611_v19 = vpop.f32.mrf.mxu0 }
 0x909   :  { %4842 = vtanh.f32 %v1339_v18  ;;  %v4352_v32 = vmul.f32 -1.442695, %v1339_v18 }
 0x90a   :  { %v1451_v21 = vpop.f32.mrf.mxu1 }
 0x90b   :  { %v1455_v22 = vadd.f32 %v1451_v21, %v1379_v20 }
 0x90c   :  { %v4618_v25 = vpop.f32.mrf.mxu1 }
 0x90d   :  { %4844 = vtanh.f32 %v1455_v22  ;;  %v4354_v33 = vmul.f32 -1.442695, %v1455_v22 }
 0x90e   :  { %4846 = vpow2.f32 %v4352_v32 }
 0x90f   :  { %4848 = vpow2.f32 %v4354_v33 }
 0x916   :  { %v4843_v26 = vpop.eup %4842 }
 0x917   :  { %1353 = vrot.lane.b32.xlu0 %v4843_v26, %s5061_s8 }
 0x91a   :  { %v4845_v29 = vpop.eup %4844 }
 0x91b   :  { %1469 = vrot.lane.b32.xlu1 %v4845_v29, %s5061_s8  ;;  %1348 = vrot.lane.b32.xlu0 %v1265_v30, %s5060_s3  ;;  %v4847_v34 = vpop.eup %4846 }
 0x91c   :  { %v1343_v35 = vadd.f32 1.0, %v4847_v34  ;;  %v4849_v36 = vpop.eup %4848 }
 0x91d   :  { %v1459_v37 = vadd.f32 1.0, %v4849_v36 }
 0x91e   :  { %4850 = vrcp.f32 %v1343_v35 }
 0x91f   :  { %1464 = vrot.lane.b32.xlu1 %v1381_v31, %s5060_s3  ;;  %4852 = vrcp.f32 %v1459_v37 }
 0x92b   :  { %v4851_v38 = vpop.eup %4850 }
 0x92c   :  { %v4853_v41 = vpop.eup %4852 }
 0x989   :  { %v1354_v39 = vpop.permute.xlu0 %1353 }
 0x98a   :  { %v1356_v40 = vmul.f32 %v4851_v38, %v1354_v39 }
 0x98c   :  { %1358 = vrot.lane.b32.xlu0 %v1356_v40, %s5060_s3 }
 0x98d   :  { %v1470_v42 = vpop.permute.xlu1 %1469  ;;  %v1349_v44 = vpop.permute.xlu0 %1348 }
 0x98e   :  { %v1472_v43 = vmul.f32 %v4853_v41, %v1470_v42  ;;  %v1351_v45 = vmul.f32 %v4851_v38, %v1349_v44 }
 0x990   :  { %1474 = vrot.lane.b32.xlu1 %v1472_v43, %s5060_s3 }
 0x991   :  { %v1465_v46 = vpop.permute.xlu1 %1464 }
 0x992   :  { %v1467_v49 = vmul.f32 %v4853_v41, %v1465_v46 }
 0x9fe   :  { %v1359_v47 = vpop.permute.xlu0 %1358 }
 0x9ff   :  { %v1361_v48 = vadd.f32 %v1359_v47, %v1351_v45 }
 0xa01   :  { %4854 = vtanh.f32 %v1361_v48 }
 0xa02   :  { %v1475_v50 = vpop.permute.xlu1 %1474 }
 0xa03   :  { %v1477_v51 = vadd.f32 %v1475_v50, %v1467_v49 }
 0xa05   :  { %4856 = vtanh.f32 %v1477_v51 }
 0xa0e   :  { %v4855_v52 = vpop.eup %4854 }
 0xa0f   :  { %1364 = vrot.lane.b32.xlu0 %v4855_v52, %s5062_s9 }
 0xa12   :  { %v4857_v53 = vpop.eup %4856 }
 0xa13   :  { %1480 = vrot.lane.b32.xlu1 %v4857_v53, %s5062_s9 }
 0xa81   :  { %v1365_v54 = vpop.permute.xlu0 %1364 }
 0xa82   :  { %v1367_v55 = vmul.f32 %v4851_v38, %v1365_v54 }
 0xa84   :  { %1369 = vrot.lane.b32.xlu0 %v1367_v55, %s5063_s5 }
 0xa85   :  { %v1481_v56 = vpop.permute.xlu1 %1480 }
 0xa86   :  { %v1483_v57 = vmul.f32 %v4853_v41, %v1481_v56 }
 0xa88   :  { %1485 = vrot.lane.b32.xlu1 %v1483_v57, %s5063_s5  ;;  %1374 = vrot.lane.b32.xlu0 %v1361_v48, %s5064_s22 }
 0xa8c   :  { %1490 = vrot.lane.b32.xlu1 %v1477_v51, %s5064_s22 }
 0xaf6   :  { %v1370_v58 = vpop.permute.xlu0 %1369 }
 0xaf7   :  { %1372 = vst.msk [vmem:[#allocation2] sm:$0x3] %vm105_vm0, %v1370_v58  ;;  %1378 = vst.msk [vmem:[%s5925_s12 + $0x6] sm:$0x3] %vm105_vm0, %v1370_v58 }
 0xafa   :  { %v1486_v59 = vpop.permute.xlu1 %1485  ;;  %v1375_v60 = vpop.permute.xlu0 %1374 }
 0xafb   :  { %1488 = vst.msk [vmem:[#allocation4] sm:$0x3] %vm105_vm0, %v1486_v59  ;;  %1494 = vst.msk [vmem:[%s5926_s13 + $0x18] sm:$0x3] %vm105_vm0, %v1486_v59 }
 0xafc   :  { %1377 = vst.msk [vmem:[#allocation3] sm:$0x3] %vm105_vm0, %v1375_v60 }
 0xafe   :  { %v1491_v61 = vpop.permute.xlu1 %1490  ;;  %v1496_v62 = vld [vmem:[#allocation2] sm:$0x3] }
 0xaff   :  { %1493 = vst.msk [vmem:[#allocation5] sm:$0x3] %vm105_vm0, %v1491_v61  ;;  %4624 = vmatmul.mubr.msk.f32.vlgmr.msra.gmra.mxu0 %vm118_vm1, %v1496_v62 }
 0xb00   :  { %4634 = vmatpush3.msra.mxu0 %v5224_v23  ;;  %4637 = vmatprep.mubr.msk.f32.mxu0 %vm5059_vm2, %v5058_v3 }
 0xb01   :  { %4635 = vmatprep.subr.mxu0 %v5058_v3 }
 0xb02   :  { %v1612_v63 = vld [vmem:[#allocation4] sm:$0x3]  ;;  %4636 = vmatpush3.msra.mxu0 %v5245_v27 }
 0xb03   :  { %4631 = vmatmul.mubr.msk.f32.vlgmr.msra.gmra.mxu1 %vm118_vm1, %v1612_v63  ;;  %4647 = vmatprep.subr.mxu0 %v5058_v3  ;;  %v1497_v11 = vld [vmem:[#allocation3] sm:$0x3] }
 0xb04   :  { %4641 = vmatpush3.msra.mxu1 %v5229_v24  ;;  %4644 = vmatprep.mubr.msk.f32.mxu1 %vm5059_vm2, %v5058_v3 }
 0xb05   :  { %4642 = vmatprep.subr.mxu1 %v5058_v3 }
 0xb06   :  { %4643 = vmatpush3.msra.mxu1 %v5253_v28  ;;  %v1613_v12 = vld [vmem:[#allocation5] sm:$0x3] }
 0xb07   :  { %4654 = vmatprep.subr.mxu1 %v5058_v3 }
 0xbbf   :  { %v1567_v1 = vpop.f32.mrf.mxu0 }
 0xbc0   :  { %v1571_v2 = vadd.f32 %v1567_v1, %v1495_v0 }
 0xbc1   :  { %v4625_v4 = vpop.f32.mrf.mxu0 }
 0xbc2   :  { %4858 = vtanh.f32 %v1571_v2  ;;  %v4356_v13 = vmul.f32 -1.442695, %v1571_v2 }
 0xbc3   :  { %v1683_v6 = vpop.f32.mrf.mxu1 }
 0xbc4   :  { %v1687_v7 = vadd.f32 %v1683_v6, %v1611_v5 }
 0xbc5   :  { %v4632_v8 = vpop.f32.mrf.mxu1 }
 0xbc6   :  { %4860 = vtanh.f32 %v1687_v7  ;;  %v4358_v14 = vmul.f32 -1.442695, %v1687_v7 }
 0xbc7   :  { %4862 = vpow2.f32 %v4356_v13 }
 0xbc8   :  { %4864 = vpow2.f32 %v4358_v14 }
 0xbcf   :  { %v4859_v9 = vpop.eup %4858 }
 0xbd0   :  { %1585 = vrot.lane.b32.xlu0 %v4859_v9, %s5061_s8 }
 0xbd3   :  { %v4861_v10 = vpop.eup %4860 }
 0xbd4   :  { %1701 = vrot.lane.b32.xlu1 %v4861_v10, %s5061_s8  ;;  %1580 = vrot.lane.b32.xlu0 %v1497_v11, %s5060_s3  ;;  %v4863_v15 = vpop.eup %4862 }
 0xbd5   :  { %v1575_v16 = vadd.f32 1.0, %v4863_v15  ;;  %v4865_v17 = vpop.eup %4864 }
 0xbd6   :  { %v1691_v18 = vadd.f32 1.0, %v4865_v17 }
 0xbd7   :  { %4866 = vrcp.f32 %v1575_v16 }
 0xbd8   :  { %1696 = vrot.lane.b32.xlu1 %v1613_v12, %s5060_s3  ;;  %4868 = vrcp.f32 %v1691_v18 }
 0xbe4   :  { %v4867_v19 = vpop.eup %4866 }
 0xbe5   :  { %v4869_v22 = vpop.eup %4868 }
 0xc42   :  { %v1586_v20 = vpop.permute.xlu0 %1585 }
 0xc43   :  { %v1588_v21 = vmul.f32 %v4867_v19, %v1586_v20 }
 0xc45   :  { %1590 = vrot.lane.b32.xlu0 %v1588_v21, %s5060_s3 }
 0xc46   :  { %v1702_v25 = vpop.permute.xlu1 %1701  ;;  %v1581_v29 = vpop.permute.xlu0 %1580 }
 0xc47   :  { %v1704_v26 = vmul.f32 %v4869_v22, %v1702_v25  ;;  %v1583_v30 = vmul.f32 %v4867_v19, %v1581_v29  ;;  %v5511_v29 = vld [vmem:[%s5921_s10 + $0x8] sm:$0xff] }
 0xc49   :  { %1706 = vrot.lane.b32.xlu1 %v1704_v26, %s5060_s3 }
 0xc4a   :  { %v1697_v31 = vpop.permute.xlu1 %1696 }
 0xc4b   :  { %v1699_v34 = vmul.f32 %v4869_v22, %v1697_v31  ;;  %v5520_v31 = vld [vmem:[%s5921_s10] sm:$0xff] }
 0xcb7   :  { %v1591_v32 = vpop.permute.xlu0 %1590 }
 0xcb8   :  { %v1593_v33 = vadd.f32 %v1591_v32, %v1583_v30  ;;  %v5528_v32 = vld [vmem:[%s5922_s11 + $0x8] sm:$0xff] }
 0xcba   :  { %4870 = vtanh.f32 %v1593_v33 }
 0xcbb   :  { %v1707_v35 = vpop.permute.xlu1 %1706 }
 0xcbc   :  { %v1709_v36 = vadd.f32 %v1707_v35, %v1699_v34  ;;  %v1959_v34 = vld [vmem:[#allocation6 + $0xc] sm:$0x3] }
 0xcbe   :  { %4872 = vtanh.f32 %v1709_v36 }
 0xcc7   :  { %v4871_v37 = vpop.eup %4870 }
 0xcc8   :  { %1596 = vrot.lane.b32.xlu0 %v4871_v37, %s5062_s9 }
 0xccb   :  { %v4873_v38 = vpop.eup %4872 }
 0xccc   :  { %1712 = vrot.lane.b32.xlu1 %v4873_v38, %s5062_s9  ;;  %v2075_v38 = vld [vmem:[#allocation7 + $0x12] sm:$0x3] }
 0xd3a   :  { %v1597_v39 = vpop.permute.xlu0 %1596 }
 0xd3b   :  { %v1599_v40 = vmul.f32 %v4867_v19, %v1597_v39 }
 0xd3d   :  { %1601 = vrot.lane.b32.xlu0 %v1599_v40, %s5063_s5 }
 0xd3e   :  { %v1713_v41 = vpop.permute.xlu1 %1712 }
 0xd3f   :  { %v1715_v42 = vmul.f32 %v4869_v22, %v1713_v41 }
 0xd41   :  { %1717 = vrot.lane.b32.xlu1 %v1715_v42, %s5063_s5  ;;  %1606 = vrot.lane.b32.xlu0 %v1593_v33, %s5064_s22  ;;  %v5537_v33 = vld [vmem:[%s5922_s11] sm:$0xff] }
 0xd45   :  { %1722 = vrot.lane.b32.xlu1 %v1709_v36, %s5064_s22 }
 0xdaf   :  { %v1602_v43 = vpop.permute.xlu0 %1601 }
 0xdb0   :  { %1604 = vst.msk [vmem:[#allocation2] sm:$0x3] %vm105_vm0, %v1602_v43  ;;  %1610 = vst.msk [vmem:[%s5925_s12 + $0x8] sm:$0x3] %vm105_vm0, %v1602_v43 }
 0xdb3   :  { %v1718_v44 = vpop.permute.xlu1 %1717  ;;  %v1607_v45 = vpop.permute.xlu0 %1606 }
 0xdb4   :  { %1720 = vst.msk [vmem:[#allocation4] sm:$0x3] %vm105_vm0, %v1718_v44  ;;  %1726 = vst.msk [vmem:[%s5926_s13 + $0x16] sm:$0x3] %vm105_vm0, %v1718_v44 }
 0xdb5   :  { %1609 = vst.msk [vmem:[#allocation3] sm:$0x3] %vm105_vm0, %v1607_v45 }
 0xdb7   :  { %v1723_v46 = vpop.permute.xlu1 %1722  ;;  %v1728_v47 = vld [vmem:[#allocation2] sm:$0x3] }
 0xdb8   :  { %1725 = vst.msk [vmem:[#allocation5] sm:$0x3] %vm105_vm0, %v1723_v46  ;;  %4638 = vmatmul.mubr.msk.f32.vlgmr.msra.gmra.mxu0 %vm118_vm1, %v1728_v47 }
 0xdb9   :  { %4648 = vmatpush3.msra.mxu0 %v5224_v23  ;;  %4651 = vmatprep.mubr.msk.f32.mxu0 %vm5059_vm2, %v5058_v3  ;;  %v1727_v23 = vld [vmem:[#allocation6 + $0xa] sm:$0x3] }
 0xdba   :  { %4649 = vmatprep.subr.mxu0 %v5058_v3 }
 0xdbb   :  { %v1844_v48 = vld [vmem:[#allocation4] sm:$0x3]  ;;  %4650 = vmatpush3.msra.mxu0 %v5245_v27  ;;  %v1843_v27 = vld [vmem:[#allocation7 + $0x14] sm:$0x3] }
 0xdbc   :  { %4645 = vmatmul.mubr.msk.f32.vlgmr.msra.gmra.mxu1 %vm118_vm1, %v1844_v48  ;;  %4661 = vmatprep.subr.mxu0 %v5058_v3  ;;  %v1729_v56 = vld [vmem:[#allocation3] sm:$0x3] }
 0xdbd   :  { %4655 = vmatpush3.msra.mxu1 %v5229_v24  ;;  %4658 = vmatprep.mubr.msk.f32.mxu1 %vm5059_vm2, %v5058_v3 }
 0xdbe   :  { %4656 = vmatprep.subr.mxu1 %v5058_v3 }
 0xdbf   :  { %4657 = vmatpush3.msra.mxu1 %v5253_v28  ;;  %v1845_v28 = vld [vmem:[#allocation5] sm:$0x3] }
 0xdc0   :  { %4668 = vmatprep.subr.mxu1 %v5058_v3 }
 0xe78   :  { %v1799_v49 = vpop.f32.mrf.mxu0 }
 0xe79   :  { %v1803_v50 = vadd.f32 %v1799_v49, %v1727_v23 }
 0xe7a   :  { %v4639_v51 = vpop.f32.mrf.mxu0 }
 0xe7b   :  { %4874 = vtanh.f32 %v1803_v50  ;;  %v4360_v57 = vmul.f32 -1.442695, %v1803_v50 }
 0xe7c   :  { %v1915_v52 = vpop.f32.mrf.mxu1 }
 0xe7d   :  { %v1919_v53 = vadd.f32 %v1915_v52, %v1843_v27 }
 0xe7e   :  { %v4646_v54 = vpop.f32.mrf.mxu1 }
 0xe7f   :  { %4876 = vtanh.f32 %v1919_v53  ;;  %v4362_v58 = vmul.f32 -1.442695, %v1919_v53 }
 0xe80   :  { %4878 = vpow2.f32 %v4360_v57 }
 0xe81   :  { %4880 = vpow2.f32 %v4362_v58 }
 0xe88   :  { %v4875_v24 = vpop.eup %4874 }
 0xe89   :  { %1817 = vrot.lane.b32.xlu0 %v4875_v24, %s5061_s8 }
 0xe8c   :  { %v4877_v55 = vpop.eup %4876 }
 0xe8d   :  { %1933 = vrot.lane.b32.xlu1 %v4877_v55, %s5061_s8  ;;  %1812 = vrot.lane.b32.xlu0 %v1729_v56, %s5060_s3  ;;  %v4879_v59 = vpop.eup %4878 }
 0xe8e   :  { %v1807_v60 = vadd.f32 1.0, %v4879_v59  ;;  %v4881_v61 = vpop.eup %4880 }
 0xe8f   :  { %v1923_v62 = vadd.f32 1.0, %v4881_v61 }
 0xe90   :  { %4882 = vrcp.f32 %v1807_v60 }
 0xe91   :  { %1928 = vrot.lane.b32.xlu1 %v1845_v28, %s5060_s3  ;;  %4884 = vrcp.f32 %v1923_v62 }
 0xe9d   :  { %v4883_v63 = vpop.eup %4882 }
 0xe9e   :  { %v4885_v2 = vpop.eup %4884 }
 0xefb   :  { %v1818_v0 = vpop.permute.xlu0 %1817 }
 0xefc   :  { %v1820_v1 = vmul.f32 %v4883_v63, %v1818_v0 }
 0xefe   :  { %1822 = vrot.lane.b32.xlu0 %v1820_v1, %s5060_s3 }
 0xeff   :  { %v1934_v4 = vpop.permute.xlu1 %1933  ;;  %v1813_v6 = vpop.permute.xlu0 %1812 }
 0xf00   :  { %v1936_v5 = vmul.f32 %v4885_v2, %v1934_v4  ;;  %v1815_v7 = vmul.f32 %v4883_v63, %v1813_v6 }
 0xf02   :  { %1938 = vrot.lane.b32.xlu1 %v1936_v5, %s5060_s3 }
 0xf03   :  { %v1929_v8 = vpop.permute.xlu1 %1928 }
 0xf04   :  { %v1931_v11 = vmul.f32 %v4885_v2, %v1929_v8 }
 0xf70   :  { %v1823_v9 = vpop.permute.xlu0 %1822 }
 0xf71   :  { %v1825_v10 = vadd.f32 %v1823_v9, %v1815_v7 }
 0xf73   :  { %4886 = vtanh.f32 %v1825_v10 }
 0xf74   :  { %v1939_v12 = vpop.permute.xlu1 %1938 }
 0xf75   :  { %v1941_v13 = vadd.f32 %v1939_v12, %v1931_v11  ;;  %v2191_v11 = vld [vmem:[#allocation6 + $0xe] sm:$0x3] }
 0xf77   :  { %4888 = vtanh.f32 %v1941_v13 }
 0xf80   :  { %v4887_v14 = vpop.eup %4886 }
 0xf81   :  { %1828 = vrot.lane.b32.xlu0 %v4887_v14, %s5062_s9 }
 0xf84   :  { %v4889_v15 = vpop.eup %4888 }
 0xf85   :  { %1944 = vrot.lane.b32.xlu1 %v4889_v15, %s5062_s9  ;;  %v2307_v15 = vld [vmem:[#allocation7 + $0x10] sm:$0x3] }
 0xff3   :  { %v1829_v16 = vpop.permute.xlu0 %1828 }
 0xff4   :  { %v1831_v17 = vmul.f32 %v4883_v63, %v1829_v16 }
 0xff6   :  { %1833 = vrot.lane.b32.xlu0 %v1831_v17, %s5063_s5 }
 0xff7   :  { %v1945_v18 = vpop.permute.xlu1 %1944 }
 0xff8   :  { %v1947_v19 = vmul.f32 %v4885_v2, %v1945_v18 }
 0xffa   :  { %1949 = vrot.lane.b32.xlu1 %v1947_v19, %s5063_s5  ;;  %1838 = vrot.lane.b32.xlu0 %v1825_v10, %s5064_s22 }
 0xffe   :  { %1954 = vrot.lane.b32.xlu1 %v1941_v13, %s5064_s22 }
0x1068   :  { %v1834_v20 = vpop.permute.xlu0 %1833 }
0x1069   :  { %1836 = vst.msk [vmem:[#allocation2] sm:$0x3] %vm105_vm0, %v1834_v20  ;;  %1842 = vst.msk [vmem:[%s5925_s12 + $0xa] sm:$0x3] %vm105_vm0, %v1834_v20 }
0x106c   :  { %v1950_v21 = vpop.permute.xlu1 %1949  ;;  %v1839_v22 = vpop.permute.xlu0 %1838 }
0x106d   :  { %1952 = vst.msk [vmem:[#allocation4] sm:$0x3] %vm105_vm0, %v1950_v21  ;;  %1958 = vst.msk [vmem:[%s5926_s13 + $0x14] sm:$0x3] %vm105_vm0, %v1950_v21 }
0x106e   :  { %1841 = vst.msk [vmem:[#allocation3] sm:$0x3] %vm105_vm0, %v1839_v22 }
0x1070   :  { %v1955_v25 = vpop.permute.xlu1 %1954  ;;  %v1960_v26 = vld [vmem:[#allocation2] sm:$0x3] }
0x1071   :  { %1957 = vst.msk [vmem:[#allocation5] sm:$0x3] %vm105_vm0, %v1955_v25  ;;  %4652 = vmatmul.mubr.msk.f32.vlgmr.msra.gmra.mxu0 %vm118_vm1, %v1960_v26 }
0x1072   :  { %4662 = vmatpush3.msra.mxu0 %v5511_v29  ;;  %4665 = vmatprep.mubr.msk.f32.mxu0 %vm5059_vm2, %v5058_v3 }
0x1073   :  { %4663 = vmatprep.subr.mxu0 %v5058_v3 }
0x1074   :  { %v2076_v30 = vld [vmem:[#allocation4] sm:$0x3]  ;;  %4664 = vmatpush3.msra.mxu0 %v5520_v31 }
0x1075   :  { %4659 = vmatmul.mubr.msk.f32.vlgmr.msra.gmra.mxu1 %vm118_vm1, %v2076_v30  ;;  %4675 = vmatprep.subr.mxu0 %v5058_v3  ;;  %v1961_v44 = vld [vmem:[#allocation3] sm:$0x3] }
0x1076   :  { %4669 = vmatpush3.msra.mxu1 %v5528_v32  ;;  %4672 = vmatprep.mubr.msk.f32.mxu1 %vm5059_vm2, %v5058_v3 }
0x1077   :  { %4670 = vmatprep.subr.mxu1 %v5058_v3 }
0x1078   :  { %4671 = vmatpush3.msra.mxu1 %v5537_v33  ;;  %v2077_v45 = vld [vmem:[#allocation5] sm:$0x3] }
0x1079   :  { %4682 = vmatprep.subr.mxu1 %v5058_v3 }
0x1131   :  { %v2031_v35 = vpop.f32.mrf.mxu0 }
0x1132   :  { %v2035_v36 = vadd.f32 %v2031_v35, %v1959_v34 }
0x1133   :  { %v4653_v37 = vpop.f32.mrf.mxu0 }
0x1134   :  { %4890 = vtanh.f32 %v2035_v36  ;;  %v4364_v46 = vmul.f32 -1.442695, %v2035_v36 }
0x1135   :  { %v2147_v39 = vpop.f32.mrf.mxu1 }
0x1136   :  { %v2151_v40 = vadd.f32 %v2147_v39, %v2075_v38 }
0x1137   :  { %v4660_v41 = vpop.f32.mrf.mxu1 }
0x1138   :  { %4892 = vtanh.f32 %v2151_v40  ;;  %v4366_v47 = vmul.f32 -1.442695, %v2151_v40 }
0x1139   :  { %4894 = vpow2.f32 %v4364_v46 }
0x113a   :  { %4896 = vpow2.f32 %v4366_v47 }
0x1141   :  { %v4891_v42 = vpop.eup %4890 }
0x1142   :  { %2049 = vrot.lane.b32.xlu0 %v4891_v42, %s5061_s8 }
0x1145   :  { %v4893_v43 = vpop.eup %4892 }
0x1146   :  { %2165 = vrot.lane.b32.xlu1 %v4893_v43, %s5061_s8  ;;  %2044 = vrot.lane.b32.xlu0 %v1961_v44, %s5060_s3  ;;  %v4895_v48 = vpop.eup %4894 }
0x1147   :  { %v2039_v23 = vadd.f32 1.0, %v4895_v48  ;;  %v4897_v49 = vpop.eup %4896 }
0x1148   :  { %v2155_v50 = vadd.f32 1.0, %v4897_v49 }
0x1149   :  { %4898 = vrcp.f32 %v2039_v23 }
0x114a   :  { %2160 = vrot.lane.b32.xlu1 %v2077_v45, %s5060_s3  ;;  %4900 = vrcp.f32 %v2155_v50 }
0x1156   :  { %v4899_v51 = vpop.eup %4898 }
0x1157   :  { %v4901_v53 = vpop.eup %4900 }
0x11b4   :  { %v2050_v27 = vpop.permute.xlu0 %2049 }
0x11b5   :  { %v2052_v52 = vmul.f32 %v4899_v51, %v2050_v27 }
0x11b7   :  { %2054 = vrot.lane.b32.xlu0 %v2052_v52, %s5060_s3 }
0x11b8   :  { %v2166_v54 = vpop.permute.xlu1 %2165  ;;  %v2045_v55 = vpop.permute.xlu0 %2044 }
0x11b9   :  { %v2168_v24 = vmul.f32 %v4901_v53, %v2166_v54  ;;  %v2047_v56 = vmul.f32 %v4899_v51, %v2045_v55 }
0x11bb   :  { %2170 = vrot.lane.b32.xlu1 %v2168_v24, %s5060_s3 }
0x11bc   :  { %v2161_v28 = vpop.permute.xlu1 %2160 }
0x11bd   :  { %v2163_v59 = vmul.f32 %v4901_v53, %v2161_v28 }
0x1229   :  { %v2055_v57 = vpop.permute.xlu0 %2054 }
0x122a   :  { %v2057_v58 = vadd.f32 %v2055_v57, %v2047_v56 }
0x122c   :  { %4902 = vtanh.f32 %v2057_v58 }
0x122d   :  { %v2171_v60 = vpop.permute.xlu1 %2170 }
0x122e   :  { %v2173_v61 = vadd.f32 %v2171_v60, %v2163_v59  ;;  %v2423_v59 = vld [vmem:[#allocation6 + $0x10] sm:$0x3] }
0x1230   :  { %4904 = vtanh.f32 %v2173_v61 }
0x1239   :  { %v4903_v62 = vpop.eup %4902 }
0x123a   :  { %2060 = vrot.lane.b32.xlu0 %v4903_v62, %s5062_s9 }
0x123d   :  { %v4905_v63 = vpop.eup %4904 }
0x123e   :  { %2176 = vrot.lane.b32.xlu1 %v4905_v63, %s5062_s9  ;;  %v2539_v63 = vld [vmem:[#allocation7 + $0xe] sm:$0x3] }
0x12ac   :  { %v2061_v0 = vpop.permute.xlu0 %2060 }
0x12ad   :  { %v2063_v1 = vmul.f32 %v4899_v51, %v2061_v0 }
0x12af   :  { %2065 = vrot.lane.b32.xlu0 %v2063_v1, %s5063_s5 }
0x12b0   :  { %v2177_v2 = vpop.permute.xlu1 %2176 }
0x12b1   :  { %v2179_v4 = vmul.f32 %v4901_v53, %v2177_v2 }
0x12b3   :  { %2181 = vrot.lane.b32.xlu1 %v2179_v4, %s5063_s5  ;;  %2070 = vrot.lane.b32.xlu0 %v2057_v58, %s5064_s22 }
0x12b7   :  { %2186 = vrot.lane.b32.xlu1 %v2173_v61, %s5064_s22 }
0x1321   :  { %v2066_v5 = vpop.permute.xlu0 %2065 }
0x1322   :  { %2068 = vst.msk [vmem:[#allocation2] sm:$0x3] %vm105_vm0, %v2066_v5  ;;  %2074 = vst.msk [vmem:[%s5925_s12 + $0xc] sm:$0x3] %vm105_vm0, %v2066_v5 }
0x1325   :  { %v2182_v6 = vpop.permute.xlu1 %2181  ;;  %v2071_v7 = vpop.permute.xlu0 %2070 }
0x1326   :  { %2184 = vst.msk [vmem:[#allocation4] sm:$0x3] %vm105_vm0, %v2182_v6  ;;  %2190 = vst.msk [vmem:[%s5926_s13 + $0x12] sm:$0x3] %vm105_vm0, %v2182_v6 }
0x1327   :  { %2073 = vst.msk [vmem:[#allocation3] sm:$0x3] %vm105_vm0, %v2071_v7 }
0x1329   :  { %v2187_v8 = vpop.permute.xlu1 %2186  ;;  %v2192_v9 = vld [vmem:[#allocation2] sm:$0x3] }
0x132a   :  { %2189 = vst.msk [vmem:[#allocation5] sm:$0x3] %vm105_vm0, %v2187_v8  ;;  %4666 = vmatmul.mubr.msk.f32.vlgmr.msra.gmra.mxu0 %vm118_vm1, %v2192_v9 }
0x132b   :  { %4676 = vmatpush3.msra.mxu0 %v5511_v29  ;;  %4679 = vmatprep.mubr.msk.f32.mxu0 %vm5059_vm2, %v5058_v3 }
0x132c   :  { %4677 = vmatprep.subr.mxu0 %v5058_v3 }
0x132d   :  { %v2308_v10 = vld [vmem:[#allocation4] sm:$0x3]  ;;  %4678 = vmatpush3.msra.mxu0 %v5520_v31 }
0x132e   :  { %4673 = vmatmul.mubr.msk.f32.vlgmr.msra.gmra.mxu1 %vm118_vm1, %v2308_v10  ;;  %4689 = vmatprep.subr.mxu0 %v5058_v3  ;;  %v2193_v21 = vld [vmem:[#allocation3] sm:$0x3] }
0x132f   :  { %4683 = vmatpush3.msra.mxu1 %v5528_v32  ;;  %4686 = vmatprep.mubr.msk.f32.mxu1 %vm5059_vm2, %v5058_v3 }
0x1330   :  { %4684 = vmatprep.subr.mxu1 %v5058_v3 }
0x1331   :  { %4685 = vmatpush3.msra.mxu1 %v5537_v33  ;;  %v2309_v22 = vld [vmem:[#allocation5] sm:$0x3] }
0x1332   :  { %4696 = vmatprep.subr.mxu1 %v5058_v3 }
0x13ea   :  { %v2263_v12 = vpop.f32.mrf.mxu0 }
0x13eb   :  { %v2267_v13 = vadd.f32 %v2263_v12, %v2191_v11 }
0x13ec   :  { %v4667_v14 = vpop.f32.mrf.mxu0 }
0x13ed   :  { %4906 = vtanh.f32 %v2267_v13  ;;  %v4368_v25 = vmul.f32 -1.442695, %v2267_v13 }
0x13ee   :  { %v2379_v16 = vpop.f32.mrf.mxu1 }
0x13ef   :  { %v2383_v17 = vadd.f32 %v2379_v16, %v2307_v15 }
0x13f0   :  { %v4674_v18 = vpop.f32.mrf.mxu1 }
0x13f1   :  { %4908 = vtanh.f32 %v2383_v17  ;;  %v4370_v26 = vmul.f32 -1.442695, %v2383_v17 }
0x13f2   :  { %4910 = vpow2.f32 %v4368_v25 }
0x13f3   :  { %4912 = vpow2.f32 %v4370_v26 }
0x13fa   :  { %v4907_v19 = vpop.eup %4906 }
0x13fb   :  { %2281 = vrot.lane.b32.xlu0 %v4907_v19, %s5061_s8 }
0x13fe   :  { %v4909_v20 = vpop.eup %4908 }
0x13ff   :  { %2397 = vrot.lane.b32.xlu1 %v4909_v20, %s5061_s8  ;;  %2276 = vrot.lane.b32.xlu0 %v2193_v21, %s5060_s3  ;;  %v4911_v30 = vpop.eup %4910 }
0x1400   :  { %v2271_v34 = vadd.f32 1.0, %v4911_v30  ;;  %v4913_v35 = vpop.eup %4912 }
0x1401   :  { %v2387_v36 = vadd.f32 1.0, %v4913_v35 }
0x1402   :  { %4914 = vrcp.f32 %v2271_v34 }
0x1403   :  { %2392 = vrot.lane.b32.xlu1 %v2309_v22, %s5060_s3  ;;  %4916 = vrcp.f32 %v2387_v36 }
0x140f   :  { %v4915_v37 = vpop.eup %4914 }
0x1410   :  { %v4917_v40 = vpop.eup %4916 }
0x146d   :  { %v2282_v38 = vpop.permute.xlu0 %2281 }
0x146e   :  { %v2284_v39 = vmul.f32 %v4915_v37, %v2282_v38 }
0x1470   :  { %2286 = vrot.lane.b32.xlu0 %v2284_v39, %s5060_s3 }
0x1471   :  { %v2398_v41 = vpop.permute.xlu1 %2397  ;;  %v2277_v43 = vpop.permute.xlu0 %2276 }
0x1472   :  { %v2400_v42 = vmul.f32 %v4917_v40, %v2398_v41  ;;  %v2279_v44 = vmul.f32 %v4915_v37, %v2277_v43 }
0x1474   :  { %2402 = vrot.lane.b32.xlu1 %v2400_v42, %s5060_s3 }
0x1475   :  { %v2393_v45 = vpop.permute.xlu1 %2392 }
0x1476   :  { %v2395_v48 = vmul.f32 %v4917_v40, %v2393_v45 }
0x14e2   :  { %v2287_v46 = vpop.permute.xlu0 %2286 }
0x14e3   :  { %v2289_v47 = vadd.f32 %v2287_v46, %v2279_v44 }
0x14e5   :  { %4918 = vtanh.f32 %v2289_v47 }
0x14e6   :  { %v2403_v23 = vpop.permute.xlu1 %2402 }
0x14e7   :  { %v2405_v49 = vadd.f32 %v2403_v23, %v2395_v48  ;;  %v2655_v48 = vld [vmem:[#allocation6 + $0x12] sm:$0x3] }
0x14e9   :  { %4920 = vtanh.f32 %v2405_v49 }
0x14f2   :  { %v4919_v50 = vpop.eup %4918 }
0x14f3   :  { %2292 = vrot.lane.b32.xlu0 %v4919_v50, %s5062_s9 }
0x14f6   :  { %v4921_v51 = vpop.eup %4920 }
0x14f7   :  { %2408 = vrot.lane.b32.xlu1 %v4921_v51, %s5062_s9  ;;  %v2771_v51 = vld [vmem:[#allocation7 + $0xc] sm:$0x3] }
0x1565   :  { %v2293_v27 = vpop.permute.xlu0 %2292 }
0x1566   :  { %v2295_v52 = vmul.f32 %v4915_v37, %v2293_v27 }
0x1568   :  { %2297 = vrot.lane.b32.xlu0 %v2295_v52, %s5063_s5 }
0x1569   :  { %v2409_v53 = vpop.permute.xlu1 %2408 }
0x156a   :  { %v2411_v54 = vmul.f32 %v4917_v40, %v2409_v53 }
0x156c   :  { %2413 = vrot.lane.b32.xlu1 %v2411_v54, %s5063_s5  ;;  %2302 = vrot.lane.b32.xlu0 %v2289_v47, %s5064_s22 }
0x1570   :  { %2418 = vrot.lane.b32.xlu1 %v2405_v49, %s5064_s22 }
0x15da   :  { %v2298_v24 = vpop.permute.xlu0 %2297 }
0x15db   :  { %2300 = vst.msk [vmem:[#allocation2] sm:$0x3] %vm105_vm0, %v2298_v24  ;;  %2306 = vst.msk [vmem:[%s5925_s12 + $0xe] sm:$0x3] %vm105_vm0, %v2298_v24 }
0x15de   :  { %v2414_v55 = vpop.permute.xlu1 %2413  ;;  %v2303_v56 = vpop.permute.xlu0 %2302 }
0x15df   :  { %2416 = vst.msk [vmem:[#allocation4] sm:$0x3] %vm105_vm0, %v2414_v55  ;;  %2422 = vst.msk [vmem:[%s5926_s13 + $0x10] sm:$0x3] %vm105_vm0, %v2414_v55 }
0x15e0   :  { %2305 = vst.msk [vmem:[#allocation3] sm:$0x3] %vm105_vm0, %v2303_v56 }
0x15e2   :  { %v2419_v28 = vpop.permute.xlu1 %2418  ;;  %v2424_v57 = vld [vmem:[#allocation2] sm:$0x3] }
0x15e3   :  { %2421 = vst.msk [vmem:[#allocation5] sm:$0x3] %vm105_vm0, %v2419_v28  ;;  %4680 = vmatmul.mubr.msk.f32.vlgmr.msra.gmra.mxu0 %vm118_vm1, %v2424_v57 }
0x15e4   :  { %4690 = vmatpush3.msra.mxu0 %v5511_v29  ;;  %4693 = vmatprep.mubr.msk.f32.mxu0 %vm5059_vm2, %v5058_v3 }
0x15e5   :  { %4691 = vmatprep.subr.mxu0 %v5058_v3 }
0x15e6   :  { %v2540_v58 = vld [vmem:[#allocation4] sm:$0x3]  ;;  %4692 = vmatpush3.msra.mxu0 %v5520_v31 }
0x15e7   :  { %4687 = vmatmul.mubr.msk.f32.vlgmr.msra.gmra.mxu1 %vm118_vm1, %v2540_v58  ;;  %4703 = vmatprep.subr.mxu0 %v5058_v3  ;;  %v2425_v6 = vld [vmem:[#allocation3] sm:$0x3] }
0x15e8   :  { %4697 = vmatpush3.msra.mxu1 %v5528_v32  ;;  %4700 = vmatprep.mubr.msk.f32.mxu1 %vm5059_vm2, %v5058_v3 }
0x15e9   :  { %4698 = vmatprep.subr.mxu1 %v5058_v3 }
0x15ea   :  { %4699 = vmatpush3.msra.mxu1 %v5537_v33  ;;  %v2541_v7 = vld [vmem:[#allocation5] sm:$0x3] }
0x15eb   :  { %4710 = vmatprep.subr.mxu1 %v5058_v3 }
0x16a3   :  { %v2495_v60 = vpop.f32.mrf.mxu0 }
0x16a4   :  { %v2499_v61 = vadd.f32 %v2495_v60, %v2423_v59 }
0x16a5   :  { %v4681_v62 = vpop.f32.mrf.mxu0 }
0x16a6   :  { %4922 = vtanh.f32 %v2499_v61  ;;  %v4372_v8 = vmul.f32 -1.442695, %v2499_v61 }
0x16a7   :  { %v2611_v0 = vpop.f32.mrf.mxu1 }
0x16a8   :  { %v2615_v1 = vadd.f32 %v2611_v0, %v2539_v63 }
0x16a9   :  { %v4688_v2 = vpop.f32.mrf.mxu1 }
0x16aa   :  { %4924 = vtanh.f32 %v2615_v1  ;;  %v4374_v9 = vmul.f32 -1.442695, %v2615_v1 }
0x16ab   :  { %4926 = vpow2.f32 %v4372_v8 }
0x16ac   :  { %4928 = vpow2.f32 %v4374_v9 }
0x16b3   :  { %v4923_v4 = vpop.eup %4922 }
0x16b4   :  { %2513 = vrot.lane.b32.xlu0 %v4923_v4, %s5061_s8 }
0x16b7   :  { %v4925_v5 = vpop.eup %4924 }
0x16b8   :  { %2629 = vrot.lane.b32.xlu1 %v4925_v5, %s5061_s8  ;;  %2508 = vrot.lane.b32.xlu0 %v2425_v6, %s5060_s3  ;;  %v4927_v10 = vpop.eup %4926 }
0x16b9   :  { %v2503_v11 = vadd.f32 1.0, %v4927_v10  ;;  %v4929_v12 = vpop.eup %4928 }
0x16ba   :  { %v2619_v13 = vadd.f32 1.0, %v4929_v12 }
0x16bb   :  { %4930 = vrcp.f32 %v2503_v11 }
0x16bc   :  { %2624 = vrot.lane.b32.xlu1 %v2541_v7, %s5060_s3  ;;  %4932 = vrcp.f32 %v2619_v13 }
0x16c8   :  { %v4931_v14 = vpop.eup %4930 }
0x16c9   :  { %v4933_v17 = vpop.eup %4932 }
0x1726   :  { %v2514_v15 = vpop.permute.xlu0 %2513 }
0x1727   :  { %v2516_v16 = vmul.f32 %v4931_v14, %v2514_v15 }
0x1729   :  { %2518 = vrot.lane.b32.xlu0 %v2516_v16, %s5060_s3 }
0x172a   :  { %v2630_v18 = vpop.permute.xlu1 %2629  ;;  %v2509_v20 = vpop.permute.xlu0 %2508 }
0x172b   :  { %v2632_v19 = vmul.f32 %v4933_v17, %v2630_v18  ;;  %v2511_v21 = vmul.f32 %v4931_v14, %v2509_v20 }
0x172d   :  { %2634 = vrot.lane.b32.xlu1 %v2632_v19, %s5060_s3 }
0x172e   :  { %v2625_v22 = vpop.permute.xlu1 %2624 }
0x172f   :  { %v2627_v30 = vmul.f32 %v4933_v17, %v2625_v22 }
0x179b   :  { %v2519_v25 = vpop.permute.xlu0 %2518 }
0x179c   :  { %v2521_v26 = vadd.f32 %v2519_v25, %v2511_v21 }
0x179e   :  { %4934 = vtanh.f32 %v2521_v26 }
0x179f   :  { %v2635_v34 = vpop.permute.xlu1 %2634 }
0x17a0   :  { %v2637_v35 = vadd.f32 %v2635_v34, %v2627_v30  ;;  %v2887_v30 = vld [vmem:[#allocation6 + $0x14] sm:$0x3] }
0x17a2   :  { %4936 = vtanh.f32 %v2637_v35 }
0x17ab   :  { %v4935_v36 = vpop.eup %4934 }
0x17ac   :  { %2524 = vrot.lane.b32.xlu0 %v4935_v36, %s5062_s9 }
0x17af   :  { %v4937_v37 = vpop.eup %4936 }
0x17b0   :  { %2640 = vrot.lane.b32.xlu1 %v4937_v37, %s5062_s9  ;;  %v3003_v37 = vld [vmem:[#allocation7 + $0xa] sm:$0x3] }
0x181e   :  { %v2525_v38 = vpop.permute.xlu0 %2524 }
0x181f   :  { %v2527_v39 = vmul.f32 %v4931_v14, %v2525_v38 }
0x1821   :  { %2529 = vrot.lane.b32.xlu0 %v2527_v39, %s5063_s5 }
0x1822   :  { %v2641_v40 = vpop.permute.xlu1 %2640 }
0x1823   :  { %v2643_v41 = vmul.f32 %v4933_v17, %v2641_v40 }
0x1825   :  { %2645 = vrot.lane.b32.xlu1 %v2643_v41, %s5063_s5  ;;  %2534 = vrot.lane.b32.xlu0 %v2521_v26, %s5064_s22 }
0x1829   :  { %2650 = vrot.lane.b32.xlu1 %v2637_v35, %s5064_s22 }
0x1893   :  { %v2530_v42 = vpop.permute.xlu0 %2529 }
0x1894   :  { %2532 = vst.msk [vmem:[#allocation2] sm:$0x3] %vm105_vm0, %v2530_v42  ;;  %2538 = vst.msk [vmem:[%s5925_s12 + $0x10] sm:$0x3] %vm105_vm0, %v2530_v42 }
0x1897   :  { %v2646_v43 = vpop.permute.xlu1 %2645  ;;  %v2535_v44 = vpop.permute.xlu0 %2534 }
0x1898   :  { %2648 = vst.msk [vmem:[#allocation4] sm:$0x3] %vm105_vm0, %v2646_v43  ;;  %2654 = vst.msk [vmem:[%s5926_s13 + $0xe] sm:$0x3] %vm105_vm0, %v2646_v43 }
0x1899   :  { %2537 = vst.msk [vmem:[#allocation3] sm:$0x3] %vm105_vm0, %v2535_v44 }
0x189b   :  { %v2651_v45 = vpop.permute.xlu1 %2650  ;;  %v2656_v46 = vld [vmem:[#allocation2] sm:$0x3] }
0x189c   :  { %2653 = vst.msk [vmem:[#allocation5] sm:$0x3] %vm105_vm0, %v2651_v45  ;;  %4694 = vmatmul.mubr.msk.f32.vlgmr.msra.gmra.mxu0 %vm118_vm1, %v2656_v46 }
0x189d   :  { %4704 = vmatpush3.msra.mxu0 %v5511_v29  ;;  %4707 = vmatprep.mubr.msk.f32.mxu0 %vm5059_vm2, %v5058_v3 }
0x189e   :  { %4705 = vmatprep.subr.mxu0 %v5058_v3 }
0x189f   :  { %v2772_v47 = vld [vmem:[#allocation4] sm:$0x3]  ;;  %4706 = vmatpush3.msra.mxu0 %v5520_v31 }
0x18a0   :  { %4701 = vmatmul.mubr.msk.f32.vlgmr.msra.gmra.mxu1 %vm118_vm1, %v2772_v47  ;;  %4717 = vmatprep.subr.mxu0 %v5058_v3  ;;  %v2657_v55 = vld [vmem:[#allocation3] sm:$0x3] }
0x18a1   :  { %4711 = vmatpush3.msra.mxu1 %v5528_v32  ;;  %4714 = vmatprep.mubr.msk.f32.mxu1 %vm5059_vm2, %v5058_v3 }
0x18a2   :  { %4712 = vmatprep.subr.mxu1 %v5058_v3 }
0x18a3   :  { %4713 = vmatpush3.msra.mxu1 %v5537_v33  ;;  %v2773_v56 = vld [vmem:[#allocation5] sm:$0x3] }
0x18a4   :  { %4724 = vmatprep.subr.mxu1 %v5058_v3 }
0x195c   :  { %v2727_v23 = vpop.f32.mrf.mxu0 }
0x195d   :  { %v2731_v49 = vadd.f32 %v2727_v23, %v2655_v48 }
0x195e   :  { %v4695_v50 = vpop.f32.mrf.mxu0 }
0x195f   :  { %4938 = vtanh.f32 %v2731_v49  ;;  %v4376_v28 = vmul.f32 -1.442695, %v2731_v49 }
0x1960   :  { %v2843_v27 = vpop.f32.mrf.mxu1 }
0x1961   :  { %v2847_v52 = vadd.f32 %v2843_v27, %v2771_v51 }
0x1962   :  { %v4702_v53 = vpop.f32.mrf.mxu1 }
0x1963   :  { %4940 = vtanh.f32 %v2847_v52  ;;  %v4378_v57 = vmul.f32 -1.442695, %v2847_v52 }
0x1964   :  { %4942 = vpow2.f32 %v4376_v28 }
0x1965   :  { %4944 = vpow2.f32 %v4378_v57 }
0x196c   :  { %v4939_v54 = vpop.eup %4938 }
0x196d   :  { %2745 = vrot.lane.b32.xlu0 %v4939_v54, %s5061_s8 }
0x1970   :  { %v4941_v24 = vpop.eup %4940 }
0x1971   :  { %2861 = vrot.lane.b32.xlu1 %v4941_v24, %s5061_s8  ;;  %2740 = vrot.lane.b32.xlu0 %v2657_v55, %s5060_s3  ;;  %v4943_v58 = vpop.eup %4942 }
0x1972   :  { %v2735_v59 = vadd.f32 1.0, %v4943_v58  ;;  %v4945_v60 = vpop.eup %4944 }
0x1973   :  { %v2851_v61 = vadd.f32 1.0, %v4945_v60 }
0x1974   :  { %4946 = vrcp.f32 %v2735_v59 }
0x1975   :  { %2856 = vrot.lane.b32.xlu1 %v2773_v56, %s5060_s3  ;;  %4948 = vrcp.f32 %v2851_v61 }
0x1981   :  { %v4947_v62 = vpop.eup %4946 }
0x1982   :  { %v4949_v1 = vpop.eup %4948 }
0x19df   :  { %v2746_v63 = vpop.permute.xlu0 %2745 }
0x19e0   :  { %v2748_v0 = vmul.f32 %v4947_v62, %v2746_v63 }
0x19e2   :  { %2750 = vrot.lane.b32.xlu0 %v2748_v0, %s5060_s3 }
0x19e3   :  { %v2862_v2 = vpop.permute.xlu1 %2861  ;;  %v2741_v5 = vpop.permute.xlu0 %2740 }
0x19e4   :  { %v2864_v4 = vmul.f32 %v4949_v1, %v2862_v2  ;;  %v2743_v6 = vmul.f32 %v4947_v62, %v2741_v5 }
0x19e6   :  { %2866 = vrot.lane.b32.xlu1 %v2864_v4, %s5060_s3 }
0x19e7   :  { %v2857_v7 = vpop.permute.xlu1 %2856 }
0x19e8   :  { %v2859_v10 = vmul.f32 %v4949_v1, %v2857_v7 }
0x1a54   :  { %v2751_v8 = vpop.permute.xlu0 %2750 }
0x1a55   :  { %v2753_v9 = vadd.f32 %v2751_v8, %v2743_v6 }
0x1a57   :  { %4950 = vtanh.f32 %v2753_v9 }
0x1a58   :  { %v2867_v11 = vpop.permute.xlu1 %2866 }
0x1a59   :  { %v2869_v12 = vadd.f32 %v2867_v11, %v2859_v10  ;;  %v3119_v10 = vld [vmem:[#allocation6 + $0x16] sm:$0x3] }
0x1a5b   :  { %4952 = vtanh.f32 %v2869_v12 }
0x1a64   :  { %v4951_v13 = vpop.eup %4950 }
0x1a65   :  { %2756 = vrot.lane.b32.xlu0 %v4951_v13, %s5062_s9 }
0x1a68   :  { %v4953_v14 = vpop.eup %4952 }
0x1a69   :  { %2872 = vrot.lane.b32.xlu1 %v4953_v14, %s5062_s9  ;;  %v3235_v14 = vld [vmem:[#allocation7 + $0x8] sm:$0x3] }
0x1ad7   :  { %v2757_v15 = vpop.permute.xlu0 %2756 }
0x1ad8   :  { %v2759_v16 = vmul.f32 %v4947_v62, %v2757_v15 }
0x1ada   :  { %2761 = vrot.lane.b32.xlu0 %v2759_v16, %s5063_s5 }
0x1adb   :  { %v2873_v17 = vpop.permute.xlu1 %2872 }
0x1adc   :  { %v2875_v18 = vmul.f32 %v4949_v1, %v2873_v17 }
0x1ade   :  { %2877 = vrot.lane.b32.xlu1 %v2875_v18, %s5063_s5  ;;  %2766 = vrot.lane.b32.xlu0 %v2753_v9, %s5064_s22 }
0x1ae2   :  { %2882 = vrot.lane.b32.xlu1 %v2869_v12, %s5064_s22 }
0x1b4c   :  { %v2762_v19 = vpop.permute.xlu0 %2761 }
0x1b4d   :  { %2764 = vst.msk [vmem:[#allocation2] sm:$0x3] %vm105_vm0, %v2762_v19  ;;  %2770 = vst.msk [vmem:[%s5925_s12 + $0x12] sm:$0x3] %vm105_vm0, %v2762_v19 }
0x1b50   :  { %v2878_v20 = vpop.permute.xlu1 %2877  ;;  %v2767_v21 = vpop.permute.xlu0 %2766 }
0x1b51   :  { %2880 = vst.msk [vmem:[#allocation4] sm:$0x3] %vm105_vm0, %v2878_v20  ;;  %2886 = vst.msk [vmem:[%s5926_s13 + $0xc] sm:$0x3] %vm105_vm0, %v2878_v20 }
0x1b52   :  { %2769 = vst.msk [vmem:[#allocation3] sm:$0x3] %vm105_vm0, %v2767_v21 }
0x1b54   :  { %v2883_v22 = vpop.permute.xlu1 %2882  ;;  %v2888_v25 = vld [vmem:[#allocation2] sm:$0x3] }
0x1b55   :  { %2885 = vst.msk [vmem:[#allocation5] sm:$0x3] %vm105_vm0, %v2883_v22  ;;  %4708 = vmatmul.mubr.msk.f32.vlgmr.msra.gmra.mxu0 %vm118_vm1, %v2888_v25 }
0x1b56   :  { %4718 = vmatpush3.msra.mxu0 %v5511_v29  ;;  %4721 = vmatprep.mubr.msk.f32.mxu0 %vm5059_vm2, %v5058_v3 }
0x1b57   :  { %4719 = vmatprep.subr.mxu0 %v5058_v3 }
0x1b58   :  { %v3004_v26 = vld [vmem:[#allocation4] sm:$0x3]  ;;  %4720 = vmatpush3.msra.mxu0 %v5520_v31 }
0x1b59   :  { %4715 = vmatmul.mubr.msk.f32.vlgmr.msra.gmra.mxu1 %vm118_vm1, %v3004_v26  ;;  %4731 = vmatprep.subr.mxu0 %v5058_v3  ;;  %v2889_v43 = vld [vmem:[#allocation3] sm:$0x3] }
0x1b5a   :  { %4725 = vmatpush3.msra.mxu1 %v5528_v32  ;;  %4728 = vmatprep.mubr.msk.f32.mxu1 %vm5059_vm2, %v5058_v3 }
0x1b5b   :  { %4726 = vmatprep.subr.mxu1 %v5058_v3 }
0x1b5c   :  { %4727 = vmatpush3.msra.mxu1 %v5537_v33  ;;  %v3005_v44 = vld [vmem:[#allocation5] sm:$0x3] }
0x1b5d   :  { %4738 = vmatprep.subr.mxu1 %v5058_v3 }
0x1c15   :  { %v2959_v34 = vpop.f32.mrf.mxu0 }
0x1c16   :  { %v2963_v35 = vadd.f32 %v2959_v34, %v2887_v30 }
0x1c17   :  { %v4709_v36 = vpop.f32.mrf.mxu0 }
0x1c18   :  { %4954 = vtanh.f32 %v2963_v35  ;;  %v4380_v45 = vmul.f32 -1.442695, %v2963_v35 }
0x1c19   :  { %v3075_v38 = vpop.f32.mrf.mxu1 }
0x1c1a   :  { %v3079_v39 = vadd.f32 %v3075_v38, %v3003_v37 }
0x1c1b   :  { %v4716_v40 = vpop.f32.mrf.mxu1 }
0x1c1c   :  { %4956 = vtanh.f32 %v3079_v39  ;;  %v4382_v46 = vmul.f32 -1.442695, %v3079_v39 }
0x1c1d   :  { %4958 = vpow2.f32 %v4380_v45 }
0x1c1e   :  { %4960 = vpow2.f32 %v4382_v46 }
0x1c25   :  { %v4955_v41 = vpop.eup %4954 }
0x1c26   :  { %2977 = vrot.lane.b32.xlu0 %v4955_v41, %s5061_s8 }
0x1c29   :  { %v4957_v42 = vpop.eup %4956 }
0x1c2a   :  { %3093 = vrot.lane.b32.xlu1 %v4957_v42, %s5061_s8  ;;  %2972 = vrot.lane.b32.xlu0 %v2889_v43, %s5060_s3  ;;  %v4959_v47 = vpop.eup %4958 }
0x1c2b   :  { %v2967_v48 = vadd.f32 1.0, %v4959_v47  ;;  %v4961_v23 = vpop.eup %4960 }
0x1c2c   :  { %v3083_v49 = vadd.f32 1.0, %v4961_v23 }
0x1c2d   :  { %4962 = vrcp.f32 %v2967_v48 }
0x1c2e   :  { %3088 = vrot.lane.b32.xlu1 %v3005_v44, %s5060_s3  ;;  %4964 = vrcp.f32 %v3083_v49 }
0x1c3a   :  { %v4963_v50 = vpop.eup %4962 }
0x1c3b   :  { %v4965_v52 = vpop.eup %4964 }
0x1c98   :  { %v2978_v51 = vpop.permute.xlu0 %2977 }
0x1c99   :  { %v2980_v27 = vmul.f32 %v4963_v50, %v2978_v51 }
0x1c9b   :  { %2982 = vrot.lane.b32.xlu0 %v2980_v27, %s5060_s3 }
0x1c9c   :  { %v3094_v53 = vpop.permute.xlu1 %3093  ;;  %v2973_v24 = vpop.permute.xlu0 %2972 }
0x1c9d   :  { %v3096_v54 = vmul.f32 %v4965_v52, %v3094_v53  ;;  %v2975_v55 = vmul.f32 %v4963_v50, %v2973_v24 }
0x1c9f   :  { %3098 = vrot.lane.b32.xlu1 %v3096_v54, %s5060_s3 }
0x1ca0   :  { %v3089_v56 = vpop.permute.xlu1 %3088 }
0x1ca1   :  { %v3091_v58 = vmul.f32 %v4965_v52, %v3089_v56 }
0x1d0d   :  { %v2983_v28 = vpop.permute.xlu0 %2982 }
0x1d0e   :  { %v2985_v57 = vadd.f32 %v2983_v28, %v2975_v55 }
0x1d10   :  { %4966 = vtanh.f32 %v2985_v57 }
0x1d11   :  { %v3099_v59 = vpop.permute.xlu1 %3098 }
0x1d12   :  { %v3101_v60 = vadd.f32 %v3099_v59, %v3091_v58 }
0x1d14   :  { %4968 = vtanh.f32 %v3101_v60 }
0x1d1d   :  { %v4967_v61 = vpop.eup %4966 }
0x1d1e   :  { %2988 = vrot.lane.b32.xlu0 %v4967_v61, %s5062_s9 }
0x1d21   :  { %v4969_v62 = vpop.eup %4968 }
0x1d22   :  { %3104 = vrot.lane.b32.xlu1 %v4969_v62, %s5062_s9 }
0x1d90   :  { %v2989_v63 = vpop.permute.xlu0 %2988 }
0x1d91   :  { %v2991_v0 = vmul.f32 %v4963_v50, %v2989_v63 }
0x1d93   :  { %2993 = vrot.lane.b32.xlu0 %v2991_v0, %s5063_s5 }
0x1d94   :  { %v3105_v1 = vpop.permute.xlu1 %3104 }
0x1d95   :  { %v3107_v2 = vmul.f32 %v4965_v52, %v3105_v1 }
0x1d97   :  { %3109 = vrot.lane.b32.xlu1 %v3107_v2, %s5063_s5  ;;  %2998 = vrot.lane.b32.xlu0 %v2985_v57, %s5064_s22 }
0x1d9b   :  { %3114 = vrot.lane.b32.xlu1 %v3101_v60, %s5064_s22 }
0x1e05   :  { %v2994_v4 = vpop.permute.xlu0 %2993 }
0x1e06   :  { %3002 = vst.msk [vmem:[%s5925_s12 + $0x14] sm:$0x3] %vm105_vm0, %v2994_v4  ;;  %2996 = vst.msk [vmem:[#allocation2] sm:$0x3] %vm105_vm0, %v2994_v4 }
0x1e09   :  { %v3110_v5 = vpop.permute.xlu1 %3109  ;;  %v2999_v6 = vpop.permute.xlu0 %2998 }
0x1e0a   :  { %3118 = vst.msk [vmem:[%s5926_s13 + $0xa] sm:$0x3] %vm105_vm0, %v3110_v5  ;;  %3112 = vst.msk [vmem:[#allocation4] sm:$0x3] %vm105_vm0, %v3110_v5 }
0x1e0b   :  { %3001 = vst.msk [vmem:[#allocation3] sm:$0x3] %vm105_vm0, %v2999_v6 }
0x1e0d   :  { %v3115_v7 = vpop.permute.xlu1 %3114  ;;  %v3120_v8 = vld [vmem:[#allocation2] sm:$0x3] }
0x1e0e   :  { %3117 = vst.msk [vmem:[#allocation5] sm:$0x3] %vm105_vm0, %v3115_v7  ;;  %4722 = vmatmul.mubr.msk.f32.vlgmr.msra.gmra.mxu0 %vm118_vm1, %v3120_v8 }
0x1e0f   :  { %4732 = vmatpush3.msra.mxu0 %v5511_v29  ;;  %4735 = vmatprep.mubr.msk.f32.mxu0 %vm5059_vm2, %v5058_v3 }
0x1e10   :  { %4733 = vmatprep.subr.mxu0 %v5058_v3 }
0x1e11   :  { %v3236_v9 = vld [vmem:[#allocation4] sm:$0x3]  ;;  %4734 = vmatpush3.msra.mxu0 %v5520_v31 }
0x1e12   :  { %4729 = vmatmul.mubr.msk.f32.vlgmr.msra.gmra.mxu1 %vm118_vm1, %v3236_v9  ;;  %4745 = vmatprep.subr.mxu0 %v5058_v3  ;;  %v3121_v20 = vld [vmem:[#allocation3] sm:$0x3] }
0x1e13   :  { %4739 = vmatpush3.msra.mxu1 %v5528_v32  ;;  %4742 = vmatprep.mubr.msk.f32.mxu1 %vm5059_vm2, %v5058_v3 }
0x1e14   :  { %4740 = vmatprep.subr.mxu1 %v5058_v3 }
0x1e15   :  { %4741 = vmatpush3.msra.mxu1 %v5537_v33  ;;  %v3237_v21 = vld [vmem:[#allocation5] sm:$0x3] }
0x1e16   :  { %4752 = vmatprep.subr.mxu1 %v5058_v3 }
0x1ece   :  { %v3191_v11 = vpop.f32.mrf.mxu0 }
0x1ecf   :  { %v3195_v12 = vadd.f32 %v3191_v11, %v3119_v10 }
0x1ed0   :  { %v4723_v13 = vpop.f32.mrf.mxu0 }
0x1ed1   :  { %4970 = vtanh.f32 %v3195_v12  ;;  %v4384_v22 = vmul.f32 -1.442695, %v3195_v12 }
0x1ed2   :  { %v3307_v15 = vpop.f32.mrf.mxu1 }
0x1ed3   :  { %v3311_v16 = vadd.f32 %v3307_v15, %v3235_v14 }
0x1ed4   :  { %v4730_v17 = vpop.f32.mrf.mxu1 }
0x1ed5   :  { %4972 = vtanh.f32 %v3311_v16  ;;  %v4386_v25 = vmul.f32 -1.442695, %v3311_v16 }
0x1ed6   :  { %4974 = vpow2.f32 %v4384_v22 }
0x1ed7   :  { %4976 = vpow2.f32 %v4386_v25 }
0x1ede   :  { %v4971_v18 = vpop.eup %4970 }
0x1edf   :  { %3209 = vrot.lane.b32.xlu0 %v4971_v18, %s5061_s8 }
0x1ee2   :  { %v4973_v19 = vpop.eup %4972 }
0x1ee3   :  { %3325 = vrot.lane.b32.xlu1 %v4973_v19, %s5061_s8  ;;  %3204 = vrot.lane.b32.xlu0 %v3121_v20, %s5060_s3  ;;  %v4975_v26 = vpop.eup %4974 }
0x1ee4   :  { %v3199_v30 = vadd.f32 1.0, %v4975_v26  ;;  %v4977_v34 = vpop.eup %4976 }
0x1ee5   :  { %v3315_v35 = vadd.f32 1.0, %v4977_v34 }
0x1ee6   :  { %4978 = vrcp.f32 %v3199_v30 }
0x1ee7   :  { %3320 = vrot.lane.b32.xlu1 %v3237_v21, %s5060_s3  ;;  %4980 = vrcp.f32 %v3315_v35 }
0x1ef3   :  { %v4979_v36 = vpop.eup %4978 }
0x1ef4   :  { %v4981_v39 = vpop.eup %4980 }
0x1f51   :  { %v3210_v37 = vpop.permute.xlu0 %3209 }
0x1f52   :  { %v3212_v38 = vmul.f32 %v4979_v36, %v3210_v37 }
0x1f54   :  { %3214 = vrot.lane.b32.xlu0 %v3212_v38, %s5060_s3 }
0x1f55   :  { %v3326_v40 = vpop.permute.xlu1 %3325  ;;  %v3205_v42 = vpop.permute.xlu0 %3204 }
0x1f56   :  { %v3328_v41 = vmul.f32 %v4981_v39, %v3326_v40  ;;  %v3207_v43 = vmul.f32 %v4979_v36, %v3205_v42  ;;  %v5797_v42 = vld [vmem:[%s5921_s10 + $0x8] sm:$0xff] }
0x1f58   :  { %3330 = vrot.lane.b32.xlu1 %v3328_v41, %s5060_s3 }
0x1f59   :  { %v3321_v44 = vpop.permute.xlu1 %3320 }
0x1f5a   :  { %v3323_v47 = vmul.f32 %v4981_v39, %v3321_v44  ;;  %v5806_v44 = vld [vmem:[%s5921_s10] sm:$0xff] }
0x1fc6   :  { %v3215_v45 = vpop.permute.xlu0 %3214 }
0x1fc7   :  { %v3217_v46 = vadd.f32 %v3215_v45, %v3207_v43  ;;  %v5814_v45 = vld [vmem:[%s5922_s11 + $0x8] sm:$0xff] }
0x1fc9   :  { %4982 = vtanh.f32 %v3217_v46 }
0x1fca   :  { %v3331_v48 = vpop.permute.xlu1 %3330 }
0x1fcb   :  { %v3333_v23 = vadd.f32 %v3331_v48, %v3323_v47  ;;  %v3583_v47 = vld [vmem:[#allocation6 + $0x1a] sm:$0x3] }
0x1fcd   :  { %4984 = vtanh.f32 %v3333_v23 }
0x1fd6   :  { %v4983_v49 = vpop.eup %4982 }
0x1fd7   :  { %3220 = vrot.lane.b32.xlu0 %v4983_v49, %s5062_s9 }
0x1fda   :  { %v4985_v50 = vpop.eup %4984 }
0x1fdb   :  { %3336 = vrot.lane.b32.xlu1 %v4985_v50, %s5062_s9  ;;  %v3699_v50 = vld [vmem:[#allocation7 + $0x4] sm:$0x3] }
0x2049   :  { %v3221_v51 = vpop.permute.xlu0 %3220 }
0x204a   :  { %v3223_v27 = vmul.f32 %v4979_v36, %v3221_v51 }
0x204c   :  { %3225 = vrot.lane.b32.xlu0 %v3223_v27, %s5063_s5 }
0x204d   :  { %v3337_v52 = vpop.permute.xlu1 %3336 }
0x204e   :  { %v3339_v53 = vmul.f32 %v4981_v39, %v3337_v52 }
0x2050   :  { %3341 = vrot.lane.b32.xlu1 %v3339_v53, %s5063_s5  ;;  %3230 = vrot.lane.b32.xlu0 %v3217_v46, %s5064_s22  ;;  %v5823_v46 = vld [vmem:[%s5922_s11] sm:$0xff] }
0x2054   :  { %3346 = vrot.lane.b32.xlu1 %v3333_v23, %s5064_s22 }
0x20be   :  { %v3226_v54 = vpop.permute.xlu0 %3225 }
0x20bf   :  { %3234 = vst.msk [vmem:[%s5925_s12 + $0x16] sm:$0x3] %vm105_vm0, %v3226_v54  ;;  %3228 = vst.msk [vmem:[#allocation2] sm:$0x3] %vm105_vm0, %v3226_v54 }
0x20c2   :  { %v3342_v24 = vpop.permute.xlu1 %3341  ;;  %v3231_v55 = vpop.permute.xlu0 %3230 }
0x20c3   :  { %3350 = vst.msk [vmem:[%s5926_s13 + $0x8] sm:$0x3] %vm105_vm0, %v3342_v24  ;;  %3344 = vst.msk [vmem:[#allocation4] sm:$0x3] %vm105_vm0, %v3342_v24 }
0x20c4   :  { %3233 = vst.msk [vmem:[#allocation3] sm:$0x3] %vm105_vm0, %v3231_v55 }
0x20c6   :  { %v3347_v56 = vpop.permute.xlu1 %3346  ;;  %v3352_v28 = vld [vmem:[#allocation2] sm:$0x3] }
0x20c7   :  { %3349 = vst.msk [vmem:[#allocation5] sm:$0x3] %vm105_vm0, %v3347_v56  ;;  %4736 = vmatmul.mubr.msk.f32.vlgmr.msra.gmra.mxu0 %vm118_vm1, %v3352_v28 }
0x20c8   :  { %4746 = vmatpush3.msra.mxu0 %v5511_v29  ;;  %4749 = vmatprep.mubr.msk.f32.mxu0 %vm5059_vm2, %v5058_v3  ;;  %v3351_v29 = vld [vmem:[#allocation6 + $0x18] sm:$0x3] }
0x20c9   :  { %4747 = vmatprep.subr.mxu0 %v5058_v3 }
0x20ca   :  { %v3468_v57 = vld [vmem:[#allocation4] sm:$0x3]  ;;  %4748 = vmatpush3.msra.mxu0 %v5520_v31  ;;  %v3467_v31 = vld [vmem:[#allocation7 + $0x6] sm:$0x3] }
0x20cb   :  { %4743 = vmatmul.mubr.msk.f32.vlgmr.msra.gmra.mxu1 %vm118_vm1, %v3468_v57  ;;  %4759 = vmatprep.subr.mxu0 %v5058_v3  ;;  %v3353_v1 = vld [vmem:[#allocation3] sm:$0x3] }
0x20cc   :  { %4753 = vmatpush3.msra.mxu1 %v5528_v32  ;;  %4756 = vmatprep.mubr.msk.f32.mxu1 %vm5059_vm2, %v5058_v3 }
0x20cd   :  { %4754 = vmatprep.subr.mxu1 %v5058_v3 }
0x20ce   :  { %4755 = vmatpush3.msra.mxu1 %v5537_v33  ;;  %v3469_v33 = vld [vmem:[#allocation5] sm:$0x3] }
0x20cf   :  { %4766 = vmatprep.subr.mxu1 %v5058_v3 }
0x2187   :  { %v3423_v58 = vpop.f32.mrf.mxu0 }
0x2188   :  { %v3427_v59 = vadd.f32 %v3423_v58, %v3351_v29 }
0x2189   :  { %v4737_v60 = vpop.f32.mrf.mxu0 }
0x218a   :  { %4986 = vtanh.f32 %v3427_v59  ;;  %v4388_v2 = vmul.f32 -1.442695, %v3427_v59 }
0x218b   :  { %v3539_v61 = vpop.f32.mrf.mxu1 }
0x218c   :  { %v3543_v62 = vadd.f32 %v3539_v61, %v3467_v31 }
0x218d   :  { %v4744_v63 = vpop.f32.mrf.mxu1 }
0x218e   :  { %4988 = vtanh.f32 %v3543_v62  ;;  %v4390_v4 = vmul.f32 -1.442695, %v3543_v62 }
0x218f   :  { %4990 = vpow2.f32 %v4388_v2 }
0x2190   :  { %4992 = vpow2.f32 %v4390_v4 }
0x2197   :  { %v4987_v32 = vpop.eup %4986 }
0x2198   :  { %3441 = vrot.lane.b32.xlu0 %v4987_v32, %s5061_s8 }
0x219b   :  { %v4989_v0 = vpop.eup %4988 }
0x219c   :  { %3557 = vrot.lane.b32.xlu1 %v4989_v0, %s5061_s8  ;;  %3436 = vrot.lane.b32.xlu0 %v3353_v1, %s5060_s3  ;;  %v4991_v5 = vpop.eup %4990 }
0x219d   :  { %v3431_v6 = vadd.f32 1.0, %v4991_v5  ;;  %v4993_v7 = vpop.eup %4992 }
0x219e   :  { %v3547_v8 = vadd.f32 1.0, %v4993_v7 }
0x219f   :  { %4994 = vrcp.f32 %v3431_v6 }
0x21a0   :  { %3552 = vrot.lane.b32.xlu1 %v3469_v33, %s5060_s3  ;;  %4996 = vrcp.f32 %v3547_v8 }
0x21ac   :  { %v4995_v9 = vpop.eup %4994 }
0x21ad   :  { %v4997_v12 = vpop.eup %4996 }
0x220a   :  { %v3442_v10 = vpop.permute.xlu0 %3441 }
0x220b   :  { %v3444_v11 = vmul.f32 %v4995_v9, %v3442_v10 }
0x220d   :  { %3446 = vrot.lane.b32.xlu0 %v3444_v11, %s5060_s3 }
0x220e   :  { %v3558_v13 = vpop.permute.xlu1 %3557  ;;  %v3437_v15 = vpop.permute.xlu0 %3436 }
0x220f   :  { %v3560_v14 = vmul.f32 %v4997_v12, %v3558_v13  ;;  %v3439_v16 = vmul.f32 %v4995_v9, %v3437_v15 }
0x2211   :  { %3562 = vrot.lane.b32.xlu1 %v3560_v14, %s5060_s3 }
0x2212   :  { %v3553_v17 = vpop.permute.xlu1 %3552 }
0x2213   :  { %v3555_v20 = vmul.f32 %v4997_v12, %v3553_v17 }
0x227f   :  { %v3447_v18 = vpop.permute.xlu0 %3446 }
0x2280   :  { %v3449_v19 = vadd.f32 %v3447_v18, %v3439_v16 }
0x2282   :  { %4998 = vtanh.f32 %v3449_v19 }
0x2283   :  { %v3563_v21 = vpop.permute.xlu1 %3562 }
0x2284   :  { %v3565_v22 = vadd.f32 %v3563_v21, %v3555_v20  ;;  %v3815_v20 = vld [vmem:[#allocation6 + $0x1c] sm:$0x3] }
0x2286   :  { %5000 = vtanh.f32 %v3565_v22 }
0x228f   :  { %v4999_v25 = vpop.eup %4998 }
0x2290   :  { %3452 = vrot.lane.b32.xlu0 %v4999_v25, %s5062_s9 }
0x2293   :  { %v5001_v26 = vpop.eup %5000 }
0x2294   :  { %3568 = vrot.lane.b32.xlu1 %v5001_v26, %s5062_s9  ;;  %v3931_v26 = vld [vmem:[#allocation7 + $0x2] sm:$0x3] }
0x2302   :  { %v3453_v30 = vpop.permute.xlu0 %3452 }
0x2303   :  { %v3455_v34 = vmul.f32 %v4995_v9, %v3453_v30 }
0x2305   :  { %3457 = vrot.lane.b32.xlu0 %v3455_v34, %s5063_s5 }
0x2306   :  { %v3569_v35 = vpop.permute.xlu1 %3568 }
0x2307   :  { %v3571_v36 = vmul.f32 %v4997_v12, %v3569_v35 }
0x2309   :  { %3573 = vrot.lane.b32.xlu1 %v3571_v36, %s5063_s5  ;;  %3462 = vrot.lane.b32.xlu0 %v3449_v19, %s5064_s22 }
0x230d   :  { %3578 = vrot.lane.b32.xlu1 %v3565_v22, %s5064_s22 }
0x2377   :  { %v3458_v37 = vpop.permute.xlu0 %3457 }
0x2378   :  { %3466 = vst.msk [vmem:[%s5925_s12 + $0x18] sm:$0x3] %vm105_vm0, %v3458_v37  ;;  %3460 = vst.msk [vmem:[#allocation2] sm:$0x3] %vm105_vm0, %v3458_v37 }
0x237b   :  { %v3574_v38 = vpop.permute.xlu1 %3573  ;;  %v3463_v39 = vpop.permute.xlu0 %3462 }
0x237c   :  { %3582 = vst.msk [vmem:[%s5926_s13 + $0x6] sm:$0x3] %vm105_vm0, %v3574_v38  ;;  %3576 = vst.msk [vmem:[#allocation4] sm:$0x3] %vm105_vm0, %v3574_v38 }
0x237d   :  { %3465 = vst.msk [vmem:[#allocation3] sm:$0x3] %vm105_vm0, %v3463_v39 }
0x237f   :  { %v3579_v40 = vpop.permute.xlu1 %3578  ;;  %v3584_v41 = vld [vmem:[#allocation2] sm:$0x3] }
0x2380   :  { %3581 = vst.msk [vmem:[#allocation5] sm:$0x3] %vm105_vm0, %v3579_v40  ;;  %4750 = vmatmul.mubr.msk.f32.vlgmr.msra.gmra.mxu0 %vm118_vm1, %v3584_v41 }
0x2381   :  { %4760 = vmatpush3.msra.mxu0 %v5797_v42  ;;  %4763 = vmatprep.mubr.msk.f32.mxu0 %vm5059_vm2, %v5058_v3 }
0x2382   :  { %4761 = vmatprep.subr.mxu0 %v5058_v3 }
0x2383   :  { %v3700_v43 = vld [vmem:[#allocation4] sm:$0x3]  ;;  %4762 = vmatpush3.msra.mxu0 %v5806_v44 }
0x2384   :  { %4757 = vmatmul.mubr.msk.f32.vlgmr.msra.gmra.mxu1 %vm118_vm1, %v3700_v43  ;;  %4773 = vmatprep.subr.mxu0 %v5058_v3  ;;  %v3585_v24 = vld [vmem:[#allocation3] sm:$0x3] }
0x2385   :  { %4767 = vmatpush3.msra.mxu1 %v5814_v45  ;;  %4770 = vmatprep.mubr.msk.f32.mxu1 %vm5059_vm2, %v5058_v3 }
0x2386   :  { %4768 = vmatprep.subr.mxu1 %v5058_v3 }
0x2387   :  { %4769 = vmatpush3.msra.mxu1 %v5823_v46  ;;  %v3701_v55 = vld [vmem:[#allocation5] sm:$0x3] }
0x2388   :  { %4780 = vmatprep.subr.mxu1 %v5058_v3 }
0x2440   :  { %v3655_v48 = vpop.f32.mrf.mxu0 }
0x2441   :  { %v3659_v23 = vadd.f32 %v3655_v48, %v3583_v47 }
0x2442   :  { %v4751_v49 = vpop.f32.mrf.mxu0 }
0x2443   :  { %5002 = vtanh.f32 %v3659_v23  ;;  %v4392_v56 = vmul.f32 -1.442695, %v3659_v23 }
0x2444   :  { %v3771_v51 = vpop.f32.mrf.mxu1 }
0x2445   :  { %v3775_v27 = vadd.f32 %v3771_v51, %v3699_v50 }
0x2446   :  { %v4758_v52 = vpop.f32.mrf.mxu1 }
0x2447   :  { %5004 = vtanh.f32 %v3775_v27  ;;  %v4394_v28 = vmul.f32 -1.442695, %v3775_v27 }
0x2448   :  { %5006 = vpow2.f32 %v4392_v56 }
0x2449   :  { %5008 = vpow2.f32 %v4394_v28 }
0x2450   :  { %v5003_v53 = vpop.eup %5002 }
0x2451   :  { %3673 = vrot.lane.b32.xlu0 %v5003_v53, %s5061_s8 }
0x2454   :  { %v5005_v54 = vpop.eup %5004 }
0x2455   :  { %3789 = vrot.lane.b32.xlu1 %v5005_v54, %s5061_s8  ;;  %3668 = vrot.lane.b32.xlu0 %v3585_v24, %s5060_s3  ;;  %v5007_v57 = vpop.eup %5006 }
0x2456   :  { %v3663_v29 = vadd.f32 1.0, %v5007_v57  ;;  %v5009_v58 = vpop.eup %5008 }
0x2457   :  { %v3779_v59 = vadd.f32 1.0, %v5009_v58 }
0x2458   :  { %5010 = vrcp.f32 %v3663_v29 }
0x2459   :  { %3784 = vrot.lane.b32.xlu1 %v3701_v55, %s5060_s3  ;;  %5012 = vrcp.f32 %v3779_v59 }
0x2465   :  { %v5011_v60 = vpop.eup %5010 }
0x2466   :  { %v5013_v62 = vpop.eup %5012 }
0x24c3   :  { %v3674_v31 = vpop.permute.xlu0 %3673 }
0x24c4   :  { %v3676_v61 = vmul.f32 %v5011_v60, %v3674_v31 }
0x24c6   :  { %3678 = vrot.lane.b32.xlu0 %v3676_v61, %s5060_s3 }
0x24c7   :  { %v3790_v63 = vpop.permute.xlu1 %3789  ;;  %v3669_v0 = vpop.permute.xlu0 %3668 }
0x24c8   :  { %v3792_v32 = vmul.f32 %v5013_v62, %v3790_v63  ;;  %v3671_v1 = vmul.f32 %v5011_v60, %v3669_v0  ;;  %v4047_v0 = vld [vmem:[#allocation6 + $0x1e] sm:$0x3] }
0x24ca   :  { %3794 = vrot.lane.b32.xlu1 %v3792_v32, %s5060_s3 }
0x24cb   :  { %v3785_v33 = vpop.permute.xlu1 %3784 }
0x24cc   :  { %v3787_v5 = vmul.f32 %v5013_v62, %v3785_v33 }
0x2538   :  { %v3679_v2 = vpop.permute.xlu0 %3678 }
0x2539   :  { %v3681_v4 = vadd.f32 %v3679_v2, %v3671_v1 }
0x253b   :  { %5014 = vtanh.f32 %v3681_v4 }
0x253c   :  { %v3795_v6 = vpop.permute.xlu1 %3794 }
0x253d   :  { %v3797_v7 = vadd.f32 %v3795_v6, %v3787_v5 }
0x253f   :  { %5016 = vtanh.f32 %v3797_v7 }
0x2548   :  { %v5015_v8 = vpop.eup %5014 }
0x2549   :  { %3684 = vrot.lane.b32.xlu0 %v5015_v8, %s5062_s9 }
0x254c   :  { %v5017_v9 = vpop.eup %5016 }
0x254d   :  { %3800 = vrot.lane.b32.xlu1 %v5017_v9, %s5062_s9 }
0x25bb   :  { %v3685_v10 = vpop.permute.xlu0 %3684 }
0x25bc   :  { %v3687_v11 = vmul.f32 %v5011_v60, %v3685_v10 }
0x25be   :  { %3689 = vrot.lane.b32.xlu0 %v3687_v11, %s5063_s5 }
0x25bf   :  { %v3801_v12 = vpop.permute.xlu1 %3800 }
0x25c0   :  { %v3803_v13 = vmul.f32 %v5013_v62, %v3801_v12 }
0x25c2   :  { %3805 = vrot.lane.b32.xlu1 %v3803_v13, %s5063_s5  ;;  %3694 = vrot.lane.b32.xlu0 %v3681_v4, %s5064_s22  ;;  %v4163_v4 = vld [vmem:[#allocation7] sm:$0x3] }
0x25c6   :  { %3810 = vrot.lane.b32.xlu1 %v3797_v7, %s5064_s22 }
0x2630   :  { %v3690_v14 = vpop.permute.xlu0 %3689 }
0x2631   :  { %3698 = vst.msk [vmem:[%s5925_s12 + $0x1a] sm:$0x3] %vm105_vm0, %v3690_v14  ;;  %3692 = vst.msk [vmem:[#allocation2] sm:$0x3] %vm105_vm0, %v3690_v14 }
0x2634   :  { %v3806_v15 = vpop.permute.xlu1 %3805  ;;  %v3695_v16 = vpop.permute.xlu0 %3694 }
0x2635   :  { %3814 = vst.msk [vmem:[%s5926_s13 + $0x4] sm:$0x3] %vm105_vm0, %v3806_v15  ;;  %3808 = vst.msk [vmem:[#allocation4] sm:$0x3] %vm105_vm0, %v3806_v15 }
0x2636   :  { %3697 = vst.msk [vmem:[#allocation3] sm:$0x3] %vm105_vm0, %v3695_v16 }
0x2638   :  { %v3811_v17 = vpop.permute.xlu1 %3810  ;;  %v3816_v18 = vld [vmem:[#allocation2] sm:$0x3] }
0x2639   :  { %3813 = vst.msk [vmem:[#allocation5] sm:$0x3] %vm105_vm0, %v3811_v17  ;;  %4764 = vmatmul.mubr.msk.f32.vlgmr.msra.gmra.mxu0 %vm118_vm1, %v3816_v18 }
0x263a   :  { %4774 = vmatpush3.msra.mxu0 %v5797_v42  ;;  %4777 = vmatprep.mubr.msk.f32.mxu0 %vm5059_vm2, %v5058_v3 }
0x263b   :  { %4775 = vmatprep.subr.mxu0 %v5058_v3 }
0x263c   :  { %v3932_v19 = vld [vmem:[#allocation4] sm:$0x3]  ;;  %4776 = vmatpush3.msra.mxu0 %v5806_v44 }
0x263d   :  { %4771 = vmatmul.mubr.msk.f32.vlgmr.msra.gmra.mxu1 %vm118_vm1, %v3932_v19  ;;  %v3817_v38 = vld [vmem:[#allocation3] sm:$0x3] }
0x263e   :  { %4781 = vmatpush3.msra.mxu1 %v5814_v45  ;;  %4784 = vmatprep.mubr.msk.f32.mxu1 %vm5059_vm2, %v5058_v3 }
0x263f   :  { %4782 = vmatprep.subr.mxu1 %v5058_v3 }
0x2640   :  { %4783 = vmatpush3.msra.mxu1 %v5823_v46  ;;  %v3933_v3 = vld [vmem:[#allocation5] sm:$0x3] }
0x26f9   :  { %v3887_v21 = vpop.f32.mrf.mxu0 }
0x26fa   :  { %v3891_v22 = vadd.f32 %v3887_v21, %v3815_v20 }
0x26fb   :  { %v4765_v25 = vpop.f32.mrf.mxu0 }
0x26fc   :  { %5018 = vtanh.f32 %v3891_v22  ;;  %v4396_v39 = vmul.f32 -1.442695, %v3891_v22 }
0x26fd   :  { %v4003_v30 = vpop.f32.mrf.mxu1 }
0x26fe   :  { %v4007_v34 = vadd.f32 %v4003_v30, %v3931_v26 }
0x26ff   :  { %v4772_v35 = vpop.f32.mrf.mxu1 }
0x2700   :  { %5020 = vtanh.f32 %v4007_v34  ;;  %v4398_v40 = vmul.f32 -1.442695, %v4007_v34 }
0x2701   :  { %5022 = vpow2.f32 %v4396_v39 }
0x2702   :  { %5024 = vpow2.f32 %v4398_v40 }
0x2709   :  { %v5019_v36 = vpop.eup %5018 }
0x270a   :  { %3905 = vrot.lane.b32.xlu0 %v5019_v36, %s5061_s8 }
0x270d   :  { %v5021_v37 = vpop.eup %5020 }
0x270e   :  { %4021 = vrot.lane.b32.xlu1 %v5021_v37, %s5061_s8  ;;  %3900 = vrot.lane.b32.xlu0 %v3817_v38, %s5060_s3  ;;  %v5023_v41 = vpop.eup %5022 }
0x270f   :  { %v3895_v42 = vadd.f32 1.0, %v5023_v41  ;;  %v5025_v43 = vpop.eup %5024 }
0x2710   :  { %v4011_v44 = vadd.f32 1.0, %v5025_v43 }
0x2711   :  { %5026 = vrcp.f32 %v3895_v42 }
0x2712   :  { %4016 = vrot.lane.b32.xlu1 %v3933_v3, %s5060_s3  ;;  %5028 = vrcp.f32 %v4011_v44 }
0x271e   :  { %v5027_v45 = vpop.eup %5026 }
0x271f   :  { %v5029_v48 = vpop.eup %5028 }
0x277c   :  { %v3906_v46 = vpop.permute.xlu0 %3905 }
0x277d   :  { %v3908_v47 = vmul.f32 %v5027_v45, %v3906_v46 }
0x277f   :  { %3910 = vrot.lane.b32.xlu0 %v3908_v47, %s5060_s3 }
0x2780   :  { %v4022_v23 = vpop.permute.xlu1 %4021  ;;  %v3901_v50 = vpop.permute.xlu0 %3900 }
0x2781   :  { %v4024_v49 = vmul.f32 %v5029_v48, %v4022_v23  ;;  %v3903_v51 = vmul.f32 %v5027_v45, %v3901_v50 }
0x2783   :  { %4026 = vrot.lane.b32.xlu1 %v4024_v49, %s5060_s3 }
0x2784   :  { %v4017_v27 = vpop.permute.xlu1 %4016 }
0x2785   :  { %v4019_v54 = vmul.f32 %v5029_v48, %v4017_v27 }
0x27f1   :  { %v3911_v52 = vpop.permute.xlu0 %3910 }
0x27f2   :  { %v3913_v53 = vadd.f32 %v3911_v52, %v3903_v51 }
0x27f4   :  { %5030 = vtanh.f32 %v3913_v53 }
0x27f5   :  { %v4027_v24 = vpop.permute.xlu1 %4026 }
0x27f6   :  { %v4029_v55 = vadd.f32 %v4027_v24, %v4019_v54 }
0x27f8   :  { %5032 = vtanh.f32 %v4029_v55 }
0x2801   :  { %v5031_v56 = vpop.eup %5030 }
0x2802   :  { %3916 = vrot.lane.b32.xlu0 %v5031_v56, %s5062_s9 }
0x2805   :  { %v5033_v28 = vpop.eup %5032 }
0x2806   :  { %4032 = vrot.lane.b32.xlu1 %v5033_v28, %s5062_s9 }
0x2874   :  { %v3917_v57 = vpop.permute.xlu0 %3916 }
0x2875   :  { %v3919_v29 = vmul.f32 %v5027_v45, %v3917_v57 }
0x2877   :  { %3921 = vrot.lane.b32.xlu0 %v3919_v29, %s5063_s5 }
0x2878   :  { %v4033_v58 = vpop.permute.xlu1 %4032 }
0x2879   :  { %v4035_v59 = vmul.f32 %v5029_v48, %v4033_v58 }
0x287b   :  { %4037 = vrot.lane.b32.xlu1 %v4035_v59, %s5063_s5  ;;  %3926 = vrot.lane.b32.xlu0 %v3913_v53, %s5064_s22 }
0x287f   :  { %4042 = vrot.lane.b32.xlu1 %v4029_v55, %s5064_s22 }
0x28e9   :  { %v3922_v60 = vpop.permute.xlu0 %3921 }
0x28ea   :  { %3930 = vst.msk [vmem:[%s5925_s12 + $0x1c] sm:$0x3] %vm105_vm0, %v3922_v60  ;;  %3924 = vst.msk [vmem:[#allocation2] sm:$0x3] %vm105_vm0, %v3922_v60 }
0x28ed   :  { %v4038_v31 = vpop.permute.xlu1 %4037  ;;  %v3927_v61 = vpop.permute.xlu0 %3926 }
0x28ee   :  { %4046 = vst.msk [vmem:[%s5926_s13 + $0x2] sm:$0x3] %vm105_vm0, %v4038_v31  ;;  %4040 = vst.msk [vmem:[#allocation4] sm:$0x3] %vm105_vm0, %v4038_v31 }
0x28ef   :  { %3929 = vst.msk [vmem:[#allocation3] sm:$0x3] %vm105_vm0, %v3927_v61 }
0x28f1   :  { %v4043_v62 = vpop.permute.xlu1 %4042  ;;  %v4048_v63 = vld [vmem:[#allocation2] sm:$0x3] }
0x28f2   :  { %4045 = vst.msk [vmem:[#allocation5] sm:$0x3] %vm105_vm0, %v4043_v62  ;;  %4778 = vmatmul.mubr.msk.f32.vlgmr.msra.gmra.mxu0 %vm118_vm1, %v4048_v63 }
0x28f5   :  { %v4164_v32 = vld [vmem:[#allocation4] sm:$0x3] }
0x28f6   :  { %4785 = vmatmul.mubr.msk.f32.vlgmr.msra.gmra.mxu1 %vm118_vm1, %v4164_v32  ;;  %v4049_v10 = vld [vmem:[#allocation3] sm:$0x3] }
0x28f9   :  { %v4165_v11 = vld [vmem:[#allocation5] sm:$0x3] }
0x29b2   :  { %v4119_v1 = vpop.f32.mrf.mxu0 }
0x29b3   :  { %v4123_v33 = vadd.f32 %v4119_v1, %v4047_v0 }
0x29b4   :  { %v4779_v2 = vpop.f32.mrf.mxu0 }
0x29b5   :  { %5034 = vtanh.f32 %v4123_v33  ;;  %v4400_v12 = vmul.f32 -1.442695, %v4123_v33 }
0x29b6   :  { %v4235_v5 = vpop.f32.mrf.mxu1 }
0x29b7   :  { %v4239_v6 = vadd.f32 %v4235_v5, %v4163_v4 }
0x29b8   :  { %v4786_v7 = vpop.f32.mrf.mxu1 }
0x29b9   :  { %5036 = vtanh.f32 %v4239_v6  ;;  %v4402_v13 = vmul.f32 -1.442695, %v4239_v6 }
0x29ba   :  { %5038 = vpow2.f32 %v4400_v12 }
0x29bb   :  { %5040 = vpow2.f32 %v4402_v13 }
0x29c2   :  { %v5035_v8 = vpop.eup %5034 }
0x29c3   :  { %4137 = vrot.lane.b32.xlu0 %v5035_v8, %s5061_s8 }
0x29c6   :  { %v5037_v9 = vpop.eup %5036 }
0x29c7   :  { %4253 = vrot.lane.b32.xlu1 %v5037_v9, %s5061_s8  ;;  %4132 = vrot.lane.b32.xlu0 %v4049_v10, %s5060_s3  ;;  %v5039_v14 = vpop.eup %5038 }
0x29c8   :  { %v4127_v15 = vadd.f32 1.0, %v5039_v14  ;;  %v5041_v16 = vpop.eup %5040 }
0x29c9   :  { %v4243_v17 = vadd.f32 1.0, %v5041_v16 }
0x29ca   :  { %5042 = vrcp.f32 %v4127_v15 }
0x29cb   :  { %4248 = vrot.lane.b32.xlu1 %v4165_v11, %s5060_s3  ;;  %5044 = vrcp.f32 %v4243_v17 }
0x29d7   :  { %v5043_v18 = vpop.eup %5042 }
0x29d8   :  { %v5045_v21 = vpop.eup %5044 }
0x2a35   :  { %v4138_v19 = vpop.permute.xlu0 %4137 }
0x2a36   :  { %v4140_v20 = vmul.f32 %v5043_v18, %v4138_v19 }
0x2a38   :  { %4142 = vrot.lane.b32.xlu0 %v4140_v20, %s5060_s3 }
0x2a39   :  { %v4254_v22 = vpop.permute.xlu1 %4253  ;;  %v4133_v26 = vpop.permute.xlu0 %4132 }
0x2a3a   :  { %v4256_v25 = vmul.f32 %v5045_v21, %v4254_v22  ;;  %v4135_v30 = vmul.f32 %v5043_v18, %v4133_v26 }
0x2a3c   :  { %4258 = vrot.lane.b32.xlu1 %v4256_v25, %s5060_s3 }
0x2a3d   :  { %v4249_v34 = vpop.permute.xlu1 %4248 }
0x2a3e   :  { %v4251_v37 = vmul.f32 %v5045_v21, %v4249_v34 }
0x2aaa   :  { %v4143_v35 = vpop.permute.xlu0 %4142 }
0x2aab   :  { %v4145_v36 = vadd.f32 %v4143_v35, %v4135_v30 }
0x2aad   :  { %5046 = vtanh.f32 %v4145_v36 }
0x2aae   :  { %v4259_v38 = vpop.permute.xlu1 %4258 }
0x2aaf   :  { %v4261_v3 = vadd.f32 %v4259_v38, %v4251_v37 }
0x2ab1   :  { %5048 = vtanh.f32 %v4261_v3 }
0x2aba   :  { %v5047_v39 = vpop.eup %5046 }
0x2abb   :  { %4148 = vrot.lane.b32.xlu0 %v5047_v39, %s5062_s9 }
0x2abe   :  { %v5049_v40 = vpop.eup %5048 }
0x2abf   :  { %4264 = vrot.lane.b32.xlu1 %v5049_v40, %s5062_s9 }
0x2ac3   :  { %4158 = vrot.lane.b32.xlu1 %v4145_v36, %s5064_s22 }
0x2ac7   :  { %4274 = vrot.lane.b32.xlu1 %v4261_v3, %s5064_s22 }
0x2b2d   :  { %v4149_v41 = vpop.permute.xlu0 %4148 }
0x2b2e   :  { %v4151_v42 = vmul.f32 %v5043_v18, %v4149_v41 }
0x2b30   :  { %4153 = vrot.lane.b32.xlu0 %v4151_v42, %s5063_s5 }
0x2b31   :  { %v4265_v43 = vpop.permute.xlu1 %4264 }
0x2b32   :  { %v4267_v44 = vmul.f32 %v5045_v21, %v4265_v43 }
0x2b34   :  { %4269 = vrot.lane.b32.xlu0 %v4267_v44, %s5063_s5 }
0x2b35   :  { %v4159_v45 = vpop.permute.xlu1 %4158 }
0x2b36   :  { %4161 = vst.msk [vmem:[#allocation3] sm:$0x3] %vm105_vm0, %v4159_v45 }
0x2b39   :  { %v4275_v46 = vpop.permute.xlu1 %4274 }
0x2b3a   :  { %4277 = vst.msk [vmem:[#allocation5] sm:$0x3] %vm105_vm0, %v4275_v46 }
0x2ba2   :  { %v4154_v47 = vpop.permute.xlu0 %4153 }
0x2ba3   :  { %4156 = vst.msk [vmem:[#allocation2] sm:$0x3] %vm105_vm0, %v4154_v47  ;;  %4162 = vst.msk [vmem:[%s5925_s12 + $0x1e] sm:$0x3] %vm105_vm0, %v4154_v47 }
0x2ba6   :  { %v4270_v48 = vpop.permute.xlu0 %4269 }
0x2ba7   :  { %4272 = vst.msk [vmem:[#allocation4] sm:$0x3] %vm105_vm0, %v4270_v48  ;;  %4278 = vst.msk [vmem:[%s5926_s13] sm:$0x3] %vm105_vm0, %v4270_v48 }

// kernel: basic_rnn_forward.3
= control target key start
LH: loop header
LB: loop body
LE: loop exit
PB: predicated region body
PF: predicated region fallthrough
CT: control target
= control target key end

     0   :  { %vm71_vm0 = vcmask 123904   ;;  %v4764_v3 = vmov 0.0   ;;  %vm84_vm1 = vcmask 130048   ;;  %vm4765_vm2 = vmmov 0   ;;  %s4766_s16 = smov 16   ;;  %s4769_s20 = smov 80   ;;  %s5555_s2 = inlined_call_operand.vmem [shape: f32[16,64], index: 2, kind: input, shape index: {}]   ;;  %s5556_s3 = inlined_call_operand.vmem [shape: f32[16,64], index: 3, kind: input, shape index: {}]   ;;  %s5557_s0 = inlined_call_operand.vmem [shape: f32[32,16], index: 0, kind: input, shape index: {}, may-alias: {0,1}]   ;;  %s5558_s1 = inlined_call_operand.vmem [shape: f32[32,16], index: 1, kind: input, shape index: {}, may-alias: {0,1}]   ;;  %s5559_s6 = inlined_call_operand.vmem [shape: f32[16,64], index: 6, kind: input, shape index: {}]   ;;  %s5560_s7 = inlined_call_operand.vmem [shape: f32[16,64], index: 7, kind: input, shape index: {}]   ;;  %s5561_s4 = inlined_call_operand.vmem [shape: f32[1,64], index: 4, kind: input, shape index: {}]   ;;  %s5562_s5 = inlined_call_operand.vmem [shape: f32[1,64], index: 5, kind: input, shape index: {}]   ;;  %s5563_s8 = inlined_call_operand.vmem [shape: f32[32,16], index: 8, kind: output, shape index: {0}]   ;;  %s5564_s9 = inlined_call_operand.vmem [shape: f32[32,16], index: 9, kind: output, shape index: {1}]  }
   0x1   :  { %v83_v0 = vld [vmem:[%s5555_s2 + $0x8] sm:$0xff]  ;;  %v82_v2 = vld [vmem:[%s5555_s2] sm:$0xff]  ;;  %72 = vst.msk [vmem:[#allocation2] sm:$0x3] %vm71_vm0, %v4764_v3  ;;  %73 = vst.msk [vmem:[#allocation3] sm:$0x3] %vm71_vm0, %v4764_v3 }
   0x2   :  { %v197_v1 = vld [vmem:[%s5556_s3 + $0x8] sm:$0xff]  ;;  %74 = vst.msk [vmem:[#allocation4] sm:$0x3] %vm71_vm0, %v4764_v3  ;;  %75 = vst.msk [vmem:[#allocation5] sm:$0x3] %vm71_vm0, %v4764_v3  ;;  %4249 = vmatprep.subr.mxu0 %v83_v0  ;;  %v196_v4 = vld [vmem:[%s5556_s3] sm:$0xff] }
   0x3   :  { %4259 = vmatprep.subr.mxu1 %v197_v1  ;;  %v78_v5 = vld [vmem:[%s5557_s0] sm:$0xff]  ;;  %4250 = vmatpush3.msra.mxu0 %v83_v0  ;;  %v79_v7 = vld [vmem:[%s5557_s0 + $0x8] sm:$0xff]  ;;  %v194_v9 = vld [vmem:[%s5558_s1 + $0x10] sm:$0xff]  ;;  %vm305_vm3 = vcmask 523264   ;;  %s4770_s21 = smov 112  }
   0x4   :  { %4260 = vmatpush3.msra.mxu1 %v197_v1  ;;  %v192_v6 = vld [vmem:[%s5558_s1] sm:$0xff]  ;;  %4251 = vmatprep.subr.mxu0 %v82_v2  ;;  %v193_v8 = vld [vmem:[%s5558_s1 + $0x8] sm:$0xff]  ;;  %v80_v11 = vld [vmem:[%s5557_s0 + $0x10] sm:$0xff] }
   0x5   :  { %4261 = vmatprep.subr.mxu1 %v196_v4  ;;  %4252 = vmatpush3.msra.mxu0 %v82_v2  ;;  %v4861_v10 = vld [vmem:[%s5559_s6 + $0x8] sm:$0xff]  ;;  %v195_v12 = vld [vmem:[%s5558_s1 + $0x18] sm:$0xff]  ;;  %v4881_v14 = vld [vmem:[%s5559_s6] sm:$0xff] }
   0x6   :  { %4253 = vmatprep.mubr.msk.f32.mxu0 %vm84_vm1, %v78_v5  ;;  %4262 = vmatpush3.msra.mxu1 %v196_v4  ;;  %v81_v13 = vld [vmem:[%s5557_s0 + $0x18] sm:$0xff]  ;;  %v4886_v15 = vld [vmem:[%s5560_s7 + $0x8] sm:$0xff]  ;;  %v4895_v16 = vld [vmem:[%s5560_s7] sm:$0xff] }
   0x7   :  { %4263 = vmatprep.mubr.msk.f32.mxu1 %vm84_vm1, %v192_v6  ;;  %4254 = vmatmul.mubr.msk.f32.vlgmr.msra.gmra.mxu0 %vm84_vm1, %v79_v7  ;;  %v4071_v21 = vld [vmem:[%s5561_s4] ss:$0 sm:$0xff]  ;;  %s4767_s4 = smov 96  }
   0x8   :  { %4264 = vmatmul.mubr.msk.f32.vlgmr.msra.gmra.mxu1 %vm84_vm1, %v193_v8  ;;  %4269 = vmatprep.subr.mxu0 %v4764_v3  ;;  %v319_v17 = vld [vmem:[#allocation2] sm:$0x3]  ;;  %v320_v19 = vld [vmem:[#allocation3] sm:$0x3] }
   0x9   :  { %4266 = vmatprep.mubr.msk.f32.mxu1 %vm84_vm1, %v194_v9  ;;  %4270 = vmatpush3.msra.mxu0 %v4861_v10  ;;  %v436_v18 = vld [vmem:[#allocation4] sm:$0x3]  ;;  %v437_v20 = vld [vmem:[#allocation5] sm:$0x3]  ;;  %v4076_v22 = vld [vmem:[%s5562_s5] ss:$0 sm:$0xff] }
   0xa   :  { %4256 = vmatprep.mubr.msk.f32.mxu0 %vm84_vm1, %v80_v11  ;;  %4271 = vmatprep.subr.mxu0 %v4764_v3  ;;  %s4768_s5 = smov 32  }
   0xb   :  { %4276 = vmatprep.subr.mxu1 %v4764_v3  ;;  %4257 = vmatmul.mubr.msk.f32.gmra.mxu0 %vm84_vm1, %v81_v13 }
   0xc   :  { %4267 = vmatmul.mubr.msk.f32.gmra.mxu1 %vm84_vm1, %v195_v12  ;;  %4272 = vmatpush3.msra.mxu0 %v4881_v14 }
   0xd   :  { %4277 = vmatpush3.msra.mxu1 %v4886_v15  ;;  %4273 = vmatprep.mubr.msk.f32.mxu0 %vm4765_vm2, %v4764_v3 }
   0xe   :  { %4278 = vmatprep.subr.mxu1 %v4764_v3  ;;  %4280 = vmatprep.mubr.msk.f32.mxu1 %vm4765_vm2, %v4764_v3 }
   0xf   :  { %4279 = vmatpush3.msra.mxu1 %v4895_v16  ;;  %4274 = vmatmul.mubr.msk.f32.vlgmr.msra.gmra.mxu0 %vm84_vm1, %v319_v17 }
  0x10   :  { %4281 = vmatmul.mubr.msk.f32.vlgmr.msra.gmra.mxu1 %vm84_vm1, %v436_v18  ;;  %403 = vrot.lane.b32.xlu1 %v320_v19, %s4766_s16 }
  0x11   :  { %4283 = vmatprep.subr.mxu0 %v4764_v3  ;;  %4287 = vmatprep.mubr.msk.f32.mxu0 %vm4765_vm2, %v4764_v3 }
  0x12   :  { %4284 = vmatpush3.msra.mxu0 %v4861_v10  ;;  %4290 = vmatprep.subr.mxu1 %v4764_v3 }
  0x13   :  { %4285 = vmatprep.subr.mxu0 %v4764_v3  ;;  %4291 = vmatpush3.msra.mxu1 %v4886_v15 }
  0x14   :  { %4286 = vmatpush3.msra.mxu0 %v4881_v14  ;;  %520 = vrot.lane.b32.xlu1 %v437_v20, %s4766_s16 }
  0x15   :  { %4292 = vmatprep.subr.mxu1 %v4764_v3  ;;  %4294 = vmatprep.mubr.msk.f32.mxu1 %vm4765_vm2, %v4764_v3 }
  0x16   :  { %4293 = vmatpush3.msra.mxu1 %v4895_v16  ;;  %4297 = vmatprep.subr.mxu0 %v4764_v3 }
  0x17   :  { %4304 = vmatprep.subr.mxu1 %v4764_v3 }
  0x82   :  { %v404_v61 = vpop.permute.xlu1 %403 }
  0x86   :  { %v521_v63 = vpop.permute.xlu1 %520 }
  0xc7   :  { %v4255_v23 = vpop.f32.mrf.mxu0 }
  0xc8   :  { %v4265_v24 = vpop.f32.mrf.mxu1  ;;  %v189_v25 = vadd.f32 %v4255_v23, %v4071_v21 }
  0xc9   :  { %v302_v26 = vadd.f32 %v4265_v24, %v4076_v22  ;;  %v163_v27 = vpop.f32.mrf.mxu0 }
  0xca   :  { %v276_v28 = vpop.f32.mrf.mxu1  ;;  %307 = vst.msk [vmem:[#allocation6 + $0x8] sm:$0xff] %vm305_vm3, %v189_v25  ;;  %v188_v29 = vadd.f32 %v4071_v21, %v163_v27 }
  0xcb   :  { %311 = vst.msk [vmem:[#allocation7 + $0x8] sm:$0xff] %vm305_vm3, %v302_v26  ;;  %v301_v30 = vadd.f32 %v4076_v22, %v276_v28  ;;  %v4258_v32 = vpop.f32.mrf.mxu0 }
  0xcc   :  { %v4268_v31 = vpop.f32.mrf.mxu1  ;;  %306 = vst.msk [vmem:[#allocation6] sm:$0xff] %vm305_vm3, %v188_v29  ;;  %v191_v34 = vadd.f32 %v4258_v32, %v4071_v21 }
  0xcd   :  { %310 = vst.msk [vmem:[#allocation7] sm:$0xff] %vm305_vm3, %v301_v30  ;;  %v304_v33 = vadd.f32 %v4268_v31, %v4076_v22  ;;  %v173_v36 = vpop.f32.mrf.mxu0 }
  0xce   :  { %v286_v35 = vpop.f32.mrf.mxu1  ;;  %309 = vst.msk [vmem:[#allocation6 + $0x18] sm:$0xff] %vm305_vm3, %v191_v34  ;;  %v190_v38 = vadd.f32 %v4071_v21, %v173_v36 }
  0xcf   :  { %313 = vst.msk [vmem:[#allocation7 + $0x18] sm:$0xff] %vm305_vm3, %v304_v33  ;;  %v303_v37 = vadd.f32 %v4076_v22, %v286_v35  ;;  %v390_v39 = vpop.f32.mrf.mxu0 }
  0xd0   :  { %v507_v40 = vpop.f32.mrf.mxu1  ;;  %308 = vst.msk [vmem:[#allocation6 + $0x10] sm:$0xff] %vm305_vm3, %v190_v38 }
  0xd1   :  { %312 = vst.msk [vmem:[#allocation7 + $0x10] sm:$0xff] %vm305_vm3, %v303_v37  ;;  %v4275_v41 = vpop.f32.mrf.mxu0 }
  0xd2   :  { %v4282_v42 = vpop.f32.mrf.mxu1 }
  0xd3   :  { %v318_v43 = vld [vmem:[#allocation6] sm:$0x3]  ;;  %v551_v22 = vld [vmem:[#allocation6 + $0x2] sm:$0x3] }
  0xd4   :  { %v394_v44 = vadd.f32 %v390_v39, %v318_v43 }
  0xd6   :  { %v435_v45 = vld [vmem:[#allocation7 + $0x1e] sm:$0x3]  ;;  %4500 = vtanh.f32 %v394_v44  ;;  %v4078_v49 = vmul.f32 -1.442695, %v394_v44  ;;  %v667_v26 = vld [vmem:[#allocation7 + $0x1c] sm:$0x3] }
  0xd7   :  { %v511_v46 = vadd.f32 %v507_v40, %v435_v45 }
  0xd9   :  { %4502 = vtanh.f32 %v511_v46  ;;  %v4080_v50 = vmul.f32 -1.442695, %v511_v46 }
  0xda   :  { %4504 = vpow2.f32 %v4078_v49 }
  0xdb   :  { %4506 = vpow2.f32 %v4080_v50 }
  0xe3   :  { %v4501_v47 = vpop.eup %4500 }
  0xe4   :  { %408 = vrot.lane.b32.xlu0 %v4501_v47, %s4767_s4 }
  0xe6   :  { %v4503_v48 = vpop.eup %4502 }
  0xe7   :  { %v4505_v51 = vpop.eup %4504 }
  0xe8   :  { %525 = vrot.lane.b32.xlu0 %v4503_v48, %s4767_s4  ;;  %v398_v52 = vadd.f32 1.0, %v4505_v51  ;;  %v4507_v53 = vpop.eup %4506 }
  0xe9   :  { %v515_v54 = vadd.f32 1.0, %v4507_v53 }
  0xea   :  { %4508 = vrcp.f32 %v398_v52 }
  0xeb   :  { %4510 = vrcp.f32 %v515_v54 }
  0xf7   :  { %v4509_v55 = vpop.eup %4508 }
  0xf8   :  { %v4511_v58 = vpop.eup %4510  ;;  %v406_v62 = vmul.f32 %v4509_v55, %v404_v61 }
  0xf9   :  { %v523_v2 = vmul.f32 %v4511_v58, %v521_v63 }
 0x156   :  { %v409_v56 = vpop.permute.xlu0 %408 }
 0x157   :  { %v411_v57 = vmul.f32 %v4509_v55, %v409_v56 }
 0x159   :  { %413 = vrot.lane.b32.xlu0 %v411_v57, %s4766_s16 }
 0x15a   :  { %v526_v59 = vpop.permute.xlu0 %525 }
 0x15b   :  { %v528_v60 = vmul.f32 %v4511_v58, %v526_v59 }
 0x15d   :  { %530 = vrot.lane.b32.xlu1 %v528_v60, %s4766_s16 }
 0x1cb   :  { %v414_v0 = vpop.permute.xlu0 %413 }
 0x1cc   :  { %v416_v1 = vadd.f32 %v414_v0, %v406_v62 }
 0x1ce   :  { %4512 = vtanh.f32 %v416_v1 }
 0x1cf   :  { %v531_v4 = vpop.permute.xlu1 %530 }
 0x1d0   :  { %v533_v5 = vadd.f32 %v531_v4, %v523_v2  ;;  %v783_v2 = vld [vmem:[#allocation6 + $0x4] sm:$0x3] }
 0x1d2   :  { %4514 = vtanh.f32 %v533_v5 }
 0x1db   :  { %v4513_v6 = vpop.eup %4512 }
 0x1dc   :  { %419 = vrot.lane.b32.xlu0 %v4513_v6, %s4768_s5 }
 0x1df   :  { %v4515_v7 = vpop.eup %4514 }
 0x1e0   :  { %536 = vrot.lane.b32.xlu1 %v4515_v7, %s4768_s5  ;;  %v899_v7 = vld [vmem:[#allocation7 + $0x1a] sm:$0x3] }
 0x24e   :  { %v420_v8 = vpop.permute.xlu0 %419 }
 0x24f   :  { %v422_v9 = vmul.f32 %v4509_v55, %v420_v8 }
 0x251   :  { %424 = vrot.lane.b32.xlu0 %v422_v9, %s4769_s20 }
 0x252   :  { %v537_v11 = vpop.permute.xlu1 %536 }
 0x253   :  { %v539_v12 = vmul.f32 %v4511_v58, %v537_v11 }
 0x255   :  { %541 = vrot.lane.b32.xlu1 %v539_v12, %s4769_s20  ;;  %430 = vrot.lane.b32.xlu0 %v416_v1, %s4770_s21 }
 0x259   :  { %546 = vrot.lane.b32.xlu1 %v533_v5, %s4770_s21 }
 0x2c3   :  { %v425_v13 = vpop.permute.xlu0 %424 }
 0x2c4   :  { %428 = vst.msk [vmem:[#allocation2] sm:$0x3] %vm71_vm0, %v425_v13  ;;  %434 = vst.msk [vmem:[%s5563_s8] sm:$0x3] %vm71_vm0, %v425_v13 }
 0x2c7   :  { %v542_v17 = vpop.permute.xlu1 %541  ;;  %v431_v18 = vpop.permute.xlu0 %430 }
 0x2c8   :  { %544 = vst.msk [vmem:[#allocation4] sm:$0x3] %vm71_vm0, %v542_v17  ;;  %550 = vst.msk [vmem:[%s5564_s9 + $0x1e] sm:$0x3] %vm71_vm0, %v542_v17 }
 0x2c9   :  { %433 = vst.msk [vmem:[#allocation3] sm:$0x3] %vm71_vm0, %v431_v18 }
 0x2cb   :  { %v552_v19 = vld [vmem:[#allocation2] sm:$0x3]  ;;  %v547_v20 = vpop.permute.xlu1 %546 }
 0x2cc   :  { %549 = vst.msk [vmem:[#allocation5] sm:$0x3] %vm71_vm0, %v547_v20  ;;  %4288 = vmatmul.mubr.msk.f32.vlgmr.msra.gmra.mxu0 %vm84_vm1, %v552_v19 }
 0x2cd   :  { %4298 = vmatpush3.msra.mxu0 %v4861_v10  ;;  %4301 = vmatprep.mubr.msk.f32.mxu0 %vm4765_vm2, %v4764_v3 }
 0x2ce   :  { %4299 = vmatprep.subr.mxu0 %v4764_v3 }
 0x2cf   :  { %v668_v21 = vld [vmem:[#allocation4] sm:$0x3]  ;;  %4300 = vmatpush3.msra.mxu0 %v4881_v14 }
 0x2d0   :  { %4295 = vmatmul.mubr.msk.f32.vlgmr.msra.gmra.mxu1 %vm84_vm1, %v668_v21  ;;  %4311 = vmatprep.subr.mxu0 %v4764_v3  ;;  %v553_v32 = vld [vmem:[#allocation3] sm:$0x3] }
 0x2d1   :  { %4305 = vmatpush3.msra.mxu1 %v4886_v15  ;;  %4308 = vmatprep.mubr.msk.f32.mxu1 %vm4765_vm2, %v4764_v3 }
 0x2d2   :  { %4306 = vmatprep.subr.mxu1 %v4764_v3 }
 0x2d3   :  { %4307 = vmatpush3.msra.mxu1 %v4895_v16  ;;  %v669_v33 = vld [vmem:[#allocation5] sm:$0x3] }
 0x2d4   :  { %4318 = vmatprep.subr.mxu1 %v4764_v3 }
 0x38c   :  { %v623_v23 = vpop.f32.mrf.mxu0 }
 0x38d   :  { %v627_v24 = vadd.f32 %v623_v23, %v551_v22 }
 0x38e   :  { %v4289_v25 = vpop.f32.mrf.mxu0 }
 0x38f   :  { %4516 = vtanh.f32 %v627_v24  ;;  %v4082_v34 = vmul.f32 -1.442695, %v627_v24 }
 0x390   :  { %v739_v27 = vpop.f32.mrf.mxu1 }
 0x391   :  { %v743_v28 = vadd.f32 %v739_v27, %v667_v26 }
 0x392   :  { %v4296_v29 = vpop.f32.mrf.mxu1 }
 0x393   :  { %4518 = vtanh.f32 %v743_v28  ;;  %v4084_v35 = vmul.f32 -1.442695, %v743_v28 }
 0x394   :  { %4520 = vpow2.f32 %v4082_v34 }
 0x395   :  { %4522 = vpow2.f32 %v4084_v35 }
 0x39c   :  { %v4517_v30 = vpop.eup %4516 }
 0x39d   :  { %641 = vrot.lane.b32.xlu0 %v4517_v30, %s4767_s4 }
 0x3a0   :  { %v4519_v31 = vpop.eup %4518 }
 0x3a1   :  { %757 = vrot.lane.b32.xlu1 %v4519_v31, %s4767_s4  ;;  %636 = vrot.lane.b32.xlu0 %v553_v32, %s4766_s16  ;;  %v4521_v36 = vpop.eup %4520 }
 0x3a2   :  { %v631_v37 = vadd.f32 1.0, %v4521_v36  ;;  %v4523_v38 = vpop.eup %4522 }
 0x3a3   :  { %v747_v39 = vadd.f32 1.0, %v4523_v38 }
 0x3a4   :  { %4524 = vrcp.f32 %v631_v37 }
 0x3a5   :  { %752 = vrot.lane.b32.xlu1 %v669_v33, %s4766_s16  ;;  %4526 = vrcp.f32 %v747_v39 }
 0x3b1   :  { %v4525_v40 = vpop.eup %4524 }
 0x3b2   :  { %v4527_v43 = vpop.eup %4526 }
 0x40f   :  { %v642_v41 = vpop.permute.xlu0 %641 }
 0x410   :  { %v644_v42 = vmul.f32 %v4525_v40, %v642_v41 }
 0x412   :  { %646 = vrot.lane.b32.xlu0 %v644_v42, %s4766_s16 }
 0x413   :  { %v758_v44 = vpop.permute.xlu1 %757  ;;  %v637_v46 = vpop.permute.xlu0 %636 }
 0x414   :  { %v760_v45 = vmul.f32 %v4527_v43, %v758_v44  ;;  %v639_v47 = vmul.f32 %v4525_v40, %v637_v46 }
 0x416   :  { %762 = vrot.lane.b32.xlu1 %v760_v45, %s4766_s16 }
 0x417   :  { %v753_v48 = vpop.permute.xlu1 %752 }
 0x418   :  { %v755_v51 = vmul.f32 %v4527_v43, %v753_v48 }
 0x484   :  { %v647_v49 = vpop.permute.xlu0 %646 }
 0x485   :  { %v649_v50 = vadd.f32 %v647_v49, %v639_v47 }
 0x487   :  { %4528 = vtanh.f32 %v649_v50 }
 0x488   :  { %v763_v52 = vpop.permute.xlu1 %762 }
 0x489   :  { %v765_v53 = vadd.f32 %v763_v52, %v755_v51  ;;  %v1015_v51 = vld [vmem:[#allocation6 + $0x6] sm:$0x3] }
 0x48b   :  { %4530 = vtanh.f32 %v765_v53 }
 0x494   :  { %v4529_v54 = vpop.eup %4528 }
 0x495   :  { %652 = vrot.lane.b32.xlu0 %v4529_v54, %s4768_s5 }
 0x498   :  { %v4531_v55 = vpop.eup %4530 }
 0x499   :  { %768 = vrot.lane.b32.xlu1 %v4531_v55, %s4768_s5  ;;  %v1131_v55 = vld [vmem:[#allocation7 + $0x18] sm:$0x3] }
 0x507   :  { %v653_v56 = vpop.permute.xlu0 %652 }
 0x508   :  { %v655_v57 = vmul.f32 %v4525_v40, %v653_v56 }
 0x50a   :  { %657 = vrot.lane.b32.xlu0 %v655_v57, %s4769_s20 }
 0x50b   :  { %v769_v58 = vpop.permute.xlu1 %768 }
 0x50c   :  { %v771_v59 = vmul.f32 %v4527_v43, %v769_v58 }
 0x50e   :  { %773 = vrot.lane.b32.xlu1 %v771_v59, %s4769_s20  ;;  %662 = vrot.lane.b32.xlu0 %v649_v50, %s4770_s21 }
 0x512   :  { %778 = vrot.lane.b32.xlu1 %v765_v53, %s4770_s21 }
 0x57c   :  { %v658_v60 = vpop.permute.xlu0 %657 }
 0x57d   :  { %660 = vst.msk [vmem:[#allocation2] sm:$0x3] %vm71_vm0, %v658_v60  ;;  %666 = vst.msk [vmem:[%s5563_s8 + $0x2] sm:$0x3] %vm71_vm0, %v658_v60 }
 0x580   :  { %v774_v61 = vpop.permute.xlu1 %773  ;;  %v663_v62 = vpop.permute.xlu0 %662 }
 0x581   :  { %776 = vst.msk [vmem:[#allocation4] sm:$0x3] %vm71_vm0, %v774_v61  ;;  %782 = vst.msk [vmem:[%s5564_s9 + $0x1c] sm:$0x3] %vm71_vm0, %v774_v61 }
 0x582   :  { %665 = vst.msk [vmem:[#allocation3] sm:$0x3] %vm71_vm0, %v663_v62 }
 0x584   :  { %v784_v63 = vld [vmem:[#allocation2] sm:$0x3]  ;;  %v779_v0 = vpop.permute.xlu1 %778 }
 0x585   :  { %781 = vst.msk [vmem:[#allocation5] sm:$0x3] %vm71_vm0, %v779_v0  ;;  %4302 = vmatmul.mubr.msk.f32.vlgmr.msra.gmra.mxu0 %vm84_vm1, %v784_v63 }
 0x586   :  { %4312 = vmatpush3.msra.mxu0 %v4861_v10  ;;  %4315 = vmatprep.mubr.msk.f32.mxu0 %vm4765_vm2, %v4764_v3 }
 0x587   :  { %4313 = vmatprep.subr.mxu0 %v4764_v3 }
 0x588   :  { %v900_v1 = vld [vmem:[#allocation4] sm:$0x3]  ;;  %4314 = vmatpush3.msra.mxu0 %v4881_v14 }
 0x589   :  { %4309 = vmatmul.mubr.msk.f32.vlgmr.msra.gmra.mxu1 %vm84_vm1, %v900_v1  ;;  %4325 = vmatprep.subr.mxu0 %v4764_v3  ;;  %v785_v17 = vld [vmem:[#allocation3] sm:$0x3] }
 0x58a   :  { %4319 = vmatpush3.msra.mxu1 %v4886_v15  ;;  %4322 = vmatprep.mubr.msk.f32.mxu1 %vm4765_vm2, %v4764_v3 }
 0x58b   :  { %4320 = vmatprep.subr.mxu1 %v4764_v3 }
 0x58c   :  { %4321 = vmatpush3.msra.mxu1 %v4895_v16  ;;  %v901_v18 = vld [vmem:[#allocation5] sm:$0x3] }
 0x58d   :  { %4332 = vmatprep.subr.mxu1 %v4764_v3 }
 0x645   :  { %v855_v4 = vpop.f32.mrf.mxu0 }
 0x646   :  { %v859_v5 = vadd.f32 %v855_v4, %v783_v2 }
 0x647   :  { %v4303_v6 = vpop.f32.mrf.mxu0 }
 0x648   :  { %4532 = vtanh.f32 %v859_v5  ;;  %v4086_v19 = vmul.f32 -1.442695, %v859_v5 }
 0x649   :  { %v971_v8 = vpop.f32.mrf.mxu1 }
 0x64a   :  { %v975_v9 = vadd.f32 %v971_v8, %v899_v7 }
 0x64b   :  { %v4310_v11 = vpop.f32.mrf.mxu1 }
 0x64c   :  { %4534 = vtanh.f32 %v975_v9  ;;  %v4088_v20 = vmul.f32 -1.442695, %v975_v9 }
 0x64d   :  { %4536 = vpow2.f32 %v4086_v19 }
 0x64e   :  { %4538 = vpow2.f32 %v4088_v20 }
 0x655   :  { %v4533_v12 = vpop.eup %4532 }
 0x656   :  { %873 = vrot.lane.b32.xlu0 %v4533_v12, %s4767_s4 }
 0x659   :  { %v4535_v13 = vpop.eup %4534 }
 0x65a   :  { %989 = vrot.lane.b32.xlu1 %v4535_v13, %s4767_s4  ;;  %868 = vrot.lane.b32.xlu0 %v785_v17, %s4766_s16  ;;  %v4537_v21 = vpop.eup %4536 }
 0x65b   :  { %v863_v22 = vadd.f32 1.0, %v4537_v21  ;;  %v4539_v23 = vpop.eup %4538 }
 0x65c   :  { %v979_v24 = vadd.f32 1.0, %v4539_v23 }
 0x65d   :  { %4540 = vrcp.f32 %v863_v22 }
 0x65e   :  { %984 = vrot.lane.b32.xlu1 %v901_v18, %s4766_s16  ;;  %4542 = vrcp.f32 %v979_v24 }
 0x66a   :  { %v4541_v25 = vpop.eup %4540 }
 0x66b   :  { %v4543_v28 = vpop.eup %4542 }
 0x6c8   :  { %v874_v26 = vpop.permute.xlu0 %873 }
 0x6c9   :  { %v876_v27 = vmul.f32 %v4541_v25, %v874_v26 }
 0x6cb   :  { %878 = vrot.lane.b32.xlu0 %v876_v27, %s4766_s16 }
 0x6cc   :  { %v990_v29 = vpop.permute.xlu1 %989  ;;  %v869_v31 = vpop.permute.xlu0 %868 }
 0x6cd   :  { %v992_v30 = vmul.f32 %v4543_v28, %v990_v29  ;;  %v871_v32 = vmul.f32 %v4541_v25, %v869_v31 }
 0x6cf   :  { %994 = vrot.lane.b32.xlu1 %v992_v30, %s4766_s16 }
 0x6d0   :  { %v985_v33 = vpop.permute.xlu1 %984 }
 0x6d1   :  { %v987_v36 = vmul.f32 %v4543_v28, %v985_v33 }
 0x73d   :  { %v879_v34 = vpop.permute.xlu0 %878 }
 0x73e   :  { %v881_v35 = vadd.f32 %v879_v34, %v871_v32 }
 0x740   :  { %4544 = vtanh.f32 %v881_v35 }
 0x741   :  { %v995_v37 = vpop.permute.xlu1 %994 }
 0x742   :  { %v997_v38 = vadd.f32 %v995_v37, %v987_v36  ;;  %v1247_v36 = vld [vmem:[#allocation6 + $0x8] sm:$0x3] }
 0x744   :  { %4546 = vtanh.f32 %v997_v38 }
 0x74d   :  { %v4545_v39 = vpop.eup %4544 }
 0x74e   :  { %884 = vrot.lane.b32.xlu0 %v4545_v39, %s4768_s5 }
 0x751   :  { %v4547_v40 = vpop.eup %4546 }
 0x752   :  { %1000 = vrot.lane.b32.xlu1 %v4547_v40, %s4768_s5  ;;  %v1363_v40 = vld [vmem:[#allocation7 + $0x16] sm:$0x3] }
 0x7c0   :  { %v885_v41 = vpop.permute.xlu0 %884 }
 0x7c1   :  { %v887_v42 = vmul.f32 %v4541_v25, %v885_v41 }
 0x7c3   :  { %889 = vrot.lane.b32.xlu0 %v887_v42, %s4769_s20 }
 0x7c4   :  { %v1001_v43 = vpop.permute.xlu1 %1000 }
 0x7c5   :  { %v1003_v44 = vmul.f32 %v4543_v28, %v1001_v43 }
 0x7c7   :  { %1005 = vrot.lane.b32.xlu1 %v1003_v44, %s4769_s20  ;;  %894 = vrot.lane.b32.xlu0 %v881_v35, %s4770_s21 }
 0x7cb   :  { %1010 = vrot.lane.b32.xlu1 %v997_v38, %s4770_s21 }
 0x835   :  { %v890_v45 = vpop.permute.xlu0 %889 }
 0x836   :  { %892 = vst.msk [vmem:[#allocation2] sm:$0x3] %vm71_vm0, %v890_v45  ;;  %898 = vst.msk [vmem:[%s5563_s8 + $0x4] sm:$0x3] %vm71_vm0, %v890_v45 }
 0x839   :  { %v1006_v46 = vpop.permute.xlu1 %1005  ;;  %v895_v47 = vpop.permute.xlu0 %894 }
 0x83a   :  { %1008 = vst.msk [vmem:[#allocation4] sm:$0x3] %vm71_vm0, %v1006_v46  ;;  %1014 = vst.msk [vmem:[%s5564_s9 + $0x1a] sm:$0x3] %vm71_vm0, %v1006_v46 }
 0x83b   :  { %897 = vst.msk [vmem:[#allocation3] sm:$0x3] %vm71_vm0, %v895_v47 }
 0x83d   :  { %v1016_v48 = vld [vmem:[#allocation2] sm:$0x3]  ;;  %v1011_v49 = vpop.permute.xlu1 %1010 }
 0x83e   :  { %1013 = vst.msk [vmem:[#allocation5] sm:$0x3] %vm71_vm0, %v1011_v49  ;;  %4316 = vmatmul.mubr.msk.f32.vlgmr.msra.gmra.mxu0 %vm84_vm1, %v1016_v48 }
 0x83f   :  { %4326 = vmatpush3.msra.mxu0 %v4861_v10  ;;  %4329 = vmatprep.mubr.msk.f32.mxu0 %vm4765_vm2, %v4764_v3 }
 0x840   :  { %4327 = vmatprep.subr.mxu0 %v4764_v3 }
 0x841   :  { %v1132_v50 = vld [vmem:[#allocation4] sm:$0x3]  ;;  %4328 = vmatpush3.msra.mxu0 %v4881_v14 }
 0x842   :  { %4323 = vmatmul.mubr.msk.f32.vlgmr.msra.gmra.mxu1 %vm84_vm1, %v1132_v50  ;;  %4339 = vmatprep.subr.mxu0 %v4764_v3  ;;  %v1017_v61 = vld [vmem:[#allocation3] sm:$0x3] }
 0x843   :  { %4333 = vmatpush3.msra.mxu1 %v4886_v15  ;;  %4336 = vmatprep.mubr.msk.f32.mxu1 %vm4765_vm2, %v4764_v3 }
 0x844   :  { %4334 = vmatprep.subr.mxu1 %v4764_v3 }
 0x845   :  { %4335 = vmatpush3.msra.mxu1 %v4895_v16  ;;  %v1133_v62 = vld [vmem:[#allocation5] sm:$0x3] }
 0x846   :  { %4346 = vmatprep.subr.mxu1 %v4764_v3 }
 0x8fe   :  { %v1087_v52 = vpop.f32.mrf.mxu0 }
 0x8ff   :  { %v1091_v53 = vadd.f32 %v1087_v52, %v1015_v51 }
 0x900   :  { %v4317_v54 = vpop.f32.mrf.mxu0 }
 0x901   :  { %4548 = vtanh.f32 %v1091_v53  ;;  %v4090_v63 = vmul.f32 -1.442695, %v1091_v53 }
 0x902   :  { %v1203_v56 = vpop.f32.mrf.mxu1 }
 0x903   :  { %v1207_v57 = vadd.f32 %v1203_v56, %v1131_v55 }
 0x904   :  { %v4324_v58 = vpop.f32.mrf.mxu1 }
 0x905   :  { %4550 = vtanh.f32 %v1207_v57  ;;  %v4092_v0 = vmul.f32 -1.442695, %v1207_v57 }
 0x906   :  { %4552 = vpow2.f32 %v4090_v63 }
 0x907   :  { %4554 = vpow2.f32 %v4092_v0 }
 0x90e   :  { %v4549_v59 = vpop.eup %4548 }
 0x90f   :  { %1105 = vrot.lane.b32.xlu0 %v4549_v59, %s4767_s4 }
 0x912   :  { %v4551_v60 = vpop.eup %4550 }
 0x913   :  { %1221 = vrot.lane.b32.xlu1 %v4551_v60, %s4767_s4  ;;  %1100 = vrot.lane.b32.xlu0 %v1017_v61, %s4766_s16  ;;  %v4553_v1 = vpop.eup %4552 }
 0x914   :  { %v1095_v2 = vadd.f32 1.0, %v4553_v1  ;;  %v4555_v4 = vpop.eup %4554 }
 0x915   :  { %v1211_v5 = vadd.f32 1.0, %v4555_v4 }
 0x916   :  { %4556 = vrcp.f32 %v1095_v2 }
 0x917   :  { %1216 = vrot.lane.b32.xlu1 %v1133_v62, %s4766_s16  ;;  %4558 = vrcp.f32 %v1211_v5 }
 0x923   :  { %v4557_v6 = vpop.eup %4556 }
 0x924   :  { %v4559_v9 = vpop.eup %4558 }
 0x981   :  { %v1106_v7 = vpop.permute.xlu0 %1105 }
 0x982   :  { %v1108_v8 = vmul.f32 %v4557_v6, %v1106_v7 }
 0x984   :  { %1110 = vrot.lane.b32.xlu0 %v1108_v8, %s4766_s16 }
 0x985   :  { %v1222_v11 = vpop.permute.xlu1 %1221  ;;  %v1101_v13 = vpop.permute.xlu0 %1100 }
 0x986   :  { %v1224_v12 = vmul.f32 %v4559_v9, %v1222_v11  ;;  %v1103_v17 = vmul.f32 %v4557_v6, %v1101_v13 }
 0x988   :  { %1226 = vrot.lane.b32.xlu1 %v1224_v12, %s4766_s16 }
 0x989   :  { %v1217_v18 = vpop.permute.xlu1 %1216 }
 0x98a   :  { %v1219_v21 = vmul.f32 %v4559_v9, %v1217_v18 }
 0x9f6   :  { %v1111_v19 = vpop.permute.xlu0 %1110 }
 0x9f7   :  { %v1113_v20 = vadd.f32 %v1111_v19, %v1103_v17 }
 0x9f9   :  { %4560 = vtanh.f32 %v1113_v20 }
 0x9fa   :  { %v1227_v22 = vpop.permute.xlu1 %1226 }
 0x9fb   :  { %v1229_v23 = vadd.f32 %v1227_v22, %v1219_v21 }
 0x9fd   :  { %4562 = vtanh.f32 %v1229_v23 }
 0xa06   :  { %v4561_v24 = vpop.eup %4560 }
 0xa07   :  { %1116 = vrot.lane.b32.xlu0 %v4561_v24, %s4768_s5 }
 0xa0a   :  { %v4563_v25 = vpop.eup %4562 }
 0xa0b   :  { %1232 = vrot.lane.b32.xlu1 %v4563_v25, %s4768_s5 }
 0xa79   :  { %v1117_v26 = vpop.permute.xlu0 %1116 }
 0xa7a   :  { %v1119_v27 = vmul.f32 %v4557_v6, %v1117_v26 }
 0xa7c   :  { %1121 = vrot.lane.b32.xlu0 %v1119_v27, %s4769_s20 }
 0xa7d   :  { %v1233_v28 = vpop.permute.xlu1 %1232 }
 0xa7e   :  { %v1235_v29 = vmul.f32 %v4559_v9, %v1233_v28 }
 0xa80   :  { %1237 = vrot.lane.b32.xlu1 %v1235_v29, %s4769_s20  ;;  %1126 = vrot.lane.b32.xlu0 %v1113_v20, %s4770_s21 }
 0xa84   :  { %1242 = vrot.lane.b32.xlu1 %v1229_v23, %s4770_s21 }
 0xaee   :  { %v1122_v30 = vpop.permute.xlu0 %1121 }
 0xaef   :  { %1124 = vst.msk [vmem:[#allocation2] sm:$0x3] %vm71_vm0, %v1122_v30  ;;  %1130 = vst.msk [vmem:[%s5563_s8 + $0x6] sm:$0x3] %vm71_vm0, %v1122_v30 }
 0xaf2   :  { %v1238_v31 = vpop.permute.xlu1 %1237  ;;  %v1127_v32 = vpop.permute.xlu0 %1126 }
 0xaf3   :  { %1240 = vst.msk [vmem:[#allocation4] sm:$0x3] %vm71_vm0, %v1238_v31  ;;  %1246 = vst.msk [vmem:[%s5564_s9 + $0x18] sm:$0x3] %vm71_vm0, %v1238_v31 }
 0xaf4   :  { %1129 = vst.msk [vmem:[#allocation3] sm:$0x3] %vm71_vm0, %v1127_v32 }
 0xaf6   :  { %v1243_v33 = vpop.permute.xlu1 %1242  ;;  %v1248_v34 = vld [vmem:[#allocation2] sm:$0x3] }
 0xaf7   :  { %1245 = vst.msk [vmem:[#allocation5] sm:$0x3] %vm71_vm0, %v1243_v33  ;;  %4330 = vmatmul.mubr.msk.f32.vlgmr.msra.gmra.mxu0 %vm84_vm1, %v1248_v34 }
 0xaf8   :  { %4340 = vmatpush3.msra.mxu0 %v4861_v10  ;;  %4343 = vmatprep.mubr.msk.f32.mxu0 %vm4765_vm2, %v4764_v3 }
 0xaf9   :  { %4341 = vmatprep.subr.mxu0 %v4764_v3 }
 0xafa   :  { %v1364_v35 = vld [vmem:[#allocation4] sm:$0x3]  ;;  %4342 = vmatpush3.msra.mxu0 %v4881_v14 }
 0xafb   :  { %4337 = vmatmul.mubr.msk.f32.vlgmr.msra.gmra.mxu1 %vm84_vm1, %v1364_v35  ;;  %4353 = vmatprep.subr.mxu0 %v4764_v3  ;;  %v1249_v46 = vld [vmem:[#allocation3] sm:$0x3] }
 0xafc   :  { %4347 = vmatpush3.msra.mxu1 %v4886_v15  ;;  %4350 = vmatprep.mubr.msk.f32.mxu1 %vm4765_vm2, %v4764_v3 }
 0xafd   :  { %4348 = vmatprep.subr.mxu1 %v4764_v3 }
 0xafe   :  { %4349 = vmatpush3.msra.mxu1 %v4895_v16  ;;  %v1365_v47 = vld [vmem:[#allocation5] sm:$0x3] }
 0xaff   :  { %4360 = vmatprep.subr.mxu1 %v4764_v3 }
 0xbb7   :  { %v1319_v37 = vpop.f32.mrf.mxu0 }
 0xbb8   :  { %v1323_v38 = vadd.f32 %v1319_v37, %v1247_v36 }
 0xbb9   :  { %v4331_v39 = vpop.f32.mrf.mxu0 }
 0xbba   :  { %4564 = vtanh.f32 %v1323_v38  ;;  %v4094_v48 = vmul.f32 -1.442695, %v1323_v38 }
 0xbbb   :  { %v1435_v41 = vpop.f32.mrf.mxu1 }
 0xbbc   :  { %v1439_v42 = vadd.f32 %v1435_v41, %v1363_v40 }
 0xbbd   :  { %v4338_v43 = vpop.f32.mrf.mxu1 }
 0xbbe   :  { %4566 = vtanh.f32 %v1439_v42  ;;  %v4096_v49 = vmul.f32 -1.442695, %v1439_v42 }
 0xbbf   :  { %4568 = vpow2.f32 %v4094_v48 }
 0xbc0   :  { %4570 = vpow2.f32 %v4096_v49 }
 0xbc7   :  { %v4565_v44 = vpop.eup %4564 }
 0xbc8   :  { %1337 = vrot.lane.b32.xlu0 %v4565_v44, %s4767_s4 }
 0xbcb   :  { %v4567_v45 = vpop.eup %4566 }
 0xbcc   :  { %1453 = vrot.lane.b32.xlu1 %v4567_v45, %s4767_s4  ;;  %1332 = vrot.lane.b32.xlu0 %v1249_v46, %s4766_s16  ;;  %v4569_v50 = vpop.eup %4568 }
 0xbcd   :  { %v1327_v51 = vadd.f32 1.0, %v4569_v50  ;;  %v4571_v52 = vpop.eup %4570 }
 0xbce   :  { %v1443_v53 = vadd.f32 1.0, %v4571_v52 }
 0xbcf   :  { %4572 = vrcp.f32 %v1327_v51 }
 0xbd0   :  { %1448 = vrot.lane.b32.xlu1 %v1365_v47, %s4766_s16  ;;  %4574 = vrcp.f32 %v1443_v53 }
 0xbdc   :  { %v4573_v54 = vpop.eup %4572 }
 0xbdd   :  { %v4575_v57 = vpop.eup %4574 }
 0xc3a   :  { %v1338_v55 = vpop.permute.xlu0 %1337 }
 0xc3b   :  { %v1340_v56 = vmul.f32 %v4573_v54, %v1338_v55 }
 0xc3d   :  { %1342 = vrot.lane.b32.xlu0 %v1340_v56, %s4766_s16 }
 0xc3e   :  { %v1454_v58 = vpop.permute.xlu1 %1453  ;;  %v1333_v60 = vpop.permute.xlu0 %1332 }
 0xc3f   :  { %v1456_v59 = vmul.f32 %v4575_v57, %v1454_v58  ;;  %v1335_v61 = vmul.f32 %v4573_v54, %v1333_v60  ;;  %v5153_v60 = vld [vmem:[%s5559_s6 + $0x8] sm:$0xff] }
 0xc41   :  { %1458 = vrot.lane.b32.xlu1 %v1456_v59, %s4766_s16 }
 0xc42   :  { %v1449_v62 = vpop.permute.xlu1 %1448 }
 0xc43   :  { %v1451_v1 = vmul.f32 %v4575_v57, %v1449_v62  ;;  %v5162_v62 = vld [vmem:[%s5559_s6] sm:$0xff] }
 0xcaf   :  { %v1343_v63 = vpop.permute.xlu0 %1342 }
 0xcb0   :  { %v1345_v0 = vadd.f32 %v1343_v63, %v1335_v61  ;;  %v5170_v63 = vld [vmem:[%s5560_s7 + $0x8] sm:$0xff] }
 0xcb2   :  { %4576 = vtanh.f32 %v1345_v0 }
 0xcb3   :  { %v1459_v2 = vpop.permute.xlu1 %1458 }
 0xcb4   :  { %v1461_v4 = vadd.f32 %v1459_v2, %v1451_v1  ;;  %v1711_v1 = vld [vmem:[#allocation6 + $0xc] sm:$0x3] }
 0xcb6   :  { %4578 = vtanh.f32 %v1461_v4 }
 0xcbf   :  { %v4577_v5 = vpop.eup %4576 }
 0xcc0   :  { %1348 = vrot.lane.b32.xlu0 %v4577_v5, %s4768_s5 }
 0xcc3   :  { %v4579_v6 = vpop.eup %4578 }
 0xcc4   :  { %1464 = vrot.lane.b32.xlu1 %v4579_v6, %s4768_s5  ;;  %v1827_v6 = vld [vmem:[#allocation7 + $0x12] sm:$0x3] }
 0xd32   :  { %v1349_v7 = vpop.permute.xlu0 %1348 }
 0xd33   :  { %v1351_v8 = vmul.f32 %v4573_v54, %v1349_v7 }
 0xd35   :  { %1353 = vrot.lane.b32.xlu0 %v1351_v8, %s4769_s20 }
 0xd36   :  { %v1465_v9 = vpop.permute.xlu1 %1464 }
 0xd37   :  { %v1467_v11 = vmul.f32 %v4575_v57, %v1465_v9 }
 0xd39   :  { %1469 = vrot.lane.b32.xlu1 %v1467_v11, %s4769_s20  ;;  %1358 = vrot.lane.b32.xlu0 %v1345_v0, %s4770_s21  ;;  %v5179_v0 = vld [vmem:[%s5560_s7] sm:$0xff] }
 0xd3d   :  { %1474 = vrot.lane.b32.xlu1 %v1461_v4, %s4770_s21 }
 0xda7   :  { %v1354_v12 = vpop.permute.xlu0 %1353 }
 0xda8   :  { %1356 = vst.msk [vmem:[#allocation2] sm:$0x3] %vm71_vm0, %v1354_v12  ;;  %1362 = vst.msk [vmem:[%s5563_s8 + $0x8] sm:$0x3] %vm71_vm0, %v1354_v12 }
 0xdab   :  { %v1470_v13 = vpop.permute.xlu1 %1469  ;;  %v1359_v17 = vpop.permute.xlu0 %1358 }
 0xdac   :  { %1472 = vst.msk [vmem:[#allocation4] sm:$0x3] %vm71_vm0, %v1470_v13  ;;  %1478 = vst.msk [vmem:[%s5564_s9 + $0x16] sm:$0x3] %vm71_vm0, %v1470_v13 }
 0xdad   :  { %1361 = vst.msk [vmem:[#allocation3] sm:$0x3] %vm71_vm0, %v1359_v17 }
 0xdaf   :  { %v1475_v18 = vpop.permute.xlu1 %1474  ;;  %v1480_v19 = vld [vmem:[#allocation2] sm:$0x3] }
 0xdb0   :  { %1477 = vst.msk [vmem:[#allocation5] sm:$0x3] %vm71_vm0, %v1475_v18  ;;  %4344 = vmatmul.mubr.msk.f32.vlgmr.msra.gmra.mxu0 %vm84_vm1, %v1480_v19 }
 0xdb1   :  { %4354 = vmatpush3.msra.mxu0 %v4861_v10  ;;  %4357 = vmatprep.mubr.msk.f32.mxu0 %vm4765_vm2, %v4764_v3  ;;  %v1479_v10 = vld [vmem:[#allocation6 + $0xa] sm:$0x3] }
 0xdb2   :  { %4355 = vmatprep.subr.mxu0 %v4764_v3 }
 0xdb3   :  { %v1596_v20 = vld [vmem:[#allocation4] sm:$0x3]  ;;  %4356 = vmatpush3.msra.mxu0 %v4881_v14  ;;  %v1595_v14 = vld [vmem:[#allocation7 + $0x14] sm:$0x3] }
 0xdb4   :  { %4351 = vmatmul.mubr.msk.f32.vlgmr.msra.gmra.mxu1 %vm84_vm1, %v1596_v20  ;;  %4367 = vmatprep.subr.mxu0 %v4764_v3  ;;  %v1481_v28 = vld [vmem:[#allocation3] sm:$0x3] }
 0xdb5   :  { %4361 = vmatpush3.msra.mxu1 %v4886_v15  ;;  %4364 = vmatprep.mubr.msk.f32.mxu1 %vm4765_vm2, %v4764_v3 }
 0xdb6   :  { %4362 = vmatprep.subr.mxu1 %v4764_v3 }
 0xdb7   :  { %4363 = vmatpush3.msra.mxu1 %v4895_v16  ;;  %v1597_v16 = vld [vmem:[#allocation5] sm:$0x3] }
 0xdb8   :  { %4374 = vmatprep.subr.mxu1 %v4764_v3 }
 0xe70   :  { %v1551_v21 = vpop.f32.mrf.mxu0 }
 0xe71   :  { %v1555_v22 = vadd.f32 %v1551_v21, %v1479_v10 }
 0xe72   :  { %v4345_v23 = vpop.f32.mrf.mxu0 }
 0xe73   :  { %4580 = vtanh.f32 %v1555_v22  ;;  %v4098_v29 = vmul.f32 -1.442695, %v1555_v22 }
 0xe74   :  { %v1667_v24 = vpop.f32.mrf.mxu1 }
 0xe75   :  { %v1671_v25 = vadd.f32 %v1667_v24, %v1595_v14 }
 0xe76   :  { %v4352_v26 = vpop.f32.mrf.mxu1 }
 0xe77   :  { %4582 = vtanh.f32 %v1671_v25  ;;  %v4100_v30 = vmul.f32 -1.442695, %v1671_v25 }
 0xe78   :  { %4584 = vpow2.f32 %v4098_v29 }
 0xe79   :  { %4586 = vpow2.f32 %v4100_v30 }
 0xe80   :  { %v4581_v15 = vpop.eup %4580 }
 0xe81   :  { %1569 = vrot.lane.b32.xlu0 %v4581_v15, %s4767_s4 }
 0xe84   :  { %v4583_v27 = vpop.eup %4582 }
 0xe85   :  { %1685 = vrot.lane.b32.xlu1 %v4583_v27, %s4767_s4  ;;  %1564 = vrot.lane.b32.xlu0 %v1481_v28, %s4766_s16  ;;  %v4585_v31 = vpop.eup %4584 }
 0xe86   :  { %v1559_v32 = vadd.f32 1.0, %v4585_v31  ;;  %v4587_v33 = vpop.eup %4586 }
 0xe87   :  { %v1675_v34 = vadd.f32 1.0, %v4587_v33 }
 0xe88   :  { %4588 = vrcp.f32 %v1559_v32 }
 0xe89   :  { %1680 = vrot.lane.b32.xlu1 %v1597_v16, %s4766_s16  ;;  %4590 = vrcp.f32 %v1675_v34 }
 0xe95   :  { %v4589_v35 = vpop.eup %4588 }
 0xe96   :  { %v4591_v38 = vpop.eup %4590 }
 0xef3   :  { %v1570_v36 = vpop.permute.xlu0 %1569 }
 0xef4   :  { %v1572_v37 = vmul.f32 %v4589_v35, %v1570_v36 }
 0xef6   :  { %1574 = vrot.lane.b32.xlu0 %v1572_v37, %s4766_s16 }
 0xef7   :  { %v1686_v39 = vpop.permute.xlu1 %1685  ;;  %v1565_v41 = vpop.permute.xlu0 %1564 }
 0xef8   :  { %v1688_v40 = vmul.f32 %v4591_v38, %v1686_v39  ;;  %v1567_v42 = vmul.f32 %v4589_v35, %v1565_v41 }
 0xefa   :  { %1690 = vrot.lane.b32.xlu1 %v1688_v40, %s4766_s16 }
 0xefb   :  { %v1681_v43 = vpop.permute.xlu1 %1680 }
 0xefc   :  { %v1683_v46 = vmul.f32 %v4591_v38, %v1681_v43 }
 0xf68   :  { %v1575_v44 = vpop.permute.xlu0 %1574 }
 0xf69   :  { %v1577_v45 = vadd.f32 %v1575_v44, %v1567_v42 }
 0xf6b   :  { %4592 = vtanh.f32 %v1577_v45 }
 0xf6c   :  { %v1691_v47 = vpop.permute.xlu1 %1690 }
 0xf6d   :  { %v1693_v48 = vadd.f32 %v1691_v47, %v1683_v46  ;;  %v1943_v46 = vld [vmem:[#allocation6 + $0xe] sm:$0x3] }
 0xf6f   :  { %4594 = vtanh.f32 %v1693_v48 }
 0xf78   :  { %v4593_v49 = vpop.eup %4592 }
 0xf79   :  { %1580 = vrot.lane.b32.xlu0 %v4593_v49, %s4768_s5 }
 0xf7c   :  { %v4595_v50 = vpop.eup %4594 }
 0xf7d   :  { %1696 = vrot.lane.b32.xlu1 %v4595_v50, %s4768_s5  ;;  %v2059_v50 = vld [vmem:[#allocation7 + $0x10] sm:$0x3] }
 0xfeb   :  { %v1581_v51 = vpop.permute.xlu0 %1580 }
 0xfec   :  { %v1583_v52 = vmul.f32 %v4589_v35, %v1581_v51 }
 0xfee   :  { %1585 = vrot.lane.b32.xlu0 %v1583_v52, %s4769_s20 }
 0xfef   :  { %v1697_v53 = vpop.permute.xlu1 %1696 }
 0xff0   :  { %v1699_v54 = vmul.f32 %v4591_v38, %v1697_v53 }
 0xff2   :  { %1701 = vrot.lane.b32.xlu1 %v1699_v54, %s4769_s20  ;;  %1590 = vrot.lane.b32.xlu0 %v1577_v45, %s4770_s21 }
 0xff6   :  { %1706 = vrot.lane.b32.xlu1 %v1693_v48, %s4770_s21 }
0x1060   :  { %v1586_v55 = vpop.permute.xlu0 %1585 }
0x1061   :  { %1588 = vst.msk [vmem:[#allocation2] sm:$0x3] %vm71_vm0, %v1586_v55  ;;  %1594 = vst.msk [vmem:[%s5563_s8 + $0xa] sm:$0x3] %vm71_vm0, %v1586_v55 }
0x1064   :  { %v1702_v56 = vpop.permute.xlu1 %1701  ;;  %v1591_v57 = vpop.permute.xlu0 %1590 }
0x1065   :  { %1704 = vst.msk [vmem:[#allocation4] sm:$0x3] %vm71_vm0, %v1702_v56  ;;  %1710 = vst.msk [vmem:[%s5564_s9 + $0x14] sm:$0x3] %vm71_vm0, %v1702_v56 }
0x1066   :  { %1593 = vst.msk [vmem:[#allocation3] sm:$0x3] %vm71_vm0, %v1591_v57 }
0x1068   :  { %v1707_v58 = vpop.permute.xlu1 %1706  ;;  %v1712_v59 = vld [vmem:[#allocation2] sm:$0x3] }
0x1069   :  { %1709 = vst.msk [vmem:[#allocation5] sm:$0x3] %vm71_vm0, %v1707_v58  ;;  %4358 = vmatmul.mubr.msk.f32.vlgmr.msra.gmra.mxu0 %vm84_vm1, %v1712_v59 }
0x106a   :  { %4368 = vmatpush3.msra.mxu0 %v5153_v60  ;;  %4371 = vmatprep.mubr.msk.f32.mxu0 %vm4765_vm2, %v4764_v3 }
0x106b   :  { %4369 = vmatprep.subr.mxu0 %v4764_v3 }
0x106c   :  { %v1828_v61 = vld [vmem:[#allocation4] sm:$0x3]  ;;  %4370 = vmatpush3.msra.mxu0 %v5162_v62 }
0x106d   :  { %4365 = vmatmul.mubr.msk.f32.vlgmr.msra.gmra.mxu1 %vm84_vm1, %v1828_v61  ;;  %4381 = vmatprep.subr.mxu0 %v4764_v3  ;;  %v1713_v13 = vld [vmem:[#allocation3] sm:$0x3] }
0x106e   :  { %4375 = vmatpush3.msra.mxu1 %v5170_v63  ;;  %4378 = vmatprep.mubr.msk.f32.mxu1 %vm4765_vm2, %v4764_v3 }
0x106f   :  { %4376 = vmatprep.subr.mxu1 %v4764_v3 }
0x1070   :  { %4377 = vmatpush3.msra.mxu1 %v5179_v0  ;;  %v1829_v17 = vld [vmem:[#allocation5] sm:$0x3] }
0x1071   :  { %4388 = vmatprep.subr.mxu1 %v4764_v3 }
0x1129   :  { %v1783_v2 = vpop.f32.mrf.mxu0 }
0x112a   :  { %v1787_v4 = vadd.f32 %v1783_v2, %v1711_v1 }
0x112b   :  { %v4359_v5 = vpop.f32.mrf.mxu0 }
0x112c   :  { %4596 = vtanh.f32 %v1787_v4  ;;  %v4102_v18 = vmul.f32 -1.442695, %v1787_v4 }
0x112d   :  { %v1899_v7 = vpop.f32.mrf.mxu1 }
0x112e   :  { %v1903_v8 = vadd.f32 %v1899_v7, %v1827_v6 }
0x112f   :  { %v4366_v9 = vpop.f32.mrf.mxu1 }
0x1130   :  { %4598 = vtanh.f32 %v1903_v8  ;;  %v4104_v19 = vmul.f32 -1.442695, %v1903_v8 }
0x1131   :  { %4600 = vpow2.f32 %v4102_v18 }
0x1132   :  { %4602 = vpow2.f32 %v4104_v19 }
0x1139   :  { %v4597_v11 = vpop.eup %4596 }
0x113a   :  { %1801 = vrot.lane.b32.xlu0 %v4597_v11, %s4767_s4 }
0x113d   :  { %v4599_v12 = vpop.eup %4598 }
0x113e   :  { %1917 = vrot.lane.b32.xlu1 %v4599_v12, %s4767_s4  ;;  %1796 = vrot.lane.b32.xlu0 %v1713_v13, %s4766_s16  ;;  %v4601_v20 = vpop.eup %4600 }
0x113f   :  { %v1791_v10 = vadd.f32 1.0, %v4601_v20  ;;  %v4603_v21 = vpop.eup %4602 }
0x1140   :  { %v1907_v22 = vadd.f32 1.0, %v4603_v21 }
0x1141   :  { %4604 = vrcp.f32 %v1791_v10 }
0x1142   :  { %1912 = vrot.lane.b32.xlu1 %v1829_v17, %s4766_s16  ;;  %4606 = vrcp.f32 %v1907_v22 }
0x114e   :  { %v4605_v23 = vpop.eup %4604 }
0x114f   :  { %v4607_v25 = vpop.eup %4606 }
0x11ac   :  { %v1802_v14 = vpop.permute.xlu0 %1801 }
0x11ad   :  { %v1804_v24 = vmul.f32 %v4605_v23, %v1802_v14 }
0x11af   :  { %1806 = vrot.lane.b32.xlu0 %v1804_v24, %s4766_s16 }
0x11b0   :  { %v1918_v26 = vpop.permute.xlu1 %1917  ;;  %v1797_v27 = vpop.permute.xlu0 %1796 }
0x11b1   :  { %v1920_v15 = vmul.f32 %v4607_v25, %v1918_v26  ;;  %v1799_v28 = vmul.f32 %v4605_v23, %v1797_v27 }
0x11b3   :  { %1922 = vrot.lane.b32.xlu1 %v1920_v15, %s4766_s16 }
0x11b4   :  { %v1913_v16 = vpop.permute.xlu1 %1912 }
0x11b5   :  { %v1915_v31 = vmul.f32 %v4607_v25, %v1913_v16 }
0x1221   :  { %v1807_v29 = vpop.permute.xlu0 %1806 }
0x1222   :  { %v1809_v30 = vadd.f32 %v1807_v29, %v1799_v28 }
0x1224   :  { %4608 = vtanh.f32 %v1809_v30 }
0x1225   :  { %v1923_v32 = vpop.permute.xlu1 %1922 }
0x1226   :  { %v1925_v33 = vadd.f32 %v1923_v32, %v1915_v31  ;;  %v2175_v31 = vld [vmem:[#allocation6 + $0x10] sm:$0x3] }
0x1228   :  { %4610 = vtanh.f32 %v1925_v33 }
0x1231   :  { %v4609_v34 = vpop.eup %4608 }
0x1232   :  { %1812 = vrot.lane.b32.xlu0 %v4609_v34, %s4768_s5 }
0x1235   :  { %v4611_v35 = vpop.eup %4610 }
0x1236   :  { %1928 = vrot.lane.b32.xlu1 %v4611_v35, %s4768_s5  ;;  %v2291_v35 = vld [vmem:[#allocation7 + $0xe] sm:$0x3] }
0x12a4   :  { %v1813_v36 = vpop.permute.xlu0 %1812 }
0x12a5   :  { %v1815_v37 = vmul.f32 %v4605_v23, %v1813_v36 }
0x12a7   :  { %1817 = vrot.lane.b32.xlu0 %v1815_v37, %s4769_s20 }
0x12a8   :  { %v1929_v38 = vpop.permute.xlu1 %1928 }
0x12a9   :  { %v1931_v39 = vmul.f32 %v4607_v25, %v1929_v38 }
0x12ab   :  { %1933 = vrot.lane.b32.xlu1 %v1931_v39, %s4769_s20  ;;  %1822 = vrot.lane.b32.xlu0 %v1809_v30, %s4770_s21 }
0x12af   :  { %1938 = vrot.lane.b32.xlu1 %v1925_v33, %s4770_s21 }
0x1319   :  { %v1818_v40 = vpop.permute.xlu0 %1817 }
0x131a   :  { %1820 = vst.msk [vmem:[#allocation2] sm:$0x3] %vm71_vm0, %v1818_v40  ;;  %1826 = vst.msk [vmem:[%s5563_s8 + $0xc] sm:$0x3] %vm71_vm0, %v1818_v40 }
0x131d   :  { %v1934_v41 = vpop.permute.xlu1 %1933  ;;  %v1823_v42 = vpop.permute.xlu0 %1822 }
0x131e   :  { %1936 = vst.msk [vmem:[#allocation4] sm:$0x3] %vm71_vm0, %v1934_v41  ;;  %1942 = vst.msk [vmem:[%s5564_s9 + $0x12] sm:$0x3] %vm71_vm0, %v1934_v41 }
0x131f   :  { %1825 = vst.msk [vmem:[#allocation3] sm:$0x3] %vm71_vm0, %v1823_v42 }
0x1321   :  { %v1939_v43 = vpop.permute.xlu1 %1938  ;;  %v1944_v44 = vld [vmem:[#allocation2] sm:$0x3] }
0x1322   :  { %1941 = vst.msk [vmem:[#allocation5] sm:$0x3] %vm71_vm0, %v1939_v43  ;;  %4372 = vmatmul.mubr.msk.f32.vlgmr.msra.gmra.mxu0 %vm84_vm1, %v1944_v44 }
0x1323   :  { %4382 = vmatpush3.msra.mxu0 %v5153_v60  ;;  %4385 = vmatprep.mubr.msk.f32.mxu0 %vm4765_vm2, %v4764_v3 }
0x1324   :  { %4383 = vmatprep.subr.mxu0 %v4764_v3 }
0x1325   :  { %v2060_v45 = vld [vmem:[#allocation4] sm:$0x3]  ;;  %4384 = vmatpush3.msra.mxu0 %v5162_v62 }
0x1326   :  { %4379 = vmatmul.mubr.msk.f32.vlgmr.msra.gmra.mxu1 %vm84_vm1, %v2060_v45  ;;  %4395 = vmatprep.subr.mxu0 %v4764_v3  ;;  %v1945_v56 = vld [vmem:[#allocation3] sm:$0x3] }
0x1327   :  { %4389 = vmatpush3.msra.mxu1 %v5170_v63  ;;  %4392 = vmatprep.mubr.msk.f32.mxu1 %vm4765_vm2, %v4764_v3 }
0x1328   :  { %4390 = vmatprep.subr.mxu1 %v4764_v3 }
0x1329   :  { %4391 = vmatpush3.msra.mxu1 %v5179_v0  ;;  %v2061_v57 = vld [vmem:[#allocation5] sm:$0x3] }
0x132a   :  { %4402 = vmatprep.subr.mxu1 %v4764_v3 }
0x13e2   :  { %v2015_v47 = vpop.f32.mrf.mxu0 }
0x13e3   :  { %v2019_v48 = vadd.f32 %v2015_v47, %v1943_v46 }
0x13e4   :  { %v4373_v49 = vpop.f32.mrf.mxu0 }
0x13e5   :  { %4612 = vtanh.f32 %v2019_v48  ;;  %v4106_v58 = vmul.f32 -1.442695, %v2019_v48 }
0x13e6   :  { %v2131_v51 = vpop.f32.mrf.mxu1 }
0x13e7   :  { %v2135_v52 = vadd.f32 %v2131_v51, %v2059_v50 }
0x13e8   :  { %v4380_v53 = vpop.f32.mrf.mxu1 }
0x13e9   :  { %4614 = vtanh.f32 %v2135_v52  ;;  %v4108_v59 = vmul.f32 -1.442695, %v2135_v52 }
0x13ea   :  { %4616 = vpow2.f32 %v4106_v58 }
0x13eb   :  { %4618 = vpow2.f32 %v4108_v59 }
0x13f2   :  { %v4613_v54 = vpop.eup %4612 }
0x13f3   :  { %2033 = vrot.lane.b32.xlu0 %v4613_v54, %s4767_s4 }
0x13f6   :  { %v4615_v55 = vpop.eup %4614 }
0x13f7   :  { %2149 = vrot.lane.b32.xlu1 %v4615_v55, %s4767_s4  ;;  %2028 = vrot.lane.b32.xlu0 %v1945_v56, %s4766_s16  ;;  %v4617_v61 = vpop.eup %4616 }
0x13f8   :  { %v2023_v1 = vadd.f32 1.0, %v4617_v61  ;;  %v4619_v2 = vpop.eup %4618 }
0x13f9   :  { %v2139_v4 = vadd.f32 1.0, %v4619_v2 }
0x13fa   :  { %4620 = vrcp.f32 %v2023_v1 }
0x13fb   :  { %2144 = vrot.lane.b32.xlu1 %v2061_v57, %s4766_s16  ;;  %4622 = vrcp.f32 %v2139_v4 }
0x1407   :  { %v4621_v5 = vpop.eup %4620 }
0x1408   :  { %v4623_v8 = vpop.eup %4622 }
0x1465   :  { %v2034_v6 = vpop.permute.xlu0 %2033 }
0x1466   :  { %v2036_v7 = vmul.f32 %v4621_v5, %v2034_v6 }
0x1468   :  { %2038 = vrot.lane.b32.xlu0 %v2036_v7, %s4766_s16 }
0x1469   :  { %v2150_v9 = vpop.permute.xlu1 %2149  ;;  %v2029_v12 = vpop.permute.xlu0 %2028 }
0x146a   :  { %v2152_v11 = vmul.f32 %v4623_v8, %v2150_v9  ;;  %v2031_v13 = vmul.f32 %v4621_v5, %v2029_v12 }
0x146c   :  { %2154 = vrot.lane.b32.xlu1 %v2152_v11, %s4766_s16 }
0x146d   :  { %v2145_v17 = vpop.permute.xlu1 %2144 }
0x146e   :  { %v2147_v20 = vmul.f32 %v4623_v8, %v2145_v17 }
0x14da   :  { %v2039_v18 = vpop.permute.xlu0 %2038 }
0x14db   :  { %v2041_v19 = vadd.f32 %v2039_v18, %v2031_v13 }
0x14dd   :  { %4624 = vtanh.f32 %v2041_v19 }
0x14de   :  { %v2155_v10 = vpop.permute.xlu1 %2154 }
0x14df   :  { %v2157_v21 = vadd.f32 %v2155_v10, %v2147_v20  ;;  %v2407_v20 = vld [vmem:[#allocation6 + $0x12] sm:$0x3] }
0x14e1   :  { %4626 = vtanh.f32 %v2157_v21 }
0x14ea   :  { %v4625_v22 = vpop.eup %4624 }
0x14eb   :  { %2044 = vrot.lane.b32.xlu0 %v4625_v22, %s4768_s5 }
0x14ee   :  { %v4627_v23 = vpop.eup %4626 }
0x14ef   :  { %2160 = vrot.lane.b32.xlu1 %v4627_v23, %s4768_s5  ;;  %v2523_v23 = vld [vmem:[#allocation7 + $0xc] sm:$0x3] }
0x155d   :  { %v2045_v14 = vpop.permute.xlu0 %2044 }
0x155e   :  { %v2047_v24 = vmul.f32 %v4621_v5, %v2045_v14 }
0x1560   :  { %2049 = vrot.lane.b32.xlu0 %v2047_v24, %s4769_s20 }
0x1561   :  { %v2161_v25 = vpop.permute.xlu1 %2160 }
0x1562   :  { %v2163_v26 = vmul.f32 %v4623_v8, %v2161_v25 }
0x1564   :  { %2165 = vrot.lane.b32.xlu1 %v2163_v26, %s4769_s20  ;;  %2054 = vrot.lane.b32.xlu0 %v2041_v19, %s4770_s21 }
0x1568   :  { %2170 = vrot.lane.b32.xlu1 %v2157_v21, %s4770_s21 }
0x15d2   :  { %v2050_v15 = vpop.permute.xlu0 %2049 }
0x15d3   :  { %2052 = vst.msk [vmem:[#allocation2] sm:$0x3] %vm71_vm0, %v2050_v15  ;;  %2058 = vst.msk [vmem:[%s5563_s8 + $0xe] sm:$0x3] %vm71_vm0, %v2050_v15 }
0x15d6   :  { %v2166_v27 = vpop.permute.xlu1 %2165  ;;  %v2055_v28 = vpop.permute.xlu0 %2054 }
0x15d7   :  { %2168 = vst.msk [vmem:[#allocation4] sm:$0x3] %vm71_vm0, %v2166_v27  ;;  %2174 = vst.msk [vmem:[%s5564_s9 + $0x10] sm:$0x3] %vm71_vm0, %v2166_v27 }
0x15d8   :  { %2057 = vst.msk [vmem:[#allocation3] sm:$0x3] %vm71_vm0, %v2055_v28 }
0x15da   :  { %v2171_v16 = vpop.permute.xlu1 %2170  ;;  %v2176_v29 = vld [vmem:[#allocation2] sm:$0x3] }
0x15db   :  { %2173 = vst.msk [vmem:[#allocation5] sm:$0x3] %vm71_vm0, %v2171_v16  ;;  %4386 = vmatmul.mubr.msk.f32.vlgmr.msra.gmra.mxu0 %vm84_vm1, %v2176_v29 }
0x15dc   :  { %4396 = vmatpush3.msra.mxu0 %v5153_v60  ;;  %4399 = vmatprep.mubr.msk.f32.mxu0 %vm4765_vm2, %v4764_v3 }
0x15dd   :  { %4397 = vmatprep.subr.mxu0 %v4764_v3 }
0x15de   :  { %v2292_v30 = vld [vmem:[#allocation4] sm:$0x3]  ;;  %4398 = vmatpush3.msra.mxu0 %v5162_v62 }
0x15df   :  { %4393 = vmatmul.mubr.msk.f32.vlgmr.msra.gmra.mxu1 %vm84_vm1, %v2292_v30  ;;  %4409 = vmatprep.subr.mxu0 %v4764_v3  ;;  %v2177_v41 = vld [vmem:[#allocation3] sm:$0x3] }
0x15e0   :  { %4403 = vmatpush3.msra.mxu1 %v5170_v63  ;;  %4406 = vmatprep.mubr.msk.f32.mxu1 %vm4765_vm2, %v4764_v3 }
0x15e1   :  { %4404 = vmatprep.subr.mxu1 %v4764_v3 }
0x15e2   :  { %4405 = vmatpush3.msra.mxu1 %v5179_v0  ;;  %v2293_v42 = vld [vmem:[#allocation5] sm:$0x3] }
0x15e3   :  { %4416 = vmatprep.subr.mxu1 %v4764_v3 }
0x169b   :  { %v2247_v32 = vpop.f32.mrf.mxu0 }
0x169c   :  { %v2251_v33 = vadd.f32 %v2247_v32, %v2175_v31 }
0x169d   :  { %v4387_v34 = vpop.f32.mrf.mxu0 }
0x169e   :  { %4628 = vtanh.f32 %v2251_v33  ;;  %v4110_v43 = vmul.f32 -1.442695, %v2251_v33 }
0x169f   :  { %v2363_v36 = vpop.f32.mrf.mxu1 }
0x16a0   :  { %v2367_v37 = vadd.f32 %v2363_v36, %v2291_v35 }
0x16a1   :  { %v4394_v38 = vpop.f32.mrf.mxu1 }
0x16a2   :  { %4630 = vtanh.f32 %v2367_v37  ;;  %v4112_v44 = vmul.f32 -1.442695, %v2367_v37 }
0x16a3   :  { %4632 = vpow2.f32 %v4110_v43 }
0x16a4   :  { %4634 = vpow2.f32 %v4112_v44 }
0x16ab   :  { %v4629_v39 = vpop.eup %4628 }
0x16ac   :  { %2265 = vrot.lane.b32.xlu0 %v4629_v39, %s4767_s4 }
0x16af   :  { %v4631_v40 = vpop.eup %4630 }
0x16b0   :  { %2381 = vrot.lane.b32.xlu1 %v4631_v40, %s4767_s4  ;;  %2260 = vrot.lane.b32.xlu0 %v2177_v41, %s4766_s16  ;;  %v4633_v45 = vpop.eup %4632 }
0x16b1   :  { %v2255_v46 = vadd.f32 1.0, %v4633_v45  ;;  %v4635_v47 = vpop.eup %4634 }
0x16b2   :  { %v2371_v48 = vadd.f32 1.0, %v4635_v47 }
0x16b3   :  { %4636 = vrcp.f32 %v2255_v46 }
0x16b4   :  { %2376 = vrot.lane.b32.xlu1 %v2293_v42, %s4766_s16  ;;  %4638 = vrcp.f32 %v2371_v48 }
0x16c0   :  { %v4637_v49 = vpop.eup %4636 }
0x16c1   :  { %v4639_v52 = vpop.eup %4638 }
0x171e   :  { %v2266_v50 = vpop.permute.xlu0 %2265 }
0x171f   :  { %v2268_v51 = vmul.f32 %v4637_v49, %v2266_v50 }
0x1721   :  { %2270 = vrot.lane.b32.xlu0 %v2268_v51, %s4766_s16 }
0x1722   :  { %v2382_v53 = vpop.permute.xlu1 %2381  ;;  %v2261_v55 = vpop.permute.xlu0 %2260 }
0x1723   :  { %v2384_v54 = vmul.f32 %v4639_v52, %v2382_v53  ;;  %v2263_v56 = vmul.f32 %v4637_v49, %v2261_v55 }
0x1725   :  { %2386 = vrot.lane.b32.xlu1 %v2384_v54, %s4766_s16 }
0x1726   :  { %v2377_v57 = vpop.permute.xlu1 %2376 }
0x1727   :  { %v2379_v61 = vmul.f32 %v4639_v52, %v2377_v57 }
0x1793   :  { %v2271_v58 = vpop.permute.xlu0 %2270 }
0x1794   :  { %v2273_v59 = vadd.f32 %v2271_v58, %v2263_v56 }
0x1796   :  { %4640 = vtanh.f32 %v2273_v59 }
0x1797   :  { %v2387_v1 = vpop.permute.xlu1 %2386 }
0x1798   :  { %v2389_v2 = vadd.f32 %v2387_v1, %v2379_v61  ;;  %v2639_v61 = vld [vmem:[#allocation6 + $0x14] sm:$0x3] }
0x179a   :  { %4642 = vtanh.f32 %v2389_v2 }
0x17a3   :  { %v4641_v4 = vpop.eup %4640 }
0x17a4   :  { %2276 = vrot.lane.b32.xlu0 %v4641_v4, %s4768_s5 }
0x17a7   :  { %v4643_v5 = vpop.eup %4642 }
0x17a8   :  { %2392 = vrot.lane.b32.xlu1 %v4643_v5, %s4768_s5  ;;  %v2755_v5 = vld [vmem:[#allocation7 + $0xa] sm:$0x3] }
0x1816   :  { %v2277_v6 = vpop.permute.xlu0 %2276 }
0x1817   :  { %v2279_v7 = vmul.f32 %v4637_v49, %v2277_v6 }
0x1819   :  { %2281 = vrot.lane.b32.xlu0 %v2279_v7, %s4769_s20 }
0x181a   :  { %v2393_v8 = vpop.permute.xlu1 %2392 }
0x181b   :  { %v2395_v9 = vmul.f32 %v4639_v52, %v2393_v8 }
0x181d   :  { %2397 = vrot.lane.b32.xlu1 %v2395_v9, %s4769_s20  ;;  %2286 = vrot.lane.b32.xlu0 %v2273_v59, %s4770_s21 }
0x1821   :  { %2402 = vrot.lane.b32.xlu1 %v2389_v2, %s4770_s21 }
0x188b   :  { %v2282_v11 = vpop.permute.xlu0 %2281 }
0x188c   :  { %2284 = vst.msk [vmem:[#allocation2] sm:$0x3] %vm71_vm0, %v2282_v11  ;;  %2290 = vst.msk [vmem:[%s5563_s8 + $0x10] sm:$0x3] %vm71_vm0, %v2282_v11 }
0x188f   :  { %v2398_v12 = vpop.permute.xlu1 %2397  ;;  %v2287_v13 = vpop.permute.xlu0 %2286 }
0x1890   :  { %2400 = vst.msk [vmem:[#allocation4] sm:$0x3] %vm71_vm0, %v2398_v12  ;;  %2406 = vst.msk [vmem:[%s5564_s9 + $0xe] sm:$0x3] %vm71_vm0, %v2398_v12 }
0x1891   :  { %2289 = vst.msk [vmem:[#allocation3] sm:$0x3] %vm71_vm0, %v2287_v13 }
0x1893   :  { %v2403_v17 = vpop.permute.xlu1 %2402  ;;  %v2408_v18 = vld [vmem:[#allocation2] sm:$0x3] }
0x1894   :  { %2405 = vst.msk [vmem:[#allocation5] sm:$0x3] %vm71_vm0, %v2403_v17  ;;  %4400 = vmatmul.mubr.msk.f32.vlgmr.msra.gmra.mxu0 %vm84_vm1, %v2408_v18 }
0x1895   :  { %4410 = vmatpush3.msra.mxu0 %v5153_v60  ;;  %4413 = vmatprep.mubr.msk.f32.mxu0 %vm4765_vm2, %v4764_v3 }
0x1896   :  { %4411 = vmatprep.subr.mxu0 %v4764_v3 }
0x1897   :  { %v2524_v19 = vld [vmem:[#allocation4] sm:$0x3]  ;;  %4412 = vmatpush3.msra.mxu0 %v5162_v62 }
0x1898   :  { %4407 = vmatmul.mubr.msk.f32.vlgmr.msra.gmra.mxu1 %vm84_vm1, %v2524_v19  ;;  %4423 = vmatprep.subr.mxu0 %v4764_v3  ;;  %v2409_v27 = vld [vmem:[#allocation3] sm:$0x3] }
0x1899   :  { %4417 = vmatpush3.msra.mxu1 %v5170_v63  ;;  %4420 = vmatprep.mubr.msk.f32.mxu1 %vm4765_vm2, %v4764_v3 }
0x189a   :  { %4418 = vmatprep.subr.mxu1 %v4764_v3 }
0x189b   :  { %4419 = vmatpush3.msra.mxu1 %v5179_v0  ;;  %v2525_v28 = vld [vmem:[#allocation5] sm:$0x3] }
0x189c   :  { %4430 = vmatprep.subr.mxu1 %v4764_v3 }
0x1954   :  { %v2479_v10 = vpop.f32.mrf.mxu0 }
0x1955   :  { %v2483_v21 = vadd.f32 %v2479_v10, %v2407_v20 }
0x1956   :  { %v4401_v22 = vpop.f32.mrf.mxu0 }
0x1957   :  { %4644 = vtanh.f32 %v2483_v21  ;;  %v4114_v16 = vmul.f32 -1.442695, %v2483_v21 }
0x1958   :  { %v2595_v14 = vpop.f32.mrf.mxu1 }
0x1959   :  { %v2599_v24 = vadd.f32 %v2595_v14, %v2523_v23 }
0x195a   :  { %v4408_v25 = vpop.f32.mrf.mxu1 }
0x195b   :  { %4646 = vtanh.f32 %v2599_v24  ;;  %v4116_v29 = vmul.f32 -1.442695, %v2599_v24 }
0x195c   :  { %4648 = vpow2.f32 %v4114_v16 }
0x195d   :  { %4650 = vpow2.f32 %v4116_v29 }
0x1964   :  { %v4645_v26 = vpop.eup %4644 }
0x1965   :  { %2497 = vrot.lane.b32.xlu0 %v4645_v26, %s4767_s4 }
0x1968   :  { %v4647_v15 = vpop.eup %4646 }
0x1969   :  { %2613 = vrot.lane.b32.xlu1 %v4647_v15, %s4767_s4  ;;  %2492 = vrot.lane.b32.xlu0 %v2409_v27, %s4766_s16  ;;  %v4649_v30 = vpop.eup %4648 }
0x196a   :  { %v2487_v31 = vadd.f32 1.0, %v4649_v30  ;;  %v4651_v32 = vpop.eup %4650 }
0x196b   :  { %v2603_v33 = vadd.f32 1.0, %v4651_v32 }
0x196c   :  { %4652 = vrcp.f32 %v2487_v31 }
0x196d   :  { %2608 = vrot.lane.b32.xlu1 %v2525_v28, %s4766_s16  ;;  %4654 = vrcp.f32 %v2603_v33 }
0x1979   :  { %v4653_v34 = vpop.eup %4652 }
0x197a   :  { %v4655_v37 = vpop.eup %4654 }
0x19d7   :  { %v2498_v35 = vpop.permute.xlu0 %2497 }
0x19d8   :  { %v2500_v36 = vmul.f32 %v4653_v34, %v2498_v35 }
0x19da   :  { %2502 = vrot.lane.b32.xlu0 %v2500_v36, %s4766_s16 }
0x19db   :  { %v2614_v38 = vpop.permute.xlu1 %2613  ;;  %v2493_v40 = vpop.permute.xlu0 %2492 }
0x19dc   :  { %v2616_v39 = vmul.f32 %v4655_v37, %v2614_v38  ;;  %v2495_v41 = vmul.f32 %v4653_v34, %v2493_v40 }
0x19de   :  { %2618 = vrot.lane.b32.xlu1 %v2616_v39, %s4766_s16 }
0x19df   :  { %v2609_v42 = vpop.permute.xlu1 %2608 }
0x19e0   :  { %v2611_v45 = vmul.f32 %v4655_v37, %v2609_v42 }
0x1a4c   :  { %v2503_v43 = vpop.permute.xlu0 %2502 }
0x1a4d   :  { %v2505_v44 = vadd.f32 %v2503_v43, %v2495_v41 }
0x1a4f   :  { %4656 = vtanh.f32 %v2505_v44 }
0x1a50   :  { %v2619_v46 = vpop.permute.xlu1 %2618 }
0x1a51   :  { %v2621_v47 = vadd.f32 %v2619_v46, %v2611_v45  ;;  %v2871_v45 = vld [vmem:[#allocation6 + $0x16] sm:$0x3] }
0x1a53   :  { %4658 = vtanh.f32 %v2621_v47 }
0x1a5c   :  { %v4657_v48 = vpop.eup %4656 }
0x1a5d   :  { %2508 = vrot.lane.b32.xlu0 %v4657_v48, %s4768_s5 }
0x1a60   :  { %v4659_v49 = vpop.eup %4658 }
0x1a61   :  { %2624 = vrot.lane.b32.xlu1 %v4659_v49, %s4768_s5  ;;  %v2987_v49 = vld [vmem:[#allocation7 + $0x8] sm:$0x3] }
0x1acf   :  { %v2509_v50 = vpop.permute.xlu0 %2508 }
0x1ad0   :  { %v2511_v51 = vmul.f32 %v4653_v34, %v2509_v50 }
0x1ad2   :  { %2513 = vrot.lane.b32.xlu0 %v2511_v51, %s4769_s20 }
0x1ad3   :  { %v2625_v52 = vpop.permute.xlu1 %2624 }
0x1ad4   :  { %v2627_v53 = vmul.f32 %v4655_v37, %v2625_v52 }
0x1ad6   :  { %2629 = vrot.lane.b32.xlu1 %v2627_v53, %s4769_s20  ;;  %2518 = vrot.lane.b32.xlu0 %v2505_v44, %s4770_s21 }
0x1ada   :  { %2634 = vrot.lane.b32.xlu1 %v2621_v47, %s4770_s21 }
0x1b44   :  { %v2514_v54 = vpop.permute.xlu0 %2513 }
0x1b45   :  { %2516 = vst.msk [vmem:[#allocation2] sm:$0x3] %vm71_vm0, %v2514_v54  ;;  %2522 = vst.msk [vmem:[%s5563_s8 + $0x12] sm:$0x3] %vm71_vm0, %v2514_v54 }
0x1b48   :  { %v2630_v55 = vpop.permute.xlu1 %2629  ;;  %v2519_v56 = vpop.permute.xlu0 %2518 }
0x1b49   :  { %2632 = vst.msk [vmem:[#allocation4] sm:$0x3] %vm71_vm0, %v2630_v55  ;;  %2638 = vst.msk [vmem:[%s5564_s9 + $0xc] sm:$0x3] %vm71_vm0, %v2630_v55 }
0x1b4a   :  { %2521 = vst.msk [vmem:[#allocation3] sm:$0x3] %vm71_vm0, %v2519_v56 }
0x1b4c   :  { %v2635_v57 = vpop.permute.xlu1 %2634  ;;  %v2640_v58 = vld [vmem:[#allocation2] sm:$0x3] }
0x1b4d   :  { %2637 = vst.msk [vmem:[#allocation5] sm:$0x3] %vm71_vm0, %v2635_v57  ;;  %4414 = vmatmul.mubr.msk.f32.vlgmr.msra.gmra.mxu0 %vm84_vm1, %v2640_v58 }
0x1b4e   :  { %4424 = vmatpush3.msra.mxu0 %v5153_v60  ;;  %4427 = vmatprep.mubr.msk.f32.mxu0 %vm4765_vm2, %v4764_v3 }
0x1b4f   :  { %4425 = vmatprep.subr.mxu0 %v4764_v3 }
0x1b50   :  { %v2756_v59 = vld [vmem:[#allocation4] sm:$0x3]  ;;  %4426 = vmatpush3.msra.mxu0 %v5162_v62 }
0x1b51   :  { %4421 = vmatmul.mubr.msk.f32.vlgmr.msra.gmra.mxu1 %vm84_vm1, %v2756_v59  ;;  %4437 = vmatprep.subr.mxu0 %v4764_v3  ;;  %v2641_v12 = vld [vmem:[#allocation3] sm:$0x3] }
0x1b52   :  { %4431 = vmatpush3.msra.mxu1 %v5170_v63  ;;  %4434 = vmatprep.mubr.msk.f32.mxu1 %vm4765_vm2, %v4764_v3 }
0x1b53   :  { %4432 = vmatprep.subr.mxu1 %v4764_v3 }
0x1b54   :  { %4433 = vmatpush3.msra.mxu1 %v5179_v0  ;;  %v2757_v13 = vld [vmem:[#allocation5] sm:$0x3] }
0x1b55   :  { %4444 = vmatprep.subr.mxu1 %v4764_v3 }
0x1c0d   :  { %v2711_v1 = vpop.f32.mrf.mxu0 }
0x1c0e   :  { %v2715_v2 = vadd.f32 %v2711_v1, %v2639_v61 }
0x1c0f   :  { %v4415_v4 = vpop.f32.mrf.mxu0 }
0x1c10   :  { %4660 = vtanh.f32 %v2715_v2  ;;  %v4118_v17 = vmul.f32 -1.442695, %v2715_v2 }
0x1c11   :  { %v2827_v6 = vpop.f32.mrf.mxu1 }
0x1c12   :  { %v2831_v7 = vadd.f32 %v2827_v6, %v2755_v5 }
0x1c13   :  { %v4422_v8 = vpop.f32.mrf.mxu1 }
0x1c14   :  { %4662 = vtanh.f32 %v2831_v7  ;;  %v4120_v18 = vmul.f32 -1.442695, %v2831_v7 }
0x1c15   :  { %4664 = vpow2.f32 %v4118_v17 }
0x1c16   :  { %4666 = vpow2.f32 %v4120_v18 }
0x1c1d   :  { %v4661_v9 = vpop.eup %4660 }
0x1c1e   :  { %2729 = vrot.lane.b32.xlu0 %v4661_v9, %s4767_s4 }
0x1c21   :  { %v4663_v11 = vpop.eup %4662 }
0x1c22   :  { %2845 = vrot.lane.b32.xlu1 %v4663_v11, %s4767_s4  ;;  %2724 = vrot.lane.b32.xlu0 %v2641_v12, %s4766_s16  ;;  %v4665_v19 = vpop.eup %4664 }
0x1c23   :  { %v2719_v20 = vadd.f32 1.0, %v4665_v19  ;;  %v4667_v10 = vpop.eup %4666 }
0x1c24   :  { %v2835_v21 = vadd.f32 1.0, %v4667_v10 }
0x1c25   :  { %4668 = vrcp.f32 %v2719_v20 }
0x1c26   :  { %2840 = vrot.lane.b32.xlu1 %v2757_v13, %s4766_s16  ;;  %4670 = vrcp.f32 %v2835_v21 }
0x1c32   :  { %v4669_v22 = vpop.eup %4668 }
0x1c33   :  { %v4671_v24 = vpop.eup %4670 }
0x1c90   :  { %v2730_v23 = vpop.permute.xlu0 %2729 }
0x1c91   :  { %v2732_v14 = vmul.f32 %v4669_v22, %v2730_v23 }
0x1c93   :  { %2734 = vrot.lane.b32.xlu0 %v2732_v14, %s4766_s16 }
0x1c94   :  { %v2846_v25 = vpop.permute.xlu1 %2845  ;;  %v2725_v15 = vpop.permute.xlu0 %2724 }
0x1c95   :  { %v2848_v26 = vmul.f32 %v4671_v24, %v2846_v25  ;;  %v2727_v27 = vmul.f32 %v4669_v22, %v2725_v15 }
0x1c97   :  { %2850 = vrot.lane.b32.xlu1 %v2848_v26, %s4766_s16 }
0x1c98   :  { %v2841_v28 = vpop.permute.xlu1 %2840 }
0x1c99   :  { %v2843_v30 = vmul.f32 %v4671_v24, %v2841_v28 }
0x1d05   :  { %v2735_v16 = vpop.permute.xlu0 %2734 }
0x1d06   :  { %v2737_v29 = vadd.f32 %v2735_v16, %v2727_v27 }
0x1d08   :  { %4672 = vtanh.f32 %v2737_v29 }
0x1d09   :  { %v2851_v31 = vpop.permute.xlu1 %2850 }
0x1d0a   :  { %v2853_v32 = vadd.f32 %v2851_v31, %v2843_v30 }
0x1d0c   :  { %4674 = vtanh.f32 %v2853_v32 }
0x1d15   :  { %v4673_v33 = vpop.eup %4672 }
0x1d16   :  { %2740 = vrot.lane.b32.xlu0 %v4673_v33, %s4768_s5 }
0x1d19   :  { %v4675_v34 = vpop.eup %4674 }
0x1d1a   :  { %2856 = vrot.lane.b32.xlu1 %v4675_v34, %s4768_s5 }
0x1d88   :  { %v2741_v35 = vpop.permute.xlu0 %2740 }
0x1d89   :  { %v2743_v36 = vmul.f32 %v4669_v22, %v2741_v35 }
0x1d8b   :  { %2745 = vrot.lane.b32.xlu0 %v2743_v36, %s4769_s20 }
0x1d8c   :  { %v2857_v37 = vpop.permute.xlu1 %2856 }
0x1d8d   :  { %v2859_v38 = vmul.f32 %v4671_v24, %v2857_v37 }
0x1d8f   :  { %2861 = vrot.lane.b32.xlu1 %v2859_v38, %s4769_s20  ;;  %2750 = vrot.lane.b32.xlu0 %v2737_v29, %s4770_s21 }
0x1d93   :  { %2866 = vrot.lane.b32.xlu1 %v2853_v32, %s4770_s21 }
0x1dfd   :  { %v2746_v39 = vpop.permute.xlu0 %2745 }
0x1dfe   :  { %2754 = vst.msk [vmem:[%s5563_s8 + $0x14] sm:$0x3] %vm71_vm0, %v2746_v39  ;;  %2748 = vst.msk [vmem:[#allocation2] sm:$0x3] %vm71_vm0, %v2746_v39 }
0x1e01   :  { %v2862_v40 = vpop.permute.xlu1 %2861  ;;  %v2751_v41 = vpop.permute.xlu0 %2750 }
0x1e02   :  { %2870 = vst.msk [vmem:[%s5564_s9 + $0xa] sm:$0x3] %vm71_vm0, %v2862_v40  ;;  %2864 = vst.msk [vmem:[#allocation4] sm:$0x3] %vm71_vm0, %v2862_v40 }
0x1e03   :  { %2753 = vst.msk [vmem:[#allocation3] sm:$0x3] %vm71_vm0, %v2751_v41 }
0x1e05   :  { %v2867_v42 = vpop.permute.xlu1 %2866  ;;  %v2872_v43 = vld [vmem:[#allocation2] sm:$0x3] }
0x1e06   :  { %2869 = vst.msk [vmem:[#allocation5] sm:$0x3] %vm71_vm0, %v2867_v42  ;;  %4428 = vmatmul.mubr.msk.f32.vlgmr.msra.gmra.mxu0 %vm84_vm1, %v2872_v43 }
0x1e07   :  { %4438 = vmatpush3.msra.mxu0 %v5153_v60  ;;  %4441 = vmatprep.mubr.msk.f32.mxu0 %vm4765_vm2, %v4764_v3 }
0x1e08   :  { %4439 = vmatprep.subr.mxu0 %v4764_v3 }
0x1e09   :  { %v2988_v44 = vld [vmem:[#allocation4] sm:$0x3]  ;;  %4440 = vmatpush3.msra.mxu0 %v5162_v62 }
0x1e0a   :  { %4435 = vmatmul.mubr.msk.f32.vlgmr.msra.gmra.mxu1 %vm84_vm1, %v2988_v44  ;;  %4451 = vmatprep.subr.mxu0 %v4764_v3  ;;  %v2873_v55 = vld [vmem:[#allocation3] sm:$0x3] }
0x1e0b   :  { %4445 = vmatpush3.msra.mxu1 %v5170_v63  ;;  %4448 = vmatprep.mubr.msk.f32.mxu1 %vm4765_vm2, %v4764_v3 }
0x1e0c   :  { %4446 = vmatprep.subr.mxu1 %v4764_v3 }
0x1e0d   :  { %4447 = vmatpush3.msra.mxu1 %v5179_v0  ;;  %v2989_v56 = vld [vmem:[#allocation5] sm:$0x3] }
0x1e0e   :  { %4458 = vmatprep.subr.mxu1 %v4764_v3 }
0x1ec6   :  { %v2943_v46 = vpop.f32.mrf.mxu0 }
0x1ec7   :  { %v2947_v47 = vadd.f32 %v2943_v46, %v2871_v45 }
0x1ec8   :  { %v4429_v48 = vpop.f32.mrf.mxu0 }
0x1ec9   :  { %4676 = vtanh.f32 %v2947_v47  ;;  %v4122_v57 = vmul.f32 -1.442695, %v2947_v47 }
0x1eca   :  { %v3059_v50 = vpop.f32.mrf.mxu1 }
0x1ecb   :  { %v3063_v51 = vadd.f32 %v3059_v50, %v2987_v49 }
0x1ecc   :  { %v4436_v52 = vpop.f32.mrf.mxu1 }
0x1ecd   :  { %4678 = vtanh.f32 %v3063_v51  ;;  %v4124_v58 = vmul.f32 -1.442695, %v3063_v51 }
0x1ece   :  { %4680 = vpow2.f32 %v4122_v57 }
0x1ecf   :  { %4682 = vpow2.f32 %v4124_v58 }
0x1ed6   :  { %v4677_v53 = vpop.eup %4676 }
0x1ed7   :  { %2961 = vrot.lane.b32.xlu0 %v4677_v53, %s4767_s4 }
0x1eda   :  { %v4679_v54 = vpop.eup %4678 }
0x1edb   :  { %3077 = vrot.lane.b32.xlu1 %v4679_v54, %s4767_s4  ;;  %2956 = vrot.lane.b32.xlu0 %v2873_v55, %s4766_s16  ;;  %v4681_v59 = vpop.eup %4680 }
0x1edc   :  { %v2951_v61 = vadd.f32 1.0, %v4681_v59  ;;  %v4683_v1 = vpop.eup %4682 }
0x1edd   :  { %v3067_v2 = vadd.f32 1.0, %v4683_v1 }
0x1ede   :  { %4684 = vrcp.f32 %v2951_v61 }
0x1edf   :  { %3072 = vrot.lane.b32.xlu1 %v2989_v56, %s4766_s16  ;;  %4686 = vrcp.f32 %v3067_v2 }
0x1eeb   :  { %v4685_v4 = vpop.eup %4684 }
0x1eec   :  { %v4687_v7 = vpop.eup %4686 }
0x1f49   :  { %v2962_v5 = vpop.permute.xlu0 %2961 }
0x1f4a   :  { %v2964_v6 = vmul.f32 %v4685_v4, %v2962_v5 }
0x1f4c   :  { %2966 = vrot.lane.b32.xlu0 %v2964_v6, %s4766_s16 }
0x1f4d   :  { %v3078_v8 = vpop.permute.xlu1 %3077  ;;  %v2957_v11 = vpop.permute.xlu0 %2956 }
0x1f4e   :  { %v3080_v9 = vmul.f32 %v4687_v7, %v3078_v8  ;;  %v2959_v12 = vmul.f32 %v4685_v4, %v2957_v11  ;;  %v5439_v11 = vld [vmem:[%s5559_s6 + $0x8] sm:$0xff] }
0x1f50   :  { %3082 = vrot.lane.b32.xlu1 %v3080_v9, %s4766_s16 }
0x1f51   :  { %v3073_v13 = vpop.permute.xlu1 %3072 }
0x1f52   :  { %v3075_v19 = vmul.f32 %v4687_v7, %v3073_v13  ;;  %v5448_v13 = vld [vmem:[%s5559_s6] sm:$0xff] }
0x1fbe   :  { %v2967_v17 = vpop.permute.xlu0 %2966 }
0x1fbf   :  { %v2969_v18 = vadd.f32 %v2967_v17, %v2959_v12  ;;  %v5456_v17 = vld [vmem:[%s5560_s7 + $0x8] sm:$0xff] }
0x1fc1   :  { %4688 = vtanh.f32 %v2969_v18 }
0x1fc2   :  { %v3083_v20 = vpop.permute.xlu1 %3082 }
0x1fc3   :  { %v3085_v10 = vadd.f32 %v3083_v20, %v3075_v19  ;;  %v3335_v19 = vld [vmem:[#allocation6 + $0x1a] sm:$0x3] }
0x1fc5   :  { %4690 = vtanh.f32 %v3085_v10 }
0x1fce   :  { %v4689_v21 = vpop.eup %4688 }
0x1fcf   :  { %2972 = vrot.lane.b32.xlu0 %v4689_v21, %s4768_s5 }
0x1fd2   :  { %v4691_v22 = vpop.eup %4690 }
0x1fd3   :  { %3088 = vrot.lane.b32.xlu1 %v4691_v22, %s4768_s5  ;;  %v3451_v22 = vld [vmem:[#allocation7 + $0x4] sm:$0x3] }
0x2041   :  { %v2973_v23 = vpop.permute.xlu0 %2972 }
0x2042   :  { %v2975_v14 = vmul.f32 %v4685_v4, %v2973_v23 }
0x2044   :  { %2977 = vrot.lane.b32.xlu0 %v2975_v14, %s4769_s20 }
0x2045   :  { %v3089_v24 = vpop.permute.xlu1 %3088 }
0x2046   :  { %v3091_v25 = vmul.f32 %v4687_v7, %v3089_v24 }
0x2048   :  { %3093 = vrot.lane.b32.xlu1 %v3091_v25, %s4769_s20  ;;  %2982 = vrot.lane.b32.xlu0 %v2969_v18, %s4770_s21  ;;  %v5465_v18 = vld [vmem:[%s5560_s7] sm:$0xff] }
0x204c   :  { %3098 = vrot.lane.b32.xlu1 %v3085_v10, %s4770_s21 }
0x20b6   :  { %v2978_v26 = vpop.permute.xlu0 %2977 }
0x20b7   :  { %2986 = vst.msk [vmem:[%s5563_s8 + $0x16] sm:$0x3] %vm71_vm0, %v2978_v26  ;;  %2980 = vst.msk [vmem:[#allocation2] sm:$0x3] %vm71_vm0, %v2978_v26 }
0x20ba   :  { %v3094_v15 = vpop.permute.xlu1 %3093  ;;  %v2983_v27 = vpop.permute.xlu0 %2982 }
0x20bb   :  { %3102 = vst.msk [vmem:[%s5564_s9 + $0x8] sm:$0x3] %vm71_vm0, %v3094_v15  ;;  %3096 = vst.msk [vmem:[#allocation4] sm:$0x3] %vm71_vm0, %v3094_v15 }
0x20bc   :  { %2985 = vst.msk [vmem:[#allocation3] sm:$0x3] %vm71_vm0, %v2983_v27 }
0x20be   :  { %v3099_v28 = vpop.permute.xlu1 %3098  ;;  %v3104_v16 = vld [vmem:[#allocation2] sm:$0x3] }
0x20bf   :  { %3101 = vst.msk [vmem:[#allocation5] sm:$0x3] %vm71_vm0, %v3099_v28  ;;  %4442 = vmatmul.mubr.msk.f32.vlgmr.msra.gmra.mxu0 %vm84_vm1, %v3104_v16 }
0x20c0   :  { %4452 = vmatpush3.msra.mxu0 %v5153_v60  ;;  %4455 = vmatprep.mubr.msk.f32.mxu0 %vm4765_vm2, %v4764_v3  ;;  %v3103_v60 = vld [vmem:[#allocation6 + $0x18] sm:$0x3] }
0x20c1   :  { %4453 = vmatprep.subr.mxu0 %v4764_v3 }
0x20c2   :  { %v3220_v29 = vld [vmem:[#allocation4] sm:$0x3]  ;;  %4454 = vmatpush3.msra.mxu0 %v5162_v62  ;;  %v3219_v62 = vld [vmem:[#allocation7 + $0x6] sm:$0x3] }
0x20c3   :  { %4449 = vmatmul.mubr.msk.f32.vlgmr.msra.gmra.mxu1 %vm84_vm1, %v3220_v29  ;;  %4465 = vmatprep.subr.mxu0 %v4764_v3  ;;  %v3105_v37 = vld [vmem:[#allocation3] sm:$0x3] }
0x20c4   :  { %4459 = vmatpush3.msra.mxu1 %v5170_v63  ;;  %4462 = vmatprep.mubr.msk.f32.mxu1 %vm4765_vm2, %v4764_v3 }
0x20c5   :  { %4460 = vmatprep.subr.mxu1 %v4764_v3 }
0x20c6   :  { %4461 = vmatpush3.msra.mxu1 %v5179_v0  ;;  %v3221_v0 = vld [vmem:[#allocation5] sm:$0x3] }
0x20c7   :  { %4472 = vmatprep.subr.mxu1 %v4764_v3 }
0x217f   :  { %v3175_v30 = vpop.f32.mrf.mxu0 }
0x2180   :  { %v3179_v31 = vadd.f32 %v3175_v30, %v3103_v60 }
0x2181   :  { %v4443_v32 = vpop.f32.mrf.mxu0 }
0x2182   :  { %4692 = vtanh.f32 %v3179_v31  ;;  %v4126_v38 = vmul.f32 -1.442695, %v3179_v31 }
0x2183   :  { %v3291_v33 = vpop.f32.mrf.mxu1 }
0x2184   :  { %v3295_v34 = vadd.f32 %v3291_v33, %v3219_v62 }
0x2185   :  { %v4450_v35 = vpop.f32.mrf.mxu1 }
0x2186   :  { %4694 = vtanh.f32 %v3295_v34  ;;  %v4128_v39 = vmul.f32 -1.442695, %v3295_v34 }
0x2187   :  { %4696 = vpow2.f32 %v4126_v38 }
0x2188   :  { %4698 = vpow2.f32 %v4128_v39 }
0x218f   :  { %v4693_v63 = vpop.eup %4692 }
0x2190   :  { %3193 = vrot.lane.b32.xlu0 %v4693_v63, %s4767_s4 }
0x2193   :  { %v4695_v36 = vpop.eup %4694 }
0x2194   :  { %3309 = vrot.lane.b32.xlu1 %v4695_v36, %s4767_s4  ;;  %3188 = vrot.lane.b32.xlu0 %v3105_v37, %s4766_s16  ;;  %v4697_v40 = vpop.eup %4696 }
0x2195   :  { %v3183_v41 = vadd.f32 1.0, %v4697_v40  ;;  %v4699_v42 = vpop.eup %4698 }
0x2196   :  { %v3299_v43 = vadd.f32 1.0, %v4699_v42 }
0x2197   :  { %4700 = vrcp.f32 %v3183_v41 }
0x2198   :  { %3304 = vrot.lane.b32.xlu1 %v3221_v0, %s4766_s16  ;;  %4702 = vrcp.f32 %v3299_v43 }
0x21a4   :  { %v4701_v44 = vpop.eup %4700 }
0x21a5   :  { %v4703_v47 = vpop.eup %4702 }
0x2202   :  { %v3194_v45 = vpop.permute.xlu0 %3193 }
0x2203   :  { %v3196_v46 = vmul.f32 %v4701_v44, %v3194_v45 }
0x2205   :  { %3198 = vrot.lane.b32.xlu0 %v3196_v46, %s4766_s16 }
0x2206   :  { %v3310_v48 = vpop.permute.xlu1 %3309  ;;  %v3189_v50 = vpop.permute.xlu0 %3188 }
0x2207   :  { %v3312_v49 = vmul.f32 %v4703_v47, %v3310_v48  ;;  %v3191_v51 = vmul.f32 %v4701_v44, %v3189_v50 }
0x2209   :  { %3314 = vrot.lane.b32.xlu1 %v3312_v49, %s4766_s16 }
0x220a   :  { %v3305_v52 = vpop.permute.xlu1 %3304 }
0x220b   :  { %v3307_v55 = vmul.f32 %v4703_v47, %v3305_v52 }
0x2277   :  { %v3199_v53 = vpop.permute.xlu0 %3198 }
0x2278   :  { %v3201_v54 = vadd.f32 %v3199_v53, %v3191_v51 }
0x227a   :  { %4704 = vtanh.f32 %v3201_v54 }
0x227b   :  { %v3315_v56 = vpop.permute.xlu1 %3314 }
0x227c   :  { %v3317_v57 = vadd.f32 %v3315_v56, %v3307_v55  ;;  %v3567_v55 = vld [vmem:[#allocation6 + $0x1c] sm:$0x3] }
0x227e   :  { %4706 = vtanh.f32 %v3317_v57 }
0x2287   :  { %v4705_v58 = vpop.eup %4704 }
0x2288   :  { %3204 = vrot.lane.b32.xlu0 %v4705_v58, %s4768_s5 }
0x228b   :  { %v4707_v59 = vpop.eup %4706 }
0x228c   :  { %3320 = vrot.lane.b32.xlu1 %v4707_v59, %s4768_s5  ;;  %v3683_v59 = vld [vmem:[#allocation7 + $0x2] sm:$0x3] }
0x22fa   :  { %v3205_v61 = vpop.permute.xlu0 %3204 }
0x22fb   :  { %v3207_v1 = vmul.f32 %v4701_v44, %v3205_v61 }
0x22fd   :  { %3209 = vrot.lane.b32.xlu0 %v3207_v1, %s4769_s20 }
0x22fe   :  { %v3321_v2 = vpop.permute.xlu1 %3320 }
0x22ff   :  { %v3323_v4 = vmul.f32 %v4703_v47, %v3321_v2 }
0x2301   :  { %3325 = vrot.lane.b32.xlu1 %v3323_v4, %s4769_s20  ;;  %3214 = vrot.lane.b32.xlu0 %v3201_v54, %s4770_s21 }
0x2305   :  { %3330 = vrot.lane.b32.xlu1 %v3317_v57, %s4770_s21 }
0x236f   :  { %v3210_v5 = vpop.permute.xlu0 %3209 }
0x2370   :  { %3218 = vst.msk [vmem:[%s5563_s8 + $0x18] sm:$0x3] %vm71_vm0, %v3210_v5  ;;  %3212 = vst.msk [vmem:[#allocation2] sm:$0x3] %vm71_vm0, %v3210_v5 }
0x2373   :  { %v3326_v6 = vpop.permute.xlu1 %3325  ;;  %v3215_v7 = vpop.permute.xlu0 %3214 }
0x2374   :  { %3334 = vst.msk [vmem:[%s5564_s9 + $0x6] sm:$0x3] %vm71_vm0, %v3326_v6  ;;  %3328 = vst.msk [vmem:[#allocation4] sm:$0x3] %vm71_vm0, %v3326_v6 }
0x2375   :  { %3217 = vst.msk [vmem:[#allocation3] sm:$0x3] %vm71_vm0, %v3215_v7 }
0x2377   :  { %v3331_v8 = vpop.permute.xlu1 %3330  ;;  %v3336_v9 = vld [vmem:[#allocation2] sm:$0x3] }
0x2378   :  { %3333 = vst.msk [vmem:[#allocation5] sm:$0x3] %vm71_vm0, %v3331_v8  ;;  %4456 = vmatmul.mubr.msk.f32.vlgmr.msra.gmra.mxu0 %vm84_vm1, %v3336_v9 }
0x2379   :  { %4466 = vmatpush3.msra.mxu0 %v5439_v11  ;;  %4469 = vmatprep.mubr.msk.f32.mxu0 %vm4765_vm2, %v4764_v3 }
0x237a   :  { %4467 = vmatprep.subr.mxu0 %v4764_v3 }
0x237b   :  { %v3452_v12 = vld [vmem:[#allocation4] sm:$0x3]  ;;  %4468 = vmatpush3.msra.mxu0 %v5448_v13 }
0x237c   :  { %4463 = vmatmul.mubr.msk.f32.vlgmr.msra.gmra.mxu1 %vm84_vm1, %v3452_v12  ;;  %4479 = vmatprep.subr.mxu0 %v4764_v3  ;;  %v3337_v15 = vld [vmem:[#allocation3] sm:$0x3] }
0x237d   :  { %4473 = vmatpush3.msra.mxu1 %v5456_v17  ;;  %4476 = vmatprep.mubr.msk.f32.mxu1 %vm4765_vm2, %v4764_v3 }
0x237e   :  { %4474 = vmatprep.subr.mxu1 %v4764_v3 }
0x237f   :  { %4475 = vmatpush3.msra.mxu1 %v5465_v18  ;;  %v3453_v27 = vld [vmem:[#allocation5] sm:$0x3] }
0x2380   :  { %4486 = vmatprep.subr.mxu1 %v4764_v3 }
0x2438   :  { %v3407_v20 = vpop.f32.mrf.mxu0 }
0x2439   :  { %v3411_v10 = vadd.f32 %v3407_v20, %v3335_v19 }
0x243a   :  { %v4457_v21 = vpop.f32.mrf.mxu0 }
0x243b   :  { %4708 = vtanh.f32 %v3411_v10  ;;  %v4130_v28 = vmul.f32 -1.442695, %v3411_v10 }
0x243c   :  { %v3523_v23 = vpop.f32.mrf.mxu1 }
0x243d   :  { %v3527_v14 = vadd.f32 %v3523_v23, %v3451_v22 }
0x243e   :  { %v4464_v24 = vpop.f32.mrf.mxu1 }
0x243f   :  { %4710 = vtanh.f32 %v3527_v14  ;;  %v4132_v16 = vmul.f32 -1.442695, %v3527_v14 }
0x2440   :  { %4712 = vpow2.f32 %v4130_v28 }
0x2441   :  { %4714 = vpow2.f32 %v4132_v16 }
0x2448   :  { %v4709_v25 = vpop.eup %4708 }
0x2449   :  { %3425 = vrot.lane.b32.xlu0 %v4709_v25, %s4767_s4 }
0x244c   :  { %v4711_v26 = vpop.eup %4710 }
0x244d   :  { %3541 = vrot.lane.b32.xlu1 %v4711_v26, %s4767_s4  ;;  %3420 = vrot.lane.b32.xlu0 %v3337_v15, %s4766_s16  ;;  %v4713_v29 = vpop.eup %4712 }
0x244e   :  { %v3415_v60 = vadd.f32 1.0, %v4713_v29  ;;  %v4715_v30 = vpop.eup %4714 }
0x244f   :  { %v3531_v31 = vadd.f32 1.0, %v4715_v30 }
0x2450   :  { %4716 = vrcp.f32 %v3415_v60 }
0x2451   :  { %3536 = vrot.lane.b32.xlu1 %v3453_v27, %s4766_s16  ;;  %4718 = vrcp.f32 %v3531_v31 }
0x245d   :  { %v4717_v32 = vpop.eup %4716 }
0x245e   :  { %v4719_v34 = vpop.eup %4718 }
0x24bb   :  { %v3426_v62 = vpop.permute.xlu0 %3425 }
0x24bc   :  { %v3428_v33 = vmul.f32 %v4717_v32, %v3426_v62 }
0x24be   :  { %3430 = vrot.lane.b32.xlu0 %v3428_v33, %s4766_s16 }
0x24bf   :  { %v3542_v35 = vpop.permute.xlu1 %3541  ;;  %v3421_v36 = vpop.permute.xlu0 %3420 }
0x24c0   :  { %v3544_v63 = vmul.f32 %v4719_v34, %v3542_v35  ;;  %v3423_v37 = vmul.f32 %v4717_v32, %v3421_v36  ;;  %v3799_v36 = vld [vmem:[#allocation6 + $0x1e] sm:$0x3] }
0x24c2   :  { %3546 = vrot.lane.b32.xlu1 %v3544_v63, %s4766_s16 }
0x24c3   :  { %v3537_v0 = vpop.permute.xlu1 %3536 }
0x24c4   :  { %v3539_v40 = vmul.f32 %v4719_v34, %v3537_v0 }
0x2530   :  { %v3431_v38 = vpop.permute.xlu0 %3430 }
0x2531   :  { %v3433_v39 = vadd.f32 %v3431_v38, %v3423_v37 }
0x2533   :  { %4720 = vtanh.f32 %v3433_v39 }
0x2534   :  { %v3547_v41 = vpop.permute.xlu1 %3546 }
0x2535   :  { %v3549_v42 = vadd.f32 %v3547_v41, %v3539_v40 }
0x2537   :  { %4722 = vtanh.f32 %v3549_v42 }
0x2540   :  { %v4721_v43 = vpop.eup %4720 }
0x2541   :  { %3436 = vrot.lane.b32.xlu0 %v4721_v43, %s4768_s5 }
0x2544   :  { %v4723_v44 = vpop.eup %4722 }
0x2545   :  { %3552 = vrot.lane.b32.xlu1 %v4723_v44, %s4768_s5 }
0x25b3   :  { %v3437_v45 = vpop.permute.xlu0 %3436 }
0x25b4   :  { %v3439_v46 = vmul.f32 %v4717_v32, %v3437_v45 }
0x25b6   :  { %3441 = vrot.lane.b32.xlu0 %v3439_v46, %s4769_s20 }
0x25b7   :  { %v3553_v47 = vpop.permute.xlu1 %3552 }
0x25b8   :  { %v3555_v48 = vmul.f32 %v4719_v34, %v3553_v47 }
0x25ba   :  { %3557 = vrot.lane.b32.xlu1 %v3555_v48, %s4769_s20  ;;  %3446 = vrot.lane.b32.xlu0 %v3433_v39, %s4770_s21  ;;  %v3915_v39 = vld [vmem:[#allocation7] sm:$0x3] }
0x25be   :  { %3562 = vrot.lane.b32.xlu1 %v3549_v42, %s4770_s21 }
0x2628   :  { %v3442_v49 = vpop.permute.xlu0 %3441 }
0x2629   :  { %3450 = vst.msk [vmem:[%s5563_s8 + $0x1a] sm:$0x3] %vm71_vm0, %v3442_v49  ;;  %3444 = vst.msk [vmem:[#allocation2] sm:$0x3] %vm71_vm0, %v3442_v49 }
0x262c   :  { %v3558_v50 = vpop.permute.xlu1 %3557  ;;  %v3447_v51 = vpop.permute.xlu0 %3446 }
0x262d   :  { %3566 = vst.msk [vmem:[%s5564_s9 + $0x4] sm:$0x3] %vm71_vm0, %v3558_v50  ;;  %3560 = vst.msk [vmem:[#allocation4] sm:$0x3] %vm71_vm0, %v3558_v50 }
0x262e   :  { %3449 = vst.msk [vmem:[#allocation3] sm:$0x3] %vm71_vm0, %v3447_v51 }
0x2630   :  { %v3563_v52 = vpop.permute.xlu1 %3562  ;;  %v3568_v53 = vld [vmem:[#allocation2] sm:$0x3] }
0x2631   :  { %3565 = vst.msk [vmem:[#allocation5] sm:$0x3] %vm71_vm0, %v3563_v52  ;;  %4470 = vmatmul.mubr.msk.f32.vlgmr.msra.gmra.mxu0 %vm84_vm1, %v3568_v53 }
0x2632   :  { %4480 = vmatpush3.msra.mxu0 %v5439_v11  ;;  %4483 = vmatprep.mubr.msk.f32.mxu0 %vm4765_vm2, %v4764_v3 }
0x2633   :  { %4481 = vmatprep.subr.mxu0 %v4764_v3 }
0x2634   :  { %v3684_v54 = vld [vmem:[#allocation4] sm:$0x3]  ;;  %4482 = vmatpush3.msra.mxu0 %v5448_v13 }
0x2635   :  { %4477 = vmatmul.mubr.msk.f32.vlgmr.msra.gmra.mxu1 %vm84_vm1, %v3684_v54  ;;  %v3569_v6 = vld [vmem:[#allocation3] sm:$0x3] }
0x2636   :  { %4487 = vmatpush3.msra.mxu1 %v5456_v17  ;;  %4490 = vmatprep.mubr.msk.f32.mxu1 %vm4765_vm2, %v4764_v3 }
0x2637   :  { %4488 = vmatprep.subr.mxu1 %v4764_v3 }
0x2638   :  { %4489 = vmatpush3.msra.mxu1 %v5465_v18  ;;  %v3685_v3 = vld [vmem:[#allocation5] sm:$0x3] }
0x26f1   :  { %v3639_v56 = vpop.f32.mrf.mxu0 }
0x26f2   :  { %v3643_v57 = vadd.f32 %v3639_v56, %v3567_v55 }
0x26f3   :  { %v4471_v58 = vpop.f32.mrf.mxu0 }
0x26f4   :  { %4724 = vtanh.f32 %v3643_v57  ;;  %v4134_v7 = vmul.f32 -1.442695, %v3643_v57 }
0x26f5   :  { %v3755_v61 = vpop.f32.mrf.mxu1 }
0x26f6   :  { %v3759_v1 = vadd.f32 %v3755_v61, %v3683_v59 }
0x26f7   :  { %v4478_v2 = vpop.f32.mrf.mxu1 }
0x26f8   :  { %4726 = vtanh.f32 %v3759_v1  ;;  %v4136_v8 = vmul.f32 -1.442695, %v3759_v1 }
0x26f9   :  { %4728 = vpow2.f32 %v4134_v7 }
0x26fa   :  { %4730 = vpow2.f32 %v4136_v8 }
0x2701   :  { %v4725_v4 = vpop.eup %4724 }
0x2702   :  { %3657 = vrot.lane.b32.xlu0 %v4725_v4, %s4767_s4 }
0x2705   :  { %v4727_v5 = vpop.eup %4726 }
0x2706   :  { %3773 = vrot.lane.b32.xlu1 %v4727_v5, %s4767_s4  ;;  %3652 = vrot.lane.b32.xlu0 %v3569_v6, %s4766_s16  ;;  %v4729_v9 = vpop.eup %4728 }
0x2707   :  { %v3647_v11 = vadd.f32 1.0, %v4729_v9  ;;  %v4731_v12 = vpop.eup %4730 }
0x2708   :  { %v3763_v13 = vadd.f32 1.0, %v4731_v12 }
0x2709   :  { %4732 = vrcp.f32 %v3647_v11 }
0x270a   :  { %3768 = vrot.lane.b32.xlu1 %v3685_v3, %s4766_s16  ;;  %4734 = vrcp.f32 %v3763_v13 }
0x2716   :  { %v4733_v17 = vpop.eup %4732 }
0x2717   :  { %v4735_v20 = vpop.eup %4734 }
0x2774   :  { %v3658_v18 = vpop.permute.xlu0 %3657 }
0x2775   :  { %v3660_v19 = vmul.f32 %v4733_v17, %v3658_v18 }
0x2777   :  { %3662 = vrot.lane.b32.xlu0 %v3660_v19, %s4766_s16 }
0x2778   :  { %v3774_v10 = vpop.permute.xlu1 %3773  ;;  %v3653_v22 = vpop.permute.xlu0 %3652 }
0x2779   :  { %v3776_v21 = vmul.f32 %v4735_v20, %v3774_v10  ;;  %v3655_v23 = vmul.f32 %v4733_v17, %v3653_v22 }
0x277b   :  { %3778 = vrot.lane.b32.xlu1 %v3776_v21, %s4766_s16 }
0x277c   :  { %v3769_v14 = vpop.permute.xlu1 %3768 }
0x277d   :  { %v3771_v26 = vmul.f32 %v4735_v20, %v3769_v14 }
0x27e9   :  { %v3663_v24 = vpop.permute.xlu0 %3662 }
0x27ea   :  { %v3665_v25 = vadd.f32 %v3663_v24, %v3655_v23 }
0x27ec   :  { %4736 = vtanh.f32 %v3665_v25 }
0x27ed   :  { %v3779_v15 = vpop.permute.xlu1 %3778 }
0x27ee   :  { %v3781_v27 = vadd.f32 %v3779_v15, %v3771_v26 }
0x27f0   :  { %4738 = vtanh.f32 %v3781_v27 }
0x27f9   :  { %v4737_v28 = vpop.eup %4736 }
0x27fa   :  { %3668 = vrot.lane.b32.xlu0 %v4737_v28, %s4768_s5 }
0x27fd   :  { %v4739_v16 = vpop.eup %4738 }
0x27fe   :  { %3784 = vrot.lane.b32.xlu1 %v4739_v16, %s4768_s5 }
0x286c   :  { %v3669_v29 = vpop.permute.xlu0 %3668 }
0x286d   :  { %v3671_v60 = vmul.f32 %v4733_v17, %v3669_v29 }
0x286f   :  { %3673 = vrot.lane.b32.xlu0 %v3671_v60, %s4769_s20 }
0x2870   :  { %v3785_v30 = vpop.permute.xlu1 %3784 }
0x2871   :  { %v3787_v31 = vmul.f32 %v4735_v20, %v3785_v30 }
0x2873   :  { %3789 = vrot.lane.b32.xlu1 %v3787_v31, %s4769_s20  ;;  %3678 = vrot.lane.b32.xlu0 %v3665_v25, %s4770_s21 }
0x2877   :  { %3794 = vrot.lane.b32.xlu1 %v3781_v27, %s4770_s21 }
0x28e1   :  { %v3674_v32 = vpop.permute.xlu0 %3673 }
0x28e2   :  { %3682 = vst.msk [vmem:[%s5563_s8 + $0x1c] sm:$0x3] %vm71_vm0, %v3674_v32  ;;  %3676 = vst.msk [vmem:[#allocation2] sm:$0x3] %vm71_vm0, %v3674_v32 }
0x28e5   :  { %v3790_v62 = vpop.permute.xlu1 %3789  ;;  %v3679_v33 = vpop.permute.xlu0 %3678 }
0x28e6   :  { %3798 = vst.msk [vmem:[%s5564_s9 + $0x2] sm:$0x3] %vm71_vm0, %v3790_v62  ;;  %3792 = vst.msk [vmem:[#allocation4] sm:$0x3] %vm71_vm0, %v3790_v62 }
0x28e7   :  { %3681 = vst.msk [vmem:[#allocation3] sm:$0x3] %vm71_vm0, %v3679_v33 }
0x28e9   :  { %v3795_v34 = vpop.permute.xlu1 %3794  ;;  %v3800_v35 = vld [vmem:[#allocation2] sm:$0x3] }
0x28ea   :  { %3797 = vst.msk [vmem:[#allocation5] sm:$0x3] %vm71_vm0, %v3795_v34  ;;  %4484 = vmatmul.mubr.msk.f32.vlgmr.msra.gmra.mxu0 %vm84_vm1, %v3800_v35 }
0x28ed   :  { %v3916_v63 = vld [vmem:[#allocation4] sm:$0x3] }
0x28ee   :  { %4491 = vmatmul.mubr.msk.f32.vlgmr.msra.gmra.mxu1 %vm84_vm1, %v3916_v63  ;;  %v3801_v45 = vld [vmem:[#allocation3] sm:$0x3] }
0x28f1   :  { %v3917_v46 = vld [vmem:[#allocation5] sm:$0x3] }
0x29aa   :  { %v3871_v37 = vpop.f32.mrf.mxu0 }
0x29ab   :  { %v3875_v0 = vadd.f32 %v3871_v37, %v3799_v36 }
0x29ac   :  { %v4485_v38 = vpop.f32.mrf.mxu0 }
0x29ad   :  { %4740 = vtanh.f32 %v3875_v0  ;;  %v4138_v47 = vmul.f32 -1.442695, %v3875_v0 }
0x29ae   :  { %v3987_v40 = vpop.f32.mrf.mxu1 }
0x29af   :  { %v3991_v41 = vadd.f32 %v3987_v40, %v3915_v39 }
0x29b0   :  { %v4492_v42 = vpop.f32.mrf.mxu1 }
0x29b1   :  { %4742 = vtanh.f32 %v3991_v41  ;;  %v4140_v48 = vmul.f32 -1.442695, %v3991_v41 }
0x29b2   :  { %4744 = vpow2.f32 %v4138_v47 }
0x29b3   :  { %4746 = vpow2.f32 %v4140_v48 }
0x29ba   :  { %v4741_v43 = vpop.eup %4740 }
0x29bb   :  { %3889 = vrot.lane.b32.xlu0 %v4741_v43, %s4767_s4 }
0x29be   :  { %v4743_v44 = vpop.eup %4742 }
0x29bf   :  { %4005 = vrot.lane.b32.xlu1 %v4743_v44, %s4767_s4  ;;  %3884 = vrot.lane.b32.xlu0 %v3801_v45, %s4766_s16  ;;  %v4745_v49 = vpop.eup %4744 }
0x29c0   :  { %v3879_v50 = vadd.f32 1.0, %v4745_v49  ;;  %v4747_v51 = vpop.eup %4746 }
0x29c1   :  { %v3995_v52 = vadd.f32 1.0, %v4747_v51 }
0x29c2   :  { %4748 = vrcp.f32 %v3879_v50 }
0x29c3   :  { %4000 = vrot.lane.b32.xlu1 %v3917_v46, %s4766_s16  ;;  %4750 = vrcp.f32 %v3995_v52 }
0x29cf   :  { %v4749_v53 = vpop.eup %4748 }
0x29d0   :  { %v4751_v56 = vpop.eup %4750 }
0x2a2d   :  { %v3890_v54 = vpop.permute.xlu0 %3889 }
0x2a2e   :  { %v3892_v55 = vmul.f32 %v4749_v53, %v3890_v54 }
0x2a30   :  { %3894 = vrot.lane.b32.xlu0 %v3892_v55, %s4766_s16 }
0x2a31   :  { %v4006_v57 = vpop.permute.xlu1 %4005  ;;  %v3885_v59 = vpop.permute.xlu0 %3884 }
0x2a32   :  { %v4008_v58 = vmul.f32 %v4751_v56, %v4006_v57  ;;  %v3887_v61 = vmul.f32 %v4749_v53, %v3885_v59 }
0x2a34   :  { %4010 = vrot.lane.b32.xlu1 %v4008_v58, %s4766_s16 }
0x2a35   :  { %v4001_v1 = vpop.permute.xlu1 %4000 }
0x2a36   :  { %v4003_v5 = vmul.f32 %v4751_v56, %v4001_v1 }
0x2aa2   :  { %v3895_v2 = vpop.permute.xlu0 %3894 }
0x2aa3   :  { %v3897_v4 = vadd.f32 %v3895_v2, %v3887_v61 }
0x2aa5   :  { %4752 = vtanh.f32 %v3897_v4 }
0x2aa6   :  { %v4011_v6 = vpop.permute.xlu1 %4010 }
0x2aa7   :  { %v4013_v3 = vadd.f32 %v4011_v6, %v4003_v5 }
0x2aa9   :  { %4754 = vtanh.f32 %v4013_v3 }
0x2ab2   :  { %v4753_v7 = vpop.eup %4752 }
0x2ab3   :  { %3900 = vrot.lane.b32.xlu0 %v4753_v7, %s4768_s5 }
0x2ab6   :  { %v4755_v8 = vpop.eup %4754 }
0x2ab7   :  { %4016 = vrot.lane.b32.xlu1 %v4755_v8, %s4768_s5 }
0x2abb   :  { %3910 = vrot.lane.b32.xlu1 %v3897_v4, %s4770_s21 }
0x2abf   :  { %4026 = vrot.lane.b32.xlu1 %v4013_v3, %s4770_s21 }
0x2b25   :  { %v3901_v9 = vpop.permute.xlu0 %3900 }
0x2b26   :  { %v3903_v11 = vmul.f32 %v4749_v53, %v3901_v9 }
0x2b28   :  { %3905 = vrot.lane.b32.xlu0 %v3903_v11, %s4769_s20 }
0x2b29   :  { %v4017_v12 = vpop.permute.xlu1 %4016 }
0x2b2a   :  { %v4019_v13 = vmul.f32 %v4751_v56, %v4017_v12 }
0x2b2c   :  { %4021 = vrot.lane.b32.xlu0 %v4019_v13, %s4769_s20 }
0x2b2d   :  { %v3911_v17 = vpop.permute.xlu1 %3910 }
0x2b2e   :  { %3913 = vst.msk [vmem:[#allocation3] sm:$0x3] %vm71_vm0, %v3911_v17 }
0x2b31   :  { %v4027_v18 = vpop.permute.xlu1 %4026 }
0x2b32   :  { %4029 = vst.msk [vmem:[#allocation5] sm:$0x3] %vm71_vm0, %v4027_v18 }
0x2b9a   :  { %v3906_v19 = vpop.permute.xlu0 %3905 }
0x2b9b   :  { %3908 = vst.msk [vmem:[#allocation2] sm:$0x3] %vm71_vm0, %v3906_v19  ;;  %3914 = vst.msk [vmem:[%s5563_s8 + $0x1e] sm:$0x3] %vm71_vm0, %v3906_v19 }
0x2b9e   :  { %v4022_v20 = vpop.permute.xlu0 %4021 }
0x2b9f   :  { %4024 = vst.msk [vmem:[#allocation4] sm:$0x3] %vm71_vm0, %v4022_v20  ;;  %4030 = vst.msk [vmem:[%s5564_s9] sm:$0x3] %vm71_vm0, %v4022_v20 }

</bundles_post_ra>
